<compile_context>
chip_gen: v6e
topology: v6e:2x2x1
jax: 0.10.0
libtpu: 0.0.40
codegen_flags: <defaults>
</compile_context>

<pallas_src>
import jax
import jax.numpy as jnp
from jax.experimental import pallas as pl
from jax.experimental.pallas import tpu as pltpu

IN_C, OUT_C = 3, 32
KH = KW = 7
H = W = 32                         # input spatial size implied by fc_input_size
OH = OW = H - KH + 1               # 26  (conv_output_size)
PH = PW = (OH - 2) // 2 + 1        # 13  (max_output_size)
NPIX = PH * PW                     # 169 pooled positions per image
QPAD = ((NPIX + 7) // 8) * 8       # 176 (8-sublane multiple) per quadrant block
K_FEAT = KH * KW * IN_C            # 147 im2col features
K_FEAT1 = K_FEAT + 1               # 148: +1 constant-one column carrying conv bias
FC_IN = NPIX * OUT_C               # 5408 (torch fc_input_size)
FC_IN_PAD = QPAD * OUT_C           # 5632 (pad rows are zero; weight rows zeroed)
FC_OUT = 10
LANE_OUT = 128                     # lane-dense logits block; wrapper slices [:, :10]
BLK_N = 8                          # images per grid step (sublane-aligned)


def _cnn_kernel(p_ref, wc_ref, wf_ref, bf_ref, o_ref):
    """Fused conv + maxpool + relu + fc for a block of BLK_N images.

    p_ref:  (B, 4*QPAD, K_FEAT1) bf16  quadrant-stacked im2col patches (+ones col)
    wc_ref: (K_FEAT1, OUT_C)     bf16  conv weight with bias folded as last row
    wf_ref: (FC_IN_PAD, 128)     bf16  fc weight, (p,c)-row order, lane-padded
    bf_ref: (1, 128)             f32   fc bias, lane-padded
    o_ref:  (B, 128)             f32   logits (lane-dense; first 10 lanes valid)
    """
    b = p_ref.shape[0]
    # One conv matmul for the whole block: (B*704,148) x (148,32) -> f32.
    p = p_ref[...].reshape(b * 4 * QPAD, K_FEAT1)            # leading-dim merge: free
    conv = jnp.dot(p, wc_ref[...], preferred_element_type=jnp.float32)
    conv = conv.reshape(b, 4 * QPAD, OUT_C)                  # leading-dim split: free

    # 2x2/2 max-pool == elementwise max of the four quadrant row blocks
    # (each starts at an 8-aligned sublane offset; pad rows are all-zero).
    q0 = conv[:, 0 * QPAD:1 * QPAD, :]
    q1 = conv[:, 1 * QPAD:2 * QPAD, :]
    q2 = conv[:, 2 * QPAD:3 * QPAD, :]
    q3 = conv[:, 3 * QPAD:4 * QPAD, :]
    pooled = jnp.maximum(jnp.maximum(q0, q1), jnp.maximum(q2, q3))   # (B,176,32)

    # ReLU (bias already inside conv via the ones column; max/relu commute).
    pooled = jnp.maximum(pooled, 0.0)

    # Fused FC on the bf16 MXU path.  The flatten below is the one remaining
    # relayout (done on bf16); the weight is pre-oriented so no transpose.
    flat = pooled.astype(jnp.bfloat16).reshape(b, FC_IN_PAD)          # (B, 5632)
    logits = jnp.dot(flat, wf_ref[...], preferred_element_type=jnp.float32)
    o_ref[...] = logits + bf_ref[...]                                 # (B, 128)


def _quadrant_patches(x_nhwc):
    """(N,H,W,C) bf16 -> (N, 4*QPAD, K_FEAT1) quadrant-stacked im2col patches.

    Row q*QPAD + (ph*PW + pw) holds the 7x7x3 patch at conv position
    (2*ph+dh, 2*pw+dw) for quadrant q=(dh,dw), plus a trailing 1.0 (bias hook).
    Built directly from strided slices of x (no intermediate (N,26,26,147)
    im2col tensor).  Pad rows 169..175 of each quadrant are all-zero.
    """
    n = x_nhwc.shape[0]
    ones = jnp.ones((n, PH, PW, 1), jnp.bfloat16)
    quads = []
    for dh in range(2):
        for dw in range(2):
            cols = []
            for i in range(KH):
                for j in range(KW):
                    cols.append(x_nhwc[:, dh + i: dh + i + 2 * PH - 1: 2,
                                        dw + j: dw + j + 2 * PW - 1: 2, :])
            cols.append(ones)
            q = jnp.concatenate(cols, axis=-1).reshape(n, NPIX, K_FEAT1)
            q = jnp.pad(q, ((0, 0), (0, QPAD - NPIX), (0, 0)))
            quads.append(q)
    return jnp.concatenate(quads, axis=1)                    # (N, 704, 148)


@jax.jit
def vanilla_cnn_forward(x_nchw, w_conv, b_conv, w_fc, b_fc):
    n = x_nchw.shape[0]
    n_pad = ((n + BLK_N - 1) // BLK_N) * BLK_N

    # ---- layout glue (plain JAX, traced under the same jit) ----
    x_nhwc = jnp.transpose(x_nchw, (0, 2, 3, 1)).astype(jnp.bfloat16)
    patches = _quadrant_patches(x_nhwc)                       # (N, 704, 148) bf16
    if n_pad != n:
        patches = jnp.pad(patches, ((0, n_pad - n), (0, 0), (0, 0)))

    # conv weight as matmul operand, bias folded as the last (ones) feature row
    w_mat = jnp.transpose(w_conv, (2, 3, 1, 0)).reshape(K_FEAT, OUT_C)
    wc = jnp.concatenate([w_mat, b_conv.reshape(1, OUT_C)],
                         axis=0).astype(jnp.bfloat16)          # (148, 32)

    # fc weight: torch flatten order is (c, ph, pw); kernel flat order is (p, c).
    # Pad positions 169..175 and lanes 10..127 with zeros; keep lane-dense rhs.
    wf = jnp.transpose(w_fc.reshape(FC_OUT, OUT_C, PH, PW), (2, 3, 1, 0))
    wf = wf.reshape(NPIX, OUT_C, FC_OUT)
    wf = jnp.pad(wf, ((0, QPAD - NPIX), (0, 0), (0, LANE_OUT - FC_OUT)))
    wf = wf.reshape(FC_IN_PAD, LANE_OUT).astype(jnp.bfloat16)  # (5632, 128)

    bf = jnp.pad(b_fc, (0, LANE_OUT - FC_OUT)).reshape(1, LANE_OUT)
    bf = bf.astype(jnp.float32)

    out = pl.pallas_call(
        _cnn_kernel,
        out_shape=jax.ShapeDtypeStruct((n_pad, LANE_OUT), jnp.float32),
        grid=(n_pad // BLK_N,),
        in_specs=[
            pl.BlockSpec((BLK_N, 4 * QPAD, K_FEAT1), lambda g: (g, 0, 0)),
            pl.BlockSpec((K_FEAT1, OUT_C), lambda g: (0, 0)),        # resident
            pl.BlockSpec((FC_IN_PAD, LANE_OUT), lambda g: (0, 0)),   # resident
            pl.BlockSpec((1, LANE_OUT), lambda g: (0, 0)),           # resident
        ],
        out_specs=pl.BlockSpec((BLK_N, LANE_OUT), lambda g: (g, 0)),
        compiler_params=pltpu.CompilerParams(
            dimension_semantics=("parallel",),
            vmem_limit_bytes=32 * 1024 * 1024),
    )(patches, wc, wf, bf)
    return out[:n, :FC_OUT]


if __name__ == "__main__":
    key = jax.random.PRNGKey(0)
    k_x, k_wc, k_bc, k_wf, k_bf = jax.random.split(key, 5)

    N = 16  # two grid steps of BLK_N=8 -> keeps both v7x TensorCores busy
    x = jax.random.normal(k_x, (N, IN_C, H, W), dtype=jnp.float32)
    w_conv = jax.random.normal(k_wc, (OUT_C, IN_C, KH, KW), jnp.float32) * 0.05
    b_conv = jax.random.normal(k_bc, (OUT_C,), jnp.float32) * 0.05
    w_fc = jax.random.normal(k_wf, (FC_OUT, FC_IN), jnp.float32) * 0.02
    b_fc = jax.random.normal(k_bf, (FC_OUT,), jnp.float32) * 0.02

    out = jax.block_until_ready(vanilla_cnn_forward(x, w_conv, b_conv, w_fc, b_fc))

    # pure-JAX reference with PyTorch NCHW semantics
    conv = jax.lax.conv_general_dilated(
        x, w_conv, window_strides=(1, 1), padding="VALID",
        dimension_numbers=("NCHW", "OIHW", "NCHW"),
        precision=jax.lax.Precision.HIGHEST)
    conv = jnp.maximum(conv + b_conv[None, :, None, None], 0.0)
    pooled_ref = jax.lax.reduce_window(conv, -jnp.inf, jax.lax.max,
                                       (1, 1, 2, 2), (1, 1, 2, 2), "VALID")
    ref = pooled_ref.reshape(N, -1) @ w_fc.T + b_fc

    assert out.shape == (N, FC_OUT)
    assert jnp.allclose(out, ref, rtol=2e-2, atol=2e-2), (
        float(jnp.max(jnp.abs(out - ref))))
    print("KERNEL_OK")
</pallas_src>

<mosaic_0001>
module attributes {stable_mosaic.version = 11 : i64} {
  func.func @_cnn_kernel(%arg0: i32, %arg1: memref<8x704x148xbf16, #tpu.memory_space<vmem>>, %arg2: memref<148x32xbf16, #tpu.memory_space<vmem>>, %arg3: memref<5632x128xbf16, #tpu.memory_space<vmem>>, %arg4: memref<1x128xf32, #tpu.memory_space<vmem>>, %arg5: memref<8x128xf32, #tpu.memory_space<vmem>>) attributes {dimension_semantics = [#tpu.dimension_semantics<parallel>], iteration_bounds = array<i64: 2>, scalar_prefetch = 0 : i64, scratch_operands = 0 : i64, tpu.core_type = #tpu.core_type<tc>, window_params = [{transform_indices = @transform_0, window_bounds = array<i64: 8, 704, 148>}, {pipeline_mode = #tpu.pipeline_mode<synchronous>, transform_indices = @transform_1, window_bounds = array<i64: 148, 32>}, {pipeline_mode = #tpu.pipeline_mode<synchronous>, transform_indices = @transform_2, window_bounds = array<i64: 5632, 128>}, {pipeline_mode = #tpu.pipeline_mode<synchronous>, transform_indices = @transform_3, window_bounds = array<i64: 1, 128>}, {transform_indices = @transform_4, window_bounds = array<i64: 8, 128>}]} {
    %c0 = arith.constant 0 : index
    %c0_0 = arith.constant 0 : index
    %c0_1 = arith.constant 0 : index
    %0 = vector.load %arg1[%c0, %c0_0, %c0_1] : memref<8x704x148xbf16, #tpu.memory_space<vmem>>, vector<8x704x148xbf16>
    %1 = vector.shape_cast %0 : vector<8x704x148xbf16> to vector<5632x148xbf16>
    %c0_2 = arith.constant 0 : index
    %c0_3 = arith.constant 0 : index
    %2 = vector.load %arg2[%c0_2, %c0_3] : memref<148x32xbf16, #tpu.memory_space<vmem>>, vector<148x32xbf16>
    %cst = arith.constant dense<0.000000e+00> : vector<5632x32xf32>
    %3 = tpu.matmul %1, %2, %cst {dimension_numbers = #tpu.dot_dimension_numbers<[1], [0], [0], [1], [0, 0, 1, 1], [], []>} : vector<5632x148xbf16>, vector<148x32xbf16>, vector<5632x32xf32> -> vector<5632x32xf32>
    %4 = vector.shape_cast %3 : vector<5632x32xf32> to vector<8x704x32xf32>
    %5 = vector.extract_strided_slice %4 {offsets = [0, 0, 0], sizes = [8, 176, 32], strides = [1, 1, 1]} : vector<8x704x32xf32> to vector<8x176x32xf32>
    %6 = vector.extract_strided_slice %4 {offsets = [0, 176, 0], sizes = [8, 176, 32], strides = [1, 1, 1]} : vector<8x704x32xf32> to vector<8x176x32xf32>
    %7 = vector.extract_strided_slice %4 {offsets = [0, 352, 0], sizes = [8, 176, 32], strides = [1, 1, 1]} : vector<8x704x32xf32> to vector<8x176x32xf32>
    %8 = vector.extract_strided_slice %4 {offsets = [0, 528, 0], sizes = [8, 176, 32], strides = [1, 1, 1]} : vector<8x704x32xf32> to vector<8x176x32xf32>
    %9 = arith.maximumf %5, %6 : vector<8x176x32xf32>
    %10 = arith.maximumf %7, %8 : vector<8x176x32xf32>
    %11 = arith.maximumf %9, %10 : vector<8x176x32xf32>
    %cst_4 = arith.constant 0.000000e+00 : f32
    %12 = vector.broadcast %cst_4 : f32 to vector<8x176x32xf32>
    %13 = arith.maximumf %11, %12 : vector<8x176x32xf32>
    %14 = arith.truncf %13 : vector<8x176x32xf32> to vector<8x176x32xbf16>
    %15 = vector.shape_cast %14 : vector<8x176x32xbf16> to vector<8x5632xbf16>
    %c0_5 = arith.constant 0 : index
    %c0_6 = arith.constant 0 : index
    %16 = vector.load %arg3[%c0_5, %c0_6] : memref<5632x128xbf16, #tpu.memory_space<vmem>>, vector<5632x128xbf16>
    %cst_7 = arith.constant dense<0.000000e+00> : vector<8x128xf32>
    %17 = tpu.matmul %15, %16, %cst_7 {dimension_numbers = #tpu.dot_dimension_numbers<[1], [0], [0], [1], [0, 0, 1, 1], [], []>} : vector<8x5632xbf16>, vector<5632x128xbf16>, vector<8x128xf32> -> vector<8x128xf32>
    %c0_8 = arith.constant 0 : index
    %c0_9 = arith.constant 0 : index
    %18 = vector.load %arg4[%c0_8, %c0_9] : memref<1x128xf32, #tpu.memory_space<vmem>>, vector<1x128xf32>
    %19 = vector.broadcast %18 : vector<1x128xf32> to vector<8x128xf32>
    %20 = arith.addf %17, %19 : vector<8x128xf32>
    %c0_10 = arith.constant 0 : index
    %c0_11 = arith.constant 0 : index
    %21 = vector.load %arg5[%c0_10, %c0_11] : memref<8x128xf32, #tpu.memory_space<vmem>>, vector<8x128xf32>
    tpu.vector_store %arg5[%c0_10, %c0_11], %20 {strides = array<i32>} : memref<8x128xf32, #tpu.memory_space<vmem>>, vector<8x128xf32>,
    return
  }
  func.func @transform_0(%arg0: i32) -> (i32, i32, i32) {
    %c0_i32 = arith.constant 0 : i32
    %c0_i32_0 = arith.constant 0 : i32
    %c0_i32_1 = arith.constant 0 : i32
    return %arg0, %c0_i32, %c0_i32_0 : i32, i32, i32
  }
  func.func @transform_1(%arg0: i32) -> (i32, i32) {
    %c0_i32 = arith.constant 0 : i32
    %c0_i32_0 = arith.constant 0 : i32
    %c0_i32_1 = arith.constant 0 : i32
    return %c0_i32, %c0_i32_0 : i32, i32
  }
  func.func @transform_2(%arg0: i32) -> (i32, i32) {
    %c0_i32 = arith.constant 0 : i32
    %c0_i32_0 = arith.constant 0 : i32
    %c0_i32_1 = arith.constant 0 : i32
    return %c0_i32, %c0_i32_0 : i32, i32
  }
  func.func @transform_3(%arg0: i32) -> (i32, i32) {
    %c0_i32 = arith.constant 0 : i32
    %c0_i32_0 = arith.constant 0 : i32
    %c0_i32_1 = arith.constant 0 : i32
    return %c0_i32, %c0_i32_0 : i32, i32
  }
  func.func @transform_4(%arg0: i32) -> (i32, i32) {
    %c0_i32 = arith.constant 0 : i32
    %c0_i32_0 = arith.constant 0 : i32
    return %arg0, %c0_i32 : i32, i32
  }
}

</mosaic_0001>

<bundles_post_ra>
// kernel: vanilla_cnn_forward.1
= control target key start
LH: loop header
LB: loop body
LE: loop exit
PB: predicated region body
PF: predicated region fallthrough
CT: control target
= control target key end

     0   :  { %9 = vsyncpa [#allocation3], 0  ;;  %s24544_s0 = inlined_call_operand.vmem [shape: bf16[16,704,148], index: 0, kind: input, shape index: {}]   ;;  %s24545_s1 = inlined_call_operand.vmem [shape: bf16[148,32], index: 1, kind: input, shape index: {}]   ;;  %s24546_s2 = inlined_call_operand.vmem [shape: bf16[5632,128], index: 2, kind: input, shape index: {}]   ;;  %s24547_s3 = inlined_call_operand.vmem [shape: f32[1,128], index: 3, kind: input, shape index: {}]   ;;  %s24548_s4 = inlined_call_operand.hbm [shape: f32[16,128], index: 4, kind: output, shape index: {}]  }
   0x1   :  { %11 = vsyncpa [#allocation3 + $0x1], 0  ;;  %s18720_s15 = smov 0   ;;  %s18722_s16 = smov 0  }
   0x2   :  { %s18724_s17 = smov 0   ;;  %s18726_s18 = smov 0  }
   0x3 LB: > { %s18741_s19 = sadd.s32 4294967295, %s18686_s18   ;;  %s15228_s20 = sadd.s32 4294967294, %s18686_s18   ;;  %s18686_s18 = sphi %s18726_s18, %s25712_s18   ;;  %s18682_s17 = sphi %s18724_s17, %s25711_s17   ;;  %s18678_s16 = sphi %s18722_s16, %s25710_s16   ;;  %s18674_s15 = sphi %s18720_s15, %s25709_s15  }
   0x4   : > { %s18745_s21 = sadd.s32 1, %s18686_s18   ;;  %s113_s22 = sadd.s32 1, %s18682_s17 }
   0x5   : > { %s110_s23 = ssub.s32 %s18686_s18, %s18745_s21  ;;  %p123_p0 = scmp.ne.s32.totalorder %s18682_s17, %s18678_s16 }
   0x6   : > { %p111_p1 = scmp.eq.s32.totalorder %s110_s23, 0  ;;  %p124_p2 = scmp.eq.s32.totalorder %s18741_s19, 1 }
   0x7   : > { %p129_p3 = scmp.ne.s32.totalorder %s18678_s16, %s18674_s15  ;;  %p130_p4 = scmp.eq.s32.totalorder %s15228_s20, 1 }
   0x8   : > { %s18756_s24 = scalar_select %p111_p1, %s18682_s17, %s113_s22  }
   0x9   : > { %p18758_p5 = por %p124_p2, %p123_p0  ;;  %p18762_p6 = por %p130_p4, %p129_p3 }
   0xa   : > { %p15231_p7 = scmp.ge.s32.totalorder %s18686_s18, 1  ;;  %p167_p8 = scmp.lt.s32.totalorder %s18686_s18, 3 }
   0xc   : > { %p168_p9 = pnand %p15231_p7, %p167_p8 }
   0xe   : > { %171 = sbr.rel (%p168_p9) target bundleno = 2959 (0xb8f), region = 36 }
  0x13   : > { %v17208_v0 = vld [vmem:[%s24545_s1 + $0x38] sm:$0xff]   ;;  %v24549_v1 = vmov 0   ;;  %v17209_v2 = vld [vmem:[%s24545_s1 + $0x30] sm:$0xff]   ;;  %s15233_s5 = sshll.u32 %s18741_s19, 3  ;;  %v17210_v3 = vld [vmem:[%s24545_s1 + $0x28] sm:$0xff]   ;;  %vm4150_vm0 = vcmask 162816  }
  0x14   : > { %5211 = vmatprep.subr.bf16.mxu0 %v24549_v1  ;;  %17142 = vmatprep.subr.bf16.mxu1 %v24549_v1  ;;  %p195_p10 = scmp.lt.s32.totalorder %s15233_s5, 15  ;;  %v17211_v4 = vld [vmem:[%s24545_s1 + $0x20] sm:$0xff]   ;;  %v17212_v6 = vld [vmem:[%s24545_s1 + $0x18] sm:$0xff]   ;;  %v17213_v7 = vld [vmem:[%s24545_s1 + $0x10] sm:$0xff]   ;;  %vm5207_vm1 = vcmask 1041408   ;;  %s18691_s10 = smov 32  }
  0x15   : > { %5212 = vmatpush1.bf16.msra.mxu0 %v17208_v0  ;;  %17152 = vmatpush1.bf16.msra.mxu1 %v17208_v0  ;;  %v17214_v8 = vld [vmem:[%s24545_s1 + $0x8] sm:$0xff]   ;;  %v17215_v10 = vld [vmem:[%s24545_s1] sm:$0xff]   ;;  %s18692_s12 = smov 64   ;;  %s18693_s13 = smov 96   ;;  %vm11096_vm2 = vcmask 261120   ;;  %vm11100_vm3 = vcmask 523264  }
  0x16   : > { %5213 = vmatprep.subr.bf16.mxu0 %v24549_v1  ;;  %17143 = vmatprep.subr.bf16.mxu1 %v24549_v1  ;;  %s25714_s5 = smov (!%p195_p10, %s15233_s5), 15  ;;  %v17216_v11 = vld [vmem:[%s24545_s1 + $0x48] ss:$0 sps:$4 sm:$0x33]   ;;  %v17217_v13 = vld [vmem:[%s24545_s1 + $0x40] sm:$0xff]   ;;  %vm11103_vm4 = vcmask 785408  }
  0x17   : > { %s17162_s8 = smul.u32 704, %s25714_s5  ;;  %v5209_v12 = vsel %vm5207_vm1, %v17216_v11, 0  ;;  %s191_s23 = sand.u32 1, %s18678_s16  }
  0x18   : > { %s15232_s27 = sshll.u32 %s191_s23, 3  ;;  %s16655_s28 = sshll.u32 %s18741_s19, 7 }
  0x19   : > { %5214 = vmatpush1.bf16.msra.mxu0 %v17209_v2  ;;  %17153 = vmatpush1.bf16.msra.mxu1 %v17209_v2  ;;  %s18787_s11 = scalar_lea.vmem %s24544_s0, %s17162_s8  ;;  %s24509_s6 = scalar_lea.hbm %s24548_s4, %s16655_s28 }
  0x1a   : > { %5215 = vmatprep.subr.bf16.mxu0 %v24549_v1  ;;  %17144 = vmatprep.subr.bf16.mxu1 %v24549_v1  ;;  %v17220_v5 = vld [vmem:[%s18787_s11 + $0x4] ss:$8 sps:$4 sm:$0xff]   ;;  %v17250_v9 = vld [vmem:[%s18787_s11 + $0xdb4] ss:$8 sps:$4 sm:$0xff]   ;;  %v17218_v14 = vld [vmem:[%s18787_s11] ss:$8 sps:$4 sm:$0xff]  }
  0x1b   : > { %15949 = vmatprep.mubr.msk.bf16.mxu0 %vm4150_vm0, %v17220_v5  ;;  %16168 = vmatprep.mubr.msk.bf16.mxu1 %vm4150_vm0, %v17250_v9  ;;  %v17221_v15 = vld [vmem:[%s18787_s11 + $0x14] ss:$8 sps:$4 sm:$0xff]   ;;  %v17248_v16 = vld [vmem:[%s18787_s11 + $0xdb0] ss:$8 sps:$4 sm:$0xff]   ;;  %v17254_v17 = vld [vmem:[%s18787_s11 + $0xdc4] ss:$8 sps:$4 sm:$0xff]  }
  0x1c   : > { %v17223_v18 = vld [vmem:[%s18787_s11 + $0x10] ss:$8 sps:$4 sm:$0xff]   ;;  %v17224_v19 = vld [vmem:[%s18787_s11 + $0x24] ss:$8 sps:$4 sm:$0xff]   ;;  %v17256_v20 = vld [vmem:[%s18787_s11 + $0xdc0] ss:$8 sps:$4 sm:$0xff]  }
  0x1d   : > { %5216 = vmatpush1.bf16.msra.mxu0 %v17210_v3  ;;  %17154 = vmatpush1.bf16.msra.mxu1 %v17210_v3  ;;  %v17260_v21 = vld [vmem:[%s18787_s11 + $0xdd4] ss:$8 sps:$4 sm:$0xff]   ;;  %v17226_v22 = vld [vmem:[%s18787_s11 + $0x20] ss:$8 sps:$4 sm:$0xff]   ;;  %v17262_v23 = vld [vmem:[%s18787_s11 + $0xdd0] ss:$8 sps:$4 sm:$0xff]  }
  0x1e   : > { %5217 = vmatprep.subr.bf16.mxu0 %v24549_v1  ;;  %17145 = vmatprep.subr.bf16.mxu1 %v24549_v1  ;;  %v17227_v24 = vld [vmem:[%s18787_s11 + $0x34] ss:$8 sps:$4 sm:$0xff]   ;;  %v17266_v25 = vld [vmem:[%s18787_s11 + $0xde4] ss:$8 sps:$4 sm:$0xff]   ;;  %v17229_v26 = vld [vmem:[%s18787_s11 + $0x30] ss:$8 sps:$4 sm:$0xff]  }
  0x1f   : > { %v17268_v27 = vld [vmem:[%s18787_s11 + $0xde0] ss:$8 sps:$4 sm:$0xff]   ;;  %v17230_v28 = vld [vmem:[%s18787_s11 + $0x44] ss:$8 sps:$4 sm:$0xff]   ;;  %v17272_v29 = vld [vmem:[%s18787_s11 + $0xdf4] ss:$8 sps:$4 sm:$0xff]  }
  0x20   : > { %v17232_v30 = vld [vmem:[%s18787_s11 + $0x40] ss:$8 sps:$4 sm:$0xff]   ;;  %v17274_v31 = vld [vmem:[%s18787_s11 + $0xdf0] ss:$8 sps:$4 sm:$0xff]   ;;  %v17233_v32 = vld [vmem:[%s18787_s11 + $0x54] ss:$8 sps:$4 sm:$0xff]  }
  0x21   : > { %5218 = vmatpush1.bf16.msra.mxu0 %v17211_v4  ;;  %17155 = vmatpush1.bf16.msra.mxu1 %v17211_v4  ;;  %v17278_v33 = vld [vmem:[%s18787_s11 + $0xe04] ss:$8 sps:$4 sm:$0xff]   ;;  %v17235_v34 = vld [vmem:[%s18787_s11 + $0x50] ss:$8 sps:$4 sm:$0xff]   ;;  %v17280_v35 = vld [vmem:[%s18787_s11 + $0xe00] ss:$8 sps:$4 sm:$0xff]  }
  0x22   : > { %5219 = vmatprep.subr.bf16.mxu0 %v24549_v1  ;;  %17146 = vmatprep.subr.bf16.mxu1 %v24549_v1  ;;  %v17236_v36 = vld [vmem:[%s18787_s11 + $0x64] ss:$8 sps:$4 sm:$0xff]   ;;  %v17284_v37 = vld [vmem:[%s18787_s11 + $0xe14] ss:$8 sps:$4 sm:$0xff]   ;;  %v17238_v38 = vld [vmem:[%s18787_s11 + $0x60] ss:$8 sps:$4 sm:$0xff]  }
  0x23   : > { %v17286_v39 = vld [vmem:[%s18787_s11 + $0xe10] ss:$8 sps:$4 sm:$0xff]   ;;  %v17239_v40 = vld [vmem:[%s18787_s11 + $0x74] ss:$8 sps:$4 sm:$0xff]   ;;  %v17290_v41 = vld [vmem:[%s18787_s11 + $0xe24] ss:$8 sps:$4 sm:$0xff]  }
  0x24   : > { %v17241_v42 = vld [vmem:[%s18787_s11 + $0x70] ss:$8 sps:$4 sm:$0xff]   ;;  %v17292_v43 = vld [vmem:[%s18787_s11 + $0xe20] ss:$8 sps:$4 sm:$0xff]   ;;  %v17242_v44 = vld [vmem:[%s18787_s11 + $0x84] ss:$8 sps:$4 sm:$0xff]  }
  0x25   : > { %5220 = vmatpush1.bf16.msra.mxu0 %v17212_v6  ;;  %17156 = vmatpush1.bf16.msra.mxu1 %v17212_v6  ;;  %v17296_v45 = vld [vmem:[%s18787_s11 + $0xe34] ss:$8 sps:$4 sm:$0xff]   ;;  %v17244_v46 = vld [vmem:[%s18787_s11 + $0x80] ss:$8 sps:$4 sm:$0xff]   ;;  %v17298_v47 = vld [vmem:[%s18787_s11 + $0xe30] ss:$8 sps:$4 sm:$0xff]  }
  0x26   : > { %5221 = vmatprep.subr.bf16.mxu0 %v24549_v1  ;;  %17147 = vmatprep.subr.bf16.mxu1 %v24549_v1  ;;  %v17245_v48 = vld [vmem:[%s18787_s11 + $0x94] ss:$8 sps:$4 sm:$0xff]   ;;  %v17302_v49 = vld [vmem:[%s18787_s11 + $0xe44] ss:$8 sps:$4 sm:$0xff]   ;;  %v17247_v50 = vld [vmem:[%s18787_s11 + $0x90] ss:$8 sps:$4 sm:$0xff]  }
  0x27   : > { %v17304_v51 = vld [vmem:[%s18787_s11 + $0xe40] ss:$8 sps:$4 sm:$0xff]   ;;  %v17251_v52 = vld [vmem:[%s18787_s11 + $0xa4] ss:$8 sps:$4 sm:$0xff]   ;;  %v17308_v53 = vld [vmem:[%s18787_s11 + $0xe54] ss:$8 sps:$4 sm:$0xff]  }
  0x28   : > { %v17253_v54 = vld [vmem:[%s18787_s11 + $0xa0] ss:$8 sps:$4 sm:$0xff]   ;;  %v17310_v55 = vld [vmem:[%s18787_s11 + $0xe50] ss:$8 sps:$4 sm:$0xff]   ;;  %v17257_v56 = vld [vmem:[%s18787_s11 + $0xb4] ss:$8 sps:$4 sm:$0xff]  }
  0x29   : > { %5222 = vmatpush1.bf16.msra.mxu0 %v17213_v7  ;;  %17157 = vmatpush1.bf16.msra.mxu1 %v17213_v7  ;;  %v17314_v57 = vld [vmem:[%s18787_s11 + $0xe64] ss:$8 sps:$4 sm:$0xff]   ;;  %v17259_v58 = vld [vmem:[%s18787_s11 + $0xb0] ss:$8 sps:$4 sm:$0xff]   ;;  %v17316_v59 = vld [vmem:[%s18787_s11 + $0xe60] ss:$8 sps:$4 sm:$0xff]  }
  0x2a   : > { %5223 = vmatprep.subr.bf16.mxu0 %v24549_v1  ;;  %17148 = vmatprep.subr.bf16.mxu1 %v24549_v1  ;;  %v17263_v60 = vld [vmem:[%s18787_s11 + $0xc4] ss:$8 sps:$4 sm:$0xff]   ;;  %v17320_v61 = vld [vmem:[%s18787_s11 + $0xe74] ss:$8 sps:$4 sm:$0xff]   ;;  %v17265_v62 = vld [vmem:[%s18787_s11 + $0xc0] ss:$8 sps:$4 sm:$0xff]  }
  0x2b   : > { %v17322_v63 = vld [vmem:[%s18787_s11 + $0xe70] ss:$8 sps:$4 sm:$0xff]   ;;  %v17269_v0 = vld [vmem:[%s18787_s11 + $0xd4] ss:$8 sps:$4 sm:$0xff]   ;;  %v17326_v2 = vld [vmem:[%s18787_s11 + $0xe84] ss:$8 sps:$4 sm:$0xff]  }
  0x2c   : > { %v17271_v3 = vld [vmem:[%s18787_s11 + $0xd0] ss:$8 sps:$4 sm:$0xff]   ;;  %v17328_v4 = vld [vmem:[%s18787_s11 + $0xe80] ss:$8 sps:$4 sm:$0xff]   ;;  %v17275_v5 = vld [vmem:[%s18787_s11 + $0xe4] ss:$8 sps:$4 sm:$0xff]  }
  0x2d   : > { %5224 = vmatpush1.bf16.msra.mxu0 %v17214_v8  ;;  %17158 = vmatpush1.bf16.msra.mxu1 %v17214_v8  ;;  %v17332_v6 = vld [vmem:[%s18787_s11 + $0xe94] ss:$8 sps:$4 sm:$0xff]   ;;  %v17277_v7 = vld [vmem:[%s18787_s11 + $0xe0] ss:$8 sps:$4 sm:$0xff]   ;;  %v17334_v8 = vld [vmem:[%s18787_s11 + $0xe90] ss:$8 sps:$4 sm:$0xff]  }
  0x2e   : > { %5225 = vmatprep.subr.bf16.mxu0 %v24549_v1  ;;  %17149 = vmatprep.subr.bf16.mxu1 %v24549_v1  ;;  %v17281_v9 = vld [vmem:[%s18787_s11 + $0xf4] ss:$8 sps:$4 sm:$0xff]   ;;  %v17283_v11 = vld [vmem:[%s18787_s11 + $0xf0] ss:$8 sps:$4 sm:$0xff]   ;;  %s18694_s19 = smov [#allocation2]  }
  0x31   : > { %5226 = vmatpush1.bf16.msra.mxu0 %v17215_v10  ;;  %17159 = vmatpush1.bf16.msra.mxu1 %v17215_v10  ;;  %v17338_v10 = vld [vmem:[%s18787_s11 + $0xea4] ss:$8 sps:$4 sm:$0xff]  }
  0x32   : > { %5239 = vmatprep.subr.bf16.mxu0 %v24549_v1  ;;  %17150 = vmatprep.subr.bf16.mxu1 %v24549_v1 }
  0x35   : > { %5240 = vmatpush2.bf16.msra.mxu0 %v5209_v12  ;;  %17160 = vmatpush2.bf16.msra.mxu1 %v5209_v12  ;;  %v17340_v12 = vld [vmem:[%s18787_s11 + $0xea0] ss:$8 sps:$4 sm:$0xff]  }
  0x36   : > { %5241 = vmatprep.subr.bf16.mxu0 %v24549_v1  ;;  %17151 = vmatprep.subr.bf16.mxu1 %v24549_v1  ;;  %v17478_v1 = vld [vmem:[%s18787_s11 + $0x1010] ss:$8 sps:$4 sm:$0xff]  }
  0x39   : > { %5242 = vmatpush2.bf16.msra.mxu0 %v17217_v13  ;;  %17161 = vmatpush2.bf16.msra.mxu1 %v17217_v13  ;;  %v17287_v13 = vld [vmem:[%s18787_s11 + $0x104] ss:$8 sps:$4 sm:$0xff]  }
  0x3c   : > { %5244 = vmatmul.mubr.bf16.vlgmr.msra.gmra.mxu0 %v17218_v14  ;;  %6996 = vmatmul.mubr.bf16.vlgmr.msra.gmra.mxu1 %v17248_v16  ;;  %v17344_v14 = vld [vmem:[%s18787_s11 + $0xeb4] ss:$8 sps:$4 sm:$0xff]   ;;  %v17346_v16 = vld [vmem:[%s18787_s11 + $0xeb0] ss:$8 sps:$4 sm:$0xff]  }
  0x3d   : > { %15950 = vmatprep.mubr.msk.bf16.mxu0 %vm4150_vm0, %v17221_v15  ;;  %16169 = vmatprep.mubr.msk.bf16.mxu1 %vm4150_vm0, %v17254_v17  ;;  %v17289_v15 = vld [vmem:[%s18787_s11 + $0x100] ss:$8 sps:$4 sm:$0xff]   ;;  %v17293_v17 = vld [vmem:[%s18787_s11 + $0x114] ss:$8 sps:$4 sm:$0xff]  }
  0x44   : > { %5252 = vmatmul.mubr.bf16.gmra.mxu0 %v17223_v18  ;;  %7004 = vmatmul.mubr.bf16.gmra.mxu1 %v17256_v20  ;;  %v17350_v18 = vld [vmem:[%s18787_s11 + $0xec4] ss:$8 sps:$4 sm:$0xff]   ;;  %v17352_v20 = vld [vmem:[%s18787_s11 + $0xec0] ss:$8 sps:$4 sm:$0xff]  }
  0x45   : > { %15951 = vmatprep.mubr.msk.bf16.mxu0 %vm4150_vm0, %v17224_v19  ;;  %16170 = vmatprep.mubr.msk.bf16.mxu1 %vm4150_vm0, %v17260_v21  ;;  %v17295_v19 = vld [vmem:[%s18787_s11 + $0x110] ss:$8 sps:$4 sm:$0xff]   ;;  %v17299_v21 = vld [vmem:[%s18787_s11 + $0x124] ss:$8 sps:$4 sm:$0xff]  }
  0x4c   : > { %5260 = vmatmul.mubr.bf16.gmra.mxu0 %v17226_v22  ;;  %7012 = vmatmul.mubr.bf16.gmra.mxu1 %v17262_v23  ;;  %v17356_v22 = vld [vmem:[%s18787_s11 + $0xed4] ss:$8 sps:$4 sm:$0xff]   ;;  %v17301_v23 = vld [vmem:[%s18787_s11 + $0x120] ss:$8 sps:$4 sm:$0xff]  }
  0x4d   : > { %15952 = vmatprep.mubr.msk.bf16.mxu0 %vm4150_vm0, %v17227_v24  ;;  %16171 = vmatprep.mubr.msk.bf16.mxu1 %vm4150_vm0, %v17266_v25  ;;  %v17358_v24 = vld [vmem:[%s18787_s11 + $0xed0] ss:$8 sps:$4 sm:$0xff]   ;;  %v17305_v25 = vld [vmem:[%s18787_s11 + $0x134] ss:$8 sps:$4 sm:$0xff]  }
  0x54   : > { %5268 = vmatmul.mubr.bf16.gmra.mxu0 %v17229_v26  ;;  %7020 = vmatmul.mubr.bf16.gmra.mxu1 %v17268_v27  ;;  %v17362_v26 = vld [vmem:[%s18787_s11 + $0xee4] ss:$8 sps:$4 sm:$0xff]   ;;  %v17307_v27 = vld [vmem:[%s18787_s11 + $0x130] ss:$8 sps:$4 sm:$0xff]  }
  0x55   : > { %15953 = vmatprep.mubr.msk.bf16.mxu0 %vm4150_vm0, %v17230_v28  ;;  %16172 = vmatprep.mubr.msk.bf16.mxu1 %vm4150_vm0, %v17272_v29  ;;  %v17364_v28 = vld [vmem:[%s18787_s11 + $0xee0] ss:$8 sps:$4 sm:$0xff]   ;;  %v17311_v29 = vld [vmem:[%s18787_s11 + $0x144] ss:$8 sps:$4 sm:$0xff]  }
  0x5c   : > { %5276 = vmatmul.mubr.bf16.gmra.mxu0 %v17232_v30  ;;  %7028 = vmatmul.mubr.bf16.gmra.mxu1 %v17274_v31  ;;  %v17368_v30 = vld [vmem:[%s18787_s11 + $0xef4] ss:$8 sps:$4 sm:$0xff]   ;;  %v17313_v31 = vld [vmem:[%s18787_s11 + $0x140] ss:$8 sps:$4 sm:$0xff]  }
  0x5d   : > { %15954 = vmatprep.mubr.msk.bf16.mxu0 %vm4150_vm0, %v17233_v32  ;;  %16173 = vmatprep.mubr.msk.bf16.mxu1 %vm4150_vm0, %v17278_v33  ;;  %v17370_v32 = vld [vmem:[%s18787_s11 + $0xef0] ss:$8 sps:$4 sm:$0xff]   ;;  %v17317_v33 = vld [vmem:[%s18787_s11 + $0x154] ss:$8 sps:$4 sm:$0xff]  }
  0x64   : > { %5284 = vmatmul.mubr.bf16.gmra.mxu0 %v17235_v34  ;;  %7036 = vmatmul.mubr.bf16.gmra.mxu1 %v17280_v35  ;;  %v17374_v34 = vld [vmem:[%s18787_s11 + $0xf04] ss:$8 sps:$4 sm:$0xff]   ;;  %v17319_v35 = vld [vmem:[%s18787_s11 + $0x150] ss:$8 sps:$4 sm:$0xff]  }
  0x65   : > { %15955 = vmatprep.mubr.msk.bf16.mxu0 %vm4150_vm0, %v17236_v36  ;;  %16174 = vmatprep.mubr.msk.bf16.mxu1 %vm4150_vm0, %v17284_v37  ;;  %v17376_v36 = vld [vmem:[%s18787_s11 + $0xf00] ss:$8 sps:$4 sm:$0xff]   ;;  %v17323_v37 = vld [vmem:[%s18787_s11 + $0x164] ss:$8 sps:$4 sm:$0xff]  }
  0x6c   : > { %5292 = vmatmul.mubr.bf16.gmra.mxu0 %v17238_v38  ;;  %7044 = vmatmul.mubr.bf16.gmra.mxu1 %v17286_v39  ;;  %v17380_v38 = vld [vmem:[%s18787_s11 + $0xf14] ss:$8 sps:$4 sm:$0xff]   ;;  %v17325_v39 = vld [vmem:[%s18787_s11 + $0x160] ss:$8 sps:$4 sm:$0xff]  }
  0x6d   : > { %15956 = vmatprep.mubr.msk.bf16.mxu0 %vm4150_vm0, %v17239_v40  ;;  %16175 = vmatprep.mubr.msk.bf16.mxu1 %vm4150_vm0, %v17290_v41  ;;  %v17382_v40 = vld [vmem:[%s18787_s11 + $0xf10] ss:$8 sps:$4 sm:$0xff]   ;;  %v17329_v41 = vld [vmem:[%s18787_s11 + $0x174] ss:$8 sps:$4 sm:$0xff]  }
  0x74   : > { %5300 = vmatmul.mubr.bf16.gmra.mxu0 %v17241_v42  ;;  %7052 = vmatmul.mubr.bf16.gmra.mxu1 %v17292_v43  ;;  %v17386_v42 = vld [vmem:[%s18787_s11 + $0xf24] ss:$8 sps:$4 sm:$0xff]   ;;  %v17331_v43 = vld [vmem:[%s18787_s11 + $0x170] ss:$8 sps:$4 sm:$0xff]  }
  0x75   : > { %15957 = vmatprep.mubr.msk.bf16.mxu0 %vm4150_vm0, %v17242_v44  ;;  %16176 = vmatprep.mubr.msk.bf16.mxu1 %vm4150_vm0, %v17296_v45  ;;  %v17388_v44 = vld [vmem:[%s18787_s11 + $0xf20] ss:$8 sps:$4 sm:$0xff]   ;;  %v17335_v45 = vld [vmem:[%s18787_s11 + $0x184] ss:$8 sps:$4 sm:$0xff]  }
  0x7c   : > { %5308 = vmatmul.mubr.bf16.gmra.mxu0 %v17244_v46  ;;  %7060 = vmatmul.mubr.bf16.gmra.mxu1 %v17298_v47  ;;  %v17392_v46 = vld [vmem:[%s18787_s11 + $0xf34] ss:$8 sps:$4 sm:$0xff]   ;;  %v17337_v47 = vld [vmem:[%s18787_s11 + $0x180] ss:$8 sps:$4 sm:$0xff]  }
  0x7d   : > { %15958 = vmatprep.mubr.msk.bf16.mxu0 %vm4150_vm0, %v17245_v48  ;;  %16177 = vmatprep.mubr.msk.bf16.mxu1 %vm4150_vm0, %v17302_v49  ;;  %v17394_v48 = vld [vmem:[%s18787_s11 + $0xf30] ss:$8 sps:$4 sm:$0xff]   ;;  %v17341_v49 = vld [vmem:[%s18787_s11 + $0x194] ss:$8 sps:$4 sm:$0xff]  }
  0x84   : > { %5316 = vmatmul.mubr.bf16.gmra.mxu0 %v17247_v50  ;;  %7068 = vmatmul.mubr.bf16.gmra.mxu1 %v17304_v51  ;;  %v17398_v50 = vld [vmem:[%s18787_s11 + $0xf44] ss:$8 sps:$4 sm:$0xff]  }
  0x85   : > { %15959 = vmatprep.mubr.msk.bf16.mxu0 %vm4150_vm0, %v17251_v52  ;;  %16178 = vmatprep.mubr.msk.bf16.mxu1 %vm4150_vm0, %v17308_v53 }
  0x8c   : > { %5324 = vmatmul.mubr.bf16.gmra.mxu0 %v17253_v54  ;;  %7076 = vmatmul.mubr.bf16.gmra.mxu1 %v17310_v55  ;;  %v17343_v54 = vld [vmem:[%s18787_s11 + $0x190] ss:$8 sps:$4 sm:$0xff]  }
  0x8d   : > { %15960 = vmatprep.mubr.msk.bf16.mxu0 %vm4150_vm0, %v17257_v56  ;;  %16179 = vmatprep.mubr.msk.bf16.mxu1 %vm4150_vm0, %v17314_v57  ;;  %v17400_v56 = vld [vmem:[%s18787_s11 + $0xf40] ss:$8 sps:$4 sm:$0xff]   ;;  %v17347_v57 = vld [vmem:[%s18787_s11 + $0x1a4] ss:$8 sps:$4 sm:$0xff]  }
  0x94   : > { %5332 = vmatmul.mubr.bf16.gmra.mxu0 %v17259_v58  ;;  %7084 = vmatmul.mubr.bf16.gmra.mxu1 %v17316_v59 }
  0x95   : > { %15961 = vmatprep.mubr.msk.bf16.mxu0 %vm4150_vm0, %v17263_v60  ;;  %16180 = vmatprep.mubr.msk.bf16.mxu1 %vm4150_vm0, %v17320_v61  ;;  %v17404_v60 = vld [vmem:[%s18787_s11 + $0xf54] ss:$8 sps:$4 sm:$0xff]  }
  0x9c   : > { %5340 = vmatmul.mubr.bf16.gmra.mxu0 %v17265_v62  ;;  %7092 = vmatmul.mubr.bf16.gmra.mxu1 %v17322_v63 }
  0x9d   : > { %15962 = vmatprep.mubr.msk.bf16.mxu0 %vm4150_vm0, %v17269_v0  ;;  %16181 = vmatprep.mubr.msk.bf16.mxu1 %vm4150_vm0, %v17326_v2 }
  0xa4   : > { %5348 = vmatmul.mubr.bf16.gmra.mxu0 %v17271_v3  ;;  %7100 = vmatmul.mubr.bf16.gmra.mxu1 %v17328_v4  ;;  %v17349_v3 = vld [vmem:[%s18787_s11 + $0x1a0] ss:$8 sps:$4 sm:$0xff]  }
  0xa5   : > { %15963 = vmatprep.mubr.msk.bf16.mxu0 %vm4150_vm0, %v17275_v5  ;;  %16182 = vmatprep.mubr.msk.bf16.mxu1 %vm4150_vm0, %v17332_v6  ;;  %v17406_v5 = vld [vmem:[%s18787_s11 + $0xf50] ss:$8 sps:$4 sm:$0xff]   ;;  %v17353_v6 = vld [vmem:[%s18787_s11 + $0x1b4] ss:$8 sps:$4 sm:$0xff]  }
  0xac   : > { %5356 = vmatmul.mubr.bf16.gmra.mxu0 %v17277_v7  ;;  %7108 = vmatmul.mubr.bf16.gmra.mxu1 %v17334_v8 }
  0xad   : > { %15964 = vmatprep.mubr.msk.bf16.mxu0 %vm4150_vm0, %v17281_v9  ;;  %16183 = vmatprep.mubr.msk.bf16.mxu1 %vm4150_vm0, %v17338_v10  ;;  %v17410_v9 = vld [vmem:[%s18787_s11 + $0xf64] ss:$8 sps:$4 sm:$0xff]  }
  0xb4   : > { %5364 = vmatmul.mubr.bf16.gmra.mxu0 %v17283_v11  ;;  %7116 = vmatmul.mubr.bf16.gmra.mxu1 %v17340_v12 }
  0xb5   : > { %15965 = vmatprep.mubr.msk.bf16.mxu0 %vm4150_vm0, %v17287_v13  ;;  %16184 = vmatprep.mubr.msk.bf16.mxu1 %vm4150_vm0, %v17344_v14 }
  0xbc   : > { %5372 = vmatmul.mubr.bf16.gmra.mxu0 %v17289_v15  ;;  %7124 = vmatmul.mubr.bf16.gmra.mxu1 %v17346_v16  ;;  %v17355_v15 = vld [vmem:[%s18787_s11 + $0x1b0] ss:$8 sps:$4 sm:$0xff]  }
  0xbd   : > { %15966 = vmatprep.mubr.msk.bf16.mxu0 %vm4150_vm0, %v17293_v17  ;;  %16185 = vmatprep.mubr.msk.bf16.mxu1 %vm4150_vm0, %v17350_v18  ;;  %v17412_v17 = vld [vmem:[%s18787_s11 + $0xf60] ss:$8 sps:$4 sm:$0xff]   ;;  %v17359_v18 = vld [vmem:[%s18787_s11 + $0x1c4] ss:$8 sps:$4 sm:$0xff]  }
  0xc4   : > { %5380 = vmatmul.mubr.bf16.gmra.mxu0 %v17295_v19  ;;  %7132 = vmatmul.mubr.bf16.gmra.mxu1 %v17352_v20 }
  0xc5   : > { %15967 = vmatprep.mubr.msk.bf16.mxu0 %vm4150_vm0, %v17299_v21  ;;  %16186 = vmatprep.mubr.msk.bf16.mxu1 %vm4150_vm0, %v17356_v22  ;;  %v17416_v21 = vld [vmem:[%s18787_s11 + $0xf74] ss:$8 sps:$4 sm:$0xff]  }
  0xcc   : > { %5388 = vmatmul.mubr.bf16.gmra.mxu0 %v17301_v23  ;;  %7140 = vmatmul.mubr.bf16.gmra.mxu1 %v17358_v24 }
  0xcd   : > { %15968 = vmatprep.mubr.msk.bf16.mxu0 %vm4150_vm0, %v17305_v25  ;;  %16187 = vmatprep.mubr.msk.bf16.mxu1 %vm4150_vm0, %v17362_v26 }
  0xd4   : > { %5396 = vmatmul.mubr.bf16.gmra.mxu0 %v17307_v27  ;;  %7148 = vmatmul.mubr.bf16.gmra.mxu1 %v17364_v28  ;;  %v17361_v27 = vld [vmem:[%s18787_s11 + $0x1c0] ss:$8 sps:$4 sm:$0xff]  }
  0xd5   : > { %15969 = vmatprep.mubr.msk.bf16.mxu0 %vm4150_vm0, %v17311_v29  ;;  %16188 = vmatprep.mubr.msk.bf16.mxu1 %vm4150_vm0, %v17368_v30  ;;  %v17418_v29 = vld [vmem:[%s18787_s11 + $0xf70] ss:$8 sps:$4 sm:$0xff]   ;;  %v17365_v30 = vld [vmem:[%s18787_s11 + $0x1d4] ss:$8 sps:$4 sm:$0xff]  }
  0xdc   : > { %5404 = vmatmul.mubr.bf16.gmra.mxu0 %v17313_v31  ;;  %7156 = vmatmul.mubr.bf16.gmra.mxu1 %v17370_v32 }
  0xdd   : > { %15970 = vmatprep.mubr.msk.bf16.mxu0 %vm4150_vm0, %v17317_v33  ;;  %16189 = vmatprep.mubr.msk.bf16.mxu1 %vm4150_vm0, %v17374_v34  ;;  %v17422_v33 = vld [vmem:[%s18787_s11 + $0xf84] ss:$8 sps:$4 sm:$0xff]  }
  0xe4   : > { %5412 = vmatmul.mubr.bf16.gmra.mxu0 %v17319_v35  ;;  %7164 = vmatmul.mubr.bf16.gmra.mxu1 %v17376_v36 }
  0xe5   : > { %15971 = vmatprep.mubr.msk.bf16.mxu0 %vm4150_vm0, %v17323_v37  ;;  %16190 = vmatprep.mubr.msk.bf16.mxu1 %vm4150_vm0, %v17380_v38 }
  0xec   : > { %5420 = vmatmul.mubr.bf16.gmra.mxu0 %v17325_v39  ;;  %7172 = vmatmul.mubr.bf16.gmra.mxu1 %v17382_v40  ;;  %v17367_v39 = vld [vmem:[%s18787_s11 + $0x1d0] ss:$8 sps:$4 sm:$0xff]  }
  0xed   : > { %15972 = vmatprep.mubr.msk.bf16.mxu0 %vm4150_vm0, %v17329_v41  ;;  %16191 = vmatprep.mubr.msk.bf16.mxu1 %vm4150_vm0, %v17386_v42  ;;  %v17424_v41 = vld [vmem:[%s18787_s11 + $0xf80] ss:$8 sps:$4 sm:$0xff]   ;;  %v17371_v42 = vld [vmem:[%s18787_s11 + $0x1e4] ss:$8 sps:$4 sm:$0xff]  }
  0xf4   : > { %5428 = vmatmul.mubr.bf16.gmra.mxu0 %v17331_v43  ;;  %7180 = vmatmul.mubr.bf16.gmra.mxu1 %v17388_v44 }
  0xf5   : > { %15973 = vmatprep.mubr.msk.bf16.mxu0 %vm4150_vm0, %v17335_v45  ;;  %16192 = vmatprep.mubr.msk.bf16.mxu1 %vm4150_vm0, %v17392_v46  ;;  %v17428_v45 = vld [vmem:[%s18787_s11 + $0xf94] ss:$8 sps:$4 sm:$0xff]  }
  0xfc   : > { %v18976_v51 = vpop.f32.mrf.mxu0  ;;  %5436 = vmatmul.mubr.bf16.gmra.mxu0 %v17337_v47  ;;  %v18978_v52 = vpop.f32.mrf.mxu1  ;;  %7188 = vmatmul.mubr.bf16.gmra.mxu1 %v17394_v48 }
  0xfd   : > { %24710 = vst [vmem:[#allocation5_spill] sm:$0xff] %v18978_v52  ;;  %15974 = vmatprep.mubr.msk.bf16.mxu0 %vm4150_vm0, %v17341_v49  ;;  %16193 = vmatprep.mubr.msk.bf16.mxu1 %vm4150_vm0, %v17398_v50 }
  0xfe   : > { %v5247_v53 = vpop.f32.mrf.mxu0  ;;  %v6999_v55 = vpop.f32.mrf.mxu1 }
  0xff   : > { %v17373_v53 = vld [vmem:[%s18787_s11 + $0x1e0] ss:$8 sps:$4 sm:$0xff]   ;;  %v17430_v55 = vld [vmem:[%s18787_s11 + $0xf90] ss:$8 sps:$4 sm:$0xff]  }
 0x100   : > { %v18985_v58 = vpop.f32.mrf.mxu0  ;;  %v18987_v59 = vpop.f32.mrf.mxu1 }
 0x101   : > { %24711 = vst [vmem:[#allocation6_spill] sm:$0xff] %v18987_v59  ;;  %v17425_v59 = vld [vmem:[%s18787_s11 + $0x274] ss:$8 sps:$4 sm:$0xff]  }
 0x102   : > { %v5250_v61 = vpop.f32.mrf.mxu0  ;;  %v7002_v62 = vpop.f32.mrf.mxu1 }
 0x103   : > { %v17434_v61 = vld [vmem:[%s18787_s11 + $0xfa4] ss:$8 sps:$4 sm:$0xff]  }
 0x104   : > { %v18990_v63 = vpop.f32.mrf.mxu0  ;;  %5444 = vmatmul.mubr.bf16.gmra.mxu0 %v17343_v54  ;;  %v18992_v0 = vpop.f32.mrf.mxu1  ;;  %7196 = vmatmul.mubr.bf16.gmra.mxu1 %v17400_v56  ;;  %v17377_v56 = vld [vmem:[%s18787_s11 + $0x1f4] ss:$8 sps:$4 sm:$0xff]  }
 0x105   : > { %15975 = vmatprep.mubr.msk.bf16.mxu0 %vm4150_vm0, %v17347_v57  ;;  %16194 = vmatprep.mubr.msk.bf16.mxu1 %vm4150_vm0, %v17404_v60 }
 0x106   : > { %v5255_v2 = vpop.f32.mrf.mxu0  ;;  %v7007_v4 = vpop.f32.mrf.mxu1 }
 0x108   : > { %v18999_v7 = vpop.f32.mrf.mxu0  ;;  %v19001_v8 = vpop.f32.mrf.mxu1 }
 0x10a   : > { %v5258_v10 = vpop.f32.mrf.mxu0  ;;  %v7010_v11 = vpop.f32.mrf.mxu1 }
 0x10b   : > { %v17436_v10 = vld [vmem:[%s18787_s11 + $0xfa0] ss:$8 sps:$4 sm:$0xff]   ;;  %v17383_v11 = vld [vmem:[%s18787_s11 + $0x204] ss:$8 sps:$4 sm:$0xff]  }
 0x10c   : > { %v19004_v12 = vpop.f32.mrf.mxu0  ;;  %5452 = vmatmul.mubr.bf16.gmra.mxu0 %v17349_v3  ;;  %v19006_v13 = vpop.f32.mrf.mxu1  ;;  %7204 = vmatmul.mubr.bf16.gmra.mxu1 %v17406_v5 }
 0x10d   : > { %15976 = vmatprep.mubr.msk.bf16.mxu0 %vm4150_vm0, %v17353_v6  ;;  %16195 = vmatprep.mubr.msk.bf16.mxu1 %vm4150_vm0, %v17410_v9  ;;  %v17379_v6 = vld [vmem:[%s18787_s11 + $0x1f0] ss:$8 sps:$4 sm:$0xff]  }
 0x10e   : > { %v5263_v14 = vpop.f32.mrf.mxu0  ;;  %v7015_v16 = vpop.f32.mrf.mxu1 }
 0x10f   : > { %v17440_v16 = vld [vmem:[%s18787_s11 + $0xfb4] ss:$8 sps:$4 sm:$0xff]  }
 0x110   : > { %v19013_v19 = vpop.f32.mrf.mxu0  ;;  %v19015_v20 = vpop.f32.mrf.mxu1 }
 0x112   : > { %v5266_v22 = vpop.f32.mrf.mxu0  ;;  %v7018_v23 = vpop.f32.mrf.mxu1 }
 0x114   : > { %v19018_v24 = vpop.f32.mrf.mxu0  ;;  %5460 = vmatmul.mubr.bf16.gmra.mxu0 %v17355_v15  ;;  %v19020_v25 = vpop.f32.mrf.mxu1  ;;  %7212 = vmatmul.mubr.bf16.gmra.mxu1 %v17412_v17 }
 0x115   : > { %15977 = vmatprep.mubr.msk.bf16.mxu0 %vm4150_vm0, %v17359_v18  ;;  %16196 = vmatprep.mubr.msk.bf16.mxu1 %vm4150_vm0, %v17416_v21 }
 0x116   : > { %v5271_v26 = vpop.f32.mrf.mxu0  ;;  %v7023_v28 = vpop.f32.mrf.mxu1 }
 0x117   : > { %v17385_v26 = vld [vmem:[%s18787_s11 + $0x200] ss:$8 sps:$4 sm:$0xff]   ;;  %v17442_v28 = vld [vmem:[%s18787_s11 + $0xfb0] ss:$8 sps:$4 sm:$0xff]  }
 0x118   : > { %v19027_v31 = vpop.f32.mrf.mxu0  ;;  %v19029_v32 = vpop.f32.mrf.mxu1 }
 0x11a   : > { %v5274_v34 = vpop.f32.mrf.mxu0  ;;  %v7026_v35 = vpop.f32.mrf.mxu1 }
 0x11b   : > { %v17446_v34 = vld [vmem:[%s18787_s11 + $0xfc4] ss:$8 sps:$4 sm:$0xff]  }
 0x11c   : > { %v19032_v36 = vpop.f32.mrf.mxu0  ;;  %5468 = vmatmul.mubr.bf16.gmra.mxu0 %v17361_v27  ;;  %v19034_v37 = vpop.f32.mrf.mxu1  ;;  %7220 = vmatmul.mubr.bf16.gmra.mxu1 %v17418_v29  ;;  %v17389_v29 = vld [vmem:[%s18787_s11 + $0x214] ss:$8 sps:$4 sm:$0xff]  }
 0x11d   : > { %15978 = vmatprep.mubr.msk.bf16.mxu0 %vm4150_vm0, %v17365_v30  ;;  %16197 = vmatprep.mubr.msk.bf16.mxu1 %vm4150_vm0, %v17422_v33 }
 0x11e   : > { %v5279_v38 = vpop.f32.mrf.mxu0  ;;  %v7031_v40 = vpop.f32.mrf.mxu1 }
 0x120   : > { %v19041_v43 = vpop.f32.mrf.mxu0  ;;  %v19043_v44 = vpop.f32.mrf.mxu1 }
 0x121   : > { %24712 = vst [vmem:[#allocation7_spill] sm:$0xff] %v19041_v43 }
 0x122   : > { %v5282_v46 = vpop.f32.mrf.mxu0  ;;  %v7034_v47 = vpop.f32.mrf.mxu1 }
 0x123   : > { %v17448_v46 = vld [vmem:[%s18787_s11 + $0xfc0] ss:$8 sps:$4 sm:$0xff]   ;;  %v17395_v47 = vld [vmem:[%s18787_s11 + $0x224] ss:$8 sps:$4 sm:$0xff]  }
 0x124   : > { %v19046_v48 = vpop.f32.mrf.mxu0  ;;  %5476 = vmatmul.mubr.bf16.gmra.mxu0 %v17367_v39  ;;  %v19048_v49 = vpop.f32.mrf.mxu1  ;;  %7228 = vmatmul.mubr.bf16.gmra.mxu1 %v17424_v41 }
 0x125   : > { %24713 = vst [vmem:[#allocation8_spill] sm:$0xff] %v19046_v48  ;;  %24714 = vst [vmem:[#allocation9_spill] sm:$0xff] %v19048_v49  ;;  %15979 = vmatprep.mubr.msk.bf16.mxu0 %vm4150_vm0, %v17371_v42  ;;  %16198 = vmatprep.mubr.msk.bf16.mxu1 %vm4150_vm0, %v17428_v45  ;;  %v17391_v42 = vld [vmem:[%s18787_s11 + $0x210] ss:$8 sps:$4 sm:$0xff]   ;;  %v17503_v49 = vld [vmem:[%s18787_s11 + $0x344] ss:$8 sps:$4 sm:$0xff]  }
 0x126   : > { %v5287_v50 = vpop.f32.mrf.mxu0  ;;  %v7039_v54 = vpop.f32.mrf.mxu1 }
 0x127   : > { %v17452_v54 = vld [vmem:[%s18787_s11 + $0xfd4] ss:$8 sps:$4 sm:$0xff]  }
 0x128   : > { %v19055_v57 = vpop.f32.mrf.mxu0  ;;  %v19057_v60 = vpop.f32.mrf.mxu1 }
 0x129   : > { %24715 = vst [vmem:[#allocation10_spill] sm:$0xff] %v19055_v57  ;;  %24716 = vst [vmem:[#allocation11_spill] sm:$0xff] %v19057_v60  ;;  %v17497_v60 = vld [vmem:[%s18787_s11 + $0x334] ss:$8 sps:$4 sm:$0xff]  }
 0x12a   : > { %v5290_v62 = vpop.f32.mrf.mxu0  ;;  %v7042_v2 = vpop.f32.mrf.mxu1 }
 0x12c   : > { %v19060_v3 = vpop.f32.mrf.mxu0  ;;  %5484 = vmatmul.mubr.bf16.gmra.mxu0 %v17373_v53  ;;  %v19062_v4 = vpop.f32.mrf.mxu1  ;;  %7236 = vmatmul.mubr.bf16.gmra.mxu1 %v17430_v55 }
 0x12d   : > { %24717 = vst [vmem:[#allocation12_spill] sm:$0xff] %v19060_v3  ;;  %24718 = vst [vmem:[#allocation13_spill] sm:$0xff] %v19062_v4  ;;  %15980 = vmatprep.mubr.msk.bf16.mxu0 %vm4150_vm0, %v17377_v56  ;;  %16199 = vmatprep.mubr.msk.bf16.mxu1 %vm4150_vm0, %v17434_v61  ;;  %v17491_v4 = vld [vmem:[%s18787_s11 + $0x324] ss:$8 sps:$4 sm:$0xff]  }
 0x12e   : > { %v5295_v5 = vpop.f32.mrf.mxu0  ;;  %v7047_v9 = vpop.f32.mrf.mxu1 }
 0x12f   : > { %v17397_v5 = vld [vmem:[%s18787_s11 + $0x220] ss:$8 sps:$4 sm:$0xff]   ;;  %v17454_v9 = vld [vmem:[%s18787_s11 + $0xfd0] ss:$8 sps:$4 sm:$0xff]  }
 0x130   : > { %v19069_v14 = vpop.f32.mrf.mxu0  ;;  %v19071_v15 = vpop.f32.mrf.mxu1 }
 0x131   : > { %24719 = vst [vmem:[#allocation14_spill] sm:$0xff] %v19069_v14  ;;  %24720 = vst [vmem:[#allocation15_spill] sm:$0xff] %v19071_v15  ;;  %v17455_v14 = vld [vmem:[%s18787_s11 + $0x2c4] ss:$8 sps:$4 sm:$0xff]   ;;  %v17538_v15 = vld [vmem:[%s18787_s11 + $0x10b0] ss:$8 sps:$4 sm:$0xff]  }
 0x132   : > { %v5298_v17 = vpop.f32.mrf.mxu0  ;;  %v7050_v18 = vpop.f32.mrf.mxu1 }
 0x133   : > { %v17458_v17 = vld [vmem:[%s18787_s11 + $0xfe4] ss:$8 sps:$4 sm:$0xff]  }
 0x134   : > { %v19074_v21 = vpop.f32.mrf.mxu0  ;;  %5492 = vmatmul.mubr.bf16.gmra.mxu0 %v17379_v6  ;;  %v19076_v22 = vpop.f32.mrf.mxu1  ;;  %7244 = vmatmul.mubr.bf16.gmra.mxu1 %v17436_v10  ;;  %v17401_v10 = vld [vmem:[%s18787_s11 + $0x234] ss:$8 sps:$4 sm:$0xff]  }
 0x135   : > { %24721 = vst [vmem:[#allocation16_spill] sm:$0xff] %v19074_v21  ;;  %24722 = vst [vmem:[#allocation17_spill] sm:$0xff] %v19076_v22  ;;  %15981 = vmatprep.mubr.msk.bf16.mxu0 %vm4150_vm0, %v17383_v11  ;;  %16200 = vmatprep.mubr.msk.bf16.mxu1 %vm4150_vm0, %v17440_v16  ;;  %v17508_v22 = vld [vmem:[%s18787_s11 + $0x1060] ss:$8 sps:$4 sm:$0xff]  }
 0x136   : > { %v5303_v23 = vpop.f32.mrf.mxu0  ;;  %v7055_v27 = vpop.f32.mrf.mxu1 }
 0x138   : > { %v19083_v30 = vpop.f32.mrf.mxu0  ;;  %v19085_v33 = vpop.f32.mrf.mxu1 }
 0x139   : > { %24723 = vst [vmem:[#allocation18_spill] sm:$0xff] %v19083_v30  ;;  %24724 = vst [vmem:[#allocation19_spill] sm:$0xff] %v19085_v33  ;;  %v17449_v30 = vld [vmem:[%s18787_s11 + $0x2b4] ss:$8 sps:$4 sm:$0xff]  }
 0x13a   : > { %v5306_v35 = vpop.f32.mrf.mxu0  ;;  %v7058_v38 = vpop.f32.mrf.mxu1 }
 0x13b   : > { %v17460_v35 = vld [vmem:[%s18787_s11 + $0xfe0] ss:$8 sps:$4 sm:$0xff]   ;;  %v17407_v38 = vld [vmem:[%s18787_s11 + $0x244] ss:$8 sps:$4 sm:$0xff]  }
 0x13c   : > { %v19088_v39 = vpop.f32.mrf.mxu0  ;;  %5500 = vmatmul.mubr.bf16.gmra.mxu0 %v17385_v26  ;;  %v19090_v40 = vpop.f32.mrf.mxu1  ;;  %7252 = vmatmul.mubr.bf16.gmra.mxu1 %v17442_v28 }
 0x13d   : > { %24725 = vst [vmem:[#allocation20_spill] sm:$0xff] %v19088_v39  ;;  %24726 = vst [vmem:[#allocation21_spill] sm:$0xff] %v19090_v40  ;;  %15982 = vmatprep.mubr.msk.bf16.mxu0 %vm4150_vm0, %v17389_v29  ;;  %16201 = vmatprep.mubr.msk.bf16.mxu1 %vm4150_vm0, %v17446_v34  ;;  %v17403_v29 = vld [vmem:[%s18787_s11 + $0x230] ss:$8 sps:$4 sm:$0xff]  }
 0x13e   : > { %v5311_v41 = vpop.f32.mrf.mxu0  ;;  %v7063_v45 = vpop.f32.mrf.mxu1  ;;  %v17502_v40 = vld [vmem:[%s18787_s11 + $0x1050] ss:$8 sps:$4 sm:$0xff]  }
 0x13f   : > { %v17464_v45 = vld [vmem:[%s18787_s11 + $0xff4] ss:$8 sps:$4 sm:$0xff]  }
 0x140   : > { %v19097_v50 = vpop.f32.mrf.mxu0  ;;  %v19099_v53 = vpop.f32.mrf.mxu1 }
 0x141   : > { %24727 = vst [vmem:[#allocation22_spill] sm:$0xff] %v19097_v50  ;;  %24728 = vst [vmem:[#allocation23_spill] sm:$0xff] %v19099_v53  ;;  %v17443_v50 = vld [vmem:[%s18787_s11 + $0x2a4] ss:$8 sps:$4 sm:$0xff]  }
 0x142   : > { %v5314_v55 = vpop.f32.mrf.mxu0  ;;  %v7066_v56 = vpop.f32.mrf.mxu1 }
 0x144   : > { %v19102_v61 = vpop.f32.mrf.mxu0  ;;  %5508 = vmatmul.mubr.bf16.gmra.mxu0 %v17391_v42  ;;  %v19104_v62 = vpop.f32.mrf.mxu1  ;;  %7260 = vmatmul.mubr.bf16.gmra.mxu1 %v17448_v46 }
 0x145   : > { %24729 = vst [vmem:[#allocation24_spill] sm:$0xff] %v19102_v61  ;;  %24730 = vst [vmem:[#allocation25_spill] sm:$0xff] %v19104_v62  ;;  %15983 = vmatprep.mubr.msk.bf16.mxu0 %vm4150_vm0, %v17395_v47  ;;  %16202 = vmatprep.mubr.msk.bf16.mxu1 %vm4150_vm0, %v17452_v54  ;;  %v17496_v62 = vld [vmem:[%s18787_s11 + $0x1040] ss:$8 sps:$4 sm:$0xff]  }
 0x146   : > { %v5319_v2 = vpop.f32.mrf.mxu0  ;;  %v7071_v6 = vpop.f32.mrf.mxu1 }
 0x147   : > { %v17409_v2 = vld [vmem:[%s18787_s11 + $0x240] ss:$8 sps:$4 sm:$0xff]   ;;  %v17466_v6 = vld [vmem:[%s18787_s11 + $0xff0] ss:$8 sps:$4 sm:$0xff]  }
 0x148   : > { %v19111_v11 = vpop.f32.mrf.mxu0  ;;  %v19113_v16 = vpop.f32.mrf.mxu1 }
 0x149   : > { %24731 = vst [vmem:[#allocation26_spill] sm:$0xff] %v19111_v11  ;;  %24732 = vst [vmem:[#allocation27_spill] sm:$0xff] %v19113_v16  ;;  %v17437_v11 = vld [vmem:[%s18787_s11 + $0x294] ss:$8 sps:$4 sm:$0xff]  }
 0x14a   : > { %v5322_v18 = vpop.f32.mrf.mxu0  ;;  %v7074_v23 = vpop.f32.mrf.mxu1 }
 0x14b   : > { %v17470_v18 = vld [vmem:[%s18787_s11 + $0x1004] ss:$8 sps:$4 sm:$0xff]  }
 0x14c   : > { %v19116_v26 = vpop.f32.mrf.mxu0  ;;  %5516 = vmatmul.mubr.bf16.gmra.mxu0 %v17397_v5  ;;  %v19118_v27 = vpop.f32.mrf.mxu1  ;;  %7268 = vmatmul.mubr.bf16.gmra.mxu1 %v17454_v9  ;;  %v17413_v9 = vld [vmem:[%s18787_s11 + $0x254] ss:$8 sps:$4 sm:$0xff]  }
 0x14d   : > { %24733 = vst [vmem:[#allocation28_spill] sm:$0xff] %v19116_v26  ;;  %24734 = vst [vmem:[#allocation29_spill] sm:$0xff] %v19118_v27  ;;  %15984 = vmatprep.mubr.msk.bf16.mxu0 %vm4150_vm0, %v17401_v10  ;;  %16203 = vmatprep.mubr.msk.bf16.mxu1 %vm4150_vm0, %v17458_v17  ;;  %v17490_v27 = vld [vmem:[%s18787_s11 + $0x1030] ss:$8 sps:$4 sm:$0xff]  }
 0x14e   : > { %v5327_v28 = vpop.f32.mrf.mxu0  ;;  %v7079_v34 = vpop.f32.mrf.mxu1 }
 0x150   : > { %v19125_v41 = vpop.f32.mrf.mxu0  ;;  %v19127_v42 = vpop.f32.mrf.mxu1 }
 0x151   : > { %24735 = vst [vmem:[#allocation30_spill] sm:$0xff] %v19125_v41  ;;  %24736 = vst [vmem:[#allocation31_spill] sm:$0xff] %v19127_v42  ;;  %v17431_v41 = vld [vmem:[%s18787_s11 + $0x284] ss:$8 sps:$4 sm:$0xff]  }
 0x152   : > { %v5330_v46 = vpop.f32.mrf.mxu0  ;;  %v7082_v47 = vpop.f32.mrf.mxu1 }
 0x153   : > { %v17472_v46 = vld [vmem:[%s18787_s11 + $0x1000] ss:$8 sps:$4 sm:$0xff]   ;;  %v17419_v47 = vld [vmem:[%s18787_s11 + $0x264] ss:$8 sps:$4 sm:$0xff]  }
 0x154   : > { %v19130_v54 = vpop.f32.mrf.mxu0  ;;  %5524 = vmatmul.mubr.bf16.gmra.mxu0 %v17403_v29  ;;  %v19132_v55 = vpop.f32.mrf.mxu1  ;;  %7276 = vmatmul.mubr.bf16.gmra.mxu1 %v17460_v35 }
 0x155   : > { %24737 = vst [vmem:[#allocation32_spill] sm:$0xff] %v19132_v55  ;;  %15985 = vmatprep.mubr.msk.bf16.mxu0 %vm4150_vm0, %v17407_v38  ;;  %16204 = vmatprep.mubr.msk.bf16.mxu1 %vm4150_vm0, %v17464_v45  ;;  %v17415_v38 = vld [vmem:[%s18787_s11 + $0x250] ss:$8 sps:$4 sm:$0xff]   ;;  %v17484_v55 = vld [vmem:[%s18787_s11 + $0x1020] ss:$8 sps:$4 sm:$0xff]  }
 0x156   : > { %v5335_v56 = vpop.f32.mrf.mxu0  ;;  %v7087_v5 = vpop.f32.mrf.mxu1 }
 0x158   : > { %v19139_v10 = vpop.f32.mrf.mxu0  ;;  %v19141_v17 = vpop.f32.mrf.mxu1 }
 0x159   : > { %24738 = vst [vmem:[#allocation33_spill] sm:$0xff] %v19141_v17 }
 0x15a   : > { %v5338_v23 = vpop.f32.mrf.mxu0  ;;  %v7090_v28 = vpop.f32.mrf.mxu1 }
 0x15c   : > { %v19144_v29 = vpop.f32.mrf.mxu0  ;;  %5532 = vmatmul.mubr.bf16.gmra.mxu0 %v17409_v2  ;;  %v19146_v34 = vpop.f32.mrf.mxu1  ;;  %7284 = vmatmul.mubr.bf16.gmra.mxu1 %v17466_v6  ;;  %v17476_v2 = vld [vmem:[%s18787_s11 + $0x1014] ss:$8 sps:$4 sm:$0xff]  }
 0x15d   : > { %15986 = vmatprep.mubr.msk.bf16.mxu0 %vm4150_vm0, %v17413_v9  ;;  %16205 = vmatprep.mubr.msk.bf16.mxu1 %vm4150_vm0, %v17470_v18 }
 0x15e   : > { %v5343_v35 = vpop.f32.mrf.mxu0  ;;  %v7095_v45 = vpop.f32.mrf.mxu1 }
 0x15f   : > { %v17421_v35 = vld [vmem:[%s18787_s11 + $0x260] ss:$8 sps:$4 sm:$0xff]  }
 0x160   : > { %v19153_v56 = vpop.f32.mrf.mxu0  ;;  %v19155_v5 = vpop.f32.mrf.mxu1 }
 0x162   : > { %v5346_v23 = vpop.f32.mrf.mxu0  ;;  %v7098_v6 = vpop.f32.mrf.mxu1 }
 0x164   : > { %v19158_v28 = vpop.f32.mrf.mxu0  ;;  %5540 = vmatmul.mubr.bf16.gmra.mxu0 %v17415_v38  ;;  %v19160_v9 = vpop.f32.mrf.mxu1  ;;  %7292 = vmatmul.mubr.bf16.gmra.mxu1 %v17472_v46  ;;  %v17482_v38 = vld [vmem:[%s18787_s11 + $0x1024] ss:$8 sps:$4 sm:$0xff]  }
 0x165   : > { %15987 = vmatprep.mubr.msk.bf16.mxu0 %vm4150_vm0, %v17419_v47  ;;  %16206 = vmatprep.mubr.msk.bf16.mxu1 %vm4150_vm0, %v17476_v2 }
 0x166   : > { %v5351_v18 = vpop.f32.mrf.mxu0  ;;  %v7103_v45 = vpop.f32.mrf.mxu1 }
 0x167   : > { %v17427_v18 = vld [vmem:[%s18787_s11 + $0x270] ss:$8 sps:$4 sm:$0xff]  }
 0x168   : > { %v19167_v23 = vpop.f32.mrf.mxu0  ;;  %v19169_v6 = vpop.f32.mrf.mxu1 }
 0x16a   : > { %v5354_v52 = vpop.f32.mrf.mxu0  ;;  %v7106_v46 = vpop.f32.mrf.mxu1 }
 0x16c   : > { %v19172_v17 = vpop.f32.mrf.mxu0  ;;  %5548 = vmatmul.mubr.bf16.gmra.mxu0 %v17421_v35  ;;  %v19174_v47 = vpop.f32.mrf.mxu1  ;;  %7300 = vmatmul.mubr.bf16.gmra.mxu1 %v17478_v1  ;;  %v17488_v35 = vld [vmem:[%s18787_s11 + $0x1034] ss:$8 sps:$4 sm:$0xff]  }
 0x16d   : > { %15988 = vmatprep.mubr.msk.bf16.mxu0 %vm4150_vm0, %v17425_v59  ;;  %16207 = vmatprep.mubr.msk.bf16.mxu1 %vm4150_vm0, %v17482_v38 }
 0x16e   : > { %v5359_v2 = vpop.f32.mrf.mxu0  ;;  %v7111_v45 = vpop.f32.mrf.mxu1 }
 0x16f   : > { %v17433_v2 = vld [vmem:[%s18787_s11 + $0x280] ss:$8 sps:$4 sm:$0xff]  }
 0x170   : > { %v19181_v52 = vpop.f32.mrf.mxu0  ;;  %v19183_v46 = vpop.f32.mrf.mxu1 }
 0x172   : > { %v5362_v42 = vpop.f32.mrf.mxu0  ;;  %v7114_v1 = vpop.f32.mrf.mxu1 }
 0x174   : > { %v19186_v26 = vpop.f32.mrf.mxu0  ;;  %5556 = vmatmul.mubr.bf16.gmra.mxu0 %v17427_v18  ;;  %v19188_v59 = vpop.f32.mrf.mxu1  ;;  %7308 = vmatmul.mubr.bf16.gmra.mxu1 %v17484_v55  ;;  %v17494_v18 = vld [vmem:[%s18787_s11 + $0x1044] ss:$8 sps:$4 sm:$0xff]  }
 0x175   : > { %15989 = vmatprep.mubr.msk.bf16.mxu0 %vm4150_vm0, %v17431_v41  ;;  %16208 = vmatprep.mubr.msk.bf16.mxu1 %vm4150_vm0, %v17488_v35 }
 0x176   : > { %v5367_v38 = vpop.f32.mrf.mxu0  ;;  %v7119_v45 = vpop.f32.mrf.mxu1 }
 0x177   : > { %v17439_v38 = vld [vmem:[%s18787_s11 + $0x290] ss:$8 sps:$4 sm:$0xff]  }
 0x178   : > { %v19195_v42 = vpop.f32.mrf.mxu0  ;;  %v19197_v1 = vpop.f32.mrf.mxu1 }
 0x179   : > { %24739 = vst [vmem:[#allocation34_spill] sm:$0xff] %v19195_v42 }
 0x17a   : > { %v5370_v16 = vpop.f32.mrf.mxu0  ;;  %v7122_v55 = vpop.f32.mrf.mxu1 }
 0x17c   : > { %v19200_v61 = vpop.f32.mrf.mxu0  ;;  %5564 = vmatmul.mubr.bf16.gmra.mxu0 %v17433_v2  ;;  %v19202_v41 = vpop.f32.mrf.mxu1  ;;  %7316 = vmatmul.mubr.bf16.gmra.mxu1 %v17490_v27  ;;  %v17500_v2 = vld [vmem:[%s18787_s11 + $0x1054] ss:$8 sps:$4 sm:$0xff]  }
 0x17d   : > { %24740 = vst [vmem:[#allocation35_spill] sm:$0xff] %v19200_v61  ;;  %24741 = vst [vmem:[#allocation36_spill] sm:$0xff] %v19202_v41  ;;  %15990 = vmatprep.mubr.msk.bf16.mxu0 %vm4150_vm0, %v17437_v11  ;;  %16209 = vmatprep.mubr.msk.bf16.mxu1 %vm4150_vm0, %v17494_v18  ;;  %v17556_v61 = vld [vmem:[%s18787_s11 + $0x10e0] ss:$8 sps:$4 sm:$0xff]  }
 0x17e   : > { %v5375_v35 = vpop.f32.mrf.mxu0  ;;  %v7127_v45 = vpop.f32.mrf.mxu1 }
 0x17f   : > { %v17445_v35 = vld [vmem:[%s18787_s11 + $0x2a0] ss:$8 sps:$4 sm:$0xff]  }
 0x180   : > { %v19209_v16 = vpop.f32.mrf.mxu0  ;;  %v19211_v55 = vpop.f32.mrf.mxu1 }
 0x181   : > { %24742 = vst [vmem:[#allocation37_spill] sm:$0xff] %v19209_v16  ;;  %24743 = vst [vmem:[#allocation38_spill] sm:$0xff] %v19211_v55  ;;  %v17550_v16 = vld [vmem:[%s18787_s11 + $0x10d0] ss:$8 sps:$4 sm:$0xff]  }
 0x182   : > { %v5378_v53 = vpop.f32.mrf.mxu0  ;;  %v7130_v27 = vpop.f32.mrf.mxu1 }
 0x184   : > { %v19214_v39 = vpop.f32.mrf.mxu0  ;;  %5572 = vmatmul.mubr.bf16.gmra.mxu0 %v17439_v38  ;;  %v19216_v11 = vpop.f32.mrf.mxu1  ;;  %7324 = vmatmul.mubr.bf16.gmra.mxu1 %v17496_v62  ;;  %v17506_v38 = vld [vmem:[%s18787_s11 + $0x1064] ss:$8 sps:$4 sm:$0xff]  }
 0x185   : > { %24744 = vst [vmem:[#allocation39_spill] sm:$0xff] %v19214_v39  ;;  %24745 = vst [vmem:[#allocation40_spill] sm:$0xff] %v19216_v11  ;;  %15991 = vmatprep.mubr.msk.bf16.mxu0 %vm4150_vm0, %v17443_v50  ;;  %16210 = vmatprep.mubr.msk.bf16.mxu1 %vm4150_vm0, %v17500_v2  ;;  %v17544_v39 = vld [vmem:[%s18787_s11 + $0x10c0] ss:$8 sps:$4 sm:$0xff]  }
 0x186   : > { %v5383_v18 = vpop.f32.mrf.mxu0  ;;  %v7135_v45 = vpop.f32.mrf.mxu1 }
 0x187   : > { %v17451_v18 = vld [vmem:[%s18787_s11 + $0x2b0] ss:$8 sps:$4 sm:$0xff]  }
 0x188   : > { %v19223_v53 = vpop.f32.mrf.mxu0  ;;  %v19225_v27 = vpop.f32.mrf.mxu1 }
 0x189   : > { %24746 = vst [vmem:[#allocation41_spill] sm:$0xff] %v19223_v53  ;;  %24747 = vst [vmem:[#allocation42_spill] sm:$0xff] %v19225_v27 }
 0x18a   : > { %v5386_v33 = vpop.f32.mrf.mxu0  ;;  %v7138_v62 = vpop.f32.mrf.mxu1 }
 0x18c   : > { %v19228_v21 = vpop.f32.mrf.mxu0  ;;  %5580 = vmatmul.mubr.bf16.gmra.mxu0 %v17445_v35  ;;  %v19230_v50 = vpop.f32.mrf.mxu1  ;;  %7332 = vmatmul.mubr.bf16.gmra.mxu1 %v17502_v40  ;;  %v17512_v35 = vld [vmem:[%s18787_s11 + $0x1074] ss:$8 sps:$4 sm:$0xff]  }
 0x18d   : > { %24748 = vst [vmem:[#allocation43_spill] sm:$0xff] %v19228_v21  ;;  %24749 = vst [vmem:[#allocation44_spill] sm:$0xff] %v19230_v50  ;;  %15992 = vmatprep.mubr.msk.bf16.mxu0 %vm4150_vm0, %v17449_v30  ;;  %16211 = vmatprep.mubr.msk.bf16.mxu1 %vm4150_vm0, %v17506_v38 }
 0x18e   : > { %v5391_v2 = vpop.f32.mrf.mxu0  ;;  %v7143_v45 = vpop.f32.mrf.mxu1 }
 0x18f   : > { %v17457_v2 = vld [vmem:[%s18787_s11 + $0x2c0] ss:$8 sps:$4 sm:$0xff]  }
 0x190   : > { %v19237_v33 = vpop.f32.mrf.mxu0  ;;  %v19239_v62 = vpop.f32.mrf.mxu1 }
 0x191   : > { %24750 = vst [vmem:[#allocation45_spill] sm:$0xff] %v19237_v33  ;;  %24751 = vst [vmem:[#allocation46_spill] sm:$0xff] %v19239_v62  ;;  %v17514_v33 = vld [vmem:[%s18787_s11 + $0x1070] ss:$8 sps:$4 sm:$0xff]   ;;  %v17461_v62 = vld [vmem:[%s18787_s11 + $0x2d4] ss:$8 sps:$4 sm:$0xff]  }
 0x192   : > { %v5394_v21 = vpop.f32.mrf.mxu0  ;;  %v7146_v40 = vpop.f32.mrf.mxu1 }
 0x194   : > { %v19242_v50 = vpop.f32.mrf.mxu0  ;;  %5588 = vmatmul.mubr.bf16.gmra.mxu0 %v17451_v18  ;;  %v19244_v30 = vpop.f32.mrf.mxu1  ;;  %7340 = vmatmul.mubr.bf16.gmra.mxu1 %v17508_v22  ;;  %v17518_v18 = vld [vmem:[%s18787_s11 + $0x1084] ss:$8 sps:$4 sm:$0xff]  }
 0x195   : > { %24752 = vst [vmem:[#allocation47_spill] sm:$0xff] %v19242_v50  ;;  %24753 = vst [vmem:[#allocation48_spill] sm:$0xff] %v19244_v30  ;;  %15993 = vmatprep.mubr.msk.bf16.mxu0 %vm4150_vm0, %v17455_v14  ;;  %16212 = vmatprep.mubr.msk.bf16.mxu1 %vm4150_vm0, %v17512_v35 }
 0x196   : > { %v5399_v38 = vpop.f32.mrf.mxu0  ;;  %v7151_v45 = vpop.f32.mrf.mxu1 }
 0x197   : > { %v17463_v38 = vld [vmem:[%s18787_s11 + $0x2d0] ss:$8 sps:$4 sm:$0xff]  }
 0x198   : > { %v19251_v21 = vpop.f32.mrf.mxu0  ;;  %v19253_v40 = vpop.f32.mrf.mxu1 }
 0x199   : > { %24754 = vst [vmem:[#allocation49_spill] sm:$0xff] %v19251_v21  ;;  %24755 = vst [vmem:[#allocation50_spill] sm:$0xff] %v19253_v40  ;;  %v17520_v21 = vld [vmem:[%s18787_s11 + $0x1080] ss:$8 sps:$4 sm:$0xff]   ;;  %v17467_v40 = vld [vmem:[%s18787_s11 + $0x2e4] ss:$8 sps:$4 sm:$0xff]  }
 0x19a   : > { %v5402_v50 = vpop.f32.mrf.mxu0  ;;  %v7154_v22 = vpop.f32.mrf.mxu1 }
 0x19c   : > { %v19256_v30 = vpop.f32.mrf.mxu0  ;;  %5596 = vmatmul.mubr.bf16.gmra.mxu0 %v17457_v2  ;;  %v19258_v14 = vpop.f32.mrf.mxu1  ;;  %7348 = vmatmul.mubr.bf16.gmra.mxu1 %v17514_v33  ;;  %v17524_v2 = vld [vmem:[%s18787_s11 + $0x1094] ss:$8 sps:$4 sm:$0xff]  }
 0x19d   : > { %24756 = vst [vmem:[#allocation51_spill] sm:$0xff] %v19256_v30  ;;  %24757 = vst [vmem:[#allocation52_spill] sm:$0xff] %v19258_v14  ;;  %15994 = vmatprep.mubr.msk.bf16.mxu0 %vm4150_vm0, %v17461_v62  ;;  %16213 = vmatprep.mubr.msk.bf16.mxu1 %vm4150_vm0, %v17518_v18 }
 0x19e   : > { %v5407_v35 = vpop.f32.mrf.mxu0  ;;  %v7159_v45 = vpop.f32.mrf.mxu1 }
 0x19f   : > { %v17469_v35 = vld [vmem:[%s18787_s11 + $0x2e0] ss:$8 sps:$4 sm:$0xff]  }
 0x1a0   : > { %v19265_v50 = vpop.f32.mrf.mxu0  ;;  %v19267_v22 = vpop.f32.mrf.mxu1 }
 0x1a1   : > { %24758 = vst [vmem:[#allocation53_spill] sm:$0xff] %v19265_v50  ;;  %24759 = vst [vmem:[#allocation54_spill] sm:$0xff] %v19267_v22  ;;  %v17526_v50 = vld [vmem:[%s18787_s11 + $0x1090] ss:$8 sps:$4 sm:$0xff]   ;;  %v17473_v22 = vld [vmem:[%s18787_s11 + $0x2f4] ss:$8 sps:$4 sm:$0xff]  }
 0x1a2   : > { %v5410_v30 = vpop.f32.mrf.mxu0  ;;  %v7162_v33 = vpop.f32.mrf.mxu1 }
 0x1a4   : > { %v19270_v14 = vpop.f32.mrf.mxu0  ;;  %5604 = vmatmul.mubr.bf16.gmra.mxu0 %v17463_v38  ;;  %v19272_v62 = vpop.f32.mrf.mxu1  ;;  %7356 = vmatmul.mubr.bf16.gmra.mxu1 %v17520_v21  ;;  %v17530_v38 = vld [vmem:[%s18787_s11 + $0x10a4] ss:$8 sps:$4 sm:$0xff]  }
 0x1a5   : > { %24760 = vst [vmem:[#allocation55_spill] sm:$0xff] %v19270_v14  ;;  %24761 = vst [vmem:[#allocation56_spill] sm:$0xff] %v19272_v62  ;;  %15995 = vmatprep.mubr.msk.bf16.mxu0 %vm4150_vm0, %v17467_v40  ;;  %16214 = vmatprep.mubr.msk.bf16.mxu1 %vm4150_vm0, %v17524_v2 }
 0x1a6   : > { %v5415_v18 = vpop.f32.mrf.mxu0  ;;  %v7167_v45 = vpop.f32.mrf.mxu1 }
 0x1a7   : > { %v17475_v18 = vld [vmem:[%s18787_s11 + $0x2f0] ss:$8 sps:$4 sm:$0xff]  }
 0x1a8   : > { %v19279_v30 = vpop.f32.mrf.mxu0  ;;  %v19281_v33 = vpop.f32.mrf.mxu1 }
 0x1a9   : > { %24762 = vst [vmem:[#allocation57_spill] sm:$0xff] %v19279_v30  ;;  %24763 = vst [vmem:[#allocation58_spill] sm:$0xff] %v19281_v33  ;;  %v17532_v30 = vld [vmem:[%s18787_s11 + $0x10a0] ss:$8 sps:$4 sm:$0xff]   ;;  %v17479_v33 = vld [vmem:[%s18787_s11 + $0x304] ss:$8 sps:$4 sm:$0xff]  }
 0x1aa   : > { %v5418_v14 = vpop.f32.mrf.mxu0  ;;  %v7170_v21 = vpop.f32.mrf.mxu1 }
 0x1ac   : > { %v19284_v62 = vpop.f32.mrf.mxu0  ;;  %5612 = vmatmul.mubr.bf16.gmra.mxu0 %v17469_v35  ;;  %v19286_v40 = vpop.f32.mrf.mxu1  ;;  %7364 = vmatmul.mubr.bf16.gmra.mxu1 %v17526_v50  ;;  %v17536_v35 = vld [vmem:[%s18787_s11 + $0x10b4] ss:$8 sps:$4 sm:$0xff]  }
 0x1ad   : > { %24764 = vst [vmem:[#allocation59_spill] sm:$0xff] %v19286_v40  ;;  %15996 = vmatprep.mubr.msk.bf16.mxu0 %vm4150_vm0, %v17473_v22  ;;  %16215 = vmatprep.mubr.msk.bf16.mxu1 %vm4150_vm0, %v17530_v38 }
 0x1ae   : > { %v5423_v2 = vpop.f32.mrf.mxu0  ;;  %v7175_v45 = vpop.f32.mrf.mxu1 }
 0x1af   : > { %v17481_v2 = vld [vmem:[%s18787_s11 + $0x300] ss:$8 sps:$4 sm:$0xff]  }
 0x1b0   : > { %v19293_v14 = vpop.f32.mrf.mxu0  ;;  %v19295_v21 = vpop.f32.mrf.mxu1 }
 0x1b1   : > { %24765 = vst [vmem:[#allocation60_spill] sm:$0xff] %v19295_v21  ;;  %v17485_v21 = vld [vmem:[%s18787_s11 + $0x314] ss:$8 sps:$4 sm:$0xff]  }
 0x1b2   : > { %v5426_v40 = vpop.f32.mrf.mxu0  ;;  %v7178_v50 = vpop.f32.mrf.mxu1 }
 0x1b4   : > { %v19298_v53 = vpop.f32.mrf.mxu0  ;;  %5620 = vmatmul.mubr.bf16.gmra.mxu0 %v17475_v18  ;;  %v19300_v22 = vpop.f32.mrf.mxu1  ;;  %7372 = vmatmul.mubr.bf16.gmra.mxu1 %v17532_v30  ;;  %v17542_v18 = vld [vmem:[%s18787_s11 + $0x10c4] ss:$8 sps:$4 sm:$0xff]  }
 0x1b5   : > { %15997 = vmatprep.mubr.msk.bf16.mxu0 %vm4150_vm0, %v17479_v33  ;;  %16216 = vmatprep.mubr.msk.bf16.mxu1 %vm4150_vm0, %v17536_v35 }
 0x1b6   : > { %v5431_v38 = vpop.f32.mrf.mxu0  ;;  %v7183_v45 = vpop.f32.mrf.mxu1 }
 0x1b7   : > { %v17487_v38 = vld [vmem:[%s18787_s11 + $0x310] ss:$8 sps:$4 sm:$0xff]  }
 0x1b8   : > { %v19307_v40 = vpop.f32.mrf.mxu0  ;;  %v19309_v50 = vpop.f32.mrf.mxu1 }
 0x1ba   : > { %v5434_v27 = vpop.f32.mrf.mxu0  ;;  %v7186_v30 = vpop.f32.mrf.mxu1 }
 0x1bc   : > { %v19312_v3 = vpop.f32.mrf.mxu0  ;;  %5628 = vmatmul.mubr.bf16.gmra.mxu0 %v17481_v2  ;;  %v19314_v33 = vpop.f32.mrf.mxu1  ;;  %7380 = vmatmul.mubr.bf16.gmra.mxu1 %v17538_v15  ;;  %v17548_v2 = vld [vmem:[%s18787_s11 + $0x10d4] ss:$8 sps:$4 sm:$0xff]  }
 0x1bd   : > { %15998 = vmatprep.mubr.msk.bf16.mxu0 %vm4150_vm0, %v17485_v21  ;;  %16217 = vmatprep.mubr.msk.bf16.mxu1 %vm4150_vm0, %v17542_v18 }
 0x1be   : > { %v5439_v35 = vpop.f32.mrf.mxu0  ;;  %v7191_v45 = vpop.f32.mrf.mxu1 }
 0x1bf   : > { %v17493_v35 = vld [vmem:[%s18787_s11 + $0x320] ss:$8 sps:$4 sm:$0xff]  }
 0x1c0   : > { %v19321_v27 = vpop.f32.mrf.mxu0  ;;  %v19323_v30 = vpop.f32.mrf.mxu1 }
 0x1c2   : > { %v5442_v11 = vpop.f32.mrf.mxu0  ;;  %v7194_v15 = vpop.f32.mrf.mxu1 }
 0x1c4   : > { %v19326_v57 = vpop.f32.mrf.mxu0  ;;  %5636 = vmatmul.mubr.bf16.gmra.mxu0 %v17487_v38  ;;  %v19328_v21 = vpop.f32.mrf.mxu1  ;;  %7388 = vmatmul.mubr.bf16.gmra.mxu1 %v17544_v39  ;;  %v17554_v38 = vld [vmem:[%s18787_s11 + $0x10e4] ss:$8 sps:$4 sm:$0xff]  }
 0x1c5   : > { %15999 = vmatprep.mubr.msk.bf16.mxu0 %vm4150_vm0, %v17491_v4  ;;  %16218 = vmatprep.mubr.msk.bf16.mxu1 %vm4150_vm0, %v17548_v2 }
 0x1c6   : > { %v5447_v18 = vpop.f32.mrf.mxu0  ;;  %v7199_v45 = vpop.f32.mrf.mxu1 }
 0x1c7   : > { %v17499_v18 = vld [vmem:[%s18787_s11 + $0x330] ss:$8 sps:$4 sm:$0xff]  }
 0x1c8   : > { %v19335_v11 = vpop.f32.mrf.mxu0  ;;  %v19337_v15 = vpop.f32.mrf.mxu1 }
 0x1ca   : > { %v5450_v55 = vpop.f32.mrf.mxu0  ;;  %v7202_v39 = vpop.f32.mrf.mxu1 }
 0x1cc   : > { %v19340_v48 = vpop.f32.mrf.mxu0  ;;  %5644 = vmatmul.mubr.bf16.gmra.mxu0 %v17493_v35  ;;  %v19342_v4 = vpop.f32.mrf.mxu1  ;;  %7396 = vmatmul.mubr.bf16.gmra.mxu1 %v17550_v16  ;;  %v17560_v35 = vld [vmem:[%s18787_s11 + $0x10f4] ss:$8 sps:$4 sm:$0xff]  }
 0x1cd   : > { %16000 = vmatprep.mubr.msk.bf16.mxu0 %vm4150_vm0, %v17497_v60  ;;  %16219 = vmatprep.mubr.msk.bf16.mxu1 %vm4150_vm0, %v17554_v38 }
 0x1ce   : > { %v5455_v2 = vpop.f32.mrf.mxu0  ;;  %v7207_v45 = vpop.f32.mrf.mxu1 }
 0x1cf   : > { %v17505_v2 = vld [vmem:[%s18787_s11 + $0x340] ss:$8 sps:$4 sm:$0xff]  }
 0x1d0   : > { %v19349_v55 = vpop.f32.mrf.mxu0  ;;  %v19351_v39 = vpop.f32.mrf.mxu1 }
 0x1d1   : > { %24766 = vst [vmem:[#allocation61_spill] sm:$0xff] %v19349_v55  ;;  %24767 = vst [vmem:[#allocation62_spill] sm:$0xff] %v19351_v39  ;;  %v17562_v55 = vld [vmem:[%s18787_s11 + $0x10f0] ss:$8 sps:$4 sm:$0xff]   ;;  %v17509_v39 = vld [vmem:[%s18787_s11 + $0x354] ss:$8 sps:$4 sm:$0xff]  }
 0x1d2   : > { %v5458_v41 = vpop.f32.mrf.mxu0  ;;  %v7210_v16 = vpop.f32.mrf.mxu1 }
 0x1d4   : > { %v19354_v43 = vpop.f32.mrf.mxu0  ;;  %5652 = vmatmul.mubr.bf16.gmra.mxu0 %v17499_v18  ;;  %v19356_v60 = vpop.f32.mrf.mxu1  ;;  %7404 = vmatmul.mubr.bf16.gmra.mxu1 %v17556_v61  ;;  %v17566_v18 = vld [vmem:[%s18787_s11 + $0x1104] ss:$8 sps:$4 sm:$0xff]  }
 0x1d5   : > { %24768 = vst [vmem:[#allocation63_spill] sm:$0xff] %v19354_v43  ;;  %24769 = vst [vmem:[#allocation64_spill] sm:$0xff] %v19356_v60  ;;  %16001 = vmatprep.mubr.msk.bf16.mxu0 %vm4150_vm0, %v17503_v49  ;;  %16220 = vmatprep.mubr.msk.bf16.mxu1 %vm4150_vm0, %v17560_v35 }
 0x1d6   : > { %v5463_v38 = vpop.f32.mrf.mxu0  ;;  %v7215_v45 = vpop.f32.mrf.mxu1 }
 0x1d7   : > { %v17511_v38 = vld [vmem:[%s18787_s11 + $0x350] ss:$8 sps:$4 sm:$0xff]  }
 0x1d8   : > { %v19363_v41 = vpop.f32.mrf.mxu0  ;;  %v19365_v16 = vpop.f32.mrf.mxu1 }
 0x1d9   : > { %24770 = vst [vmem:[#allocation65_spill] sm:$0xff] %v19363_v41  ;;  %24771 = vst [vmem:[#allocation66_spill] sm:$0xff] %v19365_v16  ;;  %v17568_v41 = vld [vmem:[%s18787_s11 + $0x1100] ss:$8 sps:$4 sm:$0xff]   ;;  %v17515_v16 = vld [vmem:[%s18787_s11 + $0x364] ss:$8 sps:$4 sm:$0xff]  }
 0x1da   : > { %v5466_v60 = vpop.f32.mrf.mxu0  ;;  %v7218_v61 = vpop.f32.mrf.mxu1 }
 0x1dc   : > { %v19368_v43 = vpop.f32.mrf.mxu0  ;;  %5660 = vmatmul.mubr.bf16.gmra.mxu0 %v17505_v2  ;;  %v19370_v49 = vpop.f32.mrf.mxu1  ;;  %7412 = vmatmul.mubr.bf16.gmra.mxu1 %v17562_v55  ;;  %v17572_v2 = vld [vmem:[%s18787_s11 + $0x1114] ss:$8 sps:$4 sm:$0xff]  }
 0x1dd   : > { %24772 = vst [vmem:[#allocation67_spill] sm:$0xff] %v19368_v43  ;;  %24773 = vst [vmem:[#allocation68_spill] sm:$0xff] %v19370_v49  ;;  %16002 = vmatprep.mubr.msk.bf16.mxu0 %vm4150_vm0, %v17509_v39  ;;  %16221 = vmatprep.mubr.msk.bf16.mxu1 %vm4150_vm0, %v17566_v18 }
 0x1de   : > { %v5471_v35 = vpop.f32.mrf.mxu0  ;;  %v7223_v45 = vpop.f32.mrf.mxu1 }
 0x1df   : > { %v17517_v35 = vld [vmem:[%s18787_s11 + $0x360] ss:$8 sps:$4 sm:$0xff]  }
 0x1e0   : > { %v19377_v60 = vpop.f32.mrf.mxu0  ;;  %v19379_v61 = vpop.f32.mrf.mxu1 }
 0x1e1   : > { %24774 = vst [vmem:[#allocation69_spill] sm:$0xff] %v19377_v60  ;;  %24775 = vst [vmem:[#allocation70_spill] sm:$0xff] %v19379_v61  ;;  %v17574_v60 = vld [vmem:[%s18787_s11 + $0x1110] ss:$8 sps:$4 sm:$0xff]   ;;  %v17521_v61 = vld [vmem:[%s18787_s11 + $0x374] ss:$8 sps:$4 sm:$0xff]  }
 0x1e2   : > { %v5474_v49 = vpop.f32.mrf.mxu0  ;;  %v7226_v55 = vpop.f32.mrf.mxu1 }
 0x1e4   : > { %v19382_v43 = vpop.f32.mrf.mxu0  ;;  %5668 = vmatmul.mubr.bf16.gmra.mxu0 %v17511_v38  ;;  %v19384_v39 = vpop.f32.mrf.mxu1  ;;  %7420 = vmatmul.mubr.bf16.gmra.mxu1 %v17568_v41  ;;  %v17578_v38 = vld [vmem:[%s18787_s11 + $0x1124] ss:$8 sps:$4 sm:$0xff]  }
 0x1e5   : > { %24776 = vst [vmem:[#allocation71_spill] sm:$0xff] %v19382_v43  ;;  %24777 = vst [vmem:[#allocation72_spill] sm:$0xff] %v19384_v39  ;;  %16003 = vmatprep.mubr.msk.bf16.mxu0 %vm4150_vm0, %v17515_v16  ;;  %16222 = vmatprep.mubr.msk.bf16.mxu1 %vm4150_vm0, %v17572_v2 }
 0x1e6   : > { %v5479_v18 = vpop.f32.mrf.mxu0  ;;  %v7231_v45 = vpop.f32.mrf.mxu1 }
 0x1e7   : > { %v17523_v18 = vld [vmem:[%s18787_s11 + $0x370] ss:$8 sps:$4 sm:$0xff]  }
 0x1e8   : > { %v19391_v49 = vpop.f32.mrf.mxu0  ;;  %v19393_v55 = vpop.f32.mrf.mxu1 }
 0x1e9   : > { %24778 = vst [vmem:[#allocation73_spill] sm:$0xff] %v19391_v49  ;;  %24779 = vst [vmem:[#allocation74_spill] sm:$0xff] %v19393_v55  ;;  %v17580_v49 = vld [vmem:[%s18787_s11 + $0x1120] ss:$8 sps:$4 sm:$0xff]   ;;  %v17527_v55 = vld [vmem:[%s18787_s11 + $0x384] ss:$8 sps:$4 sm:$0xff]  }
 0x1ea   : > { %v5482_v39 = vpop.f32.mrf.mxu0  ;;  %v7234_v41 = vpop.f32.mrf.mxu1 }
 0x1ec   : > { %v19396_v43 = vpop.f32.mrf.mxu0  ;;  %5676 = vmatmul.mubr.bf16.gmra.mxu0 %v17517_v35  ;;  %v19398_v16 = vpop.f32.mrf.mxu1  ;;  %7428 = vmatmul.mubr.bf16.gmra.mxu1 %v17574_v60  ;;  %v17584_v35 = vld [vmem:[%s18787_s11 + $0x1134] ss:$8 sps:$4 sm:$0xff]  }
 0x1ed   : > { %24780 = vst [vmem:[#allocation75_spill] sm:$0xff] %v19396_v43  ;;  %24781 = vst [vmem:[#allocation76_spill] sm:$0xff] %v19398_v16  ;;  %16004 = vmatprep.mubr.msk.bf16.mxu0 %vm4150_vm0, %v17521_v61  ;;  %16223 = vmatprep.mubr.msk.bf16.mxu1 %vm4150_vm0, %v17578_v38 }
 0x1ee   : > { %v5487_v2 = vpop.f32.mrf.mxu0  ;;  %v7239_v45 = vpop.f32.mrf.mxu1 }
 0x1ef   : > { %v17529_v2 = vld [vmem:[%s18787_s11 + $0x380] ss:$8 sps:$4 sm:$0xff]  }
 0x1f0   : > { %v19405_v39 = vpop.f32.mrf.mxu0  ;;  %v19407_v41 = vpop.f32.mrf.mxu1 }
 0x1f1   : > { %24782 = vst [vmem:[#allocation77_spill] sm:$0xff] %v19405_v39  ;;  %24783 = vst [vmem:[#allocation78_spill] sm:$0xff] %v19407_v41  ;;  %v17586_v39 = vld [vmem:[%s18787_s11 + $0x1130] ss:$8 sps:$4 sm:$0xff]   ;;  %v17533_v41 = vld [vmem:[%s18787_s11 + $0x394] ss:$8 sps:$4 sm:$0xff]  }
 0x1f2   : > { %v5490_v16 = vpop.f32.mrf.mxu0  ;;  %v7242_v60 = vpop.f32.mrf.mxu1 }
 0x1f4   : > { %v19410_v43 = vpop.f32.mrf.mxu0  ;;  %5684 = vmatmul.mubr.bf16.gmra.mxu0 %v17523_v18  ;;  %v19412_v61 = vpop.f32.mrf.mxu1  ;;  %7436 = vmatmul.mubr.bf16.gmra.mxu1 %v17580_v49  ;;  %v17590_v18 = vld [vmem:[%s18787_s11 + $0x1144] ss:$8 sps:$4 sm:$0xff]  }
 0x1f5   : > { %24784 = vst [vmem:[#allocation79_spill] sm:$0xff] %v19410_v43  ;;  %24785 = vst [vmem:[#allocation80_spill] sm:$0xff] %v19412_v61  ;;  %16005 = vmatprep.mubr.msk.bf16.mxu0 %vm4150_vm0, %v17527_v55  ;;  %16224 = vmatprep.mubr.msk.bf16.mxu1 %vm4150_vm0, %v17584_v35 }
 0x1f6   : > { %v5495_v38 = vpop.f32.mrf.mxu0  ;;  %v7247_v45 = vpop.f32.mrf.mxu1 }
 0x1f7   : > { %v17535_v38 = vld [vmem:[%s18787_s11 + $0x390] ss:$8 sps:$4 sm:$0xff]  }
 0x1f8   : > { %v19419_v16 = vpop.f32.mrf.mxu0  ;;  %v19421_v60 = vpop.f32.mrf.mxu1 }
 0x1f9   : > { %24786 = vst [vmem:[#allocation81_spill] sm:$0xff] %v19419_v16  ;;  %24787 = vst [vmem:[#allocation82_spill] sm:$0xff] %v19421_v60  ;;  %v17592_v16 = vld [vmem:[%s18787_s11 + $0x1140] ss:$8 sps:$4 sm:$0xff]   ;;  %v17539_v60 = vld [vmem:[%s18787_s11 + $0x3a4] ss:$8 sps:$4 sm:$0xff]  }
 0x1fa   : > { %v5498_v61 = vpop.f32.mrf.mxu0  ;;  %v7250_v49 = vpop.f32.mrf.mxu1 }
 0x1fb   : > { %v17596_v49 = vld [vmem:[%s18787_s11 + $0x1154] ss:$8 sps:$4 sm:$0xff]  }
 0x1fc   : > { %v19424_v43 = vpop.f32.mrf.mxu0  ;;  %5692 = vmatmul.mubr.bf16.gmra.mxu0 %v17529_v2  ;;  %v19426_v55 = vpop.f32.mrf.mxu1  ;;  %7444 = vmatmul.mubr.bf16.gmra.mxu1 %v17586_v39 }
 0x1fd   : > { %24788 = vst [vmem:[#allocation83_spill] sm:$0xff] %v19424_v43  ;;  %24789 = vst [vmem:[#allocation84_spill] sm:$0xff] %v19426_v55  ;;  %16006 = vmatprep.mubr.msk.bf16.mxu0 %vm4150_vm0, %v17533_v41  ;;  %16225 = vmatprep.mubr.msk.bf16.mxu1 %vm4150_vm0, %v17590_v18  ;;  %v8060_v41 = vmax.f32 %v18976_v51, %v19130_v54  ;;  %v17545_v51 = vld [vmem:[%s18787_s11 + $0x3b4] ss:$8 sps:$4 sm:$0xff]   ;;  %v17602_v54 = vld [vmem:[%s18787_s11 + $0x1164] ss:$8 sps:$4 sm:$0xff]  }
 0x1fe   : > { %v5503_v35 = vpop.f32.mrf.mxu0  ;;  %v7255_v45 = vpop.f32.mrf.mxu1 }
 0x1ff   : > { %v17541_v45 = vld [vmem:[%s18787_s11 + $0x3a0] ss:$8 sps:$4 sm:$0xff]  }
 0x200   : > { %v19433_v42 = vpop.f32.mrf.mxu0  ;;  %v19435_v61 = vpop.f32.mrf.mxu1 }
 0x201   : > { %24790 = vst [vmem:[#allocation85_spill] sm:$0xff] %v19433_v42  ;;  %24791 = vst [vmem:[#allocation86_spill] sm:$0xff] %v19435_v61 }
 0x202   : > { %v5506_v2 = vpop.f32.mrf.mxu0  ;;  %v7258_v43 = vpop.f32.mrf.mxu1 }
 0x203   : > { %v17598_v43 = vld [vmem:[%s18787_s11 + $0x1150] ss:$8 sps:$4 sm:$0xff]  }
 0x204   : > { %v5509_v55 = vpop.f32.mrf.mxu0  ;;  %5700 = vmatmul.mubr.bf16.gmra.mxu0 %v17535_v38  ;;  %v19438_v39 = vpop.f32.mrf.mxu1  ;;  %7452 = vmatmul.mubr.bf16.gmra.mxu1 %v17592_v16  ;;  %v8061_v16 = vmax.f32 %v18985_v58, %v19139_v10 }
 0x205   : > { %24792 = vst [vmem:[#allocation87_spill] sm:$0xff] %v19438_v39  ;;  %v8236_v18 = vmax.f32 %v19284_v62, %v5509_v55  ;;  %16007 = vmatprep.mubr.msk.bf16.mxu0 %vm4150_vm0, %v17539_v60  ;;  %16226 = vmatprep.mubr.msk.bf16.mxu1 %vm4150_vm0, %v17596_v49  ;;  %v8170_v55 = vmax.f32 %v18992_v0, %v19146_v34  ;;  %v17547_v34 = vld [vmem:[%s18787_s11 + $0x3b0] ss:$8 sps:$4 sm:$0xff]  }
 0x206   : > { %v5511_v35 = vpop.f32.mrf.mxu0  ;;  %v7263_v2 = vpop.f32.mrf.mxu1 }
 0x207   : > { %v8412_v61 = vmax.f32 %v8060_v41, %v8236_v18  ;;  %v8062_v41 = vmax.f32 %v18990_v63, %v19144_v29  ;;  %v17604_v63 = vld [vmem:[%s18787_s11 + $0x1160] ss:$8 sps:$4 sm:$0xff]  }
 0x208   : > { %v5512_v38 = vpop.f32.mrf.mxu0  ;;  %v19447_v42 = vpop.f32.mrf.mxu1 }
 0x209   : > { %v8237_v39 = vmax.f32 %v19293_v14, %v5512_v38  ;;  %v8588_v58 = vmax.f32 %v8412_v61, 0.0  ;;  %v8171_v61 = vmax.f32 %v19001_v8, %v19155_v5  ;;  %v8064_v8 = vmax.f32 %v19004_v12, %v19158_v28  ;;  %v17553_v12 = vld [vmem:[%s18787_s11 + $0x3c0] ss:$8 sps:$4 sm:$0xff]  }
 0x20a   : > { %v5514_v62 = vpop.f32.mrf.mxu0  ;;  %v7266_v60 = vpop.f32.mrf.mxu1 }
 0x20b   : > { %v8413_v49 = vmax.f32 %v8061_v16, %v8237_v39  ;;  %v8063_v16 = vmax.f32 %v18999_v7, %v19153_v56 }
 0x20c   : > { %v5517_v18 = vpop.f32.mrf.mxu0  ;;  %5708 = vmatmul.mubr.bf16.gmra.mxu0 %v17541_v45  ;;  %v7269_v35 = vpop.f32.mrf.mxu1  ;;  %7460 = vmatmul.mubr.bf16.gmra.mxu1 %v17598_v43 }
 0x20d   : > { %v8589_v10 = vmax.f32 %v8413_v49, 0.0  ;;  %v8238_v14 = vmax.f32 %v19298_v53, %v5517_v18  ;;  %16008 = vmatprep.mubr.msk.bf16.mxu0 %vm4150_vm0, %v17545_v51  ;;  %v8346_v2 = vmax.f32 %v19300_v22, %v7269_v35  ;;  %16227 = vmatprep.mubr.msk.bf16.mxu1 %vm4150_vm0, %v17602_v54  ;;  %v17551_v51 = vld [vmem:[%s18787_s11 + $0x3c4] ss:$8 sps:$4 sm:$0xff]   ;;  %v17608_v54 = vld [vmem:[%s18787_s11 + $0x1174] ss:$8 sps:$4 sm:$0xff]  }
 0x20e   : > { %v5519_v0 = vpop.f32.mrf.mxu0  ;;  %v7271_v39 = vpop.f32.mrf.mxu1 }
 0x20f   : > { %v19464_v29 = vpack.c.bf16 %v8589_v10, %v8588_v58  ;;  %v8414_v45 = vmax.f32 %v8062_v41, %v8238_v14  ;;  %v8522_v43 = vmax.f32 %v8170_v55, %v8346_v2  ;;  %v8172_v55 = vmax.f32 %v19006_v13, %v19160_v9  ;;  %v17610_v10 = vld [vmem:[%s18787_s11 + $0x1170] ss:$8 sps:$4 sm:$0xff]  }
 0x210   : > { %v5520_v53 = vpop.f32.mrf.mxu0  ;;  %v7272_v38 = vpop.f32.mrf.mxu1 }
 0x211   : > { %v8239_v22 = vmax.f32 %v19307_v40, %v5520_v53  ;;  %v8698_v60 = vmax.f32 %v8522_v43, 0.0  ;;  %v8347_v49 = vmax.f32 %v19309_v50, %v7272_v38  ;;  %v8590_v40 = vmax.f32 %v8414_v45, 0.0  ;;  %v17557_v43 = vld [vmem:[%s18787_s11 + $0x3d4] ss:$8 sps:$4 sm:$0xff]  }
 0x212   : > { %v5522_v62 = vpop.f32.mrf.mxu0  ;;  %v7274_v18 = vpop.f32.mrf.mxu1 }
 0x213   : > { %v8415_v41 = vmax.f32 %v8063_v16, %v8239_v22  ;;  %v8523_v7 = vmax.f32 %v8171_v61, %v8347_v49  ;;  %v17614_v61 = vld [vmem:[%s18787_s11 + $0x1184] ss:$8 sps:$4 sm:$0xff]   ;;  %v17616_v49 = vld [vmem:[%s18787_s11 + $0x1180] ss:$8 sps:$4 sm:$0xff]  }
 0x214   : > { %v5525_v5 = vpop.f32.mrf.mxu0  ;;  %5716 = vmatmul.mubr.bf16.gmra.mxu0 %v17547_v34  ;;  %v7277_v56 = vpop.f32.mrf.mxu1  ;;  %7468 = vmatmul.mubr.bf16.gmra.mxu1 %v17604_v63  ;;  %v8065_v63 = vmax.f32 %v19013_v19, %v19167_v23 }
 0x215   : > { %v8591_v35 = vmax.f32 %v8415_v41, 0.0  ;;  %v8240_v58 = vmax.f32 %v19312_v3, %v5525_v5  ;;  %16009 = vmatprep.mubr.msk.bf16.mxu0 %vm4150_vm0, %v17551_v51  ;;  %v8348_v50 = vmax.f32 %v19314_v33, %v7277_v56  ;;  %16228 = vmatprep.mubr.msk.bf16.mxu1 %vm4150_vm0, %v17608_v54  ;;  %v8699_v28 = vmax.f32 %v8523_v7, 0.0 }
 0x216   : > { %v5527_v13 = vpop.f32.mrf.mxu0  ;;  %v7279_v9 = vpop.f32.mrf.mxu1  ;;  %v8173_v3 = vmax.f32 %v19015_v20, %v19169_v6  ;;  %v8174_v20 = vmax.f32 %v19020_v25, %v19174_v47  ;;  %v8066_v51 = vmax.f32 %v19018_v24, %v19172_v17  ;;  %v17559_v24 = vld [vmem:[%s18787_s11 + $0x3d0] ss:$8 sps:$4 sm:$0xff]   ;;  %v8067_v7 = vmax.f32 %v19027_v31, %v19181_v52 }
 0x217   : > { %v19484_v14 = vpack.c.bf16 %v8591_v35, %v8590_v40  ;;  %v8416_v2 = vmax.f32 %v8064_v8, %v8240_v58  ;;  %v8524_v0 = vmax.f32 %v8172_v55, %v8348_v50  ;;  %v19488_v39 = vpack.c.bf16 %v8699_v28, %v8698_v60  ;;  %v17563_v40 = vld [vmem:[%s18787_s11 + $0x3e4] ss:$8 sps:$4 sm:$0xff]   ;;  %v17620_v35 = vld [vmem:[%s18787_s11 + $0x1194] ss:$8 sps:$4 sm:$0xff]  }
 0x218   : > { %v5528_v34 = vpop.f32.mrf.mxu0  ;;  %v7280_v33 = vpop.f32.mrf.mxu1  ;;  %v8068_v28 = vmax.f32 %v19032_v36, %v19186_v26  ;;  %v17565_v36 = vld [vmem:[%s18787_s11 + $0x3e0] ss:$8 sps:$4 sm:$0xff]  }
 0x219   : > { %24793 = vst [vmem:[#allocation88_spill] sm:$0xff] %v19488_v39  ;;  %v8241_v45 = vmax.f32 %v19321_v27, %v5528_v34  ;;  %v8700_v38 = vmax.f32 %v8524_v0, 0.0  ;;  %v8349_v16 = vmax.f32 %v19323_v30, %v7280_v33  ;;  %v8592_v27 = vmax.f32 %v8416_v2, 0.0  ;;  %v17622_v0 = vld [vmem:[%s18787_s11 + $0x1190] ss:$8 sps:$4 sm:$0xff]  }
 0x21a   : > { %v5530_v53 = vpop.f32.mrf.mxu0  ;;  %v7282_v22 = vpop.f32.mrf.mxu1 }
 0x21b   : > { %v8417_v6 = vmax.f32 %v8065_v63, %v8241_v45  ;;  %v8525_v19 = vmax.f32 %v8173_v3, %v8349_v16  ;;  %v17569_v22 = vld [vmem:[%s18787_s11 + $0x3f4] ss:$8 sps:$4 sm:$0xff]  }
 0x21c   : > { %v5533_v54 = vpop.f32.mrf.mxu0  ;;  %5724 = vmatmul.mubr.bf16.gmra.mxu0 %v17553_v12  ;;  %v7285_v23 = vpop.f32.mrf.mxu1  ;;  %7476 = vmatmul.mubr.bf16.gmra.mxu1 %v17610_v10 }
 0x21d   : > { %v8593_v62 = vmax.f32 %v8417_v6, 0.0  ;;  %v8242_v60 = vmax.f32 %v19326_v57, %v5533_v54  ;;  %16010 = vmatprep.mubr.msk.bf16.mxu0 %vm4150_vm0, %v17557_v43  ;;  %v8350_v30 = vmax.f32 %v19328_v21, %v7285_v23  ;;  %16229 = vmatprep.mubr.msk.bf16.mxu1 %vm4150_vm0, %v17614_v61  ;;  %v8701_v17 = vmax.f32 %v8525_v19, 0.0  ;;  %v24797_v43 = vld [vmem:[#allocation34_spill] sm:$0xff]  ;;  %v24798_v61 = vld [vmem:[#allocation7_spill] sm:$0xff] }
 0x21e   : > { %v5535_v25 = vpop.f32.mrf.mxu0  ;;  %v7287_v47 = vpop.f32.mrf.mxu1  ;;  %v8175_v57 = vmax.f32 %v19029_v32, %v19183_v46  ;;  %v8176_v32 = vmax.f32 %v19034_v37, %v19188_v59  ;;  %v8069_v53 = vmax.f32 %v24798_v61, %v24797_v43  ;;  %v24800_v54 = vld [vmem:[#allocation62_spill] sm:$0xff] }
 0x21f   : > { %v19506_v18 = vpack.c.bf16 %v8593_v62, %v8592_v27  ;;  %v8418_v55 = vmax.f32 %v8066_v51, %v8242_v60  ;;  %v8526_v41 = vmax.f32 %v8174_v20, %v8350_v30  ;;  %v19510_v5 = vpack.c.bf16 %v8701_v17, %v8700_v38  ;;  %v24799_v38 = vld [vmem:[#allocation61_spill] sm:$0xff]  ;;  %v17626_v20 = vld [vmem:[%s18787_s11 + $0x11a4] ss:$8 sps:$4 sm:$0xff]  }
 0x220   : > { %v5536_v8 = vpop.f32.mrf.mxu0  ;;  %v7288_v21 = vpop.f32.mrf.mxu1  ;;  %v24801_v27 = vld [vmem:[#allocation36_spill] sm:$0xff]  ;;  %v24802_v62 = vld [vmem:[#allocation9_spill] sm:$0xff]  ;;  %v24803_v60 = vld [vmem:[#allocation35_spill] sm:$0xff] }
 0x221   : > { %24794 = vst [vmem:[#allocation89_spill] sm:$0xff] %v19510_v5  ;;  %v8243_v56 = vmax.f32 %v19335_v11, %v5536_v8  ;;  %v8702_v50 = vmax.f32 %v8526_v41, 0.0  ;;  %v8351_v13 = vmax.f32 %v19337_v15, %v7288_v21  ;;  %v8594_v11 = vmax.f32 %v8418_v55, 0.0  ;;  %v24804_v30 = vld [vmem:[#allocation8_spill] sm:$0xff]  ;;  %v24805_v41 = vld [vmem:[#allocation63_spill] sm:$0xff] }
 0x222   : > { %v5538_v58 = vpop.f32.mrf.mxu0  ;;  %v7290_v12 = vpop.f32.mrf.mxu1  ;;  %v8070_v25 = vmax.f32 %v24804_v30, %v24803_v60  ;;  %v24806_v8 = vld [vmem:[#allocation64_spill] sm:$0xff] }
 0x223   : > { %v8419_v46 = vmax.f32 %v8067_v7, %v8243_v56  ;;  %v8527_v31 = vmax.f32 %v8175_v57, %v8351_v13  ;;  %v17571_v56 = vld [vmem:[%s18787_s11 + $0x3f0] ss:$8 sps:$4 sm:$0xff]   ;;  %v17628_v58 = vld [vmem:[%s18787_s11 + $0x11a0] ss:$8 sps:$4 sm:$0xff]  }
 0x224   : > { %v5541_v9 = vpop.f32.mrf.mxu0  ;;  %5732 = vmatmul.mubr.bf16.gmra.mxu0 %v17559_v24  ;;  %v7293_v52 = vpop.f32.mrf.mxu1  ;;  %7484 = vmatmul.mubr.bf16.gmra.mxu1 %v17616_v49 }
 0x225   : > { %v8595_v10 = vmax.f32 %v8419_v46, 0.0  ;;  %v8244_v2 = vmax.f32 %v19340_v48, %v5541_v9  ;;  %16011 = vmatprep.mubr.msk.bf16.mxu0 %vm4150_vm0, %v17563_v40  ;;  %v8352_v15 = vmax.f32 %v19342_v4, %v7293_v52  ;;  %16230 = vmatprep.mubr.msk.bf16.mxu1 %vm4150_vm0, %v17620_v35  ;;  %v8703_v26 = vmax.f32 %v8527_v31, 0.0  ;;  %v24809_v46 = vld [vmem:[#allocation11_spill] sm:$0xff] }
 0x226   : > { %v5543_v37 = vpop.f32.mrf.mxu0  ;;  %v7295_v59 = vpop.f32.mrf.mxu1  ;;  %v8177_v48 = vmax.f32 %v19043_v44, %v19197_v1  ;;  %v8178_v44 = vmax.f32 %v24802_v62, %v24801_v27  ;;  %v24820_v27 = vld [vmem:[#allocation68_spill] sm:$0xff] }
 0x227   : > { %v19528_v3 = vpack.c.bf16 %v8595_v10, %v8594_v11  ;;  %v8420_v34 = vmax.f32 %v8068_v28, %v8244_v2  ;;  %v8528_v33 = vmax.f32 %v8176_v32, %v8352_v15  ;;  %v19532_v45 = vpack.c.bf16 %v8703_v26, %v8702_v50  ;;  %v24808_v32 = vld [vmem:[#allocation38_spill] sm:$0xff]  ;;  %v24811_v11 = vld [vmem:[#allocation37_spill] sm:$0xff] }
 0x228   : > { %v5544_v63 = vpop.f32.mrf.mxu0  ;;  %v7296_v4 = vpop.f32.mrf.mxu1  ;;  %v8179_v28 = vmax.f32 %v24809_v46, %v24808_v32  ;;  %v24812_v10 = vld [vmem:[#allocation10_spill] sm:$0xff]  ;;  %v24813_v15 = vld [vmem:[#allocation65_spill] sm:$0xff] }
 0x229   : > { %24795 = vst [vmem:[#allocation90_spill] sm:$0xff] %v19528_v3  ;;  %24796 = vst [vmem:[#allocation91_spill] sm:$0xff] %v19532_v45  ;;  %v8245_v16 = vmax.f32 %v24799_v38, %v5544_v63  ;;  %v8704_v51 = vmax.f32 %v8528_v33, 0.0  ;;  %v8353_v19 = vmax.f32 %v24800_v54, %v7296_v4  ;;  %v8596_v49 = vmax.f32 %v8420_v34, 0.0  ;;  %v17632_v26 = vld [vmem:[%s18787_s11 + $0x11b4] ss:$8 sps:$4 sm:$0xff]  }
 0x22a   : > { %v5546_v6 = vpop.f32.mrf.mxu0  ;;  %v7298_v23 = vpop.f32.mrf.mxu1  ;;  %v8071_v2 = vmax.f32 %v24812_v10, %v24811_v11  ;;  %v24814_v34 = vld [vmem:[#allocation66_spill] sm:$0xff]  ;;  %v24815_v63 = vld [vmem:[#allocation40_spill] sm:$0xff]  ;;  %v24816_v4 = vld [vmem:[#allocation13_spill] sm:$0xff] }
 0x22b   : > { %v8421_v1 = vmax.f32 %v8069_v53, %v8245_v16  ;;  %v8529_v17 = vmax.f32 %v8177_v48, %v8353_v19  ;;  %v8180_v43 = vmax.f32 %v24816_v4, %v24815_v63  ;;  %v24817_v53 = vld [vmem:[#allocation39_spill] sm:$0xff]  ;;  %v24818_v38 = vld [vmem:[#allocation12_spill] sm:$0xff]  ;;  %v24830_v10 = vld [vmem:[#allocation17_spill] sm:$0xff] }
 0x22c   : > { %v5549_v24 = vpop.f32.mrf.mxu0  ;;  %5740 = vmatmul.mubr.bf16.gmra.mxu0 %v17565_v36  ;;  %v7301_v47 = vpop.f32.mrf.mxu1  ;;  %7492 = vmatmul.mubr.bf16.gmra.mxu1 %v17622_v0  ;;  %v17575_v36 = vld [vmem:[%s18787_s11 + $0x404] ss:$8 sps:$4 sm:$0xff]   ;;  %v8072_v16 = vmax.f32 %v24818_v38, %v24817_v53  ;;  %v17583_v38 = vld [vmem:[%s18787_s11 + $0x410] ss:$8 sps:$4 sm:$0xff]  }
 0x22d   : > { %v8597_v55 = vmax.f32 %v8421_v1, 0.0  ;;  %v8246_v57 = vmax.f32 %v24805_v41, %v5549_v24  ;;  %16012 = vmatprep.mubr.msk.bf16.mxu0 %vm4150_vm0, %v17569_v22  ;;  %v8354_v21 = vmax.f32 %v24806_v8, %v7301_v47  ;;  %16231 = vmatprep.mubr.msk.bf16.mxu1 %vm4150_vm0, %v17626_v20  ;;  %v8705_v40 = vmax.f32 %v8529_v17, 0.0  ;;  %v24819_v19 = vld [vmem:[#allocation67_spill] sm:$0xff]  ;;  %v24829_v11 = vld [vmem:[#allocation44_spill] sm:$0xff]  ;;  %v17667_v45 = vld [vmem:[%s18787_s11 + $0x4f0] ss:$8 sps:$4 sm:$0xff]  }
 0x22e   : > { %v5551_v7 = vpop.f32.mrf.mxu0  ;;  %v7303_v35 = vpop.f32.mrf.mxu1  ;;  %v17577_v1 = vld [vmem:[%s18787_s11 + $0x400] ss:$8 sps:$4 sm:$0xff]  }
 0x22f   : > { %v19550_v50 = vpack.c.bf16 %v8597_v55, %v8596_v49  ;;  %v8422_v13 = vmax.f32 %v8070_v25, %v8246_v57  ;;  %v8530_v12 = vmax.f32 %v8178_v44, %v8354_v21  ;;  %v19554_v31 = vpack.c.bf16 %v8705_v40, %v8704_v51  ;;  %v17634_v25 = vld [vmem:[%s18787_s11 + $0x11b0] ss:$8 sps:$4 sm:$0xff]   ;;  %v24823_v55 = vld [vmem:[#allocation15_spill] sm:$0xff] }
 0x230   : > { %v5552_v9 = vpop.f32.mrf.mxu0  ;;  %v7304_v52 = vpop.f32.mrf.mxu1  ;;  %v24822_v49 = vld [vmem:[#allocation42_spill] sm:$0xff]  ;;  %v24825_v7 = vld [vmem:[#allocation41_spill] sm:$0xff]  ;;  %v24833_v63 = vld [vmem:[#allocation71_spill] sm:$0xff] }
 0x231   : > { %24807 = vst [vmem:[#allocation34_spill] sm:$0xff] %v19550_v50  ;;  %24810 = vst [vmem:[#allocation7_spill] sm:$0xff] %v19554_v31  ;;  %v8247_v37 = vmax.f32 %v24813_v15, %v5552_v9  ;;  %v8706_v0 = vmax.f32 %v8530_v12, 0.0  ;;  %v8355_v33 = vmax.f32 %v24814_v34, %v7304_v52  ;;  %v8598_v51 = vmax.f32 %v8422_v13, 0.0  ;;  %v24827_v35 = vld [vmem:[#allocation69_spill] sm:$0xff] }
 0x232   : > { %v5554_v59 = vpop.f32.mrf.mxu0  ;;  %v7306_v48 = vpop.f32.mrf.mxu1  ;;  %v8181_v41 = vmax.f32 %v24823_v55, %v24822_v49  ;;  %v17581_v13 = vld [vmem:[%s18787_s11 + $0x414] ss:$8 sps:$4 sm:$0xff]   ;;  %v17638_v12 = vld [vmem:[%s18787_s11 + $0x11c4] ss:$8 sps:$4 sm:$0xff]  }
 0x233   : > { %v8423_v61 = vmax.f32 %v8071_v2, %v8247_v37  ;;  %v8531_v20 = vmax.f32 %v8179_v28, %v8355_v33  ;;  %v24828_v28 = vld [vmem:[#allocation70_spill] sm:$0xff]  ;;  %v8182_v2 = vmax.f32 %v24830_v10, %v24829_v11  ;;  %v24831_v37 = vld [vmem:[#allocation43_spill] sm:$0xff] }
 0x234   : > { %v5557_v22 = vpop.f32.mrf.mxu0  ;;  %5748 = vmatmul.mubr.bf16.gmra.mxu0 %v17571_v56  ;;  %v7309_v6 = vpop.f32.mrf.mxu1  ;;  %7500 = vmatmul.mubr.bf16.gmra.mxu1 %v17628_v58  ;;  %v24826_v56 = vld [vmem:[#allocation14_spill] sm:$0xff]  ;;  %v17587_v49 = vld [vmem:[%s18787_s11 + $0x424] ss:$8 sps:$4 sm:$0xff]  }
 0x235   : > { %v8599_v54 = vmax.f32 %v8423_v61, 0.0  ;;  %v8248_v23 = vmax.f32 %v24819_v19, %v5557_v22  ;;  %16013 = vmatprep.mubr.msk.bf16.mxu0 %vm4150_vm0, %v17575_v36  ;;  %v8356_v62 = vmax.f32 %v24820_v27, %v7309_v6  ;;  %16232 = vmatprep.mubr.msk.bf16.mxu1 %vm4150_vm0, %v17632_v26  ;;  %v8707_v60 = vmax.f32 %v8531_v20, 0.0  ;;  %v24832_v36 = vld [vmem:[#allocation16_spill] sm:$0xff]  ;;  %v24836_v19 = vld [vmem:[#allocation46_spill] sm:$0xff] }
 0x236   : > { %v5559_v44 = vpop.f32.mrf.mxu0  ;;  %v7311_v30 = vpop.f32.mrf.mxu1  ;;  %v8073_v40 = vmax.f32 %v24826_v56, %v24825_v7  ;;  %v8074_v26 = vmax.f32 %v24832_v36, %v24831_v37  ;;  %v17640_v20 = vld [vmem:[%s18787_s11 + $0x11c0] ss:$8 sps:$4 sm:$0xff]   ;;  %v17644_v55 = vld [vmem:[%s18787_s11 + $0x11d4] ss:$8 sps:$4 sm:$0xff]  }
 0x237   : > { %v19572_v24 = vpack.c.bf16 %v8599_v54, %v8598_v51  ;;  %v8424_v17 = vmax.f32 %v8072_v16, %v8248_v23  ;;  %v8532_v47 = vmax.f32 %v8180_v43, %v8356_v62  ;;  %v19576_v8 = vpack.c.bf16 %v8707_v60, %v8706_v0  ;;  %v24834_v43 = vld [vmem:[#allocation72_spill] sm:$0xff]  ;;  %v24837_v23 = vld [vmem:[#allocation19_spill] sm:$0xff]  ;;  %v24839_v60 = vld [vmem:[#allocation45_spill] sm:$0xff] }
 0x238   : > { %v5560_v57 = vpop.f32.mrf.mxu0  ;;  %v7312_v21 = vpop.f32.mrf.mxu1  ;;  %v8183_v27 = vmax.f32 %v24837_v23, %v24836_v19  ;;  %v24840_v30 = vld [vmem:[#allocation18_spill] sm:$0xff]  ;;  %v24848_v37 = vld [vmem:[#allocation76_spill] sm:$0xff]  ;;  %v24855_v19 = vld [vmem:[#allocation77_spill] sm:$0xff] }
 0x239   : > { %24821 = vst [vmem:[#allocation61_spill] sm:$0xff] %v19572_v24  ;;  %24824 = vst [vmem:[#allocation62_spill] sm:$0xff] %v19576_v8  ;;  %v8249_v58 = vmax.f32 %v24827_v35, %v5560_v57  ;;  %v8708_v46 = vmax.f32 %v8532_v47, 0.0  ;;  %v8357_v9 = vmax.f32 %v24828_v28, %v7312_v21  ;;  %v8600_v33 = vmax.f32 %v8424_v17, 0.0  ;;  %v24841_v17 = vld [vmem:[#allocation73_spill] sm:$0xff]  ;;  %v24842_v21 = vld [vmem:[#allocation74_spill] sm:$0xff] }
 0x23a   : > { %v5562_v32 = vpop.f32.mrf.mxu0  ;;  %v7314_v52 = vpop.f32.mrf.mxu1  ;;  %v24844_v35 = vld [vmem:[#allocation21_spill] sm:$0xff] }
 0x23b   : > { %v8425_v15 = vmax.f32 %v8073_v40, %v8249_v58  ;;  %v8533_v0 = vmax.f32 %v8181_v41, %v8357_v9  ;;  %v24843_v40 = vld [vmem:[#allocation48_spill] sm:$0xff] }
 0x23c   : > { %v5565_v59 = vpop.f32.mrf.mxu0  ;;  %5756 = vmatmul.mubr.bf16.gmra.mxu0 %v17577_v1  ;;  %v7317_v34 = vpop.f32.mrf.mxu1  ;;  %7508 = vmatmul.mubr.bf16.gmra.mxu1 %v17634_v25  ;;  %v8075_v25 = vmax.f32 %v24840_v30, %v24839_v60  ;;  %v8184_v58 = vmax.f32 %v24844_v35, %v24843_v40  ;;  %v24846_v32 = vld [vmem:[#allocation20_spill] sm:$0xff]  ;;  %v24856_v30 = vld [vmem:[#allocation78_spill] sm:$0xff] }
 0x23d   : > { %v8601_v48 = vmax.f32 %v8425_v15, 0.0  ;;  %v8250_v4 = vmax.f32 %v24833_v63, %v5565_v59  ;;  %16014 = vmatprep.mubr.msk.bf16.mxu0 %vm4150_vm0, %v17581_v13  ;;  %v8358_v61 = vmax.f32 %v24834_v43, %v7317_v34  ;;  %16233 = vmatprep.mubr.msk.bf16.mxu1 %vm4150_vm0, %v17638_v12  ;;  %v8709_v16 = vmax.f32 %v8533_v0, 0.0  ;;  %v24845_v12 = vld [vmem:[#allocation47_spill] sm:$0xff]  ;;  %v24850_v43 = vld [vmem:[#allocation50_spill] sm:$0xff] }
 0x23e   : > { %v5567_v53 = vpop.f32.mrf.mxu0  ;;  %v7319_v22 = vpop.f32.mrf.mxu1  ;;  %v17589_v59 = vld [vmem:[%s18787_s11 + $0x420] ss:$8 sps:$4 sm:$0xff]  }
 0x23f   : > { %v19594_v6 = vpack.c.bf16 %v8601_v48, %v8600_v33  ;;  %v8426_v51 = vmax.f32 %v8074_v26, %v8250_v4  ;;  %v8534_v54 = vmax.f32 %v8182_v2, %v8358_v61  ;;  %v19598_v44 = vpack.c.bf16 %v8709_v16, %v8708_v46  ;;  %v24847_v2 = vld [vmem:[#allocation75_spill] sm:$0xff]  ;;  %v17646_v33 = vld [vmem:[%s18787_s11 + $0x11d0] ss:$8 sps:$4 sm:$0xff]  }
 0x240   : > { %v5568_v62 = vpop.f32.mrf.mxu0  ;;  %v7320_v1 = vpop.f32.mrf.mxu1  ;;  %v8076_v46 = vmax.f32 %v24846_v32, %v24845_v12  ;;  %v24851_v61 = vld [vmem:[#allocation23_spill] sm:$0xff] }
 0x241   : > { %24835 = vst [vmem:[#allocation36_spill] sm:$0xff] %v19594_v6  ;;  %24838 = vst [vmem:[#allocation9_spill] sm:$0xff] %v19598_v44  ;;  %v8251_v47 = vmax.f32 %v24841_v17, %v5568_v62  ;;  %v8710_v57 = vmax.f32 %v8534_v54, 0.0  ;;  %v8359_v7 = vmax.f32 %v24842_v21, %v7320_v1  ;;  %v8602_v11 = vmax.f32 %v8426_v51, 0.0  ;;  %v24854_v51 = vld [vmem:[#allocation22_spill] sm:$0xff]  ;;  %v24860_v21 = vld [vmem:[#allocation24_spill] sm:$0xff] }
 0x242   : > { %v5570_v41 = vpop.f32.mrf.mxu0  ;;  %v7322_v56 = vpop.f32.mrf.mxu1  ;;  %v8185_v53 = vmax.f32 %v24851_v61, %v24850_v43  ;;  %v17650_v62 = vld [vmem:[%s18787_s11 + $0x11e4] ss:$8 sps:$4 sm:$0xff]   ;;  %v24868_v43 = vld [vmem:[#allocation26_spill] sm:$0xff] }
 0x243   : > { %v8427_v13 = vmax.f32 %v8075_v25, %v8251_v47  ;;  %v8535_v9 = vmax.f32 %v8183_v27, %v8359_v7  ;;  %v17593_v27 = vld [vmem:[%s18787_s11 + $0x434] ss:$8 sps:$4 sm:$0xff]   ;;  %v24857_v47 = vld [vmem:[#allocation52_spill] sm:$0xff]  ;;  %v24861_v12 = vld [vmem:[#allocation79_spill] sm:$0xff] }
 0x244   : > { %v5573_v28 = vpop.f32.mrf.mxu0  ;;  %5764 = vmatmul.mubr.bf16.gmra.mxu0 %v17583_v38  ;;  %v7325_v52 = vpop.f32.mrf.mxu1  ;;  %7516 = vmatmul.mubr.bf16.gmra.mxu1 %v17640_v20  ;;  %v24853_v20 = vld [vmem:[#allocation49_spill] sm:$0xff] }
 0x245   : > { %v8603_v10 = vmax.f32 %v8427_v13, 0.0  ;;  %v8252_v15 = vmax.f32 %v24847_v2, %v5573_v28  ;;  %16015 = vmatprep.mubr.msk.bf16.mxu0 %vm4150_vm0, %v17587_v49  ;;  %v8360_v36 = vmax.f32 %v24848_v37, %v7325_v52  ;;  %16234 = vmatprep.mubr.msk.bf16.mxu1 %vm4150_vm0, %v17644_v55  ;;  %v8711_v0 = vmax.f32 %v8535_v9, 0.0  ;;  %v24858_v49 = vld [vmem:[#allocation25_spill] sm:$0xff]  ;;  %v17652_v2 = vld [vmem:[%s18787_s11 + $0x11e0] ss:$8 sps:$4 sm:$0xff]  }
 0x246   : > { %v5575_v26 = vpop.f32.mrf.mxu0  ;;  %v7327_v34 = vpop.f32.mrf.mxu1  ;;  %v8077_v54 = vmax.f32 %v24854_v51, %v24853_v20  ;;  %v8186_v55 = vmax.f32 %v24858_v49, %v24857_v47  ;;  %v17595_v52 = vld [vmem:[%s18787_s11 + $0x430] ss:$8 sps:$4 sm:$0xff]   ;;  %v17656_v20 = vld [vmem:[%s18787_s11 + $0x11f4] ss:$8 sps:$4 sm:$0xff]  }
 0x247   : > { %v19616_v48 = vpack.c.bf16 %v8603_v10, %v8602_v11  ;;  %v8428_v63 = vmax.f32 %v8076_v46, %v8252_v15  ;;  %v8536_v4 = vmax.f32 %v8184_v58, %v8360_v36  ;;  %v19620_v16 = vpack.c.bf16 %v8711_v0, %v8710_v57  ;;  %v24859_v57 = vld [vmem:[#allocation51_spill] sm:$0xff]  ;;  %v24862_v46 = vld [vmem:[#allocation80_spill] sm:$0xff]  ;;  %v24864_v26 = vld [vmem:[#allocation54_spill] sm:$0xff] }
 0x248   : > { %v5576_v38 = vpop.f32.mrf.mxu0  ;;  %v7328_v22 = vpop.f32.mrf.mxu1  ;;  %v8078_v7 = vmax.f32 %v24860_v21, %v24859_v57  ;;  %v17703_v6 = vld [vmem:[%s18787_s11 + $0x550] ss:$8 sps:$4 sm:$0xff]  }
 0x249   : > { %24849 = vst [vmem:[#allocation35_spill] sm:$0xff] %v19616_v48  ;;  %24852 = vst [vmem:[#allocation8_spill] sm:$0xff] %v19620_v16  ;;  %v8253_v23 = vmax.f32 %v24855_v19, %v5576_v38  ;;  %v8712_v60 = vmax.f32 %v8536_v4, 0.0  ;;  %v8361_v25 = vmax.f32 %v24856_v30, %v7328_v22  ;;  %v8604_v58 = vmax.f32 %v8428_v63, 0.0  ;;  %v24867_v4 = vld [vmem:[#allocation53_spill] sm:$0xff]  ;;  %v24870_v19 = vld [vmem:[#allocation82_spill] sm:$0xff] }
 0x24a   : > { %v5578_v1 = vpop.f32.mrf.mxu0  ;;  %v7330_v17 = vpop.f32.mrf.mxu1  ;;  %v8079_v61 = vmax.f32 %v24868_v43, %v24867_v4  ;;  %v17599_v22 = vld [vmem:[%s18787_s11 + $0x444] ss:$8 sps:$4 sm:$0xff]   ;;  %v17605_v43 = vld [vmem:[%s18787_s11 + $0x454] ss:$8 sps:$4 sm:$0xff]   ;;  %v17661_v16 = vld [vmem:[%s18787_s11 + $0x4e0] ss:$8 sps:$4 sm:$0xff]  }
 0x24b   : > { %v8429_v41 = vmax.f32 %v8077_v54, %v8253_v23  ;;  %v8537_v40 = vmax.f32 %v8185_v53, %v8361_v25  ;;  %v24869_v53 = vld [vmem:[#allocation81_spill] sm:$0xff]  ;;  %v24874_v17 = vld [vmem:[#allocation28_spill] sm:$0xff] }
 0x24c   : > { %v5581_v56 = vpop.f32.mrf.mxu0  ;;  %5772 = vmatmul.mubr.bf16.gmra.mxu0 %v17589_v59  ;;  %v7333_v35 = vpop.f32.mrf.mxu1  ;;  %7524 = vmatmul.mubr.bf16.gmra.mxu1 %v17646_v33  ;;  %v24865_v59 = vld [vmem:[#allocation27_spill] sm:$0xff]  ;;  %v24872_v1 = vld [vmem:[#allocation29_spill] sm:$0xff] }
 0x24d   : > { %v8605_v13 = vmax.f32 %v8429_v41, 0.0  ;;  %v8254_v32 = vmax.f32 %v24861_v12, %v5581_v56  ;;  %16016 = vmatprep.mubr.msk.bf16.mxu0 %vm4150_vm0, %v17593_v27  ;;  %v8362_v28 = vmax.f32 %v24862_v46, %v7333_v35  ;;  %16235 = vmatprep.mubr.msk.bf16.mxu1 %vm4150_vm0, %v17650_v62  ;;  %v8713_v11 = vmax.f32 %v8537_v40, 0.0  ;;  %v24871_v62 = vld [vmem:[#allocation56_spill] sm:$0xff]  ;;  %v17658_v46 = vld [vmem:[%s18787_s11 + $0x11f0] ss:$8 sps:$4 sm:$0xff]  }
 0x24e   : > { %v5583_v9 = vpop.f32.mrf.mxu0  ;;  %v7335_v10 = vpop.f32.mrf.mxu1  ;;  %v8187_v0 = vmax.f32 %v24865_v59, %v24864_v26  ;;  %v8188_v30 = vmax.f32 %v24872_v1, %v24871_v62  ;;  %v24876_v40 = vld [vmem:[#allocation84_spill] sm:$0xff]  ;;  %v24881_v59 = vld [vmem:[#allocation57_spill] sm:$0xff] }
 0x24f   : > { %v19638_v15 = vpack.c.bf16 %v8605_v13, %v8604_v58  ;;  %v8430_v37 = vmax.f32 %v8078_v7, %v8254_v32  ;;  %v8538_v36 = vmax.f32 %v8186_v55, %v8362_v28  ;;  %v19642_v33 = vpack.c.bf16 %v8713_v11, %v8712_v60  ;;  %v24873_v60 = vld [vmem:[#allocation55_spill] sm:$0xff]  ;;  %v24878_v11 = vld [vmem:[#allocation58_spill] sm:$0xff] }
 0x250   : > { %v5584_v34 = vpop.f32.mrf.mxu0  ;;  %v7336_v63 = vpop.f32.mrf.mxu1  ;;  %v8080_v47 = vmax.f32 %v24874_v17, %v24873_v60  ;;  %v24875_v7 = vld [vmem:[#allocation83_spill] sm:$0xff] }
 0x251   : > { %24863 = vst [vmem:[#allocation63_spill] sm:$0xff] %v19638_v15  ;;  %24866 = vst [vmem:[#allocation64_spill] sm:$0xff] %v19642_v33  ;;  %v8255_v38 = vmax.f32 %v24869_v53, %v5584_v34  ;;  %v8714_v54 = vmax.f32 %v8538_v36, 0.0  ;;  %v8363_v23 = vmax.f32 %v24870_v19, %v7336_v63  ;;  %v8606_v57 = vmax.f32 %v8430_v37, 0.0  ;;  %v17601_v13 = vld [vmem:[%s18787_s11 + $0x440] ss:$8 sps:$4 sm:$0xff]  }
 0x252   : > { %v5586_v51 = vpop.f32.mrf.mxu0  ;;  %v7338_v27 = vpop.f32.mrf.mxu1  ;;  %v24879_v10 = vld [vmem:[#allocation31_spill] sm:$0xff]  ;;  %v24883_v63 = vld [vmem:[#allocation85_spill] sm:$0xff] }
 0x253   : > { %v8431_v25 = vmax.f32 %v8079_v61, %v8255_v38  ;;  %v8539_v55 = vmax.f32 %v8187_v0, %v8363_v23  ;;  %v24882_v0 = vld [vmem:[#allocation30_spill] sm:$0xff]  ;;  %v17662_v61 = vld [vmem:[%s18787_s11 + $0x1204] ss:$8 sps:$4 sm:$0xff]  }
 0x254   : > { %v5589_v49 = vpop.f32.mrf.mxu0  ;;  %5780 = vmatmul.mubr.bf16.gmra.mxu0 %v17595_v52  ;;  %v7341_v41 = vpop.f32.mrf.mxu1  ;;  %7532 = vmatmul.mubr.bf16.gmra.mxu1 %v17652_v2  ;;  %v8189_v2 = vmax.f32 %v24879_v10, %v24878_v11  ;;  %v8081_v34 = vmax.f32 %v24882_v0, %v24881_v59  ;;  %v24885_v19 = vld [vmem:[#allocation59_spill] sm:$0xff]  ;;  %v24886_v23 = vld [vmem:[#allocation32_spill] sm:$0xff] }
 0x255   : > { %v8607_v21 = vmax.f32 %v8431_v25, 0.0  ;;  %v8256_v56 = vmax.f32 %v24875_v7, %v5589_v49  ;;  %16017 = vmatprep.mubr.msk.bf16.mxu0 %vm4150_vm0, %v17599_v22  ;;  %v8364_v35 = vmax.f32 %v24876_v40, %v7341_v41  ;;  %16236 = vmatprep.mubr.msk.bf16.mxu1 %vm4150_vm0, %v17656_v20  ;;  %v8715_v12 = vmax.f32 %v8539_v55, 0.0  ;;  %v24884_v22 = vld [vmem:[#allocation86_spill] sm:$0xff]  ;;  %v24887_v17 = vld [vmem:[#allocation87_spill] sm:$0xff]  ;;  %v24888_v7 = vld [vmem:[#allocation60_spill] sm:$0xff] }
 0x256   : > { %v5591_v58 = vpop.f32.mrf.mxu0  ;;  %v7343_v32 = vpop.f32.mrf.mxu1  ;;  %v8190_v27 = vmax.f32 %v24886_v23, %v24885_v19  ;;  %v17607_v55 = vld [vmem:[%s18787_s11 + $0x450] ss:$8 sps:$4 sm:$0xff]  }
 0x257   : > { %v19660_v28 = vpack.c.bf16 %v8607_v21, %v8606_v57  ;;  %v8432_v9 = vmax.f32 %v8080_v47, %v8256_v56  ;;  %v8540_v52 = vmax.f32 %v8188_v30, %v8364_v35  ;;  %v19664_v36 = vpack.c.bf16 %v8715_v12, %v8714_v54  ;;  %v17664_v21 = vld [vmem:[%s18787_s11 + $0x1200] ss:$8 sps:$4 sm:$0xff]   ;;  %v24889_v56 = vld [vmem:[#allocation33_spill] sm:$0xff] }
 0x258   : > { %v5592_v37 = vpop.f32.mrf.mxu0  ;;  %v7344_v26 = vpop.f32.mrf.mxu1  ;;  %v8191_v40 = vmax.f32 %v24889_v56, %v24888_v7 }
 0x259   : > { %24877 = vst [vmem:[#allocation38_spill] sm:$0xff] %v19660_v28  ;;  %24880 = vst [vmem:[#allocation11_spill] sm:$0xff] %v19664_v36  ;;  %v8257_v4 = vmax.f32 %v24883_v63, %v5592_v37  ;;  %v8716_v38 = vmax.f32 %v8540_v52, 0.0  ;;  %v8365_v20 = vmax.f32 %v24884_v22, %v7344_v26  ;;  %v8608_v25 = vmax.f32 %v8432_v9, 0.0  ;;  %v17668_v52 = vld [vmem:[%s18787_s11 + $0x1214] ss:$8 sps:$4 sm:$0xff]  }
 0x25a   : > { %v5594_v53 = vpop.f32.mrf.mxu0  ;;  %v7346_v51 = vpop.f32.mrf.mxu1  ;;  %v17674_v22 = vld [vmem:[%s18787_s11 + $0x1224] ss:$8 sps:$4 sm:$0xff]  }
 0x25b   : > { %v8433_v54 = vmax.f32 %v8081_v34, %v8257_v4  ;;  %v8541_v1 = vmax.f32 %v8189_v2, %v8365_v20  ;;  %v17613_v34 = vld [vmem:[%s18787_s11 + $0x460] ss:$8 sps:$4 sm:$0xff]   ;;  %v17670_v4 = vld [vmem:[%s18787_s11 + $0x1210] ss:$8 sps:$4 sm:$0xff]  }
 0x25c   : > { %v19674_v62 = vpop.f32.mrf.mxu0  ;;  %5788 = vmatmul.mubr.bf16.gmra.mxu0 %v17601_v13  ;;  %v7349_v30 = vpop.f32.mrf.mxu1  ;;  %7540 = vmatmul.mubr.bf16.gmra.mxu1 %v17658_v46  ;;  %v17611_v46 = vld [vmem:[%s18787_s11 + $0x464] ss:$8 sps:$4 sm:$0xff]  }
 0x25d   : > { %v8609_v60 = vmax.f32 %v8433_v54, 0.0  ;;  %16018 = vmatprep.mubr.msk.bf16.mxu0 %vm4150_vm0, %v17605_v43  ;;  %v8366_v47 = vmax.f32 %v24887_v17, %v7349_v30  ;;  %16237 = vmatprep.mubr.msk.bf16.mxu1 %vm4150_vm0, %v17662_v61  ;;  %v8717_v41 = vmax.f32 %v8541_v1, 0.0  ;;  %v17619_v54 = vld [vmem:[%s18787_s11 + $0x470] ss:$8 sps:$4 sm:$0xff]   ;;  %v17676_v30 = vld [vmem:[%s18787_s11 + $0x1220] ss:$8 sps:$4 sm:$0xff]  }
 0x25e   : > { %v5599_v49 = vpop.f32.mrf.mxu0  ;;  %v7351_v57 = vpop.f32.mrf.mxu1 }
 0x25f   : > { %v19683_v35 = vpack.c.bf16 %v8609_v60, %v8608_v25  ;;  %v8542_v58 = vmax.f32 %v8190_v27, %v8366_v47  ;;  %v19687_v12 = vpack.c.bf16 %v8717_v41, %v8716_v38  ;;  %v17617_v38 = vld [vmem:[%s18787_s11 + $0x474] ss:$8 sps:$4 sm:$0xff]   ;;  %v17623_v25 = vld [vmem:[%s18787_s11 + $0x484] ss:$8 sps:$4 sm:$0xff]  }
 0x260   : > { %v19685_v13 = vpop.f32.mrf.mxu0  ;;  %v7352_v32 = vpop.f32.mrf.mxu1  ;;  %v17680_v47 = vld [vmem:[%s18787_s11 + $0x1234] ss:$8 sps:$4 sm:$0xff]  }
 0x261   : > { %24890 = vst [vmem:[#allocation37_spill] sm:$0xff] %v19683_v35  ;;  %24891 = vst [vmem:[#allocation10_spill] sm:$0xff] %v19687_v12  ;;  %v8367_v9 = vmax.f32 %v19447_v42, %v7352_v32  ;;  %v8718_v10 = vmax.f32 %v8542_v58, 0.0  ;;  %v17682_v32 = vld [vmem:[%s18787_s11 + $0x1230] ss:$8 sps:$4 sm:$0xff]  }
 0x262   : > { %v5602_v11 = vpop.f32.mrf.mxu0  ;;  %v7354_v2 = vpop.f32.mrf.mxu1  ;;  %v17673_v35 = vld [vmem:[%s18787_s11 + $0x500] ss:$8 sps:$4 sm:$0xff]  }
 0x263   : > { %v8543_v37 = vmax.f32 %v8191_v40, %v8367_v9  ;;  %v17625_v40 = vld [vmem:[%s18787_s11 + $0x480] ss:$8 sps:$4 sm:$0xff]   ;;  %v17686_v9 = vld [vmem:[%s18787_s11 + $0x1244] ss:$8 sps:$4 sm:$0xff]  }
 0x264   : > { %v19692_v26 = vpop.f32.mrf.mxu0  ;;  %5796 = vmatmul.mubr.bf16.gmra.mxu0 %v17607_v55  ;;  %v19694_v59 = vpop.f32.mrf.mxu1  ;;  %7548 = vmatmul.mubr.bf16.gmra.mxu1 %v17664_v21 }
 0x265   : > { %16019 = vmatprep.mubr.msk.bf16.mxu0 %vm4150_vm0, %v17611_v46  ;;  %v8719_v0 = vmax.f32 %v8543_v37, 0.0  ;;  %16238 = vmatprep.mubr.msk.bf16.mxu1 %vm4150_vm0, %v17668_v52  ;;  %v17629_v46 = vld [vmem:[%s18787_s11 + $0x494] ss:$8 sps:$4 sm:$0xff]  }
 0x266   : > { %v5607_v42 = vpop.f32.mrf.mxu0  ;;  %v7359_v63 = vpop.f32.mrf.mxu1 }
 0x267   : > { %v19700_v43 = vpack.c.bf16 %v8719_v0, %v8718_v10 }
 0x268   : > { %v19702_v61 = vpop.f32.mrf.mxu0  ;;  %v19704_v53 = vpop.f32.mrf.mxu1 }
 0x269   : > { %24892 = vst [vmem:[#allocation65_spill] sm:$0xff] %v19700_v43 }
 0x26a   : > { %v5610_v20 = vpop.f32.mrf.mxu0  ;;  %v7362_v51 = vpop.f32.mrf.mxu1 }
 0x26c   : > { %v19708_v19 = vpop.f32.mrf.mxu0  ;;  %5804 = vmatmul.mubr.bf16.gmra.mxu0 %v17613_v34  ;;  %v19710_v23 = vpop.f32.mrf.mxu1  ;;  %7556 = vmatmul.mubr.bf16.gmra.mxu1 %v17670_v4  ;;  %v17631_v34 = vld [vmem:[%s18787_s11 + $0x490] ss:$8 sps:$4 sm:$0xff]   ;;  %v17688_v4 = vld [vmem:[%s18787_s11 + $0x1240] ss:$8 sps:$4 sm:$0xff]  }
 0x26d   : > { %16020 = vmatprep.mubr.msk.bf16.mxu0 %vm4150_vm0, %v17617_v38  ;;  %16239 = vmatprep.mubr.msk.bf16.mxu1 %vm4150_vm0, %v17674_v22  ;;  %v17635_v38 = vld [vmem:[%s18787_s11 + $0x4a4] ss:$8 sps:$4 sm:$0xff]   ;;  %v17692_v22 = vld [vmem:[%s18787_s11 + $0x1254] ss:$8 sps:$4 sm:$0xff]  }
 0x26e   : > { %v5615_v27 = vpop.f32.mrf.mxu0  ;;  %v7367_v1 = vpop.f32.mrf.mxu1 }
 0x270   : > { %v19717_v60 = vpop.f32.mrf.mxu0  ;;  %v19719_v17 = vpop.f32.mrf.mxu1 }
 0x272   : > { %v5618_v49 = vpop.f32.mrf.mxu0  ;;  %v7370_v55 = vpop.f32.mrf.mxu1 }
 0x273   : > { %v17694_v55 = vld [vmem:[%s18787_s11 + $0x1250] ss:$8 sps:$4 sm:$0xff]  }
 0x274   : > { %v19722_v41 = vpop.f32.mrf.mxu0  ;;  %5812 = vmatmul.mubr.bf16.gmra.mxu0 %v17619_v54  ;;  %v19724_v57 = vpop.f32.mrf.mxu1  ;;  %7564 = vmatmul.mubr.bf16.gmra.mxu1 %v17676_v30 }
 0x275   : > { %16021 = vmatprep.mubr.msk.bf16.mxu0 %vm4150_vm0, %v17623_v25  ;;  %16240 = vmatprep.mubr.msk.bf16.mxu1 %vm4150_vm0, %v17680_v47  ;;  %v17637_v47 = vld [vmem:[%s18787_s11 + $0x4a0] ss:$8 sps:$4 sm:$0xff]  }
 0x276   : > { %v5623_v21 = vpop.f32.mrf.mxu0  ;;  %v7375_v7 = vpop.f32.mrf.mxu1 }
 0x277   : > { %v17641_v21 = vld [vmem:[%s18787_s11 + $0x4b4] ss:$8 sps:$4 sm:$0xff]   ;;  %v17698_v7 = vld [vmem:[%s18787_s11 + $0x1264] ss:$8 sps:$4 sm:$0xff]  }
 0x278   : > { %v19728_v56 = vpop.f32.mrf.mxu0  ;;  %v19731_v58 = vpop.f32.mrf.mxu1 }
 0x27a   : > { %v5626_v52 = vpop.f32.mrf.mxu0  ;;  %v7378_v11 = vpop.f32.mrf.mxu1 }
 0x27c   : > { %v19736_v10 = vpop.f32.mrf.mxu0  ;;  %5820 = vmatmul.mubr.bf16.gmra.mxu0 %v17625_v40  ;;  %v19738_v2 = vpop.f32.mrf.mxu1  ;;  %7572 = vmatmul.mubr.bf16.gmra.mxu1 %v17682_v32 }
 0x27d   : > { %16022 = vmatprep.mubr.msk.bf16.mxu0 %vm4150_vm0, %v17629_v46  ;;  %16241 = vmatprep.mubr.msk.bf16.mxu1 %vm4150_vm0, %v17686_v9 }
 0x27e   : > { %v5631_v37 = vpop.f32.mrf.mxu0  ;;  %v7383_v0 = vpop.f32.mrf.mxu1 }
 0x27f   : > { %v17643_v0 = vld [vmem:[%s18787_s11 + $0x4b0] ss:$8 sps:$4 sm:$0xff]  }
 0x280   : > { %v19742_v42 = vpop.f32.mrf.mxu0  ;;  %v19745_v63 = vpop.f32.mrf.mxu1 }
 0x281   : > { %24893 = vst [vmem:[#allocation66_spill] sm:$0xff] %v19742_v42  ;;  %24894 = vst [vmem:[#allocation40_spill] sm:$0xff] %v19745_v63 }
 0x282   : > { %v5634_v20 = vpop.f32.mrf.mxu0  ;;  %v7386_v51 = vpop.f32.mrf.mxu1 }
 0x284   : > { %v19750_v27 = vpop.f32.mrf.mxu0  ;;  %5828 = vmatmul.mubr.bf16.gmra.mxu0 %v17631_v34  ;;  %v19752_v54 = vpop.f32.mrf.mxu1  ;;  %7580 = vmatmul.mubr.bf16.gmra.mxu1 %v17688_v4  ;;  %v17700_v4 = vld [vmem:[%s18787_s11 + $0x1260] ss:$8 sps:$4 sm:$0xff]  }
 0x285   : > { %24895 = vst [vmem:[#allocation13_spill] sm:$0xff] %v19750_v27  ;;  %24896 = vst [vmem:[#allocation39_spill] sm:$0xff] %v19752_v54  ;;  %16023 = vmatprep.mubr.msk.bf16.mxu0 %vm4150_vm0, %v17635_v38  ;;  %16242 = vmatprep.mubr.msk.bf16.mxu1 %vm4150_vm0, %v17692_v22  ;;  %v17647_v38 = vld [vmem:[%s18787_s11 + $0x4c4] ss:$8 sps:$4 sm:$0xff]   ;;  %v17704_v22 = vld [vmem:[%s18787_s11 + $0x1274] ss:$8 sps:$4 sm:$0xff]  }
 0x286   : > { %v5639_v1 = vpop.f32.mrf.mxu0  ;;  %v7391_v30 = vpop.f32.mrf.mxu1 }
 0x288   : > { %v19756_v25 = vpop.f32.mrf.mxu0  ;;  %v19759_v49 = vpop.f32.mrf.mxu1 }
 0x289   : > { %24897 = vst [vmem:[#allocation12_spill] sm:$0xff] %v19756_v25  ;;  %24898 = vst [vmem:[#allocation67_spill] sm:$0xff] %v19759_v49  ;;  %v17751_v49 = vld [vmem:[%s18787_s11 + $0x5d0] ss:$8 sps:$4 sm:$0xff]  }
 0x28a   : > { %v5642_v40 = vpop.f32.mrf.mxu0  ;;  %v7394_v32 = vpop.f32.mrf.mxu1 }
 0x28b   : > { %v17706_v32 = vld [vmem:[%s18787_s11 + $0x1270] ss:$8 sps:$4 sm:$0xff]  }
 0x28c   : > { %v19764_v46 = vpop.f32.mrf.mxu0  ;;  %5836 = vmatmul.mubr.bf16.gmra.mxu0 %v17637_v47  ;;  %v19766_v9 = vpop.f32.mrf.mxu1  ;;  %7588 = vmatmul.mubr.bf16.gmra.mxu1 %v17694_v55 }
 0x28d   : > { %24899 = vst [vmem:[#allocation68_spill] sm:$0xff] %v19764_v46  ;;  %24900 = vst [vmem:[#allocation42_spill] sm:$0xff] %v19766_v9  ;;  %16024 = vmatprep.mubr.msk.bf16.mxu0 %vm4150_vm0, %v17641_v21  ;;  %16243 = vmatprep.mubr.msk.bf16.mxu1 %vm4150_vm0, %v17698_v7  ;;  %v17649_v7 = vld [vmem:[%s18787_s11 + $0x4c0] ss:$8 sps:$4 sm:$0xff]  }
 0x28e   : > { %v5647_v52 = vpop.f32.mrf.mxu0  ;;  %v7399_v11 = vpop.f32.mrf.mxu1 }
 0x28f   : > { %v17653_v52 = vld [vmem:[%s18787_s11 + $0x4d4] ss:$8 sps:$4 sm:$0xff]   ;;  %v17710_v11 = vld [vmem:[%s18787_s11 + $0x1284] ss:$8 sps:$4 sm:$0xff]  }
 0x290   : > { %v19770_v37 = vpop.f32.mrf.mxu0  ;;  %v19773_v34 = vpop.f32.mrf.mxu1 }
 0x291   : > { %24901 = vst [vmem:[#allocation15_spill] sm:$0xff] %v19770_v37  ;;  %24902 = vst [vmem:[#allocation41_spill] sm:$0xff] %v19773_v34  ;;  %v17709_v34 = vld [vmem:[%s18787_s11 + $0x560] ss:$8 sps:$4 sm:$0xff]  }
 0x292   : > { %v5650_v20 = vpop.f32.mrf.mxu0  ;;  %v7402_v51 = vpop.f32.mrf.mxu1 }
 0x294   : > { %v19778_v1 = vpop.f32.mrf.mxu0  ;;  %5844 = vmatmul.mubr.bf16.gmra.mxu0 %v17643_v0  ;;  %v19780_v30 = vpop.f32.mrf.mxu1  ;;  %7596 = vmatmul.mubr.bf16.gmra.mxu1 %v17700_v4 }
 0x295   : > { %24903 = vst [vmem:[#allocation14_spill] sm:$0xff] %v19778_v1  ;;  %24904 = vst [vmem:[#allocation69_spill] sm:$0xff] %v19780_v30  ;;  %16025 = vmatprep.mubr.msk.bf16.mxu0 %vm4150_vm0, %v17647_v38  ;;  %16244 = vmatprep.mubr.msk.bf16.mxu1 %vm4150_vm0, %v17704_v22 }
 0x296   : > { %v5655_v47 = vpop.f32.mrf.mxu0  ;;  %v7407_v55 = vpop.f32.mrf.mxu1 }
 0x297   : > { %v17655_v55 = vld [vmem:[%s18787_s11 + $0x4d0] ss:$8 sps:$4 sm:$0xff]  }
 0x298   : > { %v19784_v21 = vpop.f32.mrf.mxu0  ;;  %v19787_v40 = vpop.f32.mrf.mxu1 }
 0x299   : > { %24905 = vst [vmem:[#allocation70_spill] sm:$0xff] %v19784_v21  ;;  %24906 = vst [vmem:[#allocation44_spill] sm:$0xff] %v19787_v40 }
 0x29a   : > { %v5658_v0 = vpop.f32.mrf.mxu0  ;;  %v7410_v4 = vpop.f32.mrf.mxu1 }
 0x29b   : > { %v17712_v0 = vld [vmem:[%s18787_s11 + $0x1280] ss:$8 sps:$4 sm:$0xff]   ;;  %v17659_v4 = vld [vmem:[%s18787_s11 + $0x4e4] ss:$8 sps:$4 sm:$0xff]  }
 0x29c   : > { %v19792_v20 = vpop.f32.mrf.mxu0  ;;  %5852 = vmatmul.mubr.bf16.gmra.mxu0 %v17649_v7  ;;  %v19794_v38 = vpop.f32.mrf.mxu1  ;;  %7604 = vmatmul.mubr.bf16.gmra.mxu1 %v17706_v32  ;;  %v17716_v7 = vld [vmem:[%s18787_s11 + $0x1294] ss:$8 sps:$4 sm:$0xff]  }
 0x29d   : > { %24907 = vst [vmem:[#allocation17_spill] sm:$0xff] %v19792_v20  ;;  %24908 = vst [vmem:[#allocation43_spill] sm:$0xff] %v19794_v38  ;;  %16026 = vmatprep.mubr.msk.bf16.mxu0 %vm4150_vm0, %v17653_v52  ;;  %16245 = vmatprep.mubr.msk.bf16.mxu1 %vm4150_vm0, %v17710_v11  ;;  %v17697_v20 = vld [vmem:[%s18787_s11 + $0x540] ss:$8 sps:$4 sm:$0xff]  }
 0x29e   : > { %v5663_v22 = vpop.f32.mrf.mxu0  ;;  %v7415_v51 = vpop.f32.mrf.mxu1 }
 0x2a0   : > { %v19798_v47 = vpop.f32.mrf.mxu0  ;;  %v19801_v12 = vpop.f32.mrf.mxu1 }
 0x2a1   : > { %24909 = vst [vmem:[#allocation16_spill] sm:$0xff] %v19798_v47  ;;  %24910 = vst [vmem:[#allocation71_spill] sm:$0xff] %v19801_v12 }
 0x2a2   : > { %v5666_v36 = vpop.f32.mrf.mxu0  ;;  %v7418_v32 = vpop.f32.mrf.mxu1 }
 0x2a3   : > { %v17718_v36 = vld [vmem:[%s18787_s11 + $0x1290] ss:$8 sps:$4 sm:$0xff]   ;;  %v17665_v32 = vld [vmem:[%s18787_s11 + $0x4f4] ss:$8 sps:$4 sm:$0xff]  }
 0x2a4   : > { %v19806_v33 = vpop.f32.mrf.mxu0  ;;  %5860 = vmatmul.mubr.bf16.gmra.mxu0 %v17655_v55  ;;  %v19808_v52 = vpop.f32.mrf.mxu1  ;;  %7612 = vmatmul.mubr.bf16.gmra.mxu1 %v17712_v0  ;;  %v17722_v55 = vld [vmem:[%s18787_s11 + $0x12a4] ss:$8 sps:$4 sm:$0xff]  }
 0x2a5   : > { %24911 = vst [vmem:[#allocation72_spill] sm:$0xff] %v19806_v33  ;;  %24912 = vst [vmem:[#allocation46_spill] sm:$0xff] %v19808_v52  ;;  %16027 = vmatprep.mubr.msk.bf16.mxu0 %vm4150_vm0, %v17659_v4  ;;  %16246 = vmatprep.mubr.msk.bf16.mxu1 %vm4150_vm0, %v17716_v7  ;;  %v17691_v52 = vld [vmem:[%s18787_s11 + $0x530] ss:$8 sps:$4 sm:$0xff]  }
 0x2a6   : > { %v5671_v11 = vpop.f32.mrf.mxu0  ;;  %v7423_v22 = vpop.f32.mrf.mxu1 }
 0x2a8   : > { %v19812_v51 = vpop.f32.mrf.mxu0  ;;  %v19815_v44 = vpop.f32.mrf.mxu1 }
 0x2a9   : > { %24913 = vst [vmem:[#allocation19_spill] sm:$0xff] %v19812_v51  ;;  %24914 = vst [vmem:[#allocation45_spill] sm:$0xff] %v19815_v44  ;;  %v17685_v51 = vld [vmem:[%s18787_s11 + $0x520] ss:$8 sps:$4 sm:$0xff]  }
 0x2aa   : > { %v5674_v8 = vpop.f32.mrf.mxu0  ;;  %v7426_v0 = vpop.f32.mrf.mxu1 }
 0x2ab   : > { %v17724_v8 = vld [vmem:[%s18787_s11 + $0x12a0] ss:$8 sps:$4 sm:$0xff]   ;;  %v17671_v0 = vld [vmem:[%s18787_s11 + $0x504] ss:$8 sps:$4 sm:$0xff]  }
 0x2ac   : > { %v19820_v31 = vpop.f32.mrf.mxu0  ;;  %5868 = vmatmul.mubr.bf16.gmra.mxu0 %v17661_v16  ;;  %v19822_v4 = vpop.f32.mrf.mxu1  ;;  %7620 = vmatmul.mubr.bf16.gmra.mxu1 %v17718_v36  ;;  %v17728_v16 = vld [vmem:[%s18787_s11 + $0x12b4] ss:$8 sps:$4 sm:$0xff]  }
 0x2ad   : > { %24915 = vst [vmem:[#allocation18_spill] sm:$0xff] %v19820_v31  ;;  %24916 = vst [vmem:[#allocation73_spill] sm:$0xff] %v19822_v4  ;;  %16028 = vmatprep.mubr.msk.bf16.mxu0 %vm4150_vm0, %v17665_v32  ;;  %16247 = vmatprep.mubr.msk.bf16.mxu1 %vm4150_vm0, %v17722_v55 }
 0x2ae   : > { %v5679_v7 = vpop.f32.mrf.mxu0  ;;  %v7431_v11 = vpop.f32.mrf.mxu1 }
 0x2b0   : > { %v19826_v22 = vpop.f32.mrf.mxu0  ;;  %v19829_v5 = vpop.f32.mrf.mxu1 }
 0x2b1   : > { %24917 = vst [vmem:[#allocation74_spill] sm:$0xff] %v19826_v22  ;;  %24918 = vst [vmem:[#allocation48_spill] sm:$0xff] %v19829_v5 }
 0x2b2   : > { %v5682_v39 = vpop.f32.mrf.mxu0  ;;  %v7434_v36 = vpop.f32.mrf.mxu1 }
 0x2b3   : > { %v17730_v39 = vld [vmem:[%s18787_s11 + $0x12b0] ss:$8 sps:$4 sm:$0xff]   ;;  %v17677_v36 = vld [vmem:[%s18787_s11 + $0x514] ss:$8 sps:$4 sm:$0xff]  }
 0x2b4   : > { %v19834_v43 = vpop.f32.mrf.mxu0  ;;  %5876 = vmatmul.mubr.bf16.gmra.mxu0 %v17667_v45  ;;  %v19836_v32 = vpop.f32.mrf.mxu1  ;;  %7628 = vmatmul.mubr.bf16.gmra.mxu1 %v17724_v8  ;;  %v17734_v45 = vld [vmem:[%s18787_s11 + $0x12c4] ss:$8 sps:$4 sm:$0xff]  }
 0x2b5   : > { %24919 = vst [vmem:[#allocation21_spill] sm:$0xff] %v19836_v32  ;;  %16029 = vmatprep.mubr.msk.bf16.mxu0 %vm4150_vm0, %v17671_v0  ;;  %16248 = vmatprep.mubr.msk.bf16.mxu1 %vm4150_vm0, %v17728_v16 }
 0x2b6   : > { %v5687_v55 = vpop.f32.mrf.mxu0  ;;  %v7439_v7 = vpop.f32.mrf.mxu1 }
 0x2b8   : > { %v19840_v11 = vpop.f32.mrf.mxu0  ;;  %v19843_v22 = vpop.f32.mrf.mxu1 }
 0x2b9   : > { %24920 = vst [vmem:[#allocation47_spill] sm:$0xff] %v19843_v22  ;;  %v17679_v22 = vld [vmem:[%s18787_s11 + $0x510] ss:$8 sps:$4 sm:$0xff]  }
 0x2ba   : > { %v5690_v32 = vpop.f32.mrf.mxu0  ;;  %v7442_v8 = vpop.f32.mrf.mxu1 }
 0x2bb   : > { %v17736_v32 = vld [vmem:[%s18787_s11 + $0x12c0] ss:$8 sps:$4 sm:$0xff]   ;;  %v17683_v8 = vld [vmem:[%s18787_s11 + $0x524] ss:$8 sps:$4 sm:$0xff]  }
 0x2bc   : > { %v19848_v5 = vpop.f32.mrf.mxu0  ;;  %5884 = vmatmul.mubr.bf16.gmra.mxu0 %v17673_v35  ;;  %v19850_v0 = vpop.f32.mrf.mxu1  ;;  %7636 = vmatmul.mubr.bf16.gmra.mxu1 %v17730_v39  ;;  %v17740_v35 = vld [vmem:[%s18787_s11 + $0x12d4] ss:$8 sps:$4 sm:$0xff]  }
 0x2bd   : > { %16030 = vmatprep.mubr.msk.bf16.mxu0 %vm4150_vm0, %v17677_v36  ;;  %16249 = vmatprep.mubr.msk.bf16.mxu1 %vm4150_vm0, %v17734_v45 }
 0x2be   : > { %v5695_v16 = vpop.f32.mrf.mxu0  ;;  %v7447_v55 = vpop.f32.mrf.mxu1 }
 0x2c0   : > { %v19854_v7 = vpop.f32.mrf.mxu0  ;;  %v19857_v28 = vpop.f32.mrf.mxu1 }
 0x2c2   : > { %v5698_v31 = vpop.f32.mrf.mxu0  ;;  %v7450_v39 = vpop.f32.mrf.mxu1 }
 0x2c3   : > { %v17742_v31 = vld [vmem:[%s18787_s11 + $0x12d0] ss:$8 sps:$4 sm:$0xff]   ;;  %v17689_v39 = vld [vmem:[%s18787_s11 + $0x534] ss:$8 sps:$4 sm:$0xff]  }
 0x2c4   : > { %v19862_v4 = vpop.f32.mrf.mxu0  ;;  %5892 = vmatmul.mubr.bf16.gmra.mxu0 %v17679_v22  ;;  %v19864_v36 = vpop.f32.mrf.mxu1  ;;  %7644 = vmatmul.mubr.bf16.gmra.mxu1 %v17736_v32  ;;  %v17746_v22 = vld [vmem:[%s18787_s11 + $0x12e4] ss:$8 sps:$4 sm:$0xff]  }
 0x2c5   : > { %16031 = vmatprep.mubr.msk.bf16.mxu0 %vm4150_vm0, %v17683_v8  ;;  %16250 = vmatprep.mubr.msk.bf16.mxu1 %vm4150_vm0, %v17740_v35 }
 0x2c6   : > { %v5703_v45 = vpop.f32.mrf.mxu0  ;;  %v7455_v16 = vpop.f32.mrf.mxu1 }
 0x2c8   : > { %v19868_v55 = vpop.f32.mrf.mxu0  ;;  %v19871_v44 = vpop.f32.mrf.mxu1 }
 0x2ca   : > { %v5706_v15 = vpop.f32.mrf.mxu0  ;;  %v7458_v32 = vpop.f32.mrf.mxu1 }
 0x2cb   : > { %v17748_v15 = vld [vmem:[%s18787_s11 + $0x12e0] ss:$8 sps:$4 sm:$0xff]   ;;  %v17695_v32 = vld [vmem:[%s18787_s11 + $0x544] ss:$8 sps:$4 sm:$0xff]  }
 0x2cc   : > { %v19876_v33 = vpop.f32.mrf.mxu0  ;;  %5900 = vmatmul.mubr.bf16.gmra.mxu0 %v17685_v51  ;;  %v19878_v8 = vpop.f32.mrf.mxu1  ;;  %7652 = vmatmul.mubr.bf16.gmra.mxu1 %v17742_v31  ;;  %v17752_v51 = vld [vmem:[%s18787_s11 + $0x12f4] ss:$8 sps:$4 sm:$0xff]  }
 0x2cd   : > { %16032 = vmatprep.mubr.msk.bf16.mxu0 %vm4150_vm0, %v17689_v39  ;;  %16251 = vmatprep.mubr.msk.bf16.mxu1 %vm4150_vm0, %v17746_v22 }
 0x2ce   : > { %v5711_v35 = vpop.f32.mrf.mxu0  ;;  %v7463_v45 = vpop.f32.mrf.mxu1 }
 0x2d0   : > { %v19882_v16 = vpop.f32.mrf.mxu0  ;;  %v19885_v47 = vpop.f32.mrf.mxu1 }
 0x2d2   : > { %v5714_v12 = vpop.f32.mrf.mxu0  ;;  %v7466_v31 = vpop.f32.mrf.mxu1 }
 0x2d3   : > { %v17754_v12 = vld [vmem:[%s18787_s11 + $0x12f0] ss:$8 sps:$4 sm:$0xff]   ;;  %v17701_v31 = vld [vmem:[%s18787_s11 + $0x554] ss:$8 sps:$4 sm:$0xff]  }
 0x2d4   : > { %v19890_v48 = vpop.f32.mrf.mxu0  ;;  %5908 = vmatmul.mubr.bf16.gmra.mxu0 %v17691_v52  ;;  %v19892_v39 = vpop.f32.mrf.mxu1  ;;  %7660 = vmatmul.mubr.bf16.gmra.mxu1 %v17748_v15  ;;  %v17758_v52 = vld [vmem:[%s18787_s11 + $0x1304] ss:$8 sps:$4 sm:$0xff]  }
 0x2d5   : > { %16033 = vmatprep.mubr.msk.bf16.mxu0 %vm4150_vm0, %v17695_v32  ;;  %16252 = vmatprep.mubr.msk.bf16.mxu1 %vm4150_vm0, %v17752_v51 }
 0x2d6   : > { %v5719_v22 = vpop.f32.mrf.mxu0  ;;  %v7471_v35 = vpop.f32.mrf.mxu1 }
 0x2d8   : > { %v19896_v45 = vpop.f32.mrf.mxu0  ;;  %v19899_v38 = vpop.f32.mrf.mxu1 }
 0x2d9   : > { %24921 = vst [vmem:[#allocation20_spill] sm:$0xff] %v19896_v45  ;;  %24922 = vst [vmem:[#allocation75_spill] sm:$0xff] %v19899_v38  ;;  %v17763_v45 = vld [vmem:[%s18787_s11 + $0x5f0] ss:$8 sps:$4 sm:$0xff]  }
 0x2da   : > { %v5722_v21 = vpop.f32.mrf.mxu0  ;;  %v7474_v15 = vpop.f32.mrf.mxu1 }
 0x2db   : > { %v17760_v21 = vld [vmem:[%s18787_s11 + $0x1300] ss:$8 sps:$4 sm:$0xff]   ;;  %v17707_v15 = vld [vmem:[%s18787_s11 + $0x564] ss:$8 sps:$4 sm:$0xff]  }
 0x2dc   : > { %v19904_v40 = vpop.f32.mrf.mxu0  ;;  %5916 = vmatmul.mubr.bf16.gmra.mxu0 %v17697_v20  ;;  %v19906_v32 = vpop.f32.mrf.mxu1  ;;  %7668 = vmatmul.mubr.bf16.gmra.mxu1 %v17754_v12  ;;  %v17764_v20 = vld [vmem:[%s18787_s11 + $0x1314] ss:$8 sps:$4 sm:$0xff]  }
 0x2dd   : > { %24923 = vst [vmem:[#allocation76_spill] sm:$0xff] %v19904_v40  ;;  %24924 = vst [vmem:[#allocation50_spill] sm:$0xff] %v19906_v32  ;;  %16034 = vmatprep.mubr.msk.bf16.mxu0 %vm4150_vm0, %v17701_v31  ;;  %16253 = vmatprep.mubr.msk.bf16.mxu1 %vm4150_vm0, %v17758_v52  ;;  %v17757_v40 = vld [vmem:[%s18787_s11 + $0x5e0] ss:$8 sps:$4 sm:$0xff]  }
 0x2de   : > { %v5727_v51 = vpop.f32.mrf.mxu0  ;;  %v7479_v22 = vpop.f32.mrf.mxu1 }
 0x2e0   : > { %v19910_v35 = vpop.f32.mrf.mxu0  ;;  %v19913_v1 = vpop.f32.mrf.mxu1 }
 0x2e1   : > { %24925 = vst [vmem:[#allocation23_spill] sm:$0xff] %v19910_v35  ;;  %24926 = vst [vmem:[#allocation49_spill] sm:$0xff] %v19913_v1 }
 0x2e2   : > { %v5730_v30 = vpop.f32.mrf.mxu0  ;;  %v7482_v12 = vpop.f32.mrf.mxu1 }
 0x2e3   : > { %v17766_v30 = vld [vmem:[%s18787_s11 + $0x1310] ss:$8 sps:$4 sm:$0xff]   ;;  %v17713_v12 = vld [vmem:[%s18787_s11 + $0x574] ss:$8 sps:$4 sm:$0xff]  }
 0x2e4   : > { %v19918_v37 = vpop.f32.mrf.mxu0  ;;  %5924 = vmatmul.mubr.bf16.gmra.mxu0 %v17703_v6  ;;  %v19920_v31 = vpop.f32.mrf.mxu1  ;;  %7676 = vmatmul.mubr.bf16.gmra.mxu1 %v17760_v21  ;;  %v17770_v6 = vld [vmem:[%s18787_s11 + $0x1324] ss:$8 sps:$4 sm:$0xff]  }
 0x2e5   : > { %24927 = vst [vmem:[#allocation22_spill] sm:$0xff] %v19918_v37  ;;  %24928 = vst [vmem:[#allocation77_spill] sm:$0xff] %v19920_v31  ;;  %16035 = vmatprep.mubr.msk.bf16.mxu0 %vm4150_vm0, %v17707_v15  ;;  %16254 = vmatprep.mubr.msk.bf16.mxu1 %vm4150_vm0, %v17764_v20 }
 0x2e6   : > { %v5735_v52 = vpop.f32.mrf.mxu0  ;;  %v7487_v51 = vpop.f32.mrf.mxu1 }
 0x2e8   : > { %v19924_v22 = vpop.f32.mrf.mxu0  ;;  %v19927_v24 = vpop.f32.mrf.mxu1 }
 0x2e9   : > { %24929 = vst [vmem:[#allocation78_spill] sm:$0xff] %v19924_v22  ;;  %24930 = vst [vmem:[#allocation52_spill] sm:$0xff] %v19927_v24  ;;  %v17715_v22 = vld [vmem:[%s18787_s11 + $0x570] ss:$8 sps:$4 sm:$0xff]  }
 0x2ea   : > { %v5738_v46 = vpop.f32.mrf.mxu0  ;;  %v7490_v21 = vpop.f32.mrf.mxu1 }
 0x2eb   : > { %v17772_v46 = vld [vmem:[%s18787_s11 + $0x1320] ss:$8 sps:$4 sm:$0xff]   ;;  %v17719_v21 = vld [vmem:[%s18787_s11 + $0x584] ss:$8 sps:$4 sm:$0xff]  }
 0x2ec   : > { %v19932_v37 = vpop.f32.mrf.mxu0  ;;  %5932 = vmatmul.mubr.bf16.gmra.mxu0 %v17709_v34  ;;  %v19934_v15 = vpop.f32.mrf.mxu1  ;;  %7684 = vmatmul.mubr.bf16.gmra.mxu1 %v17766_v30  ;;  %v17776_v34 = vld [vmem:[%s18787_s11 + $0x1334] ss:$8 sps:$4 sm:$0xff]  }
 0x2ed   : > { %24931 = vst [vmem:[#allocation25_spill] sm:$0xff] %v19932_v37  ;;  %24932 = vst [vmem:[#allocation51_spill] sm:$0xff] %v19934_v15  ;;  %16036 = vmatprep.mubr.msk.bf16.mxu0 %vm4150_vm0, %v17713_v12  ;;  %16255 = vmatprep.mubr.msk.bf16.mxu1 %vm4150_vm0, %v17770_v6 }
 0x2ee   : > { %v5743_v20 = vpop.f32.mrf.mxu0  ;;  %v7495_v52 = vpop.f32.mrf.mxu1 }
 0x2f0   : > { %v19938_v51 = vpop.f32.mrf.mxu0  ;;  %v19941_v24 = vpop.f32.mrf.mxu1 }
 0x2f1   : > { %24933 = vst [vmem:[#allocation24_spill] sm:$0xff] %v19938_v51  ;;  %24934 = vst [vmem:[#allocation79_spill] sm:$0xff] %v19941_v24  ;;  %v17721_v51 = vld [vmem:[%s18787_s11 + $0x580] ss:$8 sps:$4 sm:$0xff]  }
 0x2f2   : > { %v5746_v37 = vpop.f32.mrf.mxu0  ;;  %v7498_v30 = vpop.f32.mrf.mxu1 }
 0x2f3   : > { %v17778_v37 = vld [vmem:[%s18787_s11 + $0x1330] ss:$8 sps:$4 sm:$0xff]   ;;  %v17725_v30 = vld [vmem:[%s18787_s11 + $0x594] ss:$8 sps:$4 sm:$0xff]  }
 0x2f4   : > { %v19946_v15 = vpop.f32.mrf.mxu0  ;;  %5940 = vmatmul.mubr.bf16.gmra.mxu0 %v17715_v22  ;;  %v19948_v12 = vpop.f32.mrf.mxu1  ;;  %7692 = vmatmul.mubr.bf16.gmra.mxu1 %v17772_v46  ;;  %v17782_v22 = vld [vmem:[%s18787_s11 + $0x1344] ss:$8 sps:$4 sm:$0xff]  }
 0x2f5   : > { %24935 = vst [vmem:[#allocation80_spill] sm:$0xff] %v19946_v15  ;;  %24936 = vst [vmem:[#allocation54_spill] sm:$0xff] %v19948_v12  ;;  %16037 = vmatprep.mubr.msk.bf16.mxu0 %vm4150_vm0, %v17719_v21  ;;  %16256 = vmatprep.mubr.msk.bf16.mxu1 %vm4150_vm0, %v17776_v34 }
 0x2f6   : > { %v5751_v6 = vpop.f32.mrf.mxu0  ;;  %v7503_v20 = vpop.f32.mrf.mxu1 }
 0x2f8   : > { %v19952_v52 = vpop.f32.mrf.mxu0  ;;  %v19955_v24 = vpop.f32.mrf.mxu1 }
 0x2f9   : > { %24937 = vst [vmem:[#allocation27_spill] sm:$0xff] %v19952_v52  ;;  %24938 = vst [vmem:[#allocation53_spill] sm:$0xff] %v19955_v24  ;;  %v17727_v52 = vld [vmem:[%s18787_s11 + $0x590] ss:$8 sps:$4 sm:$0xff]  }
 0x2fa   : > { %v5754_v15 = vpop.f32.mrf.mxu0  ;;  %v7506_v46 = vpop.f32.mrf.mxu1 }
 0x2fb   : > { %v17784_v15 = vld [vmem:[%s18787_s11 + $0x1340] ss:$8 sps:$4 sm:$0xff]   ;;  %v17731_v46 = vld [vmem:[%s18787_s11 + $0x5a4] ss:$8 sps:$4 sm:$0xff]  }
 0x2fc   : > { %v19960_v12 = vpop.f32.mrf.mxu0  ;;  %5948 = vmatmul.mubr.bf16.gmra.mxu0 %v17721_v51  ;;  %v19962_v21 = vpop.f32.mrf.mxu1  ;;  %7700 = vmatmul.mubr.bf16.gmra.mxu1 %v17778_v37  ;;  %v17788_v51 = vld [vmem:[%s18787_s11 + $0x1354] ss:$8 sps:$4 sm:$0xff]  }
 0x2fd   : > { %24939 = vst [vmem:[#allocation26_spill] sm:$0xff] %v19960_v12  ;;  %24940 = vst [vmem:[#allocation81_spill] sm:$0xff] %v19962_v21  ;;  %16038 = vmatprep.mubr.msk.bf16.mxu0 %vm4150_vm0, %v17725_v30  ;;  %16257 = vmatprep.mubr.msk.bf16.mxu1 %vm4150_vm0, %v17782_v22 }
 0x2fe   : > { %v5759_v34 = vpop.f32.mrf.mxu0  ;;  %v7511_v6 = vpop.f32.mrf.mxu1 }
 0x300   : > { %v19966_v20 = vpop.f32.mrf.mxu0  ;;  %v19969_v24 = vpop.f32.mrf.mxu1 }
 0x301   : > { %24941 = vst [vmem:[#allocation82_spill] sm:$0xff] %v19966_v20  ;;  %24942 = vst [vmem:[#allocation56_spill] sm:$0xff] %v19969_v24  ;;  %v17733_v20 = vld [vmem:[%s18787_s11 + $0x5a0] ss:$8 sps:$4 sm:$0xff]  }
 0x302   : > { %v5762_v12 = vpop.f32.mrf.mxu0  ;;  %v7514_v37 = vpop.f32.mrf.mxu1 }
 0x303   : > { %v17790_v12 = vld [vmem:[%s18787_s11 + $0x1350] ss:$8 sps:$4 sm:$0xff]   ;;  %v17737_v37 = vld [vmem:[%s18787_s11 + $0x5b4] ss:$8 sps:$4 sm:$0xff]  }
 0x304   : > { %v19974_v21 = vpop.f32.mrf.mxu0  ;;  %5956 = vmatmul.mubr.bf16.gmra.mxu0 %v17727_v52  ;;  %v19976_v30 = vpop.f32.mrf.mxu1  ;;  %7708 = vmatmul.mubr.bf16.gmra.mxu1 %v17784_v15  ;;  %v17794_v52 = vld [vmem:[%s18787_s11 + $0x1364] ss:$8 sps:$4 sm:$0xff]  }
 0x305   : > { %24943 = vst [vmem:[#allocation29_spill] sm:$0xff] %v19974_v21  ;;  %24944 = vst [vmem:[#allocation55_spill] sm:$0xff] %v19976_v30  ;;  %16039 = vmatprep.mubr.msk.bf16.mxu0 %vm4150_vm0, %v17731_v46  ;;  %16258 = vmatprep.mubr.msk.bf16.mxu1 %vm4150_vm0, %v17788_v51 }
 0x306   : > { %v5767_v22 = vpop.f32.mrf.mxu0  ;;  %v7519_v34 = vpop.f32.mrf.mxu1 }
 0x308   : > { %v19980_v6 = vpop.f32.mrf.mxu0  ;;  %v19983_v24 = vpop.f32.mrf.mxu1 }
 0x309   : > { %24945 = vst [vmem:[#allocation28_spill] sm:$0xff] %v19980_v6  ;;  %24946 = vst [vmem:[#allocation83_spill] sm:$0xff] %v19983_v24  ;;  %v17739_v6 = vld [vmem:[%s18787_s11 + $0x5b0] ss:$8 sps:$4 sm:$0xff]  }
 0x30a   : > { %v5770_v21 = vpop.f32.mrf.mxu0  ;;  %v7522_v15 = vpop.f32.mrf.mxu1 }
 0x30b   : > { %v17796_v21 = vld [vmem:[%s18787_s11 + $0x1360] ss:$8 sps:$4 sm:$0xff]   ;;  %v17743_v15 = vld [vmem:[%s18787_s11 + $0x5c4] ss:$8 sps:$4 sm:$0xff]  }
 0x30c   : > { %v19988_v30 = vpop.f32.mrf.mxu0  ;;  %5964 = vmatmul.mubr.bf16.gmra.mxu0 %v17733_v20  ;;  %v19990_v46 = vpop.f32.mrf.mxu1  ;;  %7716 = vmatmul.mubr.bf16.gmra.mxu1 %v17790_v12  ;;  %v17800_v20 = vld [vmem:[%s18787_s11 + $0x1374] ss:$8 sps:$4 sm:$0xff]  }
 0x30d   : > { %24947 = vst [vmem:[#allocation84_spill] sm:$0xff] %v19990_v46  ;;  %16040 = vmatprep.mubr.msk.bf16.mxu0 %vm4150_vm0, %v17737_v37  ;;  %16259 = vmatprep.mubr.msk.bf16.mxu1 %vm4150_vm0, %v17794_v52 }
 0x30e   : > { %v5775_v51 = vpop.f32.mrf.mxu0  ;;  %v7527_v22 = vpop.f32.mrf.mxu1 }
 0x310   : > { %v19994_v34 = vpop.f32.mrf.mxu0  ;;  %v19997_v24 = vpop.f32.mrf.mxu1 }
 0x311   : > { %24948 = vst [vmem:[#allocation58_spill] sm:$0xff] %v19997_v24  ;;  %v17745_v24 = vld [vmem:[%s18787_s11 + $0x5c0] ss:$8 sps:$4 sm:$0xff]  }
 0x312   : > { %v5778_v46 = vpop.f32.mrf.mxu0  ;;  %v7530_v12 = vpop.f32.mrf.mxu1 }
 0x313   : > { %v17802_v46 = vld [vmem:[%s18787_s11 + $0x1370] ss:$8 sps:$4 sm:$0xff]   ;;  %v17749_v12 = vld [vmem:[%s18787_s11 + $0x5d4] ss:$8 sps:$4 sm:$0xff]  }
 0x314   : > { %v20002_v9 = vpop.f32.mrf.mxu0  ;;  %5972 = vmatmul.mubr.bf16.gmra.mxu0 %v17739_v6  ;;  %v20004_v37 = vpop.f32.mrf.mxu1  ;;  %7724 = vmatmul.mubr.bf16.gmra.mxu1 %v17796_v21  ;;  %v17806_v6 = vld [vmem:[%s18787_s11 + $0x1384] ss:$8 sps:$4 sm:$0xff]  }
 0x315   : > { %16041 = vmatprep.mubr.msk.bf16.mxu0 %vm4150_vm0, %v17743_v15  ;;  %16260 = vmatprep.mubr.msk.bf16.mxu1 %vm4150_vm0, %v17800_v20 }
 0x316   : > { %v5783_v52 = vpop.f32.mrf.mxu0  ;;  %v7535_v51 = vpop.f32.mrf.mxu1 }
 0x318   : > { %v20008_v22 = vpop.f32.mrf.mxu0  ;;  %v20011_v31 = vpop.f32.mrf.mxu1 }
 0x31a   : > { %v5786_v25 = vpop.f32.mrf.mxu0  ;;  %v7538_v21 = vpop.f32.mrf.mxu1 }
 0x31b   : > { %v17808_v25 = vld [vmem:[%s18787_s11 + $0x1380] ss:$8 sps:$4 sm:$0xff]   ;;  %v17755_v21 = vld [vmem:[%s18787_s11 + $0x5e4] ss:$8 sps:$4 sm:$0xff]  }
 0x31c   : > { %v20016_v35 = vpop.f32.mrf.mxu0  ;;  %5980 = vmatmul.mubr.bf16.gmra.mxu0 %v17745_v24  ;;  %v20018_v15 = vpop.f32.mrf.mxu1  ;;  %7732 = vmatmul.mubr.bf16.gmra.mxu1 %v17802_v46  ;;  %v17812_v24 = vld [vmem:[%s18787_s11 + $0x1394] ss:$8 sps:$4 sm:$0xff]  }
 0x31d   : > { %16042 = vmatprep.mubr.msk.bf16.mxu0 %vm4150_vm0, %v17749_v12  ;;  %16261 = vmatprep.mubr.msk.bf16.mxu1 %vm4150_vm0, %v17806_v6 }
 0x31e   : > { %v5791_v20 = vpop.f32.mrf.mxu0  ;;  %v7543_v52 = vpop.f32.mrf.mxu1 }
 0x320   : > { %v20022_v51 = vpop.f32.mrf.mxu0  ;;  %v20025_v1 = vpop.f32.mrf.mxu1 }
 0x322   : > { %v5794_v50 = vpop.f32.mrf.mxu0  ;;  %v7546_v46 = vpop.f32.mrf.mxu1 }
 0x323   : > { %v17814_v50 = vld [vmem:[%s18787_s11 + $0x1390] ss:$8 sps:$4 sm:$0xff]   ;;  %v17761_v46 = vld [vmem:[%s18787_s11 + $0x5f4] ss:$8 sps:$4 sm:$0xff]  }
 0x324   : > { %v20030_v27 = vpop.f32.mrf.mxu0  ;;  %5988 = vmatmul.mubr.bf16.gmra.mxu0 %v17751_v49  ;;  %v20032_v12 = vpop.f32.mrf.mxu1  ;;  %7740 = vmatmul.mubr.bf16.gmra.mxu1 %v17808_v25  ;;  %v17818_v49 = vld [vmem:[%s18787_s11 + $0x13a4] ss:$8 sps:$4 sm:$0xff]  }
 0x325   : > { %16043 = vmatprep.mubr.msk.bf16.mxu0 %vm4150_vm0, %v17755_v21  ;;  %16262 = vmatprep.mubr.msk.bf16.mxu1 %vm4150_vm0, %v17812_v24 }
 0x326   : > { %v5799_v6 = vpop.f32.mrf.mxu0  ;;  %v7551_v20 = vpop.f32.mrf.mxu1 }
 0x328   : > { %v20036_v52 = vpop.f32.mrf.mxu0  ;;  %v20039_v54 = vpop.f32.mrf.mxu1 }
 0x32a   : > { %v5802_v32 = vpop.f32.mrf.mxu0  ;;  %v7554_v25 = vpop.f32.mrf.mxu1 }
 0x32b   : > { %v17820_v32 = vld [vmem:[%s18787_s11 + $0x13a0] ss:$8 sps:$4 sm:$0xff]   ;;  %v17767_v25 = vld [vmem:[%s18787_s11 + $0x604] ss:$8 sps:$4 sm:$0xff]  }
 0x32c   : > { %v20044_v42 = vpop.f32.mrf.mxu0  ;;  %5996 = vmatmul.mubr.bf16.gmra.mxu0 %v17757_v40  ;;  %v20046_v21 = vpop.f32.mrf.mxu1  ;;  %7748 = vmatmul.mubr.bf16.gmra.mxu1 %v17814_v50  ;;  %v17824_v40 = vld [vmem:[%s18787_s11 + $0x13b4] ss:$8 sps:$4 sm:$0xff]  }
 0x32d   : > { %24949 = vst [vmem:[#allocation31_spill] sm:$0xff] %v20046_v21  ;;  %16044 = vmatprep.mubr.msk.bf16.mxu0 %vm4150_vm0, %v17761_v46  ;;  %16263 = vmatprep.mubr.msk.bf16.mxu1 %vm4150_vm0, %v17818_v49  ;;  %v17856_v21 = vld [vmem:[%s18787_s11 + $0x1400] ss:$8 sps:$4 sm:$0xff]  }
 0x32e   : > { %v5807_v24 = vpop.f32.mrf.mxu0  ;;  %v7559_v6 = vpop.f32.mrf.mxu1 }
 0x330   : > { %v20050_v20 = vpop.f32.mrf.mxu0  ;;  %v20053_v63 = vpop.f32.mrf.mxu1 }
 0x331   : > { %24950 = vst [vmem:[#allocation57_spill] sm:$0xff] %v20050_v20  ;;  %24951 = vst [vmem:[#allocation30_spill] sm:$0xff] %v20053_v63  ;;  %v17769_v63 = vld [vmem:[%s18787_s11 + $0x600] ss:$8 sps:$4 sm:$0xff]  }
 0x332   : > { %v5810_v38 = vpop.f32.mrf.mxu0  ;;  %v7562_v50 = vpop.f32.mrf.mxu1 }
 0x333   : > { %v17826_v38 = vld [vmem:[%s18787_s11 + $0x13b0] ss:$8 sps:$4 sm:$0xff]   ;;  %v17773_v50 = vld [vmem:[%s18787_s11 + $0x614] ss:$8 sps:$4 sm:$0xff]  }
 0x334   : > { %v20058_v3 = vpop.f32.mrf.mxu0  ;;  %6004 = vmatmul.mubr.bf16.gmra.mxu0 %v17763_v45  ;;  %v20060_v46 = vpop.f32.mrf.mxu1  ;;  %7756 = vmatmul.mubr.bf16.gmra.mxu1 %v17820_v32  ;;  %v17830_v45 = vld [vmem:[%s18787_s11 + $0x13c4] ss:$8 sps:$4 sm:$0xff]  }
 0x335   : > { %24952 = vst [vmem:[#allocation85_spill] sm:$0xff] %v20058_v3  ;;  %24953 = vst [vmem:[#allocation86_spill] sm:$0xff] %v20060_v46  ;;  %16045 = vmatprep.mubr.msk.bf16.mxu0 %vm4150_vm0, %v17767_v25  ;;  %16264 = vmatprep.mubr.msk.bf16.mxu1 %vm4150_vm0, %v17824_v40 }
 0x336   : > { %v5815_v49 = vpop.f32.mrf.mxu0  ;;  %v7567_v24 = vpop.f32.mrf.mxu1 }
 0x338   : > { %v20064_v6 = vpop.f32.mrf.mxu0  ;;  %v20067_v20 = vpop.f32.mrf.mxu1 }
 0x339   : > { %24954 = vst [vmem:[#allocation59_spill] sm:$0xff] %v20064_v6  ;;  %24955 = vst [vmem:[#allocation32_spill] sm:$0xff] %v20067_v20  ;;  %v17775_v20 = vld [vmem:[%s18787_s11 + $0x610] ss:$8 sps:$4 sm:$0xff]  }
 0x33a   : > { %v5818_v46 = vpop.f32.mrf.mxu0  ;;  %v7570_v32 = vpop.f32.mrf.mxu1 }
 0x33b   : > { %v17832_v46 = vld [vmem:[%s18787_s11 + $0x13c0] ss:$8 sps:$4 sm:$0xff]   ;;  %v17779_v32 = vld [vmem:[%s18787_s11 + $0x624] ss:$8 sps:$4 sm:$0xff]  }
 0x33c   : > { %v20072_v3 = vpop.f32.mrf.mxu0  ;;  %6012 = vmatmul.mubr.bf16.gmra.mxu0 %v17769_v63  ;;  %v20074_v25 = vpop.f32.mrf.mxu1  ;;  %7764 = vmatmul.mubr.bf16.gmra.mxu1 %v17826_v38  ;;  %v17836_v63 = vld [vmem:[%s18787_s11 + $0x13d4] ss:$8 sps:$4 sm:$0xff]  }
 0x33d   : > { %24956 = vst [vmem:[#allocation87_spill] sm:$0xff] %v20072_v3  ;;  %24957 = vst [vmem:[#allocation60_spill] sm:$0xff] %v20074_v25  ;;  %16046 = vmatprep.mubr.msk.bf16.mxu0 %vm4150_vm0, %v17773_v50  ;;  %16265 = vmatprep.mubr.msk.bf16.mxu1 %vm4150_vm0, %v17830_v45 }
 0x33e   : > { %v5823_v40 = vpop.f32.mrf.mxu0  ;;  %v7575_v49 = vpop.f32.mrf.mxu1 }
 0x340   : > { %v20078_v24 = vpop.f32.mrf.mxu0  ;;  %v20081_v6 = vpop.f32.mrf.mxu1 }
 0x341   : > { %24958 = vst [vmem:[#allocation33_spill] sm:$0xff] %v20078_v24  ;;  %24959 = vst [vmem:[#allocation92_spill] sm:$0xff] %v20081_v6  ;;  %v17781_v6 = vld [vmem:[%s18787_s11 + $0x620] ss:$8 sps:$4 sm:$0xff]  }
 0x342   : > { %v5826_v25 = vpop.f32.mrf.mxu0  ;;  %v7578_v38 = vpop.f32.mrf.mxu1 }
 0x343   : > { %v17838_v25 = vld [vmem:[%s18787_s11 + $0x13d0] ss:$8 sps:$4 sm:$0xff]   ;;  %v17785_v38 = vld [vmem:[%s18787_s11 + $0x634] ss:$8 sps:$4 sm:$0xff]  }
 0x344   : > { %v20086_v3 = vpop.f32.mrf.mxu0  ;;  %6020 = vmatmul.mubr.bf16.gmra.mxu0 %v17775_v20  ;;  %v20088_v50 = vpop.f32.mrf.mxu1  ;;  %7772 = vmatmul.mubr.bf16.gmra.mxu1 %v17832_v46  ;;  %v17842_v20 = vld [vmem:[%s18787_s11 + $0x13e4] ss:$8 sps:$4 sm:$0xff]  }
 0x345   : > { %24960 = vst [vmem:[#allocation93_spill] sm:$0xff] %v20086_v3  ;;  %24961 = vst [vmem:[#allocation94_spill] sm:$0xff] %v20088_v50  ;;  %16047 = vmatprep.mubr.msk.bf16.mxu0 %vm4150_vm0, %v17779_v32  ;;  %16266 = vmatprep.mubr.msk.bf16.mxu1 %vm4150_vm0, %v17836_v63 }
 0x346   : > { %v5831_v45 = vpop.f32.mrf.mxu0  ;;  %v7583_v40 = vpop.f32.mrf.mxu1 }
 0x348   : > { %v20092_v49 = vpop.f32.mrf.mxu0  ;;  %v20095_v24 = vpop.f32.mrf.mxu1 }
 0x349   : > { %24962 = vst [vmem:[#allocation95_spill] sm:$0xff] %v20092_v49  ;;  %24963 = vst [vmem:[#allocation96_spill] sm:$0xff] %v20095_v24  ;;  %v17787_v24 = vld [vmem:[%s18787_s11 + $0x630] ss:$8 sps:$4 sm:$0xff]  }
 0x34a   : > { %v5834_v50 = vpop.f32.mrf.mxu0  ;;  %v7586_v46 = vpop.f32.mrf.mxu1 }
 0x34b   : > { %v17844_v50 = vld [vmem:[%s18787_s11 + $0x13e0] ss:$8 sps:$4 sm:$0xff]   ;;  %v17791_v46 = vld [vmem:[%s18787_s11 + $0x644] ss:$8 sps:$4 sm:$0xff]  }
 0x34c   : > { %v20100_v3 = vpop.f32.mrf.mxu0  ;;  %6028 = vmatmul.mubr.bf16.gmra.mxu0 %v17781_v6  ;;  %v20102_v32 = vpop.f32.mrf.mxu1  ;;  %7780 = vmatmul.mubr.bf16.gmra.mxu1 %v17838_v25  ;;  %v17848_v6 = vld [vmem:[%s18787_s11 + $0x13f4] ss:$8 sps:$4 sm:$0xff]  }
 0x34d   : > { %24964 = vst [vmem:[#allocation97_spill] sm:$0xff] %v20100_v3  ;;  %24965 = vst [vmem:[#allocation98_spill] sm:$0xff] %v20102_v32  ;;  %16048 = vmatprep.mubr.msk.bf16.mxu0 %vm4150_vm0, %v17785_v38  ;;  %16267 = vmatprep.mubr.msk.bf16.mxu1 %vm4150_vm0, %v17842_v20 }
 0x34e   : > { %v5839_v63 = vpop.f32.mrf.mxu0  ;;  %v7591_v45 = vpop.f32.mrf.mxu1 }
 0x350   : > { %v20106_v40 = vpop.f32.mrf.mxu0  ;;  %v20109_v49 = vpop.f32.mrf.mxu1 }
 0x351   : > { %24966 = vst [vmem:[#allocation99_spill] sm:$0xff] %v20106_v40  ;;  %24967 = vst [vmem:[#allocation100_spill] sm:$0xff] %v20109_v49  ;;  %v17793_v49 = vld [vmem:[%s18787_s11 + $0x640] ss:$8 sps:$4 sm:$0xff]  }
 0x352   : > { %v5842_v32 = vpop.f32.mrf.mxu0  ;;  %v7594_v25 = vpop.f32.mrf.mxu1 }
 0x353   : > { %v17850_v32 = vld [vmem:[%s18787_s11 + $0x13f0] ss:$8 sps:$4 sm:$0xff]   ;;  %v17797_v25 = vld [vmem:[%s18787_s11 + $0x654] ss:$8 sps:$4 sm:$0xff]  }
 0x354   : > { %v20114_v3 = vpop.f32.mrf.mxu0  ;;  %6036 = vmatmul.mubr.bf16.gmra.mxu0 %v17787_v24  ;;  %v20116_v38 = vpop.f32.mrf.mxu1  ;;  %7788 = vmatmul.mubr.bf16.gmra.mxu1 %v17844_v50  ;;  %v17854_v24 = vld [vmem:[%s18787_s11 + $0x1404] ss:$8 sps:$4 sm:$0xff]  }
 0x355   : > { %24968 = vst [vmem:[#allocation101_spill] sm:$0xff] %v20114_v3  ;;  %24969 = vst [vmem:[#allocation102_spill] sm:$0xff] %v20116_v38  ;;  %16049 = vmatprep.mubr.msk.bf16.mxu0 %vm4150_vm0, %v17791_v46  ;;  %16268 = vmatprep.mubr.msk.bf16.mxu1 %vm4150_vm0, %v17848_v6 }
 0x356   : > { %v5847_v20 = vpop.f32.mrf.mxu0  ;;  %v7599_v63 = vpop.f32.mrf.mxu1 }
 0x358   : > { %v20120_v45 = vpop.f32.mrf.mxu0  ;;  %v20123_v40 = vpop.f32.mrf.mxu1 }
 0x359   : > { %24970 = vst [vmem:[#allocation103_spill] sm:$0xff] %v20120_v45  ;;  %24971 = vst [vmem:[#allocation104_spill] sm:$0xff] %v20123_v40  ;;  %v17799_v40 = vld [vmem:[%s18787_s11 + $0x650] ss:$8 sps:$4 sm:$0xff]  }
 0x35a   : > { %v5850_v38 = vpop.f32.mrf.mxu0  ;;  %v7602_v50 = vpop.f32.mrf.mxu1 }
 0x35b   : > { %v17803_v38 = vld [vmem:[%s18787_s11 + $0x664] ss:$8 sps:$4 sm:$0xff]   ;;  %v17860_v50 = vld [vmem:[%s18787_s11 + $0x1414] ss:$8 sps:$4 sm:$0xff]  }
 0x35c   : > { %v20128_v3 = vpop.f32.mrf.mxu0  ;;  %6044 = vmatmul.mubr.bf16.gmra.mxu0 %v17793_v49  ;;  %v20130_v46 = vpop.f32.mrf.mxu1  ;;  %7796 = vmatmul.mubr.bf16.gmra.mxu1 %v17850_v32 }
 0x35d   : > { %24972 = vst [vmem:[#allocation105_spill] sm:$0xff] %v20128_v3  ;;  %24973 = vst [vmem:[#allocation106_spill] sm:$0xff] %v20130_v46  ;;  %16050 = vmatprep.mubr.msk.bf16.mxu0 %vm4150_vm0, %v17797_v25  ;;  %16269 = vmatprep.mubr.msk.bf16.mxu1 %vm4150_vm0, %v17854_v24  ;;  %v8082_v25 = vmax.f32 %v19674_v62, %v19834_v43  ;;  %v17809_v62 = vld [vmem:[%s18787_s11 + $0x674] ss:$8 sps:$4 sm:$0xff]   ;;  %v17866_v43 = vld [vmem:[%s18787_s11 + $0x1424] ss:$8 sps:$4 sm:$0xff]  }
 0x35e   : > { %v5855_v6 = vpop.f32.mrf.mxu0  ;;  %v7607_v20 = vpop.f32.mrf.mxu1 }
 0x360   : > { %v20134_v63 = vpop.f32.mrf.mxu0  ;;  %v20137_v45 = vpop.f32.mrf.mxu1 }
 0x361   : > { %24974 = vst [vmem:[#allocation107_spill] sm:$0xff] %v20134_v63  ;;  %24975 = vst [vmem:[#allocation108_spill] sm:$0xff] %v20137_v45  ;;  %v17805_v45 = vld [vmem:[%s18787_s11 + $0x660] ss:$8 sps:$4 sm:$0xff]   ;;  %v17862_v63 = vld [vmem:[%s18787_s11 + $0x1410] ss:$8 sps:$4 sm:$0xff]  }
 0x362   : > { %v5858_v3 = vpop.f32.mrf.mxu0  ;;  %v7610_v49 = vpop.f32.mrf.mxu1 }
 0x364   : > { %v5861_v46 = vpop.f32.mrf.mxu0  ;;  %6052 = vmatmul.mubr.bf16.gmra.mxu0 %v17799_v40  ;;  %v20142_v32 = vpop.f32.mrf.mxu1  ;;  %7804 = vmatmul.mubr.bf16.gmra.mxu1 %v17856_v21  ;;  %v8083_v21 = vmax.f32 %v19685_v13, %v19840_v11 }
 0x365   : > { %24976 = vst [vmem:[#allocation109_spill] sm:$0xff] %v20142_v32  ;;  %v8258_v24 = vmax.f32 %v19988_v30, %v5861_v46  ;;  %16051 = vmatprep.mubr.msk.bf16.mxu0 %vm4150_vm0, %v17803_v38  ;;  %16270 = vmatprep.mubr.msk.bf16.mxu1 %vm4150_vm0, %v17860_v50  ;;  %v8192_v38 = vmax.f32 %v19694_v59, %v19850_v0 }
 0x366   : > { %v5863_v6 = vpop.f32.mrf.mxu0  ;;  %v7615_v3 = vpop.f32.mrf.mxu1 }
 0x367   : > { %v8434_v20 = vmax.f32 %v8082_v25, %v8258_v24  ;;  %v8084_v25 = vmax.f32 %v19692_v26, %v19848_v5 }
 0x368   : > { %v5864_v49 = vpop.f32.mrf.mxu0  ;;  %v20150_v40 = vpop.f32.mrf.mxu1 }
 0x369   : > { %v8259_v32 = vmax.f32 %v19994_v34, %v5864_v49  ;;  %v8610_v3 = vmax.f32 %v8434_v20, 0.0 }
 0x36a   : > { %v5866_v30 = vpop.f32.mrf.mxu0  ;;  %v7618_v46 = vpop.f32.mrf.mxu1 }
 0x36b   : > { %v8435_v50 = vmax.f32 %v8083_v21, %v8259_v32  ;;  %v8193_v32 = vmax.f32 %v19704_v53, %v19857_v28  ;;  %v17868_v21 = vld [vmem:[%s18787_s11 + $0x1420] ss:$8 sps:$4 sm:$0xff]  }
 0x36c   : > { %v5869_v24 = vpop.f32.mrf.mxu0  ;;  %6060 = vmatmul.mubr.bf16.gmra.mxu0 %v17805_v45  ;;  %v7621_v6 = vpop.f32.mrf.mxu1  ;;  %7812 = vmatmul.mubr.bf16.gmra.mxu1 %v17862_v63  ;;  %v8856_v63 = vshrl.u32 %v19464_v29, 16 }
 0x36d   : > { %v8611_v13 = vmax.f32 %v8435_v50, 0.0  ;;  %v8260_v11 = vmax.f32 %v20002_v9, %v5869_v24  ;;  %16052 = vmatprep.mubr.msk.bf16.mxu0 %vm4150_vm0, %v17809_v62  ;;  %v8368_v34 = vmax.f32 %v20004_v37, %v7621_v6  ;;  %16271 = vmatprep.mubr.msk.bf16.mxu1 %vm4150_vm0, %v17866_v43  ;;  %v17811_v9 = vld [vmem:[%s18787_s11 + $0x670] ss:$8 sps:$4 sm:$0xff]   ;;  %v8085_v62 = vmax.f32 %v19702_v61, %v19854_v7  ;;  %v17872_v50 = vld [vmem:[%s18787_s11 + $0x1434] ss:$8 sps:$4 sm:$0xff]  }
 0x36e   : > { %v5871_v59 = vpop.f32.mrf.mxu0  ;;  %v7623_v0 = vpop.f32.mrf.mxu1  ;;  %v17905_v37 = vld [vmem:[%s24546_s2 + $0x78] sm:$0xff]   ;;  %v8194_v61 = vmax.f32 %v19710_v23, %v19864_v36 }
 0x36f   : > { %v8775_v5 = vpack.c.bf16 %v8611_v13, %v8610_v3  ;;  %v8436_v26 = vmax.f32 %v8084_v25, %v8260_v11  ;;  %v8544_v45 = vmax.f32 %v8192_v38, %v8368_v34  ;;  %v17815_v38 = vld [vmem:[%s18787_s11 + $0x684] ss:$8 sps:$4 sm:$0xff]   ;;  %16658 = vmatprep.subr.bf16.mxu1 %v17905_v37  ;;  %v17906_v24 = vld [vmem:[%s24546_s2 + $0x38] sm:$0xff]  }
 0x370   : > { %v5872_v20 = vpop.f32.mrf.mxu0  ;;  %v7624_v49 = vpop.f32.mrf.mxu1  ;;  %16659 = vmatpush3.bf16.msra.mxu1 %v17906_v24 }
 0x371   : > { %v20177_v43 = vpack.i.b16 %v8775_v5, %v19464_v29  ;;  %v8857_v30 = vshrl.u32 %v8775_v5, 16  ;;  %v8261_v46 = vmax.f32 %v20008_v22, %v5872_v20  ;;  %v8369_v53 = vmax.f32 %v20011_v31, %v7624_v49 }
 0x372   : > { %v5874_v28 = vpop.f32.mrf.mxu0  ;;  %v7626_v25 = vpop.f32.mrf.mxu1  ;;  %v8086_v22 = vmax.f32 %v19708_v19, %v19862_v4  ;;  %v8720_v3 = vmax.f32 %v8544_v45, 0.0  ;;  %v8612_v11 = vmax.f32 %v8436_v26, 0.0  ;;  %v8888_v45 = vshrl.u32 %v19484_v14, 16 }
 0x373   : > { %24977 = vst [vmem:[#allocation110_spill] sm:$0xff] %v20177_v43  ;;  %v20188_v7 = vpack.i.b16 %v8857_v30, %v8856_v63  ;;  %v8437_v29 = vmax.f32 %v8085_v62, %v8261_v46  ;;  %v8545_v13 = vmax.f32 %v8193_v32, %v8369_v53  ;;  %v17817_v32 = vld [vmem:[%s18787_s11 + $0x680] ss:$8 sps:$4 sm:$0xff]   ;;  %v8087_v49 = vmax.f32 %v19717_v60, %v19868_v55  ;;  %v17821_v30 = vld [vmem:[%s18787_s11 + $0x694] ss:$8 sps:$4 sm:$0xff]  }
 0x374   : > { %v5877_v6 = vpop.f32.mrf.mxu0  ;;  %6068 = vmatmul.mubr.bf16.gmra.mxu0 %v17811_v9  ;;  %v7629_v31 = vpop.f32.mrf.mxu1  ;;  %7820 = vmatmul.mubr.bf16.gmra.mxu1 %v17868_v21  ;;  %v17874_v9 = vld [vmem:[%s18787_s11 + $0x1430] ss:$8 sps:$4 sm:$0xff]   ;;  %v17878_v46 = vld [vmem:[%s18787_s11 + $0x1444] ss:$8 sps:$4 sm:$0xff]   ;;  %v8088_v60 = vmax.f32 %v19722_v41, %v19876_v33 }
 0x375   : > { %24978 = vst [vmem:[#allocation111_spill] sm:$0xff] %v20188_v7  ;;  %v8613_v34 = vmax.f32 %v8437_v29, 0.0  ;;  %v8262_v59 = vmax.f32 %v20016_v35, %v5877_v6  ;;  %16053 = vmatprep.mubr.msk.bf16.mxu0 %vm4150_vm0, %v17815_v38  ;;  %v8370_v23 = vmax.f32 %v20018_v15, %v7629_v31  ;;  %16272 = vmatprep.mubr.msk.bf16.mxu1 %vm4150_vm0, %v17872_v50  ;;  %v8721_v19 = vmax.f32 %v8545_v13, 0.0  ;;  %v17823_v31 = vld [vmem:[%s18787_s11 + $0x690] ss:$8 sps:$4 sm:$0xff]  }
 0x376   : > { %v5879_v36 = vpop.f32.mrf.mxu0  ;;  %v7631_v4 = vpop.f32.mrf.mxu1  ;;  %v8195_v35 = vmax.f32 %v19719_v17, %v19871_v44  ;;  %v8196_v50 = vmax.f32 %v19724_v57, %v19878_v8  ;;  %v17933_v7 = vld [vmem:[%s18787_s11 + $0x7b0] ss:$8 sps:$4 sm:$0xff]  }
 0x377   : > { %v8776_v0 = vpack.c.bf16 %v8613_v34, %v8612_v11  ;;  %v8438_v5 = vmax.f32 %v8086_v22, %v8262_v59  ;;  %v8546_v26 = vmax.f32 %v8194_v61, %v8370_v23  ;;  %v20200_v20 = vpack.c.bf16 %v8721_v19, %v8720_v3  ;;  %v17880_v34 = vld [vmem:[%s18787_s11 + $0x1440] ss:$8 sps:$4 sm:$0xff]   ;;  %v17827_v4 = vld [vmem:[%s18787_s11 + $0x6a4] ss:$8 sps:$4 sm:$0xff]  }
 0x378   : > { %v5880_v63 = vpop.f32.mrf.mxu0  ;;  %v7632_v15 = vpop.f32.mrf.mxu1  ;;  %v8920_v3 = vshrl.u32 %v19506_v18, 16  ;;  %v8089_v59 = vmax.f32 %v19728_v56, %v19882_v16  ;;  %v8090_v56 = vmax.f32 %v19736_v10, %v19890_v48 }
 0x379   : > { %v20206_v21 = vpack.i.b16 %v8776_v0, %v19484_v14  ;;  %v8889_v37 = vshrl.u32 %v8776_v0, 16  ;;  %v8263_v62 = vmax.f32 %v20022_v51, %v5880_v63  ;;  %v8371_v44 = vmax.f32 %v20025_v1, %v7632_v15  ;;  %v17884_v0 = vld [vmem:[%s18787_s11 + $0x1454] ss:$8 sps:$4 sm:$0xff]  }
 0x37a   : > { %v5882_v38 = vpop.f32.mrf.mxu0  ;;  %v7634_v17 = vpop.f32.mrf.mxu1  ;;  %v8722_v55 = vmax.f32 %v8546_v26, 0.0  ;;  %v8614_v24 = vmax.f32 %v8438_v5, 0.0  ;;  %v8198_v26 = vmax.f32 %v19738_v2, %v19892_v39  ;;  %v24983_v2 = vld [vmem:[#allocation31_spill] sm:$0xff] }
 0x37b   : > { %24979 = vst [vmem:[#allocation112_spill] sm:$0xff] %v20206_v21  ;;  %v20214_v28 = vpack.i.b16 %v8889_v37, %v8888_v45  ;;  %v8439_v53 = vmax.f32 %v8087_v49, %v8263_v62  ;;  %v8547_v25 = vmax.f32 %v8195_v35, %v8371_v44  ;;  %v24985_v38 = vld [vmem:[#allocation75_spill] sm:$0xff]  ;;  %v24986_v44 = vld [vmem:[#allocation40_spill] sm:$0xff] }
 0x37c   : > { %v5885_v14 = vpop.f32.mrf.mxu0  ;;  %6076 = vmatmul.mubr.bf16.gmra.mxu0 %v17817_v32  ;;  %v7637_v51 = vpop.f32.mrf.mxu1  ;;  %7828 = vmatmul.mubr.bf16.gmra.mxu1 %v17874_v9 }
 0x37d   : > { %24980 = vst [vmem:[#allocation113_spill] sm:$0xff] %v20214_v28  ;;  %v8615_v61 = vmax.f32 %v8439_v53, 0.0  ;;  %v8264_v1 = vmax.f32 %v20030_v27, %v5885_v14  ;;  %16054 = vmatprep.mubr.msk.bf16.mxu0 %vm4150_vm0, %v17821_v30  ;;  %v8372_v57 = vmax.f32 %v20032_v12, %v7637_v51  ;;  %16273 = vmatprep.mubr.msk.bf16.mxu1 %vm4150_vm0, %v17878_v46  ;;  %v8723_v33 = vmax.f32 %v8547_v25, 0.0  ;;  %v24984_v30 = vld [vmem:[#allocation90_spill] sm:$0xff] }
 0x37e   : > { %v5887_v8 = vpop.f32.mrf.mxu0  ;;  %v7639_v41 = vpop.f32.mrf.mxu1  ;;  %v8197_v27 = vmax.f32 %v19731_v58, %v19885_v47  ;;  %v8952_v46 = vshrl.u32 %v24984_v30, 16  ;;  %v17886_v14 = vld [vmem:[%s18787_s11 + $0x1450] ss:$8 sps:$4 sm:$0xff]  }
 0x37f   : > { %v8777_v29 = vpack.c.bf16 %v8615_v61, %v8614_v24  ;;  %v8440_v22 = vmax.f32 %v8088_v60, %v8264_v1  ;;  %v8548_v6 = vmax.f32 %v8196_v50, %v8372_v57  ;;  %v20226_v11 = vpack.c.bf16 %v8723_v33, %v8722_v55  ;;  %v17829_v50 = vld [vmem:[%s18787_s11 + $0x6a0] ss:$8 sps:$4 sm:$0xff]   ;;  %v24989_v25 = vld [vmem:[#allocation66_spill] sm:$0xff]  ;;  %v24991_v1 = vld [vmem:[#allocation57_spill] sm:$0xff] }
 0x380   : > { %v5888_v13 = vpop.f32.mrf.mxu0  ;;  %v7640_v12 = vpop.f32.mrf.mxu1  ;;  %v24988_v55 = vld [vmem:[#allocation20_spill] sm:$0xff]  ;;  %v17833_v8 = vld [vmem:[%s18787_s11 + $0x6b4] ss:$8 sps:$4 sm:$0xff]  }
 0x381   : > { %v20232_v23 = vpack.i.b16 %v8777_v29, %v19506_v18  ;;  %v8921_v36 = vshrl.u32 %v8777_v29, 16  ;;  %v8265_v19 = vmax.f32 %v20036_v52, %v5888_v13  ;;  %v8373_v58 = vmax.f32 %v20039_v54, %v7640_v12  ;;  %v17890_v33 = vld [vmem:[%s18787_s11 + $0x1464] ss:$8 sps:$4 sm:$0xff]   ;;  %v24992_v29 = vld [vmem:[#allocation30_spill] sm:$0xff] }
 0x382   : > { %v5890_v5 = vpop.f32.mrf.mxu0  ;;  %v7642_v47 = vpop.f32.mrf.mxu1  ;;  %v8724_v16 = vmax.f32 %v8548_v6, 0.0  ;;  %v8616_v32 = vmax.f32 %v8440_v22, 0.0  ;;  %v8091_v51 = vmax.f32 %v24989_v25, %v24988_v55  ;;  %v17839_v55 = vld [vmem:[%s18787_s11 + $0x6c4] ss:$8 sps:$4 sm:$0xff]   ;;  %v17896_v25 = vld [vmem:[%s18787_s11 + $0x1474] ss:$8 sps:$4 sm:$0xff]  }
 0x383   : > { %24981 = vst [vmem:[#allocation114_spill] sm:$0xff] %v20232_v23  ;;  %v20240_v45 = vpack.i.b16 %v8921_v36, %v8920_v3  ;;  %v8441_v35 = vmax.f32 %v8089_v59, %v8265_v19  ;;  %v8549_v63 = vmax.f32 %v8197_v27, %v8373_v58  ;;  %v24993_v3 = vld [vmem:[#allocation50_spill] sm:$0xff]  ;;  %v24994_v27 = vld [vmem:[#allocation39_spill] sm:$0xff]  ;;  %v24997_v59 = vld [vmem:[#allocation13_spill] sm:$0xff] }
 0x384   : > { %v5893_v18 = vpop.f32.mrf.mxu0  ;;  %6084 = vmatmul.mubr.bf16.gmra.mxu0 %v17823_v31  ;;  %v7645_v52 = vpop.f32.mrf.mxu1  ;;  %7836 = vmatmul.mubr.bf16.gmra.mxu1 %v17880_v34  ;;  %v8200_v13 = vmax.f32 %v24994_v27, %v24993_v3  ;;  %v24996_v34 = vld [vmem:[#allocation76_spill] sm:$0xff] }
 0x385   : > { %24982 = vst [vmem:[#allocation115_spill] sm:$0xff] %v20240_v45  ;;  %v8617_v15 = vmax.f32 %v8441_v35, 0.0  ;;  %v8266_v54 = vmax.f32 %v20044_v42, %v5893_v18  ;;  %16055 = vmatprep.mubr.msk.bf16.mxu0 %vm4150_vm0, %v17827_v4  ;;  %v8374_v39 = vmax.f32 %v24983_v2, %v7645_v52  ;;  %16274 = vmatprep.mubr.msk.bf16.mxu1 %vm4150_vm0, %v17884_v0  ;;  %v8725_v48 = vmax.f32 %v8549_v63, 0.0  ;;  %v25000_v2 = vld [vmem:[#allocation34_spill] sm:$0xff]  ;;  %v25013_v3 = vld [vmem:[#allocation68_spill] sm:$0xff] }
 0x386   : > { %v5895_v9 = vpop.f32.mrf.mxu0  ;;  %v7647_v10 = vpop.f32.mrf.mxu1  ;;  %v8199_v42 = vmax.f32 %v24986_v44, %v24985_v38  ;;  %v8092_v36 = vmax.f32 %v24997_v59, %v24996_v34  ;;  %v25004_v38 = vld [vmem:[#allocation23_spill] sm:$0xff]  ;;  %v25005_v44 = vld [vmem:[#allocation12_spill] sm:$0xff] }
 0x387   : > { %v8778_v49 = vpack.c.bf16 %v8617_v15, %v8616_v32  ;;  %v8442_v37 = vmax.f32 %v8090_v56, %v8266_v54  ;;  %v8550_v62 = vmax.f32 %v8198_v26, %v8374_v39  ;;  %v20252_v53 = vpack.c.bf16 %v8725_v48, %v8724_v16  ;;  %v24998_v26 = vld [vmem:[#allocation85_spill] sm:$0xff]  ;;  %v24999_v56 = vld [vmem:[#allocation86_spill] sm:$0xff]  ;;  %v25002_v48 = vld [vmem:[#allocation67_spill] sm:$0xff] }
 0x388   : > { %v5896_v17 = vpop.f32.mrf.mxu0  ;;  %v7648_v60 = vpop.f32.mrf.mxu1  ;;  %v8984_v39 = vshrl.u32 %v25000_v2, 16  ;;  %v25001_v9 = vld [vmem:[#allocation49_spill] sm:$0xff] }
 0x389   : > { %24987 = vst [vmem:[#allocation31_spill] sm:$0xff] %v20252_v53  ;;  %v20258_v24 = vpack.i.b16 %v8778_v49, %v24984_v30  ;;  %v8953_v61 = vshrl.u32 %v8778_v49, 16  ;;  %v8267_v57 = vmax.f32 %v24991_v1, %v5896_v17  ;;  %v8375_v22 = vmax.f32 %v24992_v29, %v7648_v60  ;;  %v25007_v60 = vld [vmem:[#allocation59_spill] sm:$0xff] }
 0x38a   : > { %v5898_v41 = vpop.f32.mrf.mxu0  ;;  %v7650_v6 = vpop.f32.mrf.mxu1  ;;  %v8726_v4 = vmax.f32 %v8550_v62, 0.0  ;;  %v8618_v58 = vmax.f32 %v8442_v37, 0.0  ;;  %v8201_v10 = vmax.f32 %v25002_v48, %v25001_v9  ;;  %v17835_v37 = vld [vmem:[%s18787_s11 + $0x6b0] ss:$8 sps:$4 sm:$0xff]  }
 0x38b   : > { %24990 = vst [vmem:[#allocation90_spill] sm:$0xff] %v20258_v24  ;;  %v20266_v31 = vpack.i.b16 %v8953_v61, %v8952_v46  ;;  %v8443_v12 = vmax.f32 %v8091_v51, %v8267_v57  ;;  %v8551_v0 = vmax.f32 %v8199_v42, %v8375_v22  ;;  %v17892_v46 = vld [vmem:[%s18787_s11 + $0x1460] ss:$8 sps:$4 sm:$0xff]   ;;  %v8093_v42 = vmax.f32 %v25005_v44, %v25004_v38  ;;  %v25012_v6 = vld [vmem:[#allocation22_spill] sm:$0xff]  ;;  %v25023_v44 = vld [vmem:[#allocation33_spill] sm:$0xff] }
 0x38c   : > { %v5901_v19 = vpop.f32.mrf.mxu0  ;;  %6092 = vmatmul.mubr.bf16.gmra.mxu0 %v17829_v50  ;;  %v7653_v5 = vpop.f32.mrf.mxu1  ;;  %7844 = vmatmul.mubr.bf16.gmra.mxu1 %v17886_v14  ;;  %v25008_v61 = vld [vmem:[#allocation32_spill] sm:$0xff]  ;;  %v8094_v27 = vmax.f32 %v25013_v3, %v25012_v6 }
 0x38d   : > { %24995 = vst [vmem:[#allocation75_spill] sm:$0xff] %v20266_v31  ;;  %v8619_v47 = vmax.f32 %v8443_v12, 0.0  ;;  %v8268_v35 = vmax.f32 %v24998_v26, %v5901_v19  ;;  %16056 = vmatprep.mubr.msk.bf16.mxu0 %vm4150_vm0, %v17833_v8  ;;  %v8376_v18 = vmax.f32 %v24999_v56, %v7653_v5  ;;  %16275 = vmatprep.mubr.msk.bf16.mxu1 %vm4150_vm0, %v17890_v33  ;;  %v8727_v63 = vmax.f32 %v8551_v0, 0.0  ;;  %v25009_v8 = vld [vmem:[#allocation77_spill] sm:$0xff]  ;;  %v25010_v33 = vld [vmem:[#allocation42_spill] sm:$0xff]  ;;  %v25015_v5 = vld [vmem:[#allocation60_spill] sm:$0xff] }
 0x38e   : > { %v5903_v16 = vpop.f32.mrf.mxu0  ;;  %v7655_v52 = vpop.f32.mrf.mxu1  ;;  %v8202_v41 = vmax.f32 %v25010_v33, %v25009_v8  ;;  %v17921_v31 = vld [vmem:[%s18787_s11 + $0x790] ss:$8 sps:$4 sm:$0xff]   ;;  %v17927_v24 = vld [vmem:[%s18787_s11 + $0x7a0] ss:$8 sps:$4 sm:$0xff]  }
 0x38f   : > { %v8779_v32 = vpack.c.bf16 %v8619_v47, %v8618_v58  ;;  %v8444_v15 = vmax.f32 %v8092_v36, %v8268_v35  ;;  %v8552_v54 = vmax.f32 %v8200_v13, %v8376_v18  ;;  %v20278_v62 = vpack.c.bf16 %v8727_v63, %v8726_v4  ;;  %v25014_v4 = vld [vmem:[#allocation87_spill] sm:$0xff]  ;;  %v25016_v63 = vld [vmem:[#allocation61_spill] sm:$0xff] }
 0x390   : > { %v5904_v49 = vpop.f32.mrf.mxu0  ;;  %v7656_v30 = vpop.f32.mrf.mxu1  ;;  %v9016_v52 = vshrl.u32 %v25016_v63, 16 }
 0x391   : > { %25003 = vst [vmem:[#allocation40_spill] sm:$0xff] %v20278_v62  ;;  %v20284_v17 = vpack.i.b16 %v8779_v32, %v25000_v2  ;;  %v8985_v50 = vshrl.u32 %v8779_v32, 16  ;;  %v8269_v14 = vmax.f32 %v25007_v60, %v5904_v49  ;;  %v8377_v1 = vmax.f32 %v25008_v61, %v7656_v30  ;;  %v25017_v32 = vld [vmem:[#allocation52_spill] sm:$0xff]  ;;  %v25020_v49 = vld [vmem:[#allocation78_spill] sm:$0xff]  ;;  %v25025_v61 = vld [vmem:[#allocation51_spill] sm:$0xff] }
 0x392   : > { %v5906_v51 = vpop.f32.mrf.mxu0  ;;  %v7658_v57 = vpop.f32.mrf.mxu1  ;;  %v8728_v12 = vmax.f32 %v8552_v54, 0.0  ;;  %v8620_v36 = vmax.f32 %v8444_v15, 0.0  ;;  %v25018_v15 = vld [vmem:[#allocation41_spill] sm:$0xff]  ;;  %v17902_v60 = vld [vmem:[%s18787_s11 + $0x1484] ss:$8 sps:$4 sm:$0xff]  }
 0x393   : > { %25006 = vst [vmem:[#allocation20_spill] sm:$0xff] %v20284_v17  ;;  %v20292_v29 = vpack.i.b16 %v8985_v50, %v8984_v39  ;;  %v8445_v22 = vmax.f32 %v8093_v42, %v8269_v14  ;;  %v8553_v34 = vmax.f32 %v8201_v10, %v8377_v1  ;;  %v8203_v54 = vmax.f32 %v25018_v15, %v25017_v32  ;;  %v17841_v39 = vld [vmem:[%s18787_s11 + $0x6c0] ss:$8 sps:$4 sm:$0xff]   ;;  %v17898_v10 = vld [vmem:[%s18787_s11 + $0x1470] ss:$8 sps:$4 sm:$0xff]  }
 0x394   : > { %v5909_v13 = vpop.f32.mrf.mxu0  ;;  %6100 = vmatmul.mubr.bf16.gmra.mxu0 %v17835_v37  ;;  %v7661_v59 = vpop.f32.mrf.mxu1  ;;  %7852 = vmatmul.mubr.bf16.gmra.mxu1 %v17892_v46  ;;  %v25021_v37 = vld [vmem:[#allocation15_spill] sm:$0xff]  ;;  %v17845_v50 = vld [vmem:[%s18787_s11 + $0x6d4] ss:$8 sps:$4 sm:$0xff]  }
 0x395   : > { %25011 = vst [vmem:[#allocation66_spill] sm:$0xff] %v20292_v29  ;;  %v8621_v19 = vmax.f32 %v8445_v22, 0.0  ;;  %v8270_v0 = vmax.f32 %v25014_v4, %v5909_v13  ;;  %16057 = vmatprep.mubr.msk.bf16.mxu0 %vm4150_vm0, %v17839_v55  ;;  %v8378_v58 = vmax.f32 %v25015_v5, %v7661_v59  ;;  %16276 = vmatprep.mubr.msk.bf16.mxu1 %vm4150_vm0, %v17896_v25  ;;  %v8729_v26 = vmax.f32 %v8553_v34, 0.0  ;;  %v25024_v55 = vld [vmem:[#allocation92_spill] sm:$0xff]  ;;  %v25026_v1 = vld [vmem:[#allocation69_spill] sm:$0xff]  ;;  %v25029_v22 = vld [vmem:[#allocation14_spill] sm:$0xff] }
 0x396   : > { %v5911_v47 = vpop.f32.mrf.mxu0  ;;  %v7663_v35 = vpop.f32.mrf.mxu1  ;;  %v8095_v30 = vmax.f32 %v25021_v37, %v25020_v49  ;;  %v8204_v57 = vmax.f32 %v25026_v1, %v25025_v61  ;;  %v25031_v4 = vld [vmem:[#allocation94_spill] sm:$0xff]  ;;  %v25042_v1 = vld [vmem:[#allocation43_spill] sm:$0xff] }
 0x397   : > { %v8780_v56 = vpack.c.bf16 %v8621_v19, %v8620_v36  ;;  %v8446_v18 = vmax.f32 %v8094_v27, %v8270_v0  ;;  %v8554_v16 = vmax.f32 %v8202_v41, %v8378_v58  ;;  %v20304_v9 = vpack.c.bf16 %v8729_v26, %v8728_v12  ;;  %v25028_v41 = vld [vmem:[#allocation25_spill] sm:$0xff]  ;;  %v25037_v49 = vld [vmem:[#allocation70_spill] sm:$0xff] }
 0x398   : > { %v5912_v2 = vpop.f32.mrf.mxu0  ;;  %v7664_v48 = vpop.f32.mrf.mxu1  ;;  %v8096_v6 = vmax.f32 %v25029_v22, %v25028_v41  ;;  %v25030_v36 = vld [vmem:[#allocation93_spill] sm:$0xff]  ;;  %v25041_v61 = vld [vmem:[#allocation54_spill] sm:$0xff]  ;;  %v25044_v22 = vld [vmem:[#allocation80_spill] sm:$0xff] }
 0x399   : > { %25019 = vst [vmem:[#allocation57_spill] sm:$0xff] %v20304_v9  ;;  %v20310_v46 = vpack.i.b16 %v8780_v56, %v25016_v63  ;;  %v9017_v38 = vshrl.u32 %v8780_v56, 16  ;;  %v8271_v42 = vmax.f32 %v25023_v44, %v5912_v2  ;;  %v8379_v25 = vmax.f32 %v25024_v55, %v7664_v48  ;;  %v25033_v63 = vld [vmem:[#allocation79_spill] sm:$0xff]  ;;  %v25040_v55 = vld [vmem:[#allocation96_spill] sm:$0xff] }
 0x39a   : > { %v5914_v14 = vpop.f32.mrf.mxu0  ;;  %v7666_v51 = vpop.f32.mrf.mxu1  ;;  %v8730_v27 = vmax.f32 %v8554_v16, 0.0  ;;  %v8622_v34 = vmax.f32 %v8446_v18, 0.0  ;;  %v25032_v16 = vld [vmem:[#allocation36_spill] sm:$0xff]  ;;  %v25039_v44 = vld [vmem:[#allocation95_spill] sm:$0xff] }
 0x39b   : > { %25022 = vst [vmem:[#allocation30_spill] sm:$0xff] %v20310_v46  ;;  %v20318_v8 = vpack.i.b16 %v9017_v38, %v9016_v52  ;;  %v8447_v33 = vmax.f32 %v8095_v30, %v8271_v42  ;;  %v8555_v13 = vmax.f32 %v8203_v54, %v8379_v25  ;;  %v9048_v18 = vshrl.u32 %v25032_v16, 16  ;;  %v25034_v52 = vld [vmem:[#allocation44_spill] sm:$0xff]  ;;  %v17847_v54 = vld [vmem:[%s18787_s11 + $0x6d0] ss:$8 sps:$4 sm:$0xff]  }
 0x39c   : > { %v5917_v3 = vpop.f32.mrf.mxu0  ;;  %6108 = vmatmul.mubr.bf16.gmra.mxu0 %v17841_v39  ;;  %v7669_v12 = vpop.f32.mrf.mxu1  ;;  %7860 = vmatmul.mubr.bf16.gmra.mxu1 %v17898_v10  ;;  %v8205_v32 = vmax.f32 %v25034_v52, %v25033_v63  ;;  %v17904_v48 = vld [vmem:[%s18787_s11 + $0x1480] ss:$8 sps:$4 sm:$0xff]   ;;  %v25049_v52 = vld [vmem:[#allocation53_spill] sm:$0xff] }
 0x39d   : > { %25027 = vst [vmem:[#allocation50_spill] sm:$0xff] %v20318_v8  ;;  %v8623_v59 = vmax.f32 %v8447_v33, 0.0  ;;  %v8272_v19 = vmax.f32 %v25030_v36, %v5917_v3  ;;  %16058 = vmatprep.mubr.msk.bf16.mxu0 %vm4150_vm0, %v17845_v50  ;;  %v8380_v0 = vmax.f32 %v25031_v4, %v7669_v12  ;;  %16277 = vmatprep.mubr.msk.bf16.mxu1 %vm4150_vm0, %v17902_v60  ;;  %v8731_v58 = vmax.f32 %v8555_v13, 0.0  ;;  %v25036_v10 = vld [vmem:[#allocation24_spill] sm:$0xff]  ;;  %v17910_v60 = vld [vmem:[%s18787_s11 + $0x1494] ss:$8 sps:$4 sm:$0xff]  }
 0x39e   : > { %v5919_v5 = vpop.f32.mrf.mxu0  ;;  %v7671_v47 = vpop.f32.mrf.mxu1  ;;  %v8097_v37 = vmax.f32 %v25037_v49, %v25036_v10  ;;  %v17851_v50 = vld [vmem:[%s18787_s11 + $0x6e4] ss:$8 sps:$4 sm:$0xff]   ;;  %v17912_v49 = vld [vmem:[%s18787_s11 + $0x1490] ss:$8 sps:$4 sm:$0xff]   ;;  %v17966_v8 = vld [vmem:[%s18787_s11 + $0x1520] ss:$8 sps:$4 sm:$0xff]  }
 0x39f   : > { %v8781_v26 = vpack.c.bf16 %v8623_v59, %v8622_v34  ;;  %v8448_v35 = vmax.f32 %v8096_v6, %v8272_v19  ;;  %v8556_v56 = vmax.f32 %v8204_v57, %v8380_v0  ;;  %v20330_v2 = vpack.c.bf16 %v8731_v58, %v8730_v27  ;;  %v25045_v6 = vld [vmem:[#allocation17_spill] sm:$0xff]  ;;  %v25047_v0 = vld [vmem:[#allocation98_spill] sm:$0xff]  ;;  %v25048_v63 = vld [vmem:[#allocation35_spill] sm:$0xff] }
 0x3a0   : > { %v5920_v15 = vpop.f32.mrf.mxu0  ;;  %v7672_v39 = vpop.f32.mrf.mxu1  ;;  %v8206_v57 = vmax.f32 %v25042_v1, %v25041_v61  ;;  %v8098_v3 = vmax.f32 %v25045_v6, %v25044_v22  ;;  %v25046_v19 = vld [vmem:[#allocation97_spill] sm:$0xff]  ;;  %v25056_v61 = vld [vmem:[#allocation100_spill] sm:$0xff]  ;;  %v25058_v22 = vld [vmem:[#allocation46_spill] sm:$0xff] }
 0x3a1   : > { %25035 = vst [vmem:[#allocation39_spill] sm:$0xff] %v20330_v2  ;;  %v20336_v30 = vpack.i.b16 %v8781_v26, %v25032_v16  ;;  %v9049_v38 = vshrl.u32 %v8781_v26, 16  ;;  %v8273_v42 = vmax.f32 %v25039_v44, %v5920_v15  ;;  %v8381_v25 = vmax.f32 %v25040_v55, %v7672_v39  ;;  %v17853_v39 = vld [vmem:[%s18787_s11 + $0x6e0] ss:$8 sps:$4 sm:$0xff]   ;;  %v17857_v55 = vld [vmem:[%s18787_s11 + $0x6f4] ss:$8 sps:$4 sm:$0xff]  }
 0x3a2   : > { %v5922_v14 = vpop.f32.mrf.mxu0  ;;  %v7674_v51 = vpop.f32.mrf.mxu1  ;;  %v8732_v13 = vmax.f32 %v8556_v56, 0.0  ;;  %v8624_v59 = vmax.f32 %v8448_v35, 0.0  ;;  %v9080_v35 = vshrl.u32 %v25048_v63, 16 }
 0x3a3   : > { %25038 = vst [vmem:[#allocation76_spill] sm:$0xff] %v20336_v30  ;;  %v20344_v33 = vpack.i.b16 %v9049_v38, %v9048_v18  ;;  %v8449_v41 = vmax.f32 %v8097_v37, %v8273_v42  ;;  %v8557_v12 = vmax.f32 %v8205_v32, %v8381_v25  ;;  %v25050_v32 = vld [vmem:[#allocation71_spill] sm:$0xff]  ;;  %v25053_v38 = vld [vmem:[#allocation16_spill] sm:$0xff] }
 0x3a4   : > { %v5925_v27 = vpop.f32.mrf.mxu0  ;;  %6116 = vmatmul.mubr.bf16.gmra.mxu0 %v17847_v54  ;;  %v7677_v34 = vpop.f32.mrf.mxu1  ;;  %7868 = vmatmul.mubr.bf16.gmra.mxu1 %v17904_v48  ;;  %v8207_v15 = vmax.f32 %v25050_v32, %v25049_v52  ;;  %v25052_v37 = vld [vmem:[#allocation27_spill] sm:$0xff] }
 0x3a5   : > { %25043 = vst [vmem:[#allocation13_spill] sm:$0xff] %v20344_v33  ;;  %v8625_v36 = vmax.f32 %v8449_v41, 0.0  ;;  %v8274_v4 = vmax.f32 %v25046_v19, %v5925_v27  ;;  %16059 = vmatprep.mubr.msk.bf16.mxu0 %vm4150_vm0, %v17851_v50  ;;  %v8382_v5 = vmax.f32 %v25047_v0, %v7677_v34  ;;  %16278 = vmatprep.mubr.msk.bf16.mxu1 %vm4150_vm0, %v17910_v60  ;;  %v8733_v47 = vmax.f32 %v8557_v12, 0.0  ;;  %v25055_v60 = vld [vmem:[#allocation99_spill] sm:$0xff]  ;;  %v25057_v41 = vld [vmem:[#allocation81_spill] sm:$0xff]  ;;  %v25061_v12 = vld [vmem:[#allocation72_spill] sm:$0xff] }
 0x3a6   : > { %v5927_v58 = vpop.f32.mrf.mxu0  ;;  %v7679_v26 = vpop.f32.mrf.mxu1  ;;  %v8099_v44 = vmax.f32 %v25053_v38, %v25052_v37  ;;  %v17916_v25 = vld [vmem:[%s18787_s11 + $0x14a4] ss:$8 sps:$4 sm:$0xff]   ;;  %v8208_v6 = vmax.f32 %v25058_v22, %v25057_v41  ;;  %v17859_v38 = vld [vmem:[%s18787_s11 + $0x6f0] ss:$8 sps:$4 sm:$0xff]   ;;  %v17922_v22 = vld [vmem:[%s18787_s11 + $0x14b4] ss:$8 sps:$4 sm:$0xff]  }
 0x3a7   : > { %v8782_v56 = vpack.c.bf16 %v8625_v36, %v8624_v59  ;;  %v8450_v16 = vmax.f32 %v8098_v3, %v8274_v4  ;;  %v8558_v18 = vmax.f32 %v8206_v57, %v8382_v5  ;;  %v20356_v48 = vpack.c.bf16 %v8733_v47, %v8732_v13  ;;  %v25060_v13 = vld [vmem:[#allocation26_spill] sm:$0xff]  ;;  %v25062_v58 = vld [vmem:[#allocation101_spill] sm:$0xff]  ;;  %v17863_v41 = vld [vmem:[%s18787_s11 + $0x704] ss:$8 sps:$4 sm:$0xff]  }
 0x3a8   : > { %v5928_v54 = vpop.f32.mrf.mxu0  ;;  %v7680_v10 = vpop.f32.mrf.mxu1  ;;  %v8100_v34 = vmax.f32 %v25061_v12, %v25060_v13  ;;  %v25063_v26 = vld [vmem:[#allocation102_spill] sm:$0xff] }
 0x3a9   : > { %25051 = vst [vmem:[#allocation85_spill] sm:$0xff] %v20356_v48  ;;  %v20362_v42 = vpack.i.b16 %v8782_v56, %v25048_v63  ;;  %v9081_v50 = vshrl.u32 %v8782_v56, 16  ;;  %v8275_v14 = vmax.f32 %v25055_v60, %v5928_v54  ;;  %v8383_v1 = vmax.f32 %v25056_v61, %v7680_v10  ;;  %v25064_v54 = vld [vmem:[#allocation63_spill] sm:$0xff]  ;;  %v25066_v10 = vld [vmem:[#allocation45_spill] sm:$0xff] }
 0x3aa   : > { %v5930_v51 = vpop.f32.mrf.mxu0  ;;  %v7682_v57 = vpop.f32.mrf.mxu1  ;;  %v8734_v36 = vmax.f32 %v8558_v18, 0.0  ;;  %v8626_v0 = vmax.f32 %v8450_v16, 0.0  ;;  %v9112_v16 = vshrl.u32 %v25064_v54, 16  ;;  %v17918_v60 = vld [vmem:[%s18787_s11 + $0x14a0] ss:$8 sps:$4 sm:$0xff]  }
 0x3ab   : > { %25054 = vst [vmem:[#allocation86_spill] sm:$0xff] %v20362_v42  ;;  %v20370_v3 = vpack.i.b16 %v9081_v50, %v9080_v35  ;;  %v8451_v27 = vmax.f32 %v8099_v44, %v8275_v14  ;;  %v8559_v19 = vmax.f32 %v8207_v15, %v8383_v1  ;;  %v25068_v14 = vld [vmem:[#allocation82_spill] sm:$0xff]  ;;  %v25071_v1 = vld [vmem:[#allocation103_spill] sm:$0xff] }
 0x3ac   : > { %v5933_v59 = vpop.f32.mrf.mxu0  ;;  %6124 = vmatmul.mubr.bf16.gmra.mxu0 %v17853_v39  ;;  %v7685_v4 = vpop.f32.mrf.mxu1  ;;  %7876 = vmatmul.mubr.bf16.gmra.mxu1 %v17912_v49  ;;  %v25065_v39 = vld [vmem:[#allocation56_spill] sm:$0xff] }
 0x3ad   : > { %25059 = vst [vmem:[#allocation34_spill] sm:$0xff] %v20370_v3  ;;  %v8627_v5 = vmax.f32 %v8451_v27, 0.0  ;;  %v8276_v47 = vmax.f32 %v25062_v58, %v5933_v59  ;;  %16060 = vmatprep.mubr.msk.bf16.mxu0 %vm4150_vm0, %v17857_v55  ;;  %v8384_v56 = vmax.f32 %v25063_v26, %v7685_v4  ;;  %16279 = vmatprep.mubr.msk.bf16.mxu1 %vm4150_vm0, %v17916_v25  ;;  %v8735_v35 = vmax.f32 %v8559_v19, 0.0  ;;  %v25069_v55 = vld [vmem:[#allocation19_spill] sm:$0xff]  ;;  %v25072_v27 = vld [vmem:[#allocation104_spill] sm:$0xff]  ;;  %v25074_v59 = vld [vmem:[#allocation73_spill] sm:$0xff] }
 0x3ae   : > { %v5935_v63 = vpop.f32.mrf.mxu0  ;;  %v7687_v52 = vpop.f32.mrf.mxu1  ;;  %v8209_v49 = vmax.f32 %v25066_v10, %v25065_v39  ;;  %v8101_v25 = vmax.f32 %v25069_v55, %v25068_v14  ;;  %v25081_v14 = vld [vmem:[#allocation83_spill] sm:$0xff]  ;;  %v25082_v55 = vld [vmem:[#allocation48_spill] sm:$0xff] }
 0x3af   : > { %v8783_v18 = vpack.c.bf16 %v8627_v5, %v8626_v0  ;;  %v8452_v32 = vmax.f32 %v8100_v34, %v8276_v47  ;;  %v8560_v15 = vmax.f32 %v8208_v6, %v8384_v56  ;;  %v20382_v44 = vpack.c.bf16 %v8735_v35, %v8734_v36  ;;  %v25073_v34 = vld [vmem:[#allocation55_spill] sm:$0xff]  ;;  %v25076_v0 = vld [vmem:[#allocation29_spill] sm:$0xff]  ;;  %v25077_v5 = vld [vmem:[#allocation18_spill] sm:$0xff] }
 0x3b0   : > { %v5936_v37 = vpop.f32.mrf.mxu0  ;;  %v7688_v50 = vpop.f32.mrf.mxu1  ;;  %v8210_v36 = vmax.f32 %v25074_v59, %v25073_v34  ;;  %v8102_v58 = vmax.f32 %v25077_v5, %v25076_v0  ;;  %v25087_v59 = vld [vmem:[#allocation107_spill] sm:$0xff] }
 0x3b1   : > { %25067 = vst [vmem:[#allocation49_spill] sm:$0xff] %v20382_v44  ;;  %v20388_v51 = vpack.i.b16 %v8783_v18, %v25064_v54  ;;  %v9113_v61 = vshrl.u32 %v8783_v18, 16  ;;  %v8277_v57 = vmax.f32 %v25071_v1, %v5936_v37  ;;  %v8385_v13 = vmax.f32 %v25072_v27, %v7688_v50  ;;  %v25078_v18 = vld [vmem:[#allocation105_spill] sm:$0xff]  ;;  %v17865_v1 = vld [vmem:[%s18787_s11 + $0x700] ss:$8 sps:$4 sm:$0xff]   ;;  %v25085_v27 = vld [vmem:[#allocation74_spill] sm:$0xff] }
 0x3b2   : > { %v5938_v6 = vpop.f32.mrf.mxu0  ;;  %v7690_v12 = vpop.f32.mrf.mxu1  ;;  %v8736_v26 = vmax.f32 %v8560_v15, 0.0  ;;  %v8628_v35 = vmax.f32 %v8452_v32, 0.0  ;;  %v17928_v0 = vld [vmem:[%s18787_s11 + $0x14c4] ss:$8 sps:$4 sm:$0xff]   ;;  %v17963_v48 = vld [vmem:[%s18787_s11 + $0x800] ss:$8 sps:$4 sm:$0xff]  }
 0x3b3   : > { %25070 = vst [vmem:[#allocation67_spill] sm:$0xff] %v20388_v51  ;;  %v20396_v19 = vpack.i.b16 %v9113_v61, %v9112_v16  ;;  %v8453_v4 = vmax.f32 %v8101_v25, %v8277_v57  ;;  %v8561_v56 = vmax.f32 %v8209_v49, %v8385_v13  ;;  %v25079_v16 = vld [vmem:[#allocation106_spill] sm:$0xff]  ;;  %v8211_v25 = vmax.f32 %v25082_v55, %v25081_v14 }
 0x3b4   : > { %v5941_v47 = vpop.f32.mrf.mxu0  ;;  %6132 = vmatmul.mubr.bf16.gmra.mxu0 %v17859_v38  ;;  %v7693_v63 = vpop.f32.mrf.mxu1  ;;  %7884 = vmatmul.mubr.bf16.gmra.mxu1 %v17918_v60  ;;  %v25080_v60 = vld [vmem:[#allocation38_spill] sm:$0xff] }
 0x3b5   : > { %25075 = vst [vmem:[#allocation23_spill] sm:$0xff] %v20396_v19  ;;  %v8629_v52 = vmax.f32 %v8453_v4, 0.0  ;;  %v8278_v54 = vmax.f32 %v25078_v18, %v5941_v47  ;;  %16061 = vmatprep.mubr.msk.bf16.mxu0 %vm4150_vm0, %v17863_v41  ;;  %v8386_v39 = vmax.f32 %v25079_v16, %v7693_v63  ;;  %16280 = vmatprep.mubr.msk.bf16.mxu1 %vm4150_vm0, %v17922_v22  ;;  %v8737_v37 = vmax.f32 %v8561_v56, 0.0  ;;  %v17924_v6 = vld [vmem:[%s18787_s11 + $0x14b0] ss:$8 sps:$4 sm:$0xff]   ;;  %v25084_v22 = vld [vmem:[#allocation28_spill] sm:$0xff] }
 0x3b6   : > { %v5943_v10 = vpop.f32.mrf.mxu0  ;;  %v7695_v38 = vpop.f32.mrf.mxu1  ;;  %v9144_v32 = vshrl.u32 %v25080_v60, 16  ;;  %v8103_v13 = vmax.f32 %v25085_v27, %v25084_v22  ;;  %v17869_v4 = vld [vmem:[%s18787_s11 + $0x714] ss:$8 sps:$4 sm:$0xff]   ;;  %v25089_v63 = vld [vmem:[#allocation84_spill] sm:$0xff] }
 0x3b7   : > { %v8784_v15 = vpack.c.bf16 %v8629_v52, %v8628_v35  ;;  %v8454_v49 = vmax.f32 %v8102_v58, %v8278_v54  ;;  %v8562_v50 = vmax.f32 %v8210_v36, %v8386_v39  ;;  %v20408_v57 = vpack.c.bf16 %v8737_v37, %v8736_v26  ;;  %v25088_v58 = vld [vmem:[#allocation108_spill] sm:$0xff]  ;;  %v25090_v26 = vld [vmem:[#allocation21_spill] sm:$0xff] }
 0x3b8   : > { %v5944_v61 = vpop.f32.mrf.mxu0  ;;  %v7696_v41 = vpop.f32.mrf.mxu1  ;;  %v8212_v35 = vmax.f32 %v25090_v26, %v25089_v63 }
 0x3b9   : > { %25083 = vst [vmem:[#allocation12_spill] sm:$0xff] %v20408_v57  ;;  %v20414_v12 = vpack.i.b16 %v8784_v15, %v25080_v60  ;;  %v9145_v34 = vshrl.u32 %v8784_v15, 16  ;;  %v8279_v36 = vmax.f32 %v25087_v59, %v5944_v61  ;;  %v8387_v47 = vmax.f32 %v25088_v58, %v7696_v41  ;;  %v25092_v15 = vld [vmem:[#allocation109_spill] sm:$0xff]  ;;  %v25093_v61 = vld [vmem:[#allocation58_spill] sm:$0xff] }
 0x3ba   : > { %v5946_v5 = vpop.f32.mrf.mxu0  ;;  %v7698_v56 = vpop.f32.mrf.mxu1  ;;  %v8738_v16 = vmax.f32 %v8562_v50, 0.0  ;;  %v8630_v37 = vmax.f32 %v8454_v49, 0.0  ;;  %v25094_v50 = vld [vmem:[#allocation47_spill] sm:$0xff]  ;;  %v17871_v49 = vld [vmem:[%s18787_s11 + $0x710] ss:$8 sps:$4 sm:$0xff]  }
 0x3bb   : > { %25086 = vst [vmem:[#allocation59_spill] sm:$0xff] %v20414_v12  ;;  %v20422_v52 = vpack.i.b16 %v9145_v34, %v9144_v32  ;;  %v8455_v18 = vmax.f32 %v8103_v13, %v8279_v36  ;;  %v8563_v39 = vmax.f32 %v8211_v25, %v8387_v47  ;;  %v17930_v13 = vld [vmem:[%s18787_s11 + $0x14c0] ss:$8 sps:$4 sm:$0xff]   ;;  %v25096_v34 = vld [vmem:[#allocation37_spill] sm:$0xff] }
 0x3bc   : > { %v20424_v54 = vpop.f32.mrf.mxu0  ;;  %6140 = vmatmul.mubr.bf16.gmra.mxu0 %v17865_v1  ;;  %v7701_v10 = vpop.f32.mrf.mxu1  ;;  %7892 = vmatmul.mubr.bf16.gmra.mxu1 %v17924_v6  ;;  %v8213_v1 = vmax.f32 %v25094_v50, %v25093_v61  ;;  %v9176_v59 = vshrl.u32 %v25096_v34, 16  ;;  %v17934_v58 = vld [vmem:[%s18787_s11 + $0x14d4] ss:$8 sps:$4 sm:$0xff]  }
 0x3bd   : > { %25091 = vst [vmem:[#allocation32_spill] sm:$0xff] %v20422_v52  ;;  %v8631_v38 = vmax.f32 %v8455_v18, 0.0  ;;  %16062 = vmatprep.mubr.msk.bf16.mxu0 %vm4150_vm0, %v17869_v4  ;;  %v8388_v60 = vmax.f32 %v25092_v15, %v7701_v10  ;;  %16281 = vmatprep.mubr.msk.bf16.mxu1 %vm4150_vm0, %v17928_v0  ;;  %v8739_v14 = vmax.f32 %v8563_v39, 0.0  ;;  %v17875_v0 = vld [vmem:[%s18787_s11 + $0x724] ss:$8 sps:$4 sm:$0xff]  }
 0x3be   : > { %v5951_v32 = vpop.f32.mrf.mxu0  ;;  %v7703_v55 = vpop.f32.mrf.mxu1  ;;  %v17877_v15 = vld [vmem:[%s18787_s11 + $0x720] ss:$8 sps:$4 sm:$0xff]   ;;  %v17909_v52 = vld [vmem:[%s18787_s11 + $0x770] ss:$8 sps:$4 sm:$0xff]  }
 0x3bf   : > { %v8785_v25 = vpack.c.bf16 %v8631_v38, %v8630_v37  ;;  %v8564_v41 = vmax.f32 %v8212_v35, %v8388_v60  ;;  %v20434_v22 = vpack.c.bf16 %v8739_v14, %v8738_v16  ;;  %v17936_v32 = vld [vmem:[%s18787_s11 + $0x14d0] ss:$8 sps:$4 sm:$0xff]   ;;  %v17881_v14 = vld [vmem:[%s18787_s11 + $0x734] ss:$8 sps:$4 sm:$0xff]   ;;  %v17940_v55 = vld [vmem:[%s18787_s11 + $0x14e4] ss:$8 sps:$4 sm:$0xff]  }
 0x3c0   : > { %v20431_v6 = vpop.f32.mrf.mxu0  ;;  %v7704_v27 = vpop.f32.mrf.mxu1 }
 0x3c1   : > { %25095 = vst [vmem:[#allocation77_spill] sm:$0xff] %v20434_v22  ;;  %v20439_v36 = vpack.i.b16 %v8785_v25, %v25096_v34  ;;  %v9177_v4 = vshrl.u32 %v8785_v25, 16  ;;  %v8389_v5 = vmax.f32 %v20150_v40, %v7704_v27  ;;  %v8740_v26 = vmax.f32 %v8564_v41, 0.0 }
 0x3c2   : > { %v5954_v47 = vpop.f32.mrf.mxu0  ;;  %v7706_v56 = vpop.f32.mrf.mxu1 }
 0x3c3   : > { %25097 = vst [vmem:[#allocation42_spill] sm:$0xff] %v20439_v36  ;;  %v20444_v63 = vpack.i.b16 %v9177_v4, %v9176_v59  ;;  %v8565_v35 = vmax.f32 %v8213_v1, %v8389_v5  ;;  %v17942_v59 = vld [vmem:[%s18787_s11 + $0x14e0] ss:$8 sps:$4 sm:$0xff]   ;;  %v17887_v4 = vld [vmem:[%s18787_s11 + $0x744] ss:$8 sps:$4 sm:$0xff]  }
 0x3c4   : > { %v20446_v18 = vpop.f32.mrf.mxu0  ;;  %6148 = vmatmul.mubr.bf16.gmra.mxu0 %v17871_v49  ;;  %v20448_v16 = vpop.f32.mrf.mxu1  ;;  %7900 = vmatmul.mubr.bf16.gmra.mxu1 %v17930_v13  ;;  %v17883_v13 = vld [vmem:[%s18787_s11 + $0x730] ss:$8 sps:$4 sm:$0xff]  }
 0x3c5   : > { %25098 = vst [vmem:[#allocation22_spill] sm:$0xff] %v20444_v63  ;;  %16063 = vmatprep.mubr.msk.bf16.mxu0 %vm4150_vm0, %v17875_v0  ;;  %v8741_v40 = vmax.f32 %v8565_v35, 0.0  ;;  %16282 = vmatprep.mubr.msk.bf16.mxu1 %vm4150_vm0, %v17934_v58  ;;  %v17946_v0 = vld [vmem:[%s18787_s11 + $0x14f4] ss:$8 sps:$4 sm:$0xff]  }
 0x3c6   : > { %v5959_v39 = vpop.f32.mrf.mxu0  ;;  %v7711_v10 = vpop.f32.mrf.mxu1 }
 0x3c7   : > { %v20452_v37 = vpack.c.bf16 %v8741_v40, %v8740_v26  ;;  %v17889_v39 = vld [vmem:[%s18787_s11 + $0x740] ss:$8 sps:$4 sm:$0xff]  }
 0x3c8   : > { %v20454_v38 = vpop.f32.mrf.mxu0  ;;  %v20457_v60 = vpop.f32.mrf.mxu1 }
 0x3c9   : > { %25099 = vst [vmem:[#allocation68_spill] sm:$0xff] %v20452_v37  ;;  %v17939_v37 = vld [vmem:[%s18787_s11 + $0x7c0] ss:$8 sps:$4 sm:$0xff]  }
 0x3ca   : > { %v5962_v61 = vpop.f32.mrf.mxu0  ;;  %v7714_v50 = vpop.f32.mrf.mxu1 }
 0x3cc   : > { %v20462_v1 = vpop.f32.mrf.mxu0  ;;  %6156 = vmatmul.mubr.bf16.gmra.mxu0 %v17877_v15  ;;  %v20464_v25 = vpop.f32.mrf.mxu1  ;;  %7908 = vmatmul.mubr.bf16.gmra.mxu1 %v17936_v32  ;;  %v17948_v15 = vld [vmem:[%s18787_s11 + $0x14f0] ss:$8 sps:$4 sm:$0xff]   ;;  %v17893_v32 = vld [vmem:[%s18787_s11 + $0x754] ss:$8 sps:$4 sm:$0xff]  }
 0x3cd   : > { %16064 = vmatprep.mubr.msk.bf16.mxu0 %vm4150_vm0, %v17881_v14  ;;  %16283 = vmatprep.mubr.msk.bf16.mxu1 %vm4150_vm0, %v17940_v55  ;;  %v17952_v14 = vld [vmem:[%s18787_s11 + $0x1504] ss:$8 sps:$4 sm:$0xff]  }
 0x3ce   : > { %v5967_v41 = vpop.f32.mrf.mxu0  ;;  %v7719_v49 = vpop.f32.mrf.mxu1 }
 0x3d0   : > { %v20468_v27 = vpop.f32.mrf.mxu0  ;;  %v20471_v34 = vpop.f32.mrf.mxu1 }
 0x3d2   : > { %v5970_v5 = vpop.f32.mrf.mxu0  ;;  %v7722_v58 = vpop.f32.mrf.mxu1 }
 0x3d3   : > { %v17954_v5 = vld [vmem:[%s18787_s11 + $0x1500] ss:$8 sps:$4 sm:$0xff]   ;;  %v17899_v58 = vld [vmem:[%s18787_s11 + $0x764] ss:$8 sps:$4 sm:$0xff]  }
 0x3d4   : > { %v20476_v47 = vpop.f32.mrf.mxu0  ;;  %6164 = vmatmul.mubr.bf16.gmra.mxu0 %v17883_v13  ;;  %v20478_v56 = vpop.f32.mrf.mxu1  ;;  %7916 = vmatmul.mubr.bf16.gmra.mxu1 %v17942_v59 }
 0x3d5   : > { %16065 = vmatprep.mubr.msk.bf16.mxu0 %vm4150_vm0, %v17887_v4  ;;  %16284 = vmatprep.mubr.msk.bf16.mxu1 %vm4150_vm0, %v17946_v0  ;;  %v17895_v4 = vld [vmem:[%s18787_s11 + $0x750] ss:$8 sps:$4 sm:$0xff]  }
 0x3d6   : > { %v5975_v26 = vpop.f32.mrf.mxu0  ;;  %v7727_v35 = vpop.f32.mrf.mxu1 }
 0x3d7   : > { %v17958_v26 = vld [vmem:[%s18787_s11 + $0x1514] ss:$8 sps:$4 sm:$0xff]  }
 0x3d8   : > { %v20482_v40 = vpop.f32.mrf.mxu0  ;;  %v20485_v10 = vpop.f32.mrf.mxu1 }
 0x3da   : > { %v5978_v55 = vpop.f32.mrf.mxu0  ;;  %v7730_v61 = vpop.f32.mrf.mxu1 }
 0x3dc   : > { %v20490_v50 = vpop.f32.mrf.mxu0  ;;  %6172 = vmatmul.mubr.bf16.gmra.mxu0 %v17889_v39  ;;  %v20492_v41 = vpop.f32.mrf.mxu1  ;;  %7924 = vmatmul.mubr.bf16.gmra.mxu1 %v17948_v15 }
 0x3dd   : > { %16066 = vmatprep.mubr.msk.bf16.mxu0 %vm4150_vm0, %v17893_v32  ;;  %16285 = vmatprep.mubr.msk.bf16.mxu1 %vm4150_vm0, %v17952_v14 }
 0x3de   : > { %v5983_v49 = vpop.f32.mrf.mxu0  ;;  %v7735_v13 = vpop.f32.mrf.mxu1 }
 0x3df   : > { %v17901_v49 = vld [vmem:[%s18787_s11 + $0x760] ss:$8 sps:$4 sm:$0xff]  }
 0x3e0   : > { %v20496_v59 = vpop.f32.mrf.mxu0  ;;  %v20499_v0 = vpop.f32.mrf.mxu1 }
 0x3e1   : > { %25100 = vst [vmem:[#allocation87_spill] sm:$0xff] %v20496_v59  ;;  %25101 = vst [vmem:[#allocation60_spill] sm:$0xff] %v20499_v0  ;;  %v18035_v59 = vld [vmem:[%s18787_s11 + $0x8c4] ss:$8 sps:$4 sm:$0xff]  }
 0x3e2   : > { %v5986_v35 = vpop.f32.mrf.mxu0  ;;  %v7738_v39 = vpop.f32.mrf.mxu1 }
 0x3e3   : > { %v17960_v35 = vld [vmem:[%s18787_s11 + $0x1510] ss:$8 sps:$4 sm:$0xff]   ;;  %v17907_v39 = vld [vmem:[%s18787_s11 + $0x774] ss:$8 sps:$4 sm:$0xff]  }
 0x3e4   : > { %v20504_v15 = vpop.f32.mrf.mxu0  ;;  %6180 = vmatmul.mubr.bf16.gmra.mxu0 %v17895_v4  ;;  %v20506_v32 = vpop.f32.mrf.mxu1  ;;  %7932 = vmatmul.mubr.bf16.gmra.mxu1 %v17954_v5  ;;  %v17964_v4 = vld [vmem:[%s18787_s11 + $0x1524] ss:$8 sps:$4 sm:$0xff]  }
 0x3e5   : > { %25102 = vst [vmem:[#allocation61_spill] sm:$0xff] %v20504_v15  ;;  %25103 = vst [vmem:[#allocation52_spill] sm:$0xff] %v20506_v32  ;;  %16067 = vmatprep.mubr.msk.bf16.mxu0 %vm4150_vm0, %v17899_v58  ;;  %16286 = vmatprep.mubr.msk.bf16.mxu1 %vm4150_vm0, %v17958_v26  ;;  %v18025_v15 = vld [vmem:[%s18787_s11 + $0x8a0] ss:$8 sps:$4 sm:$0xff]  }
 0x3e6   : > { %v5991_v14 = vpop.f32.mrf.mxu0  ;;  %v7743_v55 = vpop.f32.mrf.mxu1 }
 0x3e8   : > { %v20510_v61 = vpop.f32.mrf.mxu0  ;;  %v20513_v13 = vpop.f32.mrf.mxu1 }
 0x3e9   : > { %25104 = vst [vmem:[#allocation41_spill] sm:$0xff] %v20510_v61  ;;  %25105 = vst [vmem:[#allocation78_spill] sm:$0xff] %v20513_v13 }
 0x3ea   : > { %v5994_v3 = vpop.f32.mrf.mxu0  ;;  %v7746_v5 = vpop.f32.mrf.mxu1 }
 0x3eb   : > { %v17913_v3 = vld [vmem:[%s18787_s11 + $0x784] ss:$8 sps:$4 sm:$0xff]   ;;  %v17970_v5 = vld [vmem:[%s18787_s11 + $0x1534] ss:$8 sps:$4 sm:$0xff]  }
 0x3ec   : > { %v20518_v33 = vpop.f32.mrf.mxu0  ;;  %6188 = vmatmul.mubr.bf16.gmra.mxu0 %v17901_v49  ;;  %v20520_v58 = vpop.f32.mrf.mxu1  ;;  %7940 = vmatmul.mubr.bf16.gmra.mxu1 %v17960_v35 }
 0x3ed   : > { %25106 = vst [vmem:[#allocation15_spill] sm:$0xff] %v20518_v33  ;;  %25107 = vst [vmem:[#allocation33_spill] sm:$0xff] %v20520_v58  ;;  %16068 = vmatprep.mubr.msk.bf16.mxu0 %vm4150_vm0, %v17907_v39  ;;  %16287 = vmatprep.mubr.msk.bf16.mxu1 %vm4150_vm0, %v17964_v4 }
 0x3ee   : > { %v5999_v26 = vpop.f32.mrf.mxu0  ;;  %v7751_v14 = vpop.f32.mrf.mxu1 }
 0x3ef   : > { %v18006_v14 = vld [vmem:[%s24546_s2 + $0x70] sm:$0xff]  }
 0x3f0   : > { %v20524_v55 = vpop.f32.mrf.mxu0  ;;  %v20527_v12 = vpop.f32.mrf.mxu1  ;;  %16660 = vmatprep.subr.bf16.mxu1 %v18006_v14 }
 0x3f1   : > { %25108 = vst [vmem:[#allocation92_spill] sm:$0xff] %v20524_v55  ;;  %25109 = vst [vmem:[#allocation51_spill] sm:$0xff] %v20527_v12  ;;  %v17975_v55 = vld [vmem:[%s18787_s11 + $0x820] ss:$8 sps:$4 sm:$0xff]  }
 0x3f2   : > { %v6002_v49 = vpop.f32.mrf.mxu0  ;;  %v7754_v19 = vpop.f32.mrf.mxu1 }
 0x3f3   : > { %v18009_v19 = vld [vmem:[%s24546_s2 + $0x30] sm:$0xff]  }
 0x3f4   : > { %v20532_v35 = vpop.f32.mrf.mxu0  ;;  %6196 = vmatmul.mubr.bf16.gmra.mxu0 %v17909_v52  ;;  %v20534_v39 = vpop.f32.mrf.mxu1  ;;  %7948 = vmatmul.mubr.bf16.gmra.mxu1 %v17966_v8  ;;  %v17915_v52 = vld [vmem:[%s18787_s11 + $0x780] ss:$8 sps:$4 sm:$0xff]   ;;  %v17972_v8 = vld [vmem:[%s18787_s11 + $0x1530] ss:$8 sps:$4 sm:$0xff]  }
 0x3f5   : > { %25110 = vst [vmem:[#allocation69_spill] sm:$0xff] %v20532_v35  ;;  %25111 = vst [vmem:[#allocation25_spill] sm:$0xff] %v20534_v39  ;;  %16069 = vmatprep.mubr.msk.bf16.mxu0 %vm4150_vm0, %v17913_v3  ;;  %16288 = vmatprep.mubr.msk.bf16.mxu1 %vm4150_vm0, %v17970_v5  ;;  %v17919_v3 = vld [vmem:[%s18787_s11 + $0x794] ss:$8 sps:$4 sm:$0xff]   ;;  %v17976_v5 = vld [vmem:[%s18787_s11 + $0x1544] ss:$8 sps:$4 sm:$0xff]  }
 0x3f6   : > { %v6007_v4 = vpop.f32.mrf.mxu0  ;;  %v7759_v26 = vpop.f32.mrf.mxu1  ;;  %16661 = vmatpush3.bf16.msra.mxu1 %v18009_v19 }
 0x3f8   : > { %v20544_v49 = vpop.f32.mrf.mxu0  ;;  %v20547_v51 = vpop.f32.mrf.mxu1 }
 0x3f9   : > { %25112 = vst [vmem:[#allocation14_spill] sm:$0xff] %v20544_v49  ;;  %25113 = vst [vmem:[#allocation93_spill] sm:$0xff] %v20547_v51  ;;  %v17969_v51 = vld [vmem:[%s18787_s11 + $0x810] ss:$8 sps:$4 sm:$0xff]  }
 0x3fa   : > { %v6010_v4 = vpop.f32.mrf.mxu0  ;;  %v7762_v26 = vpop.f32.mrf.mxu1 }
 0x3fb   : > { %v17978_v4 = vld [vmem:[%s18787_s11 + $0x1540] ss:$8 sps:$4 sm:$0xff]   ;;  %v17925_v26 = vld [vmem:[%s18787_s11 + $0x7a4] ss:$8 sps:$4 sm:$0xff]  }
 0x3fc   : > { %v20552_v42 = vpop.f32.mrf.mxu0  ;;  %6204 = vmatmul.mubr.bf16.gmra.mxu0 %v17915_v52  ;;  %v20554_v29 = vpop.f32.mrf.mxu1  ;;  %7956 = vmatmul.mubr.bf16.gmra.mxu1 %v17972_v8  ;;  %v17982_v52 = vld [vmem:[%s18787_s11 + $0x1554] ss:$8 sps:$4 sm:$0xff]  }
 0x3fd   : > { %25114 = vst [vmem:[#allocation94_spill] sm:$0xff] %v20552_v42  ;;  %25115 = vst [vmem:[#allocation36_spill] sm:$0xff] %v20554_v29  ;;  %16070 = vmatprep.mubr.msk.bf16.mxu0 %vm4150_vm0, %v17919_v3  ;;  %16289 = vmatprep.mubr.msk.bf16.mxu1 %vm4150_vm0, %v17976_v5 }
 0x3fe   : > { %v6015_v30 = vpop.f32.mrf.mxu0  ;;  %v7767_v14 = vpop.f32.mrf.mxu1 }
 0x400   : > { %v20558_v46 = vpop.f32.mrf.mxu0  ;;  %v20561_v19 = vpop.f32.mrf.mxu1 }
 0x401   : > { %25116 = vst [vmem:[#allocation79_spill] sm:$0xff] %v20558_v46  ;;  %25117 = vst [vmem:[#allocation44_spill] sm:$0xff] %v20561_v19 }
 0x402   : > { %v6018_v17 = vpop.f32.mrf.mxu0  ;;  %v7770_v8 = vpop.f32.mrf.mxu1 }
 0x403   : > { %v17984_v17 = vld [vmem:[%s18787_s11 + $0x1550] ss:$8 sps:$4 sm:$0xff]   ;;  %v17931_v8 = vld [vmem:[%s18787_s11 + $0x7b4] ss:$8 sps:$4 sm:$0xff]  }
 0x404   : > { %v20566_v45 = vpop.f32.mrf.mxu0  ;;  %6212 = vmatmul.mubr.bf16.gmra.mxu0 %v17921_v31  ;;  %v20568_v3 = vpop.f32.mrf.mxu1  ;;  %7964 = vmatmul.mubr.bf16.gmra.mxu1 %v17978_v4  ;;  %v17988_v31 = vld [vmem:[%s18787_s11 + $0x1564] ss:$8 sps:$4 sm:$0xff]  }
 0x405   : > { %25118 = vst [vmem:[#allocation24_spill] sm:$0xff] %v20566_v45  ;;  %25119 = vst [vmem:[#allocation70_spill] sm:$0xff] %v20568_v3  ;;  %16071 = vmatprep.mubr.msk.bf16.mxu0 %vm4150_vm0, %v17925_v26  ;;  %16290 = vmatprep.mubr.msk.bf16.mxu1 %vm4150_vm0, %v17982_v52  ;;  %v17957_v45 = vld [vmem:[%s18787_s11 + $0x7f0] ss:$8 sps:$4 sm:$0xff]  }
 0x406   : > { %v6023_v30 = vpop.f32.mrf.mxu0  ;;  %v7775_v5 = vpop.f32.mrf.mxu1 }
 0x408   : > { %v20572_v14 = vpop.f32.mrf.mxu0  ;;  %v20575_v23 = vpop.f32.mrf.mxu1 }
 0x409   : > { %25120 = vst [vmem:[#allocation95_spill] sm:$0xff] %v20572_v14  ;;  %25121 = vst [vmem:[#allocation96_spill] sm:$0xff] %v20575_v23 }
 0x40a   : > { %v6026_v28 = vpop.f32.mrf.mxu0  ;;  %v7778_v4 = vpop.f32.mrf.mxu1 }
 0x40b   : > { %v17990_v28 = vld [vmem:[%s18787_s11 + $0x1560] ss:$8 sps:$4 sm:$0xff]   ;;  %v17937_v4 = vld [vmem:[%s18787_s11 + $0x7c4] ss:$8 sps:$4 sm:$0xff]  }
 0x40c   : > { %v20580_v21 = vpop.f32.mrf.mxu0  ;;  %6220 = vmatmul.mubr.bf16.gmra.mxu0 %v17927_v24  ;;  %v20582_v26 = vpop.f32.mrf.mxu1  ;;  %7972 = vmatmul.mubr.bf16.gmra.mxu1 %v17984_v17  ;;  %v17994_v24 = vld [vmem:[%s18787_s11 + $0x1574] ss:$8 sps:$4 sm:$0xff]  }
 0x40d   : > { %25122 = vst [vmem:[#allocation54_spill] sm:$0xff] %v20580_v21  ;;  %25123 = vst [vmem:[#allocation43_spill] sm:$0xff] %v20582_v26  ;;  %16072 = vmatprep.mubr.msk.bf16.mxu0 %vm4150_vm0, %v17931_v8  ;;  %16291 = vmatprep.mubr.msk.bf16.mxu1 %vm4150_vm0, %v17988_v31  ;;  %v17951_v26 = vld [vmem:[%s18787_s11 + $0x7e0] ss:$8 sps:$4 sm:$0xff]  }
 0x40e   : > { %v6031_v52 = vpop.f32.mrf.mxu0  ;;  %v7783_v30 = vpop.f32.mrf.mxu1 }
 0x410   : > { %v20586_v5 = vpop.f32.mrf.mxu0  ;;  %v20589_v43 = vpop.f32.mrf.mxu1 }
 0x411   : > { %25124 = vst [vmem:[#allocation80_spill] sm:$0xff] %v20586_v5  ;;  %25125 = vst [vmem:[#allocation17_spill] sm:$0xff] %v20589_v43 }
 0x412   : > { %v6034_v63 = vpop.f32.mrf.mxu0  ;;  %v7786_v17 = vpop.f32.mrf.mxu1 }
 0x413   : > { %v17996_v63 = vld [vmem:[%s18787_s11 + $0x1570] ss:$8 sps:$4 sm:$0xff]   ;;  %v17943_v17 = vld [vmem:[%s18787_s11 + $0x7d4] ss:$8 sps:$4 sm:$0xff]  }
 0x414   : > { %v20594_v36 = vpop.f32.mrf.mxu0  ;;  %6228 = vmatmul.mubr.bf16.gmra.mxu0 %v17933_v7  ;;  %v20596_v8 = vpop.f32.mrf.mxu1  ;;  %7980 = vmatmul.mubr.bf16.gmra.mxu1 %v17990_v28  ;;  %v18000_v7 = vld [vmem:[%s18787_s11 + $0x1584] ss:$8 sps:$4 sm:$0xff]  }
 0x415   : > { %25126 = vst [vmem:[#allocation97_spill] sm:$0xff] %v20596_v8  ;;  %16073 = vmatprep.mubr.msk.bf16.mxu0 %vm4150_vm0, %v17937_v4  ;;  %16292 = vmatprep.mubr.msk.bf16.mxu1 %vm4150_vm0, %v17994_v24 }
 0x416   : > { %v6039_v31 = vpop.f32.mrf.mxu0  ;;  %v7791_v52 = vpop.f32.mrf.mxu1 }
 0x418   : > { %v20600_v30 = vpop.f32.mrf.mxu0  ;;  %v20603_v22 = vpop.f32.mrf.mxu1 }
 0x419   : > { %25127 = vst [vmem:[#allocation98_spill] sm:$0xff] %v20603_v22  ;;  %v17945_v22 = vld [vmem:[%s18787_s11 + $0x7d0] ss:$8 sps:$4 sm:$0xff]  }
 0x41a   : > { %v6042_v8 = vpop.f32.mrf.mxu0  ;;  %v7794_v28 = vpop.f32.mrf.mxu1 }
 0x41b   : > { %v18002_v8 = vld [vmem:[%s18787_s11 + $0x1580] ss:$8 sps:$4 sm:$0xff]   ;;  %v17949_v28 = vld [vmem:[%s18787_s11 + $0x7e4] ss:$8 sps:$4 sm:$0xff]  }
 0x41c   : > { %v20608_v5 = vpop.f32.mrf.mxu0  ;;  %6236 = vmatmul.mubr.bf16.gmra.mxu0 %v17939_v37  ;;  %v20610_v4 = vpop.f32.mrf.mxu1  ;;  %7988 = vmatmul.mubr.bf16.gmra.mxu1 %v17996_v63  ;;  %v18007_v37 = vld [vmem:[%s18787_s11 + $0x1594] ss:$8 sps:$4 sm:$0xff]  }
 0x41d   : > { %16074 = vmatprep.mubr.msk.bf16.mxu0 %vm4150_vm0, %v17943_v17  ;;  %16293 = vmatprep.mubr.msk.bf16.mxu1 %vm4150_vm0, %v18000_v7 }
 0x41e   : > { %v6047_v24 = vpop.f32.mrf.mxu0  ;;  %v7799_v31 = vpop.f32.mrf.mxu1 }
 0x420   : > { %v20614_v52 = vpop.f32.mrf.mxu0  ;;  %v20617_v43 = vpop.f32.mrf.mxu1 }
 0x422   : > { %v6050_v57 = vpop.f32.mrf.mxu0  ;;  %v7802_v63 = vpop.f32.mrf.mxu1 }
 0x423   : > { %v18010_v57 = vld [vmem:[%s18787_s11 + $0x1590] ss:$8 sps:$4 sm:$0xff]   ;;  %v17955_v63 = vld [vmem:[%s18787_s11 + $0x7f4] ss:$8 sps:$4 sm:$0xff]  }
 0x424   : > { %v20622_v21 = vpop.f32.mrf.mxu0  ;;  %6244 = vmatmul.mubr.bf16.gmra.mxu0 %v17945_v22  ;;  %v20624_v17 = vpop.f32.mrf.mxu1  ;;  %7996 = vmatmul.mubr.bf16.gmra.mxu1 %v18002_v8  ;;  %v18014_v22 = vld [vmem:[%s18787_s11 + $0x15a4] ss:$8 sps:$4 sm:$0xff]  }
 0x425   : > { %16075 = vmatprep.mubr.msk.bf16.mxu0 %vm4150_vm0, %v17949_v28  ;;  %16294 = vmatprep.mubr.msk.bf16.mxu1 %vm4150_vm0, %v18007_v37 }
 0x426   : > { %v6055_v7 = vpop.f32.mrf.mxu0  ;;  %v7807_v24 = vpop.f32.mrf.mxu1 }
 0x428   : > { %v20628_v31 = vpop.f32.mrf.mxu0  ;;  %v20631_v14 = vpop.f32.mrf.mxu1 }
 0x42a   : > { %v6058_v23 = vpop.f32.mrf.mxu0  ;;  %v7810_v8 = vpop.f32.mrf.mxu1 }
 0x42b   : > { %v18016_v23 = vld [vmem:[%s18787_s11 + $0x15a0] ss:$8 sps:$4 sm:$0xff]   ;;  %v17961_v8 = vld [vmem:[%s18787_s11 + $0x804] ss:$8 sps:$4 sm:$0xff]  }
 0x42c   : > { %v20636_v44 = vpop.f32.mrf.mxu0  ;;  %6252 = vmatmul.mubr.bf16.gmra.mxu0 %v17951_v26  ;;  %v20638_v28 = vpop.f32.mrf.mxu1  ;;  %8004 = vmatmul.mubr.bf16.gmra.mxu1 %v18010_v57  ;;  %v18020_v26 = vld [vmem:[%s18787_s11 + $0x15b4] ss:$8 sps:$4 sm:$0xff]  }
 0x42d   : > { %16076 = vmatprep.mubr.msk.bf16.mxu0 %vm4150_vm0, %v17955_v63  ;;  %16295 = vmatprep.mubr.msk.bf16.mxu1 %vm4150_vm0, %v18014_v22 }
 0x42e   : > { %v6063_v37 = vpop.f32.mrf.mxu0  ;;  %v7815_v7 = vpop.f32.mrf.mxu1 }
 0x430   : > { %v20642_v24 = vpop.f32.mrf.mxu0  ;;  %v20645_v3 = vpop.f32.mrf.mxu1 }
 0x432   : > { %v6066_v46 = vpop.f32.mrf.mxu0  ;;  %v7818_v57 = vpop.f32.mrf.mxu1 }
 0x433   : > { %v18022_v46 = vld [vmem:[%s18787_s11 + $0x15b0] ss:$8 sps:$4 sm:$0xff]   ;;  %v17967_v57 = vld [vmem:[%s18787_s11 + $0x814] ss:$8 sps:$4 sm:$0xff]  }
 0x434   : > { %v20650_v19 = vpop.f32.mrf.mxu0  ;;  %6260 = vmatmul.mubr.bf16.gmra.mxu0 %v17957_v45  ;;  %v20652_v63 = vpop.f32.mrf.mxu1  ;;  %8012 = vmatmul.mubr.bf16.gmra.mxu1 %v18016_v23  ;;  %v18026_v45 = vld [vmem:[%s18787_s11 + $0x15c4] ss:$8 sps:$4 sm:$0xff]  }
 0x435   : > { %16077 = vmatprep.mubr.msk.bf16.mxu0 %vm4150_vm0, %v17961_v8  ;;  %16296 = vmatprep.mubr.msk.bf16.mxu1 %vm4150_vm0, %v18020_v26 }
 0x436   : > { %v6071_v22 = vpop.f32.mrf.mxu0  ;;  %v7823_v37 = vpop.f32.mrf.mxu1 }
 0x438   : > { %v20656_v7 = vpop.f32.mrf.mxu0  ;;  %v20659_v42 = vpop.f32.mrf.mxu1 }
 0x439   : > { %25128 = vst [vmem:[#allocation35_spill] sm:$0xff] %v20656_v7  ;;  %25129 = vst [vmem:[#allocation53_spill] sm:$0xff] %v20659_v42 }
 0x43a   : > { %v6074_v29 = vpop.f32.mrf.mxu0  ;;  %v7826_v23 = vpop.f32.mrf.mxu1 }
 0x43b   : > { %v18028_v29 = vld [vmem:[%s18787_s11 + $0x15c0] ss:$8 sps:$4 sm:$0xff]   ;;  %v17973_v23 = vld [vmem:[%s18787_s11 + $0x824] ss:$8 sps:$4 sm:$0xff]  }
 0x43c   : > { %v20664_v49 = vpop.f32.mrf.mxu0  ;;  %6268 = vmatmul.mubr.bf16.gmra.mxu0 %v17963_v48  ;;  %v20666_v8 = vpop.f32.mrf.mxu1  ;;  %8020 = vmatmul.mubr.bf16.gmra.mxu1 %v18022_v46  ;;  %v18032_v48 = vld [vmem:[%s18787_s11 + $0x15d4] ss:$8 sps:$4 sm:$0xff]  }
 0x43d   : > { %25130 = vst [vmem:[#allocation71_spill] sm:$0xff] %v20664_v49  ;;  %25131 = vst [vmem:[#allocation27_spill] sm:$0xff] %v20666_v8  ;;  %16078 = vmatprep.mubr.msk.bf16.mxu0 %vm4150_vm0, %v17967_v57  ;;  %16297 = vmatprep.mubr.msk.bf16.mxu1 %vm4150_vm0, %v18026_v45 }
 0x43e   : > { %v6079_v26 = vpop.f32.mrf.mxu0  ;;  %v7831_v22 = vpop.f32.mrf.mxu1 }
 0x440   : > { %v20670_v37 = vpop.f32.mrf.mxu0  ;;  %v20673_v2 = vpop.f32.mrf.mxu1 }
 0x441   : > { %25132 = vst [vmem:[#allocation16_spill] sm:$0xff] %v20670_v37  ;;  %25133 = vst [vmem:[#allocation99_spill] sm:$0xff] %v20673_v2  ;;  %v18023_v37 = vld [vmem:[%s18787_s11 + $0x8a4] ss:$8 sps:$4 sm:$0xff]  }
 0x442   : > { %v6082_v35 = vpop.f32.mrf.mxu0  ;;  %v7834_v46 = vpop.f32.mrf.mxu1 }
 0x443   : > { %v18034_v35 = vld [vmem:[%s18787_s11 + $0x15d0] ss:$8 sps:$4 sm:$0xff]   ;;  %v17979_v46 = vld [vmem:[%s18787_s11 + $0x834] ss:$8 sps:$4 sm:$0xff]  }
 0x444   : > { %v20678_v39 = vpop.f32.mrf.mxu0  ;;  %6276 = vmatmul.mubr.bf16.gmra.mxu0 %v17969_v51  ;;  %v20680_v57 = vpop.f32.mrf.mxu1  ;;  %8028 = vmatmul.mubr.bf16.gmra.mxu1 %v18028_v29  ;;  %v18038_v51 = vld [vmem:[%s18787_s11 + $0x15e4] ss:$8 sps:$4 sm:$0xff]  }
 0x445   : > { %25134 = vst [vmem:[#allocation100_spill] sm:$0xff] %v20678_v39  ;;  %25135 = vst [vmem:[#allocation81_spill] sm:$0xff] %v20680_v57  ;;  %16079 = vmatprep.mubr.msk.bf16.mxu0 %vm4150_vm0, %v17973_v23  ;;  %16298 = vmatprep.mubr.msk.bf16.mxu1 %vm4150_vm0, %v18032_v48 }
 0x446   : > { %v6087_v45 = vpop.f32.mrf.mxu0  ;;  %v7839_v26 = vpop.f32.mrf.mxu1 }
 0x448   : > { %v20684_v22 = vpop.f32.mrf.mxu0  ;;  %v20687_v12 = vpop.f32.mrf.mxu1 }
 0x449   : > { %25136 = vst [vmem:[#allocation46_spill] sm:$0xff] %v20684_v22  ;;  %25137 = vst [vmem:[#allocation26_spill] sm:$0xff] %v20687_v12  ;;  %v17981_v22 = vld [vmem:[%s18787_s11 + $0x830] ss:$8 sps:$4 sm:$0xff]  }
 0x44a   : > { %v6090_v9 = vpop.f32.mrf.mxu0  ;;  %v7842_v29 = vpop.f32.mrf.mxu1 }
 0x44b   : > { %v18040_v9 = vld [vmem:[%s18787_s11 + $0x15e0] ss:$8 sps:$4 sm:$0xff]   ;;  %v17985_v29 = vld [vmem:[%s18787_s11 + $0x844] ss:$8 sps:$4 sm:$0xff]  }
 0x44c   : > { %v20692_v33 = vpop.f32.mrf.mxu0  ;;  %6284 = vmatmul.mubr.bf16.gmra.mxu0 %v17975_v55  ;;  %v20694_v23 = vpop.f32.mrf.mxu1  ;;  %8036 = vmatmul.mubr.bf16.gmra.mxu1 %v18034_v35  ;;  %v18044_v55 = vld [vmem:[%s18787_s11 + $0x15f4] ss:$8 sps:$4 sm:$0xff]  }
 0x44d   : > { %25138 = vst [vmem:[#allocation72_spill] sm:$0xff] %v20692_v33  ;;  %25139 = vst [vmem:[#allocation101_spill] sm:$0xff] %v20694_v23  ;;  %16080 = vmatprep.mubr.msk.bf16.mxu0 %vm4150_vm0, %v17979_v46  ;;  %16299 = vmatprep.mubr.msk.bf16.mxu1 %vm4150_vm0, %v18038_v51 }
 0x44e   : > { %v6095_v48 = vpop.f32.mrf.mxu0  ;;  %v7847_v45 = vpop.f32.mrf.mxu1 }
 0x450   : > { %v20698_v26 = vpop.f32.mrf.mxu0  ;;  %v20701_v12 = vpop.f32.mrf.mxu1 }
 0x451   : > { %25140 = vst [vmem:[#allocation102_spill] sm:$0xff] %v20698_v26  ;;  %25141 = vst [vmem:[#allocation63_spill] sm:$0xff] %v20701_v12  ;;  %v17987_v26 = vld [vmem:[%s18787_s11 + $0x840] ss:$8 sps:$4 sm:$0xff]  }
 0x452   : > { %v6098_v33 = vpop.f32.mrf.mxu0  ;;  %v7850_v23 = vpop.f32.mrf.mxu1 }
 0x453   : > { %v18046_v33 = vld [vmem:[%s18787_s11 + $0x15f0] ss:$8 sps:$4 sm:$0xff]   ;;  %v17991_v23 = vld [vmem:[%s18787_s11 + $0x854] ss:$8 sps:$4 sm:$0xff]  }
 0x454   : > { %v20706_v35 = vpop.f32.mrf.mxu0  ;;  %6292 = vmatmul.mubr.bf16.gmra.mxu0 %v17981_v22  ;;  %v20708_v46 = vpop.f32.mrf.mxu1  ;;  %8044 = vmatmul.mubr.bf16.gmra.mxu1 %v18040_v9 }
 0x455   : > { %25142 = vst [vmem:[#allocation56_spill] sm:$0xff] %v20706_v35  ;;  %25143 = vst [vmem:[#allocation45_spill] sm:$0xff] %v20708_v46  ;;  %16081 = vmatprep.mubr.msk.bf16.mxu0 %vm4150_vm0, %v17985_v29  ;;  %16300 = vmatprep.mubr.msk.bf16.mxu1 %vm4150_vm0, %v18044_v55 }
 0x456   : > { %v6103_v51 = vpop.f32.mrf.mxu0  ;;  %v7855_v48 = vpop.f32.mrf.mxu1 }
 0x457   : > { %v17993_v48 = vld [vmem:[%s18787_s11 + $0x850] ss:$8 sps:$4 sm:$0xff]  }
 0x458   : > { %v20712_v45 = vpop.f32.mrf.mxu0  ;;  %v20715_v12 = vpop.f32.mrf.mxu1 }
 0x459   : > { %25144 = vst [vmem:[#allocation82_spill] sm:$0xff] %v20712_v45  ;;  %25145 = vst [vmem:[#allocation19_spill] sm:$0xff] %v20715_v12  ;;  %v17997_v12 = vld [vmem:[%s18787_s11 + $0x864] ss:$8 sps:$4 sm:$0xff]  }
 0x45a   : > { %v6106_v35 = vpop.f32.mrf.mxu0  ;;  %v7858_v22 = vpop.f32.mrf.mxu1 }
 0x45c   : > { %v20719_v39 = vpop.f32.mrf.mxu0  ;;  %6300 = vmatmul.mubr.bf16.gmra.mxu0 %v17987_v26  ;;  %v20721_v9 = vpop.f32.mrf.mxu1  ;;  %8052 = vmatmul.mubr.bf16.gmra.mxu1 %v18046_v33 }
 0x45d   : > { %25146 = vst [vmem:[#allocation103_spill] sm:$0xff] %v20719_v39  ;;  %25147 = vst [vmem:[#allocation104_spill] sm:$0xff] %v20721_v9  ;;  %16082 = vmatprep.mubr.msk.bf16.mxu0 %vm4150_vm0, %v17991_v23 }
 0x45e   : > { %v6111_v29 = vpop.f32.mrf.mxu0  ;;  %v7863_v55 = vpop.f32.mrf.mxu1 }
 0x45f   : > { %v17999_v55 = vld [vmem:[%s18787_s11 + $0x860] ss:$8 sps:$4 sm:$0xff]  }
 0x460   : > { %v20724_v51 = vpop.f32.mrf.mxu0  ;;  %v20727_v45 = vpop.f32.mrf.mxu1 }
 0x461   : > { %25148 = vst [vmem:[#allocation55_spill] sm:$0xff] %v20724_v51  ;;  %25149 = vst [vmem:[#allocation73_spill] sm:$0xff] %v20727_v45  ;;  %v18003_v45 = vld [vmem:[%s18787_s11 + $0x874] ss:$8 sps:$4 sm:$0xff]  }
 0x462   : > { %v6114_v35 = vpop.f32.mrf.mxu0  ;;  %v7866_v22 = vpop.f32.mrf.mxu1 }
 0x464   : > { %v20730_v46 = vpop.f32.mrf.mxu0  ;;  %6308 = vmatmul.mubr.bf16.gmra.mxu0 %v17993_v48  ;;  %v20732_v26 = vpop.f32.mrf.mxu1 }
 0x465   : > { %25150 = vst [vmem:[#allocation29_spill] sm:$0xff] %v20730_v46  ;;  %25151 = vst [vmem:[#allocation18_spill] sm:$0xff] %v20732_v26  ;;  %16083 = vmatprep.mubr.msk.bf16.mxu0 %vm4150_vm0, %v17997_v12 }
 0x466   : > { %v6119_v33 = vpop.f32.mrf.mxu0  ;;  %v7871_v23 = vpop.f32.mrf.mxu1 }
 0x468   : > { %v20735_v29 = vpop.f32.mrf.mxu0  ;;  %v20738_v51 = vpop.f32.mrf.mxu1 }
 0x469   : > { %25152 = vst [vmem:[#allocation105_spill] sm:$0xff] %v20735_v29  ;;  %25153 = vst [vmem:[#allocation106_spill] sm:$0xff] %v20738_v51  ;;  %v18005_v29 = vld [vmem:[%s18787_s11 + $0x870] ss:$8 sps:$4 sm:$0xff]   ;;  %v18011_v51 = vld [vmem:[%s18787_s11 + $0x884] ss:$8 sps:$4 sm:$0xff]  }
 0x46a   : > { %v6122_v39 = vpop.f32.mrf.mxu0  ;;  %v7874_v35 = vpop.f32.mrf.mxu1 }
 0x46c   : > { %v20741_v22 = vpop.f32.mrf.mxu0  ;;  %6316 = vmatmul.mubr.bf16.gmra.mxu0 %v17999_v55  ;;  %v20743_v48 = vpop.f32.mrf.mxu1 }
 0x46d   : > { %25154 = vst [vmem:[#allocation38_spill] sm:$0xff] %v20743_v48  ;;  %16084 = vmatprep.mubr.msk.bf16.mxu0 %vm4150_vm0, %v18003_v45  ;;  %v18013_v48 = vld [vmem:[%s18787_s11 + $0x880] ss:$8 sps:$4 sm:$0xff]  }
 0x46e   : > { %v6127_v12 = vpop.f32.mrf.mxu0  ;;  %v7879_v33 = vpop.f32.mrf.mxu1 }
 0x470   : > { %v20746_v23 = vpop.f32.mrf.mxu0  ;;  %v20749_v46 = vpop.f32.mrf.mxu1 }
 0x471   : > { %25155 = vst [vmem:[#allocation83_spill] sm:$0xff] %v20749_v46  ;;  %v18017_v46 = vld [vmem:[%s18787_s11 + $0x894] ss:$8 sps:$4 sm:$0xff]  }
 0x472   : > { %v6130_v26 = vpop.f32.mrf.mxu0  ;;  %v7882_v39 = vpop.f32.mrf.mxu1 }
 0x474   : > { %v20752_v35 = vpop.f32.mrf.mxu0  ;;  %6324 = vmatmul.mubr.bf16.gmra.mxu0 %v18005_v29  ;;  %v20754_v55 = vpop.f32.mrf.mxu1 }
 0x475   : > { %16085 = vmatprep.mubr.msk.bf16.mxu0 %vm4150_vm0, %v18011_v51 }
 0x476   : > { %v6135_v45 = vpop.f32.mrf.mxu0  ;;  %v7887_v12 = vpop.f32.mrf.mxu1 }
 0x477   : > { %v18019_v12 = vld [vmem:[%s18787_s11 + $0x890] ss:$8 sps:$4 sm:$0xff]  }
 0x478   : > { %v20757_v33 = vpop.f32.mrf.mxu0  ;;  %v20760_v9 = vpop.f32.mrf.mxu1 }
 0x47a   : > { %v6138_v58 = vpop.f32.mrf.mxu0  ;;  %v7890_v26 = vpop.f32.mrf.mxu1 }
 0x47b   : > { %v18079_v58 = vld [vmem:[%s24546_s2 + $0x68] sm:$0xff]  }
 0x47c   : > { %v20763_v39 = vpop.f32.mrf.mxu0  ;;  %6332 = vmatmul.mubr.bf16.gmra.mxu0 %v18013_v48  ;;  %v20765_v29 = vpop.f32.mrf.mxu1  ;;  %v18081_v48 = vld [vmem:[%s24546_s2 + $0x28] sm:$0xff]   ;;  %16662 = vmatprep.subr.bf16.mxu1 %v18079_v58 }
 0x47d   : > { %16086 = vmatprep.mubr.msk.bf16.mxu0 %vm4150_vm0, %v18017_v46  ;;  %16663 = vmatpush3.bf16.msra.mxu1 %v18081_v48  ;;  %v18031_v48 = vld [vmem:[%s18787_s11 + $0x8b0] ss:$8 sps:$4 sm:$0xff]  }
 0x47e   : > { %v6143_v51 = vpop.f32.mrf.mxu0  ;;  %v7895_v57 = vpop.f32.mrf.mxu1 }
 0x480   : > { %v20768_v45 = vpop.f32.mrf.mxu0  ;;  %v20771_v61 = vpop.f32.mrf.mxu1 }
 0x482   : > { %v6146_v26 = vpop.f32.mrf.mxu0  ;;  %v7898_v46 = vpop.f32.mrf.mxu1 }
 0x483   : > { %v18029_v26 = vld [vmem:[%s18787_s11 + $0x8b4] ss:$8 sps:$4 sm:$0xff]  }
 0x484   : > { %v20780_v57 = vpop.f32.mrf.mxu0  ;;  %6340 = vmatmul.mubr.bf16.gmra.mxu0 %v18019_v12  ;;  %v20782_v51 = vpop.f32.mrf.mxu1 }
 0x485   : > { %16087 = vmatprep.mubr.msk.bf16.mxu0 %vm4150_vm0, %v18023_v37 }
 0x486   : > { %v6151_v13 = vpop.f32.mrf.mxu0  ;;  %v7903_v2 = vpop.f32.mrf.mxu1 }
 0x488   : > { %v20785_v62 = vpop.f32.mrf.mxu0  ;;  %v20788_v49 = vpop.f32.mrf.mxu1 }
 0x48a   : > { %v6154_v46 = vpop.f32.mrf.mxu0  ;;  %v7906_v58 = vpop.f32.mrf.mxu1 }
 0x48c   : > { %v20791_v32 = vpop.f32.mrf.mxu0  ;;  %6348 = vmatmul.mubr.bf16.gmra.mxu0 %v18025_v15  ;;  %v20793_v12 = vpop.f32.mrf.mxu1 }
 0x48d   : > { %25156 = vst [vmem:[#allocation48_spill] sm:$0xff] %v20793_v12  ;;  %16088 = vmatprep.mubr.msk.bf16.mxu0 %vm4150_vm0, %v18029_v26 }
 0x48e   : > { %v6159_v37 = vpop.f32.mrf.mxu0  ;;  %v7911_v13 = vpop.f32.mrf.mxu1 }
 0x490   : > { %v20796_v2 = vpop.f32.mrf.mxu0  ;;  %v20799_v8 = vpop.f32.mrf.mxu1 }
 0x491   : > { %25157 = vst [vmem:[#allocation28_spill] sm:$0xff] %v20796_v2  ;;  %25158 = vst [vmem:[#allocation74_spill] sm:$0xff] %v20799_v8  ;;  %v18037_v2 = vld [vmem:[%s18787_s11 + $0x8c0] ss:$8 sps:$4 sm:$0xff]   ;;  %v18041_v8 = vld [vmem:[%s18787_s11 + $0x8d4] ss:$8 sps:$4 sm:$0xff]  }
 0x492   : > { %v6162_v7 = vpop.f32.mrf.mxu0  ;;  %v7914_v46 = vpop.f32.mrf.mxu1 }
 0x494   : > { %v20802_v58 = vpop.f32.mrf.mxu0  ;;  %6356 = vmatmul.mubr.bf16.gmra.mxu0 %v18031_v48  ;;  %v20804_v15 = vpop.f32.mrf.mxu1 }
 0x495   : > { %25159 = vst [vmem:[#allocation107_spill] sm:$0xff] %v20802_v58  ;;  %25160 = vst [vmem:[#allocation108_spill] sm:$0xff] %v20804_v15  ;;  %16089 = vmatprep.mubr.msk.bf16.mxu0 %vm4150_vm0, %v18035_v59 }
 0x496   : > { %v6167_v26 = vpop.f32.mrf.mxu0  ;;  %v7919_v37 = vpop.f32.mrf.mxu1 }
 0x498   : > { %v20807_v13 = vpop.f32.mrf.mxu0  ;;  %v20810_v0 = vpop.f32.mrf.mxu1 }
 0x499   : > { %25161 = vst [vmem:[#allocation84_spill] sm:$0xff] %v20807_v13  ;;  %25162 = vst [vmem:[#allocation21_spill] sm:$0xff] %v20810_v0  ;;  %v18043_v13 = vld [vmem:[%s18787_s11 + $0x8d0] ss:$8 sps:$4 sm:$0xff]   ;;  %v18047_v0 = vld [vmem:[%s18787_s11 + $0x8e4] ss:$8 sps:$4 sm:$0xff]  }
 0x49a   : > { %v6170_v42 = vpop.f32.mrf.mxu0  ;;  %v7922_v7 = vpop.f32.mrf.mxu1 }
 0x49c   : > { %v20813_v46 = vpop.f32.mrf.mxu0  ;;  %6364 = vmatmul.mubr.bf16.gmra.mxu0 %v18037_v2  ;;  %v20815_v48 = vpop.f32.mrf.mxu1 }
 0x49d   : > { %25163 = vst [vmem:[#allocation109_spill] sm:$0xff] %v20813_v46  ;;  %25164 = vst [vmem:[#allocation58_spill] sm:$0xff] %v20815_v48  ;;  %16090 = vmatprep.mubr.msk.bf16.mxu0 %vm4150_vm0, %v18041_v8 }
 0x49e   : > { %v6175_v59 = vpop.f32.mrf.mxu0  ;;  %v7927_v26 = vpop.f32.mrf.mxu1 }
 0x4a0   : > { %v20818_v37 = vpop.f32.mrf.mxu0  ;;  %v20821_v15 = vpop.f32.mrf.mxu1 }
 0x4a1   : > { %25165 = vst [vmem:[#allocation47_spill] sm:$0xff] %v20818_v37  ;;  %25166 = vst [vmem:[#allocation37_spill] sm:$0xff] %v20821_v15  ;;  %v18049_v37 = vld [vmem:[%s18787_s11 + $0x8e0] ss:$8 sps:$4 sm:$0xff]   ;;  %v18050_v15 = vld [vmem:[%s18787_s11 + $0x8f4] ss:$8 sps:$4 sm:$0xff]  }
 0x4a2   : > { %v6178_v58 = vpop.f32.mrf.mxu0  ;;  %v7930_v42 = vpop.f32.mrf.mxu1 }
 0x4a4   : > { %v20824_v7 = vpop.f32.mrf.mxu0  ;;  %6372 = vmatmul.mubr.bf16.gmra.mxu0 %v18043_v13  ;;  %v20826_v2 = vpop.f32.mrf.mxu1 }
 0x4a5   : > { %25167 = vst [vmem:[#allocation116_spill] sm:$0xff] %v20824_v7  ;;  %25168 = vst [vmem:[#allocation117_spill] sm:$0xff] %v20826_v2  ;;  %16091 = vmatprep.mubr.msk.bf16.mxu0 %vm4150_vm0, %v18047_v0 }
 0x4a6   : > { %v6183_v8 = vpop.f32.mrf.mxu0  ;;  %v7935_v59 = vpop.f32.mrf.mxu1 }
 0x4a8   : > { %v20829_v26 = vpop.f32.mrf.mxu0  ;;  %v20832_v48 = vpop.f32.mrf.mxu1 }
 0x4a9   : > { %25169 = vst [vmem:[#allocation118_spill] sm:$0xff] %v20829_v26  ;;  %25170 = vst [vmem:[#allocation119_spill] sm:$0xff] %v20832_v48  ;;  %v18052_v26 = vld [vmem:[%s18787_s11 + $0x8f0] ss:$8 sps:$4 sm:$0xff]   ;;  %v18053_v48 = vld [vmem:[%s18787_s11 + $0x904] ss:$8 sps:$4 sm:$0xff]  }
 0x4aa   : > { %v6186_v46 = vpop.f32.mrf.mxu0  ;;  %v7938_v58 = vpop.f32.mrf.mxu1 }
 0x4ac   : > { %v20835_v42 = vpop.f32.mrf.mxu0  ;;  %6380 = vmatmul.mubr.bf16.gmra.mxu0 %v18049_v37  ;;  %v20837_v13 = vpop.f32.mrf.mxu1 }
 0x4ad   : > { %25171 = vst [vmem:[#allocation120_spill] sm:$0xff] %v20835_v42  ;;  %25172 = vst [vmem:[#allocation121_spill] sm:$0xff] %v20837_v13  ;;  %16092 = vmatprep.mubr.msk.bf16.mxu0 %vm4150_vm0, %v18050_v15 }
 0x4ae   : > { %v6191_v0 = vpop.f32.mrf.mxu0  ;;  %v7943_v8 = vpop.f32.mrf.mxu1 }
 0x4b0   : > { %v20840_v59 = vpop.f32.mrf.mxu0  ;;  %v20843_v2 = vpop.f32.mrf.mxu1 }
 0x4b1   : > { %25173 = vst [vmem:[#allocation122_spill] sm:$0xff] %v20840_v59  ;;  %25174 = vst [vmem:[#allocation123_spill] sm:$0xff] %v20843_v2  ;;  %v18055_v59 = vld [vmem:[%s18787_s11 + $0x900] ss:$8 sps:$4 sm:$0xff]   ;;  %v18056_v2 = vld [vmem:[%s18787_s11 + $0x914] ss:$8 sps:$4 sm:$0xff]  }
 0x4b2   : > { %v6194_v7 = vpop.f32.mrf.mxu0  ;;  %v7946_v46 = vpop.f32.mrf.mxu1 }
 0x4b4   : > { %v20846_v58 = vpop.f32.mrf.mxu0  ;;  %6388 = vmatmul.mubr.bf16.gmra.mxu0 %v18052_v26  ;;  %v20848_v37 = vpop.f32.mrf.mxu1 }
 0x4b5   : > { %25175 = vst [vmem:[#allocation124_spill] sm:$0xff] %v20846_v58  ;;  %25176 = vst [vmem:[#allocation125_spill] sm:$0xff] %v20848_v37  ;;  %16093 = vmatprep.mubr.msk.bf16.mxu0 %vm4150_vm0, %v18053_v48  ;;  %v18059_v58 = vld [vmem:[%s18787_s11 + $0x924] ss:$8 sps:$4 sm:$0xff]  }
 0x4b6   : > { %v6199_v15 = vpop.f32.mrf.mxu0  ;;  %v7951_v0 = vpop.f32.mrf.mxu1 }
 0x4b7   : > { %v18058_v0 = vld [vmem:[%s18787_s11 + $0x910] ss:$8 sps:$4 sm:$0xff]  }
 0x4b8   : > { %v20851_v8 = vpop.f32.mrf.mxu0  ;;  %v20854_v13 = vpop.f32.mrf.mxu1 }
 0x4b9   : > { %25177 = vst [vmem:[#allocation126_spill] sm:$0xff] %v20851_v8  ;;  %25178 = vst [vmem:[#allocation127_spill] sm:$0xff] %v20854_v13 }
 0x4ba   : > { %v6202_v42 = vpop.f32.mrf.mxu0  ;;  %v7954_v7 = vpop.f32.mrf.mxu1 }
 0x4bc   : > { %v20857_v46 = vpop.f32.mrf.mxu0  ;;  %6396 = vmatmul.mubr.bf16.gmra.mxu0 %v18055_v59  ;;  %v20859_v26 = vpop.f32.mrf.mxu1  ;;  %v8104_v59 = vmax.f32 %v20424_v54, %v20594_v36  ;;  %v8214_v54 = vmax.f32 %v20448_v16, %v20610_v4 }
 0x4bd   : > { %25179 = vst [vmem:[#allocation128_spill] sm:$0xff] %v20857_v46  ;;  %25180 = vst [vmem:[#allocation129_spill] sm:$0xff] %v20859_v26  ;;  %16094 = vmatprep.mubr.msk.bf16.mxu0 %vm4150_vm0, %v18056_v2 }
 0x4be   : > { %v6207_v48 = vpop.f32.mrf.mxu0  ;;  %v7959_v37 = vpop.f32.mrf.mxu1 }
 0x4c0   : > { %v20862_v15 = vpop.f32.mrf.mxu0  ;;  %v20865_v8 = vpop.f32.mrf.mxu1 }
 0x4c1   : > { %25181 = vst [vmem:[#allocation130_spill] sm:$0xff] %v20862_v15  ;;  %25182 = vst [vmem:[#allocation131_spill] sm:$0xff] %v20865_v8  ;;  %v18061_v8 = vld [vmem:[%s18787_s11 + $0x920] ss:$8 sps:$4 sm:$0xff]  }
 0x4c2   : > { %v6210_v13 = vpop.f32.mrf.mxu0  ;;  %v7962_v42 = vpop.f32.mrf.mxu1 }
 0x4c3   : > { %v8105_v13 = vmax.f32 %v20431_v6, %v20600_v30  ;;  %v18062_v42 = vld [vmem:[%s18787_s11 + $0x934] ss:$8 sps:$4 sm:$0xff]  }
 0x4c4   : > { %v6213_v7 = vpop.f32.mrf.mxu0  ;;  %6404 = vmatmul.mubr.bf16.gmra.mxu0 %v18058_v0  ;;  %v20868_v46 = vpop.f32.mrf.mxu1 }
 0x4c5   : > { %25183 = vst [vmem:[#allocation132_spill] sm:$0xff] %v20868_v46  ;;  %v8280_v2 = vmax.f32 %v20741_v22, %v6213_v7  ;;  %16095 = vmatprep.mubr.msk.bf16.mxu0 %vm4150_vm0, %v18059_v58  ;;  %v8106_v22 = vmax.f32 %v20446_v18, %v20608_v5  ;;  %v8215_v18 = vmax.f32 %v20457_v60, %v20617_v43 }
 0x4c6   : > { %v6215_v37 = vpop.f32.mrf.mxu0  ;;  %v7967_v48 = vpop.f32.mrf.mxu1  ;;  %v8108_v43 = vmax.f32 %v20462_v1, %v20622_v21 }
 0x4c7   : > { %v8456_v15 = vmax.f32 %v8104_v59, %v8280_v2  ;;  %v18065_v37 = vld [vmem:[%s18787_s11 + $0x944] ss:$8 sps:$4 sm:$0xff]  }
 0x4c8   : > { %v6216_v26 = vpop.f32.mrf.mxu0  ;;  %v20875_v53 = vpop.f32.mrf.mxu1 }
 0x4c9   : > { %v8281_v0 = vmax.f32 %v20746_v23, %v6216_v26  ;;  %v8632_v59 = vmax.f32 %v8456_v15, 0.0  ;;  %v8107_v15 = vmax.f32 %v20454_v38, %v20614_v52 }
 0x4ca   : > { %v6218_v46 = vpop.f32.mrf.mxu0  ;;  %v7970_v12 = vpop.f32.mrf.mxu1 }
 0x4cb   : > { %v8457_v36 = vmax.f32 %v8105_v13, %v8281_v0  ;;  %v8216_v0 = vmax.f32 %v20464_v25, %v20624_v17 }
 0x4cc   : > { %v6221_v58 = vpop.f32.mrf.mxu0  ;;  %6412 = vmatmul.mubr.bf16.gmra.mxu0 %v18061_v8  ;;  %v7973_v7 = vpop.f32.mrf.mxu1  ;;  %v18064_v8 = vld [vmem:[%s18787_s11 + $0x930] ss:$8 sps:$4 sm:$0xff]  }
 0x4cd   : > { %v8633_v2 = vmax.f32 %v8457_v36, 0.0  ;;  %v8282_v6 = vmax.f32 %v20752_v35, %v6221_v58  ;;  %16096 = vmatprep.mubr.msk.bf16.mxu0 %vm4150_vm0, %v18062_v42  ;;  %v8390_v30 = vmax.f32 %v20754_v55, %v7973_v7 }
 0x4ce   : > { %v6223_v23 = vpop.f32.mrf.mxu0  ;;  %v7975_v12 = vpop.f32.mrf.mxu1 }
 0x4cf   : > { %v20888_v16 = vpack.c.bf16 %v8633_v2, %v8632_v59  ;;  %v8458_v4 = vmax.f32 %v8106_v22, %v8282_v6  ;;  %v8566_v46 = vmax.f32 %v8214_v54, %v8390_v30  ;;  %v8880_v59 = vshrl.u32 %v20200_v20, 16  ;;  %v18067_v30 = vld [vmem:[%s18787_s11 + $0x940] ss:$8 sps:$4 sm:$0xff]  }
 0x4d0   : > { %v6224_v5 = vpop.f32.mrf.mxu0  ;;  %v7976_v26 = vpop.f32.mrf.mxu1  ;;  %v8217_v2 = vmax.f32 %v20471_v34, %v20631_v14  ;;  %v8109_v12 = vmax.f32 %v20468_v27, %v20628_v31  ;;  %v8218_v34 = vmax.f32 %v20478_v56, %v20638_v28 }
 0x4d1   : > { %v8283_v35 = vmax.f32 %v20757_v33, %v6224_v5  ;;  %v8391_v55 = vmax.f32 %v20760_v9, %v7976_v26  ;;  %v8742_v54 = vmax.f32 %v8566_v46, 0.0  ;;  %v8634_v52 = vmax.f32 %v8458_v4, 0.0  ;;  %v18068_v4 = vld [vmem:[%s18787_s11 + $0x954] ss:$8 sps:$4 sm:$0xff]  }
 0x4d2   : > { %v6226_v48 = vpop.f32.mrf.mxu0  ;;  %v7978_v13 = vpop.f32.mrf.mxu1 }
 0x4d3   : > { %v8459_v42 = vmax.f32 %v8107_v15, %v8283_v35  ;;  %v8567_v36 = vmax.f32 %v8215_v18, %v8391_v55  ;;  %v8110_v15 = vmax.f32 %v20476_v47, %v20636_v44 }
 0x4d4   : > { %v6229_v60 = vpop.f32.mrf.mxu0  ;;  %6420 = vmatmul.mubr.bf16.gmra.mxu0 %v18064_v8  ;;  %v7981_v38 = vpop.f32.mrf.mxu1 }
 0x4d5   : > { %v8635_v33 = vmax.f32 %v8459_v42, 0.0  ;;  %v8284_v22 = vmax.f32 %v20763_v39, %v6229_v60  ;;  %16097 = vmatprep.mubr.msk.bf16.mxu0 %vm4150_vm0, %v18065_v37  ;;  %v8392_v9 = vmax.f32 %v20765_v29, %v7981_v38  ;;  %v8743_v17 = vmax.f32 %v8567_v36, 0.0 }
 0x4d6   : > { %v6231_v25 = vpop.f32.mrf.mxu0  ;;  %v7983_v58 = vpop.f32.mrf.mxu1  ;;  %v8912_v42 = vshrl.u32 %v20226_v11, 16  ;;  %v8111_v38 = vmax.f32 %v20482_v40, %v20642_v24 }
 0x4d7   : > { %v20905_v7 = vpack.c.bf16 %v8635_v33, %v8634_v52  ;;  %v8460_v21 = vmax.f32 %v8108_v43, %v8284_v22  ;;  %v8568_v1 = vmax.f32 %v8216_v0, %v8392_v9  ;;  %v8841_v39 = vpack.c.bf16 %v8743_v17, %v8742_v54  ;;  %v18070_v54 = vld [vmem:[%s18787_s11 + $0x950] ss:$8 sps:$4 sm:$0xff]   ;;  %v18071_v52 = vld [vmem:[%s18787_s11 + $0x964] ss:$8 sps:$4 sm:$0xff]  }
 0x4d8   : > { %v6232_v6 = vpop.f32.mrf.mxu0  ;;  %v7984_v23 = vpop.f32.mrf.mxu1  ;;  %v8219_v43 = vmax.f32 %v20485_v10, %v20645_v3  ;;  %v8220_v10 = vmax.f32 %v20492_v41, %v20652_v63  ;;  %v8112_v58 = vmax.f32 %v20490_v50, %v20650_v19 }
 0x4d9   : > { %v8285_v29 = vmax.f32 %v20768_v45, %v6232_v6  ;;  %v20916_v18 = vpack.i.b16 %v8841_v39, %v20200_v20  ;;  %v8881_v5 = vshrl.u32 %v8841_v39, 16  ;;  %v8393_v8 = vmax.f32 %v20771_v61, %v7984_v23  ;;  %v25185_v23 = vld [vmem:[#allocation31_spill] sm:$0xff] }
 0x4da   : > { %v6234_v46 = vpop.f32.mrf.mxu0  ;;  %v7986_v26 = vpop.f32.mrf.mxu1  ;;  %v8744_v31 = vmax.f32 %v8568_v1, 0.0  ;;  %v8636_v37 = vmax.f32 %v8460_v21, 0.0 }
 0x4db   : > { %v8461_v14 = vmax.f32 %v8109_v12, %v8285_v29  ;;  %v20923_v27 = vpack.i.b16 %v8881_v5, %v8880_v59  ;;  %v8569_v45 = vmax.f32 %v8217_v2, %v8393_v8  ;;  %v25184_v2 = vld [vmem:[#allocation48_spill] sm:$0xff]  ;;  %v8944_v12 = vshrl.u32 %v25185_v23, 16  ;;  %v25186_v29 = vld [vmem:[#allocation53_spill] sm:$0xff] }
 0x4dc   : > { %v6237_v35 = vpop.f32.mrf.mxu0  ;;  %6428 = vmatmul.mubr.bf16.gmra.mxu0 %v18067_v30  ;;  %v7989_v20 = vpop.f32.mrf.mxu1  ;;  %v18073_v8 = vld [vmem:[%s18787_s11 + $0x960] ss:$8 sps:$4 sm:$0xff]  }
 0x4dd   : > { %v8637_v48 = vmax.f32 %v8461_v14, 0.0  ;;  %v8286_v61 = vmax.f32 %v20780_v57, %v6237_v35  ;;  %16098 = vmatprep.mubr.msk.bf16.mxu0 %vm4150_vm0, %v18068_v4  ;;  %v8394_v56 = vmax.f32 %v20782_v51, %v7989_v20  ;;  %v8745_v55 = vmax.f32 %v8569_v45, 0.0  ;;  %v25187_v4 = vld [vmem:[#allocation60_spill] sm:$0xff]  ;;  %v25189_v14 = vld [vmem:[#allocation87_spill] sm:$0xff]  ;;  %v18074_v45 = vld [vmem:[%s18787_s11 + $0x974] ss:$8 sps:$4 sm:$0xff]  }
 0x4de   : > { %v6239_v28 = vpop.f32.mrf.mxu0  ;;  %v7991_v44 = vpop.f32.mrf.mxu1  ;;  %v8221_v46 = vmax.f32 %v25187_v4, %v25186_v29  ;;  %v25190_v35 = vld [vmem:[#allocation28_spill] sm:$0xff] }
 0x4df   : > { %v20928_v47 = vpack.c.bf16 %v8637_v48, %v8636_v37  ;;  %v8462_v13 = vmax.f32 %v8110_v15, %v8286_v61  ;;  %v8570_v0 = vmax.f32 %v8218_v34, %v8394_v56  ;;  %v8842_v57 = vpack.c.bf16 %v8745_v55, %v8744_v31  ;;  %v25188_v34 = vld [vmem:[#allocation35_spill] sm:$0xff]  ;;  %v25192_v61 = vld [vmem:[#allocation74_spill] sm:$0xff]  ;;  %v25194_v44 = vld [vmem:[#allocation52_spill] sm:$0xff] }
 0x4e0   : > { %v6240_v60 = vpop.f32.mrf.mxu0  ;;  %v7992_v36 = vpop.f32.mrf.mxu1  ;;  %v8113_v15 = vmax.f32 %v25189_v14, %v25188_v34  ;;  %v25193_v55 = vld [vmem:[#allocation27_spill] sm:$0xff]  ;;  %v25205_v29 = vld [vmem:[#allocation84_spill] sm:$0xff] }
 0x4e1   : > { %v8287_v51 = vmax.f32 %v20785_v62, %v6240_v60  ;;  %v20939_v22 = vpack.i.b16 %v8842_v57, %v20226_v11  ;;  %v8913_v9 = vshrl.u32 %v8842_v57, 16  ;;  %v8395_v25 = vmax.f32 %v20788_v49, %v7992_v36 }
 0x4e2   : > { %v6242_v33 = vpop.f32.mrf.mxu0  ;;  %v7994_v17 = vpop.f32.mrf.mxu1  ;;  %v8746_v62 = vmax.f32 %v8570_v0, 0.0  ;;  %v8638_v1 = vmax.f32 %v8462_v13, 0.0  ;;  %v8222_v13 = vmax.f32 %v25194_v44, %v25193_v55 }
 0x4e3   : > { %v8463_v3 = vmax.f32 %v8111_v38, %v8287_v51  ;;  %v20946_v40 = vpack.i.b16 %v8913_v9, %v8912_v42  ;;  %v8571_v24 = vmax.f32 %v8219_v43, %v8395_v25  ;;  %v25195_v42 = vld [vmem:[#allocation71_spill] sm:$0xff]  ;;  %v25196_v43 = vld [vmem:[#allocation61_spill] sm:$0xff]  ;;  %v25199_v17 = vld [vmem:[#allocation108_spill] sm:$0xff] }
 0x4e4   : > { %v6245_v21 = vpop.f32.mrf.mxu0  ;;  %6436 = vmatmul.mubr.bf16.gmra.mxu0 %v18070_v54  ;;  %v7997_v11 = vpop.f32.mrf.mxu1  ;;  %v8114_v60 = vmax.f32 %v25196_v43, %v25195_v42  ;;  %v25198_v9 = vld [vmem:[#allocation107_spill] sm:$0xff]  ;;  %v25213_v43 = vld [vmem:[#allocation109_spill] sm:$0xff] }
 0x4e5   : > { %v8639_v59 = vmax.f32 %v8463_v3, 0.0  ;;  %v8288_v49 = vmax.f32 %v20791_v32, %v6245_v21  ;;  %16099 = vmatprep.mubr.msk.bf16.mxu0 %vm4150_vm0, %v18071_v52  ;;  %v8396_v41 = vmax.f32 %v25184_v2, %v7997_v11  ;;  %v8747_v6 = vmax.f32 %v8571_v24, 0.0  ;;  %v25202_v2 = vld [vmem:[#allocation78_spill] sm:$0xff] }
 0x4e6   : > { %v6247_v63 = vpop.f32.mrf.mxu0  ;;  %v7999_v50 = vpop.f32.mrf.mxu1 }
 0x4e7   : > { %v20951_v19 = vpack.c.bf16 %v8639_v59, %v8638_v1  ;;  %v8464_v30 = vmax.f32 %v8112_v58, %v8288_v49  ;;  %v8572_v39 = vmax.f32 %v8220_v10, %v8396_v41  ;;  %v8843_v32 = vpack.c.bf16 %v8747_v6, %v8746_v62  ;;  %v25200_v1 = vld [vmem:[#allocation40_spill] sm:$0xff]  ;;  %v25201_v49 = vld [vmem:[#allocation99_spill] sm:$0xff]  ;;  %v18076_v6 = vld [vmem:[%s18787_s11 + $0x970] ss:$8 sps:$4 sm:$0xff]  }
 0x4e8   : > { %v6248_v5 = vpop.f32.mrf.mxu0  ;;  %v8000_v26 = vpop.f32.mrf.mxu1  ;;  %v8976_v59 = vshrl.u32 %v25200_v1, 16  ;;  %v8223_v41 = vmax.f32 %v25202_v2, %v25201_v49  ;;  %v25219_v49 = vld [vmem:[#allocation46_spill] sm:$0xff]  ;;  %v25220_v2 = vld [vmem:[#allocation92_spill] sm:$0xff] }
 0x4e9   : > { %v8289_v31 = vmax.f32 %v25190_v35, %v6248_v5  ;;  %v20962_v37 = vpack.i.b16 %v8843_v32, %v25185_v23  ;;  %v8945_v48 = vshrl.u32 %v8843_v32, 16  ;;  %v8397_v56 = vmax.f32 %v25192_v61, %v8000_v26  ;;  %v25204_v23 = vld [vmem:[#allocation41_spill] sm:$0xff] }
 0x4ea   : > { %v6250_v20 = vpop.f32.mrf.mxu0  ;;  %v8002_v28 = vpop.f32.mrf.mxu1  ;;  %v8748_v36 = vmax.f32 %v8572_v39, 0.0  ;;  %v8640_v52 = vmax.f32 %v8464_v30, 0.0  ;;  %v25203_v39 = vld [vmem:[#allocation16_spill] sm:$0xff]  ;;  %v25207_v26 = vld [vmem:[#allocation21_spill] sm:$0xff] }
 0x4eb   : > { %25191 = vst [vmem:[#allocation48_spill] sm:$0xff] %v20962_v37  ;;  %v8465_v0 = vmax.f32 %v8113_v15, %v8289_v31  ;;  %v20969_v57 = vpack.i.b16 %v8945_v48, %v8944_v12  ;;  %v8573_v38 = vmax.f32 %v8221_v46, %v8397_v56  ;;  %v8115_v12 = vmax.f32 %v25204_v23, %v25203_v39  ;;  %v18077_v46 = vld [vmem:[%s18787_s11 + $0x984] ss:$8 sps:$4 sm:$0xff]   ;;  %v25208_v15 = vld [vmem:[#allocation81_spill] sm:$0xff] }
 0x4ec   : > { %v6253_v54 = vpop.f32.mrf.mxu0  ;;  %6444 = vmatmul.mubr.bf16.gmra.mxu0 %v18073_v8  ;;  %v8005_v51 = vpop.f32.mrf.mxu1  ;;  %v25209_v35 = vld [vmem:[#allocation33_spill] sm:$0xff]  ;;  %v25210_v20 = vld [vmem:[#allocation100_spill] sm:$0xff]  ;;  %v25211_v48 = vld [vmem:[#allocation15_spill] sm:$0xff] }
 0x4ed   : > { %25197 = vst [vmem:[#allocation31_spill] sm:$0xff] %v20969_v57  ;;  %v8641_v33 = vmax.f32 %v8465_v0, 0.0  ;;  %v8290_v25 = vmax.f32 %v25198_v9, %v6253_v54  ;;  %16100 = vmatprep.mubr.msk.bf16.mxu0 %vm4150_vm0, %v18074_v45  ;;  %v8398_v10 = vmax.f32 %v25199_v17, %v8005_v51  ;;  %v8749_v58 = vmax.f32 %v8573_v38, 0.0  ;;  %v25214_v54 = vld [vmem:[#allocation58_spill] sm:$0xff]  ;;  %v25216_v17 = vld [vmem:[#allocation57_spill] sm:$0xff] }
 0x4ee   : > { %v6255_v3 = vpop.f32.mrf.mxu0  ;;  %v8007_v21 = vpop.f32.mrf.mxu1  ;;  %v8224_v31 = vmax.f32 %v25209_v35, %v25208_v15  ;;  %v8116_v61 = vmax.f32 %v25211_v48, %v25210_v20 }
 0x4ef   : > { %v20974_v62 = vpack.c.bf16 %v8641_v33, %v8640_v52  ;;  %v8466_v24 = vmax.f32 %v8114_v60, %v8290_v25  ;;  %v8574_v11 = vmax.f32 %v8222_v13, %v8398_v10  ;;  %v8844_v50 = vpack.c.bf16 %v8749_v58, %v8748_v36  ;;  %v25217_v3 = vld [vmem:[#allocation26_spill] sm:$0xff]  ;;  %v25218_v58 = vld [vmem:[#allocation51_spill] sm:$0xff] }
 0x4f0   : > { %v6256_v63 = vpop.f32.mrf.mxu0  ;;  %v8008_v30 = vpop.f32.mrf.mxu1  ;;  %v9008_v10 = vshrl.u32 %v25216_v17, 16  ;;  %v8225_v21 = vmax.f32 %v25218_v58, %v25217_v3  ;;  %v18084_v3 = vld [vmem:[%s18787_s11 + $0x990] ss:$8 sps:$4 sm:$0xff]  }
 0x4f1   : > { %v8291_v4 = vmax.f32 %v25205_v29, %v6256_v63  ;;  %v20985_v8 = vpack.i.b16 %v8844_v50, %v25200_v1  ;;  %v8977_v32 = vshrl.u32 %v8844_v50, 16  ;;  %v8399_v34 = vmax.f32 %v25207_v26, %v8008_v30  ;;  %v25221_v63 = vld [vmem:[#allocation47_spill] sm:$0xff]  ;;  %v18082_v50 = vld [vmem:[%s18787_s11 + $0x994] ss:$8 sps:$4 sm:$0xff]  }
 0x4f2   : > { %v6258_v5 = vpop.f32.mrf.mxu0  ;;  %v8010_v14 = vpop.f32.mrf.mxu1  ;;  %v8750_v55 = vmax.f32 %v8574_v11, 0.0  ;;  %v8642_v0 = vmax.f32 %v8466_v24, 0.0  ;;  %v18080_v11 = vld [vmem:[%s18787_s11 + $0x980] ss:$8 sps:$4 sm:$0xff]  }
 0x4f3   : > { %25206 = vst [vmem:[#allocation53_spill] sm:$0xff] %v20985_v8  ;;  %v8467_v45 = vmax.f32 %v8115_v12, %v8291_v4  ;;  %v20992_v28 = vpack.i.b16 %v8977_v32, %v8976_v59  ;;  %v8575_v44 = vmax.f32 %v8223_v41, %v8399_v34  ;;  %v8117_v41 = vmax.f32 %v25220_v2, %v25219_v49  ;;  %v25223_v12 = vld [vmem:[#allocation37_spill] sm:$0xff]  ;;  %v25226_v34 = vld [vmem:[#allocation72_spill] sm:$0xff] }
 0x4f4   : > { %v6261_v56 = vpop.f32.mrf.mxu0  ;;  %6452 = vmatmul.mubr.bf16.gmra.mxu0 %v18076_v6  ;;  %v8013_v13 = vpop.f32.mrf.mxu1  ;;  %v25225_v5 = vld [vmem:[#allocation25_spill] sm:$0xff]  ;;  %v18085_v2 = vld [vmem:[%s18787_s11 + $0x9a4] ss:$8 sps:$4 sm:$0xff]  }
 0x4f5   : > { %25212 = vst [vmem:[#allocation60_spill] sm:$0xff] %v20992_v28  ;;  %v8643_v42 = vmax.f32 %v8467_v45, 0.0  ;;  %v8292_v60 = vmax.f32 %v25213_v43, %v6261_v56  ;;  %16101 = vmatprep.mubr.msk.bf16.mxu0 %vm4150_vm0, %v18077_v46  ;;  %v8400_v36 = vmax.f32 %v25214_v54, %v8013_v13  ;;  %v8751_v51 = vmax.f32 %v8575_v44, 0.0  ;;  %v25224_v46 = vld [vmem:[#allocation101_spill] sm:$0xff] }
 0x4f6   : > { %v6263_v38 = vpop.f32.mrf.mxu0  ;;  %v8015_v52 = vpop.f32.mrf.mxu1  ;;  %v8226_v32 = vmax.f32 %v25225_v5, %v25224_v46  ;;  %v25227_v14 = vld [vmem:[#allocation69_spill] sm:$0xff]  ;;  %v25241_v46 = vld [vmem:[#allocation36_spill] sm:$0xff] }
 0x4f7   : > { %v20997_v33 = vpack.c.bf16 %v8643_v42, %v8642_v0  ;;  %v8468_v9 = vmax.f32 %v8116_v61, %v8292_v60  ;;  %v8576_v25 = vmax.f32 %v8224_v31, %v8400_v36  ;;  %v8845_v1 = vpack.c.bf16 %v8751_v51, %v8750_v55  ;;  %v25229_v55 = vld [vmem:[#allocation116_spill] sm:$0xff]  ;;  %v25230_v13 = vld [vmem:[#allocation117_spill] sm:$0xff]  ;;  %v25232_v51 = vld [vmem:[#allocation39_spill] sm:$0xff] }
 0x4f8   : > { %v6264_v24 = vpop.f32.mrf.mxu0  ;;  %v8016_v59 = vpop.f32.mrf.mxu1  ;;  %v8118_v15 = vmax.f32 %v25227_v14, %v25226_v34  ;;  %v9040_v52 = vshrl.u32 %v25232_v51, 16  ;;  %v25243_v34 = vld [vmem:[#allocation94_spill] sm:$0xff] }
 0x4f9   : > { %25215 = vst [vmem:[#allocation35_spill] sm:$0xff] %v20997_v33  ;;  %v8293_v6 = vmax.f32 %v25221_v63, %v6264_v24  ;;  %v21008_v39 = vpack.i.b16 %v8845_v1, %v25216_v17  ;;  %v9009_v23 = vshrl.u32 %v8845_v1, 16  ;;  %v8401_v29 = vmax.f32 %v25223_v12, %v8016_v59  ;;  %v25234_v17 = vld [vmem:[#allocation93_spill] sm:$0xff]  ;;  %v25235_v24 = vld [vmem:[#allocation102_spill] sm:$0xff]  ;;  %v18131_v63 = vld [vmem:[%s24546_s2 + $0x20] sm:$0xff]  }
 0x4fa   : > { %v6266_v30 = vpop.f32.mrf.mxu0  ;;  %v8018_v4 = vpop.f32.mrf.mxu1  ;;  %v8752_v45 = vmax.f32 %v8576_v25, 0.0  ;;  %v8644_v61 = vmax.f32 %v8468_v9, 0.0  ;;  %v25233_v25 = vld [vmem:[#allocation63_spill] sm:$0xff]  ;;  %v25237_v59 = vld [vmem:[#allocation118_spill] sm:$0xff] }
 0x4fb   : > { %25222 = vst [vmem:[#allocation87_spill] sm:$0xff] %v21008_v39  ;;  %v8469_v26 = vmax.f32 %v8117_v41, %v8293_v6  ;;  %v21015_v31 = vpack.i.b16 %v9009_v23, %v9008_v10  ;;  %v8577_v20 = vmax.f32 %v8225_v21, %v8401_v29  ;;  %v8227_v9 = vmax.f32 %v25234_v17, %v25233_v25  ;;  %v18130_v41 = vld [vmem:[%s24546_s2 + $0x60] sm:$0xff]   ;;  %v25240_v4 = vld [vmem:[#allocation45_spill] sm:$0xff] }
 0x4fc   : > { %v6269_v35 = vpop.f32.mrf.mxu0  ;;  %6460 = vmatmul.mubr.bf16.gmra.mxu0 %v18080_v11  ;;  %v8021_v48 = vpop.f32.mrf.mxu1  ;;  %v25236_v11 = vld [vmem:[#allocation14_spill] sm:$0xff]  ;;  %v25239_v23 = vld [vmem:[#allocation119_spill] sm:$0xff]  ;;  %v8228_v5 = vmax.f32 %v25241_v46, %v25240_v4  ;;  %16664 = vmatprep.subr.bf16.mxu1 %v18130_v41  ;;  %v25248_v25 = vld [vmem:[#allocation85_spill] sm:$0xff] }
 0x4fd   : > { %25228 = vst [vmem:[#allocation28_spill] sm:$0xff] %v21015_v31  ;;  %v8645_v56 = vmax.f32 %v8469_v26, 0.0  ;;  %v8294_v44 = vmax.f32 %v25229_v55, %v6269_v35  ;;  %16102 = vmatprep.mubr.msk.bf16.mxu0 %vm4150_vm0, %v18082_v50  ;;  %v8402_v0 = vmax.f32 %v25230_v13, %v8021_v48  ;;  %v8753_v43 = vmax.f32 %v8577_v20, 0.0  ;;  %v25242_v26 = vld [vmem:[#allocation56_spill] sm:$0xff]  ;;  %16665 = vmatpush3.bf16.msra.mxu1 %v18131_v63  ;;  %v25246_v13 = vld [vmem:[#allocation121_spill] sm:$0xff]  ;;  %v25257_v46 = vld [vmem:[#allocation70_spill] sm:$0xff] }
 0x4fe   : > { %v6271_v42 = vpop.f32.mrf.mxu0  ;;  %v8023_v60 = vpop.f32.mrf.mxu1  ;;  %v8119_v1 = vmax.f32 %v25236_v11, %v25235_v24  ;;  %v8120_v14 = vmax.f32 %v25243_v34, %v25242_v26  ;;  %v25245_v55 = vld [vmem:[#allocation120_spill] sm:$0xff]  ;;  %v9072_v17 = vshrl.u32 %v25248_v25, 16  ;;  %v25251_v11 = vld [vmem:[#allocation82_spill] sm:$0xff]  ;;  %v25258_v26 = vld [vmem:[#allocation103_spill] sm:$0xff] }
 0x4ff   : > { %v21020_v54 = vpack.c.bf16 %v8645_v56, %v8644_v61  ;;  %v8470_v36 = vmax.f32 %v8118_v15, %v8294_v44  ;;  %v8578_v38 = vmax.f32 %v8226_v32, %v8402_v0  ;;  %v8846_v58 = vpack.c.bf16 %v8753_v43, %v8752_v45  ;;  %v18088_v41 = vld [vmem:[%s18787_s11 + $0x9b4] ss:$8 sps:$4 sm:$0xff]   ;;  %v25256_v4 = vld [vmem:[#allocation104_spill] sm:$0xff] }
 0x500   : > { %v6272_v10 = vpop.f32.mrf.mxu0  ;;  %v8024_v21 = vpop.f32.mrf.mxu1  ;;  %v25259_v34 = vld [vmem:[#allocation24_spill] sm:$0xff] }
 0x501   : > { %25231 = vst [vmem:[#allocation74_spill] sm:$0xff] %v21020_v54  ;;  %v8295_v49 = vmax.f32 %v25237_v59, %v6272_v10  ;;  %v21037_v50 = vpack.i.b16 %v8846_v58, %v25232_v51  ;;  %v9041_v30 = vshrl.u32 %v8846_v58, 16  ;;  %v8403_v12 = vmax.f32 %v25239_v23, %v8024_v21  ;;  %v25250_v10 = vld [vmem:[#allocation44_spill] sm:$0xff]  ;;  %v25255_v23 = vld [vmem:[#allocation123_spill] sm:$0xff] }
 0x502   : > { %v6274_v6 = vpop.f32.mrf.mxu0  ;;  %v8026_v29 = vpop.f32.mrf.mxu1  ;;  %v8754_v45 = vmax.f32 %v8578_v38, 0.0  ;;  %v8646_v61 = vmax.f32 %v8470_v36, 0.0  ;;  %v18087_v58 = vld [vmem:[%s18787_s11 + $0x9a0] ss:$8 sps:$4 sm:$0xff]  }
 0x503   : > { %25238 = vst [vmem:[#allocation27_spill] sm:$0xff] %v21037_v50  ;;  %v8471_v32 = vmax.f32 %v8119_v1, %v8295_v49  ;;  %v21044_v35 = vpack.i.b16 %v9041_v30, %v9040_v52  ;;  %v8579_v20 = vmax.f32 %v8227_v9, %v8403_v12  ;;  %v25249_v9 = vld [vmem:[#allocation19_spill] sm:$0xff]  ;;  %v25253_v49 = vld [vmem:[#allocation122_spill] sm:$0xff] }
 0x504   : > { %v6277_v15 = vpop.f32.mrf.mxu0  ;;  %6468 = vmatmul.mubr.bf16.gmra.mxu0 %v18084_v3  ;;  %v8029_v48 = vpop.f32.mrf.mxu1  ;;  %v8229_v36 = vmax.f32 %v25250_v10, %v25249_v9  ;;  %v25252_v1 = vld [vmem:[#allocation79_spill] sm:$0xff] }
 0x505   : > { %25244 = vst [vmem:[#allocation52_spill] sm:$0xff] %v21044_v35  ;;  %v8647_v56 = vmax.f32 %v8471_v32, 0.0  ;;  %v8296_v44 = vmax.f32 %v25245_v55, %v6277_v15  ;;  %16103 = vmatprep.mubr.msk.bf16.mxu0 %vm4150_vm0, %v18085_v2  ;;  %v8404_v0 = vmax.f32 %v25246_v13, %v8029_v48  ;;  %v8755_v43 = vmax.f32 %v8579_v20, 0.0  ;;  %v18173_v54 = vld [vmem:[%s18787_s11 + $0xb60] ss:$8 sps:$4 sm:$0xff]  }
 0x506   : > { %v6279_v42 = vpop.f32.mrf.mxu0  ;;  %v8031_v60 = vpop.f32.mrf.mxu1  ;;  %v8121_v59 = vmax.f32 %v25252_v1, %v25251_v11  ;;  %v18179_v50 = vld [vmem:[%s18787_s11 + $0xb80] ss:$8 sps:$4 sm:$0xff]  }
 0x507   : > { %v21049_v51 = vpack.c.bf16 %v8647_v56, %v8646_v61  ;;  %v8472_v52 = vmax.f32 %v8120_v14, %v8296_v44  ;;  %v8580_v38 = vmax.f32 %v8228_v5, %v8404_v0  ;;  %v8847_v21 = vpack.c.bf16 %v8755_v43, %v8754_v45  ;;  %v25261_v44 = vld [vmem:[#allocation124_spill] sm:$0xff]  ;;  %v25262_v0 = vld [vmem:[#allocation125_spill] sm:$0xff] }
 0x508   : > { %v6280_v3 = vpop.f32.mrf.mxu0  ;;  %v8032_v24 = vpop.f32.mrf.mxu1  ;;  %v8230_v5 = vmax.f32 %v25257_v46, %v25256_v4  ;;  %v8122_v14 = vmax.f32 %v25259_v34, %v25258_v26  ;;  %v25271_v4 = vld [vmem:[#allocation127_spill] sm:$0xff] }
 0x509   : > { %25247 = vst [vmem:[#allocation71_spill] sm:$0xff] %v21049_v51  ;;  %v8297_v2 = vmax.f32 %v25253_v49, %v6280_v3  ;;  %v21060_v6 = vpack.i.b16 %v8847_v21, %v25248_v25  ;;  %v9073_v30 = vshrl.u32 %v8847_v21, 16  ;;  %v8405_v12 = vmax.f32 %v25255_v23, %v8032_v24  ;;  %v25265_v3 = vld [vmem:[#allocation73_spill] sm:$0xff]  ;;  %v25268_v49 = vld [vmem:[#allocation95_spill] sm:$0xff] }
 0x50a   : > { %v6282_v63 = vpop.f32.mrf.mxu0  ;;  %v8034_v29 = vpop.f32.mrf.mxu1  ;;  %v8756_v20 = vmax.f32 %v8580_v38, 0.0  ;;  %v8648_v56 = vmax.f32 %v8472_v52, 0.0  ;;  %v25264_v38 = vld [vmem:[#allocation49_spill] sm:$0xff]  ;;  %v25273_v26 = vld [vmem:[#allocation43_spill] sm:$0xff] }
 0x50b   : > { %25254 = vst [vmem:[#allocation61_spill] sm:$0xff] %v21060_v6  ;;  %v8473_v32 = vmax.f32 %v8121_v59, %v8297_v2  ;;  %v21067_v45 = vpack.i.b16 %v9073_v30, %v9072_v17  ;;  %v8581_v48 = vmax.f32 %v8229_v36, %v8405_v12  ;;  %v9104_v36 = vshrl.u32 %v25264_v38, 16  ;;  %v18090_v24 = vld [vmem:[%s18787_s11 + $0x9b0] ss:$8 sps:$4 sm:$0xff]   ;;  %v25267_v59 = vld [vmem:[#allocation55_spill] sm:$0xff] }
 0x50c   : > { %v6285_v15 = vpop.f32.mrf.mxu0  ;;  %6476 = vmatmul.mubr.bf16.gmra.mxu0 %v18087_v58  ;;  %v8037_v61 = vpop.f32.mrf.mxu1  ;;  %v25266_v58 = vld [vmem:[#allocation96_spill] sm:$0xff]  ;;  %v8123_v2 = vmax.f32 %v25268_v49, %v25267_v59  ;;  %v25282_v59 = vld [vmem:[#allocation17_spill] sm:$0xff] }
 0x50d   : > { %25260 = vst [vmem:[#allocation107_spill] sm:$0xff] %v21067_v45  ;;  %v8649_v55 = vmax.f32 %v8473_v32, 0.0  ;;  %v8298_v13 = vmax.f32 %v25261_v44, %v6285_v15  ;;  %16104 = vmatprep.mubr.msk.bf16.mxu0 %vm4150_vm0, %v18088_v41  ;;  %v8406_v42 = vmax.f32 %v25262_v0, %v8037_v61  ;;  %v8757_v60 = vmax.f32 %v8581_v48, 0.0  ;;  %v25269_v41 = vld [vmem:[#allocation126_spill] sm:$0xff]  ;;  %v18091_v30 = vld [vmem:[%s18787_s11 + $0x9c4] ss:$8 sps:$4 sm:$0xff]  }
 0x50e   : > { %v6287_v43 = vpop.f32.mrf.mxu0  ;;  %v8039_v25 = vpop.f32.mrf.mxu1  ;;  %v8231_v52 = vmax.f32 %v25266_v58, %v25265_v3  ;;  %v25272_v32 = vld [vmem:[#allocation18_spill] sm:$0xff]  ;;  %v25274_v15 = vld [vmem:[#allocation29_spill] sm:$0xff]  ;;  %v18155_v51 = vld [vmem:[%s18787_s11 + $0xb00] ss:$8 sps:$4 sm:$0xff]  }
 0x50f   : > { %v21072_v9 = vpack.c.bf16 %v8649_v55, %v8648_v56  ;;  %v8474_v17 = vmax.f32 %v8122_v14, %v8298_v13  ;;  %v8582_v10 = vmax.f32 %v8230_v5, %v8406_v42  ;;  %v8848_v11 = vpack.c.bf16 %v8757_v60, %v8756_v20  ;;  %v25275_v20 = vld [vmem:[#allocation54_spill] sm:$0xff]  ;;  %v25277_v43 = vld [vmem:[#allocation128_spill] sm:$0xff]  ;;  %v25278_v25 = vld [vmem:[#allocation129_spill] sm:$0xff] }
 0x510   : > { %v6288_v21 = vpop.f32.mrf.mxu0  ;;  %v8040_v1 = vpop.f32.mrf.mxu1  ;;  %v8232_v34 = vmax.f32 %v25273_v26, %v25272_v32  ;;  %v8124_v48 = vmax.f32 %v25275_v20, %v25274_v15  ;;  %v18187_v31 = vld [vmem:[%s18787_s11 + $0xba0] ss:$8 sps:$4 sm:$0xff]  }
 0x511   : > { %25263 = vst [vmem:[#allocation108_spill] sm:$0xff] %v21072_v9  ;;  %v8299_v63 = vmax.f32 %v25269_v41, %v6288_v21  ;;  %v21083_v12 = vpack.i.b16 %v8848_v11, %v25264_v38  ;;  %v9105_v29 = vshrl.u32 %v8848_v11, 16  ;;  %v8407_v46 = vmax.f32 %v25271_v4, %v8040_v1  ;;  %v25281_v1 = vld [vmem:[#allocation106_spill] sm:$0xff] }
 0x512   : > { %v6290_v23 = vpop.f32.mrf.mxu0  ;;  %v8042_v5 = vpop.f32.mrf.mxu1  ;;  %v8758_v55 = vmax.f32 %v8582_v10, 0.0  ;;  %v8650_v0 = vmax.f32 %v8474_v17, 0.0  ;;  %v25280_v10 = vld [vmem:[#allocation12_spill] sm:$0xff]  ;;  %v8233_v17 = vmax.f32 %v25282_v59, %v25281_v1  ;;  %v25285_v4 = vld [vmem:[#allocation130_spill] sm:$0xff]  ;;  %v25292_v59 = vld [vmem:[#allocation83_spill] sm:$0xff] }
 0x513   : > { %25270 = vst [vmem:[#allocation40_spill] sm:$0xff] %v21083_v12  ;;  %v8475_v14 = vmax.f32 %v8123_v2, %v8299_v63  ;;  %v21090_v56 = vpack.i.b16 %v9105_v29, %v9104_v36  ;;  %v8583_v44 = vmax.f32 %v8231_v52, %v8407_v46  ;;  %v9136_v52 = vshrl.u32 %v25280_v10, 16  ;;  %v18093_v2 = vld [vmem:[%s18787_s11 + $0x9c0] ss:$8 sps:$4 sm:$0xff]   ;;  %v18094_v5 = vld [vmem:[%s18787_s11 + $0x9d4] ss:$8 sps:$4 sm:$0xff]  }
 0x514   : > { %v6293_v61 = vpop.f32.mrf.mxu0  ;;  %6484 = vmatmul.mubr.bf16.gmra.mxu0 %v18090_v24  ;;  %v8045_v13 = vpop.f32.mrf.mxu1  ;;  %v25284_v23 = vld [vmem:[#allocation80_spill] sm:$0xff]  ;;  %v18152_v12 = vld [vmem:[%s18787_s11 + $0xaf0] ss:$8 sps:$4 sm:$0xff]  }
 0x515   : > { %25276 = vst [vmem:[#allocation99_spill] sm:$0xff] %v21090_v56  ;;  %v8651_v42 = vmax.f32 %v8475_v14, 0.0  ;;  %v8300_v60 = vmax.f32 %v25277_v43, %v6293_v61  ;;  %16105 = vmatprep.mubr.msk.bf16.mxu0 %vm4150_vm0, %v18091_v30  ;;  %v8408_v38 = vmax.f32 %v25278_v25, %v8045_v13  ;;  %v8759_v58 = vmax.f32 %v8583_v44, 0.0  ;;  %v25283_v30 = vld [vmem:[#allocation105_spill] sm:$0xff]  ;;  %v25287_v14 = vld [vmem:[#allocation131_spill] sm:$0xff] }
 0x516   : > { %v6295_v3 = vpop.f32.mrf.mxu0  ;;  %v8047_v21 = vpop.f32.mrf.mxu1  ;;  %v8125_v29 = vmax.f32 %v25284_v23, %v25283_v30  ;;  %v25289_v61 = vld [vmem:[#allocation97_spill] sm:$0xff]  ;;  %v18149_v56 = vld [vmem:[%s18787_s11 + $0xae0] ss:$8 sps:$4 sm:$0xff]  }
 0x517   : > { %v21095_v11 = vpack.c.bf16 %v8651_v42, %v8650_v0  ;;  %v8476_v36 = vmax.f32 %v8124_v48, %v8300_v60  ;;  %v8584_v24 = vmax.f32 %v8232_v34, %v8408_v38  ;;  %v8849_v41 = vpack.c.bf16 %v8759_v58, %v8758_v55  ;;  %v25288_v48 = vld [vmem:[#allocation38_spill] sm:$0xff]  ;;  %v25291_v3 = vld [vmem:[#allocation132_spill] sm:$0xff] }
 0x518   : > { %v6296_v49 = vpop.f32.mrf.mxu0  ;;  %v8048_v63 = vpop.f32.mrf.mxu1  ;;  %v8234_v44 = vmax.f32 %v25289_v61, %v25288_v48  ;;  %v18096_v30 = vld [vmem:[%s18787_s11 + $0x9d0] ss:$8 sps:$4 sm:$0xff]  }
 0x519   : > { %25279 = vst [vmem:[#allocation78_spill] sm:$0xff] %v21095_v11  ;;  %v8301_v46 = vmax.f32 %v25285_v4, %v6296_v49  ;;  %v21106_v26 = vpack.i.b16 %v8849_v41, %v25280_v10  ;;  %v9137_v34 = vshrl.u32 %v8849_v41, 16  ;;  %v8409_v15 = vmax.f32 %v25287_v14, %v8048_v63  ;;  %v25293_v49 = vld [vmem:[#allocation98_spill] sm:$0xff]  ;;  %v25295_v63 = vld [vmem:[#allocation77_spill] sm:$0xff] }
 0x51a   : > { %v6298_v32 = vpop.f32.mrf.mxu0  ;;  %v8050_v20 = vpop.f32.mrf.mxu1  ;;  %v8760_v42 = vmax.f32 %v8584_v24, 0.0  ;;  %v8652_v25 = vmax.f32 %v8476_v36, 0.0  ;;  %v8235_v41 = vmax.f32 %v25293_v49, %v25292_v59  ;;  %v9168_v24 = vshrl.u32 %v25295_v63, 16  ;;  %v18102_v49 = vld [vmem:[%s18787_s11 + $0x9f0] ss:$8 sps:$4 sm:$0xff]  }
 0x51b   : > { %25286 = vst [vmem:[#allocation16_spill] sm:$0xff] %v21106_v26  ;;  %v8477_v13 = vmax.f32 %v8125_v29, %v8301_v46  ;;  %v21113_v0 = vpack.i.b16 %v9137_v34, %v9136_v52  ;;  %v8585_v43 = vmax.f32 %v8233_v17, %v8409_v15  ;;  %v18097_v29 = vld [vmem:[%s18787_s11 + $0x9e4] ss:$8 sps:$4 sm:$0xff]  }
 0x51c   : > { %v21111_v55 = vpop.f32.mrf.mxu0  ;;  %6492 = vmatmul.mubr.bf16.gmra.mxu0 %v18093_v2  ;;  %v8053_v60 = vpop.f32.mrf.mxu1 }
 0x51d   : > { %25290 = vst [vmem:[#allocation41_spill] sm:$0xff] %v21113_v0  ;;  %v8653_v38 = vmax.f32 %v8477_v13, 0.0  ;;  %16106 = vmatprep.mubr.msk.bf16.mxu0 %vm4150_vm0, %v18094_v5  ;;  %v8410_v58 = vmax.f32 %v25291_v3, %v8053_v60  ;;  %v8761_v10 = vmax.f32 %v8585_v43, 0.0  ;;  %v18099_v60 = vld [vmem:[%s18787_s11 + $0x9e0] ss:$8 sps:$4 sm:$0xff]  }
 0x51e   : > { %v6303_v21 = vpop.f32.mrf.mxu0  ;;  %v8055_v1 = vpop.f32.mrf.mxu1  ;;  %v18143_v0 = vld [vmem:[%s18787_s11 + $0xac0] ss:$8 sps:$4 sm:$0xff]  }
 0x51f   : > { %v21119_v2 = vpack.c.bf16 %v8653_v38, %v8652_v25  ;;  %v8586_v52 = vmax.f32 %v8234_v44, %v8410_v58  ;;  %v8850_v36 = vpack.c.bf16 %v8761_v10, %v8760_v42  ;;  %v25298_v44 = vld [vmem:[#allocation68_spill] sm:$0xff]  ;;  %v18100_v25 = vld [vmem:[%s18787_s11 + $0x9f4] ss:$8 sps:$4 sm:$0xff]  }
 0x520   : > { %v21122_v17 = vpop.f32.mrf.mxu0  ;;  %v8056_v23 = vpop.f32.mrf.mxu1  ;;  %v9200_v13 = vshrl.u32 %v25298_v44, 16 }
 0x521   : > { %25294 = vst [vmem:[#allocation84_spill] sm:$0xff] %v21119_v2  ;;  %v8411_v4 = vmax.f32 %v20875_v53, %v8056_v23  ;;  %v21128_v5 = vpack.i.b16 %v8850_v36, %v25295_v63  ;;  %v9169_v32 = vshrl.u32 %v8850_v36, 16  ;;  %v8762_v14 = vmax.f32 %v8586_v52, 0.0  ;;  %v18105_v36 = vld [vmem:[%s18787_s11 + $0xa00] ss:$8 sps:$4 sm:$0xff]  }
 0x522   : > { %v6306_v46 = vpop.f32.mrf.mxu0  ;;  %v8058_v34 = vpop.f32.mrf.mxu1  ;;  %v18106_v23 = vld [vmem:[%s18787_s11 + $0xa14] ss:$8 sps:$4 sm:$0xff]   ;;  %v18134_v2 = vld [vmem:[%s18787_s11 + $0xa90] ss:$8 sps:$4 sm:$0xff]  }
 0x523   : > { %25296 = vst [vmem:[#allocation21_spill] sm:$0xff] %v21128_v5  ;;  %v8587_v15 = vmax.f32 %v8235_v41, %v8411_v4  ;;  %v21132_v48 = vpack.i.b16 %v9169_v32, %v9168_v24  ;;  %v18103_v41 = vld [vmem:[%s18787_s11 + $0xa04] ss:$8 sps:$4 sm:$0xff]   ;;  %v18108_v34 = vld [vmem:[%s18787_s11 + $0xa10] ss:$8 sps:$4 sm:$0xff]  }
 0x524   : > { %v21130_v20 = vpop.f32.mrf.mxu0  ;;  %6500 = vmatmul.mubr.bf16.gmra.mxu0 %v18096_v30 }
 0x525   : > { %25297 = vst [vmem:[#allocation81_spill] sm:$0xff] %v21132_v48  ;;  %16107 = vmatprep.mubr.msk.bf16.mxu0 %vm4150_vm0, %v18097_v29  ;;  %v8763_v61 = vmax.f32 %v8587_v15, 0.0 }
 0x526   : > { %v6311_v53 = vpop.f32.mrf.mxu0 }
 0x527   : > { %v8851_v42 = vpack.c.bf16 %v8763_v61, %v8762_v14  ;;  %v18109_v14 = vld [vmem:[%s18787_s11 + $0xa24] ss:$8 sps:$4 sm:$0xff]  }
 0x528   : > { %v21136_v43 = vpop.f32.mrf.mxu0 }
 0x529   : > { %v21141_v38 = vpack.i.b16 %v8851_v42, %v25298_v44  ;;  %v9201_v3 = vshrl.u32 %v8851_v42, 16  ;;  %v18112_v42 = vld [vmem:[%s18787_s11 + $0xa34] ss:$8 sps:$4 sm:$0xff]  }
 0x52a   : > { %v6314_v58 = vpop.f32.mrf.mxu0 }
 0x52b   : > { %25299 = vst [vmem:[#allocation33_spill] sm:$0xff] %v21141_v38  ;;  %v21143_v21 = vpack.i.b16 %v9201_v3, %v9200_v13  ;;  %v18111_v13 = vld [vmem:[%s18787_s11 + $0xa20] ss:$8 sps:$4 sm:$0xff]  }
 0x52c   : > { %v21145_v10 = vpop.f32.mrf.mxu0  ;;  %6508 = vmatmul.mubr.bf16.gmra.mxu0 %v18099_v60 }
 0x52d   : > { %25300 = vst [vmem:[#allocation100_spill] sm:$0xff] %v21143_v21  ;;  %16108 = vmatprep.mubr.msk.bf16.mxu0 %vm4150_vm0, %v18100_v25  ;;  %v18129_v21 = vld [vmem:[%s18787_s11 + $0xa80] ss:$8 sps:$4 sm:$0xff]  }
 0x52e   : > { %v6319_v1 = vpop.f32.mrf.mxu0 }
 0x52f   : > { %v18114_v1 = vld [vmem:[%s18787_s11 + $0xa30] ss:$8 sps:$4 sm:$0xff]  }
 0x530   : > { %v21148_v59 = vpop.f32.mrf.mxu0 }
 0x532   : > { %v6322_v52 = vpop.f32.mrf.mxu0 }
 0x534   : > { %v21152_v63 = vpop.f32.mrf.mxu0  ;;  %6516 = vmatmul.mubr.bf16.gmra.mxu0 %v18102_v49  ;;  %v18115_v49 = vld [vmem:[%s18787_s11 + $0xa44] ss:$8 sps:$4 sm:$0xff]  }
 0x535   : > { %16109 = vmatprep.mubr.msk.bf16.mxu0 %vm4150_vm0, %v18103_v41 }
 0x536   : > { %v6327_v24 = vpop.f32.mrf.mxu0 }
 0x538   : > { %v21155_v30 = vpop.f32.mrf.mxu0 }
 0x53a   : > { %v6330_v29 = vpop.f32.mrf.mxu0 }
 0x53b   : > { %v18118_v29 = vld [vmem:[%s18787_s11 + $0xa54] ss:$8 sps:$4 sm:$0xff]  }
 0x53c   : > { %v21159_v4 = vpop.f32.mrf.mxu0  ;;  %6524 = vmatmul.mubr.bf16.gmra.mxu0 %v18105_v36 }
 0x53d   : > { %16110 = vmatprep.mubr.msk.bf16.mxu0 %vm4150_vm0, %v18106_v23  ;;  %v18117_v23 = vld [vmem:[%s18787_s11 + $0xa40] ss:$8 sps:$4 sm:$0xff]  }
 0x53e   : > { %v6335_v46 = vpop.f32.mrf.mxu0 }
 0x540   : > { %v21162_v32 = vpop.f32.mrf.mxu0 }
 0x542   : > { %v6338_v15 = vpop.f32.mrf.mxu0 }
 0x544   : > { %v21166_v61 = vpop.f32.mrf.mxu0  ;;  %6532 = vmatmul.mubr.bf16.gmra.mxu0 %v18108_v34 }
 0x545   : > { %16111 = vmatprep.mubr.msk.bf16.mxu0 %vm4150_vm0, %v18109_v14 }
 0x546   : > { %v6343_v53 = vpop.f32.mrf.mxu0 }
 0x547   : > { %v18120_v53 = vld [vmem:[%s18787_s11 + $0xa50] ss:$8 sps:$4 sm:$0xff]  }
 0x548   : > { %v21169_v44 = vpop.f32.mrf.mxu0 }
 0x54a   : > { %v6346_v60 = vpop.f32.mrf.mxu0 }
 0x54c   : > { %v21173_v25 = vpop.f32.mrf.mxu0  ;;  %6540 = vmatmul.mubr.bf16.gmra.mxu0 %v18111_v13  ;;  %v18121_v13 = vld [vmem:[%s18787_s11 + $0xa64] ss:$8 sps:$4 sm:$0xff]  }
 0x54d   : > { %25301 = vst [vmem:[#allocation15_spill] sm:$0xff] %v21173_v25  ;;  %16112 = vmatprep.mubr.msk.bf16.mxu0 %vm4150_vm0, %v18112_v42 }
 0x54e   : > { %v6351_v3 = vpop.f32.mrf.mxu0 }
 0x550   : > { %v21176_v58 = vpop.f32.mrf.mxu0 }
 0x551   : > { %25302 = vst [vmem:[#allocation109_spill] sm:$0xff] %v21176_v58 }
 0x552   : > { %v6354_v41 = vpop.f32.mrf.mxu0 }
 0x553   : > { %v18124_v41 = vld [vmem:[%s18787_s11 + $0xa74] ss:$8 sps:$4 sm:$0xff]  }
 0x554   : > { %v21180_v52 = vpop.f32.mrf.mxu0  ;;  %6548 = vmatmul.mubr.bf16.gmra.mxu0 %v18114_v1 }
 0x555   : > { %25303 = vst [vmem:[#allocation58_spill] sm:$0xff] %v21180_v52  ;;  %16113 = vmatprep.mubr.msk.bf16.mxu0 %vm4150_vm0, %v18115_v49  ;;  %v18123_v49 = vld [vmem:[%s18787_s11 + $0xa60] ss:$8 sps:$4 sm:$0xff]   ;;  %v18176_v52 = vld [vmem:[%s18787_s11 + $0xb70] ss:$8 sps:$4 sm:$0xff]  }
 0x556   : > { %v6359_v24 = vpop.f32.mrf.mxu0 }
 0x558   : > { %v21183_v36 = vpop.f32.mrf.mxu0 }
 0x559   : > { %25304 = vst [vmem:[#allocation57_spill] sm:$0xff] %v21183_v36  ;;  %v18170_v36 = vld [vmem:[%s18787_s11 + $0xb50] ss:$8 sps:$4 sm:$0xff]  }
 0x55a   : > { %v6362_v46 = vpop.f32.mrf.mxu0 }
 0x55c   : > { %v21187_v34 = vpop.f32.mrf.mxu0  ;;  %6556 = vmatmul.mubr.bf16.gmra.mxu0 %v18117_v23 }
 0x55d   : > { %25305 = vst [vmem:[#allocation26_spill] sm:$0xff] %v21187_v34  ;;  %16114 = vmatprep.mubr.msk.bf16.mxu0 %vm4150_vm0, %v18118_v29  ;;  %v18158_v34 = vld [vmem:[%s18787_s11 + $0xb10] ss:$8 sps:$4 sm:$0xff]  }
 0x55e   : > { %v6367_v14 = vpop.f32.mrf.mxu0 }
 0x55f   : > { %v18126_v14 = vld [vmem:[%s18787_s11 + $0xa70] ss:$8 sps:$4 sm:$0xff]  }
 0x560   : > { %v21190_v15 = vpop.f32.mrf.mxu0 }
 0x561   : > { %25306 = vst [vmem:[#allocation51_spill] sm:$0xff] %v21190_v15 }
 0x562   : > { %v6370_v42 = vpop.f32.mrf.mxu0 }
 0x564   : > { %v21194_v60 = vpop.f32.mrf.mxu0  ;;  %6564 = vmatmul.mubr.bf16.gmra.mxu0 %v18120_v53  ;;  %v18127_v53 = vld [vmem:[%s18787_s11 + $0xa84] ss:$8 sps:$4 sm:$0xff]  }
 0x565   : > { %25307 = vst [vmem:[#allocation46_spill] sm:$0xff] %v21194_v60  ;;  %16115 = vmatprep.mubr.msk.bf16.mxu0 %vm4150_vm0, %v18121_v13 }
 0x566   : > { %v6375_v3 = vpop.f32.mrf.mxu0 }
 0x568   : > { %v21197_v1 = vpop.f32.mrf.mxu0 }
 0x569   : > { %25308 = vst [vmem:[#allocation92_spill] sm:$0xff] %v21197_v1  ;;  %v18146_v1 = vld [vmem:[%s18787_s11 + $0xad0] ss:$8 sps:$4 sm:$0xff]  }
 0x56a   : > { %v6378_v24 = vpop.f32.mrf.mxu0 }
 0x56c   : > { %v21201_v23 = vpop.f32.mrf.mxu0  ;;  %6572 = vmatmul.mubr.bf16.gmra.mxu0 %v18123_v49  ;;  %v18132_v49 = vld [vmem:[%s18787_s11 + $0xa94] ss:$8 sps:$4 sm:$0xff]  }
 0x56d   : > { %25309 = vst [vmem:[#allocation47_spill] sm:$0xff] %v21201_v23  ;;  %16116 = vmatprep.mubr.msk.bf16.mxu0 %vm4150_vm0, %v18124_v41 }
 0x56e   : > { %v6383_v29 = vpop.f32.mrf.mxu0 }
 0x570   : > { %v21204_v46 = vpop.f32.mrf.mxu0 }
 0x571   : > { %25310 = vst [vmem:[#allocation37_spill] sm:$0xff] %v21204_v46  ;;  %v18141_v46 = vld [vmem:[%s18787_s11 + $0xac4] ss:$8 sps:$4 sm:$0xff]  }
 0x572   : > { %v6386_v13 = vpop.f32.mrf.mxu0 }
 0x574   : > { %v21208_v42 = vpop.f32.mrf.mxu0  ;;  %6580 = vmatmul.mubr.bf16.gmra.mxu0 %v18126_v14  ;;  %v18135_v14 = vld [vmem:[%s18787_s11 + $0xaa4] ss:$8 sps:$4 sm:$0xff]  }
 0x575   : > { %16117 = vmatprep.mubr.msk.bf16.mxu0 %vm4150_vm0, %v18127_v53 }
 0x576   : > { %v6391_v3 = vpop.f32.mrf.mxu0 }
 0x577   : > { %v18184_v3 = vld [vmem:[%s24546_s2 + $0x18] sm:$0xff]  }
 0x578   : > { %v21211_v24 = vpop.f32.mrf.mxu0 }
 0x57a   : > { %v6394_v38 = vpop.f32.mrf.mxu0 }
 0x57b   : > { %v18183_v38 = vld [vmem:[%s24546_s2 + $0x58] sm:$0xff]  }
 0x57c   : > { %v21215_v41 = vpop.f32.mrf.mxu0  ;;  %6588 = vmatmul.mubr.bf16.gmra.mxu0 %v18129_v21  ;;  %16666 = vmatprep.subr.bf16.mxu1 %v18183_v38  ;;  %v18140_v38 = vld [vmem:[%s18787_s11 + $0xab0] ss:$8 sps:$4 sm:$0xff]  }
 0x57d   : > { %16118 = vmatprep.mubr.msk.bf16.mxu0 %vm4150_vm0, %v18132_v49  ;;  %16667 = vmatpush3.bf16.msra.mxu1 %v18184_v3 }
 0x57e   : > { %v6399_v29 = vpop.f32.mrf.mxu0 }
 0x580   : > { %v21218_v13 = vpop.f32.mrf.mxu0 }
 0x582   : > { %v6402_v48 = vpop.f32.mrf.mxu0 }
 0x583   : > { %v18137_v48 = vld [vmem:[%s18787_s11 + $0xaa0] ss:$8 sps:$4 sm:$0xff]  }
 0x584   : > { %v21222_v53 = vpop.f32.mrf.mxu0  ;;  %6596 = vmatmul.mubr.bf16.gmra.mxu0 %v18134_v2  ;;  %v18138_v2 = vld [vmem:[%s18787_s11 + $0xab4] ss:$8 sps:$4 sm:$0xff]  }
 0x585   : > { %16119 = vmatprep.mubr.msk.bf16.mxu0 %vm4150_vm0, %v18135_v14 }
 0x586   : > { %v6407_v21 = vpop.f32.mrf.mxu0 }
 0x588   : > { %v21231_v49 = vpop.f32.mrf.mxu0 }
 0x58a   : > { %v6410_v29 = vpop.f32.mrf.mxu0 }
 0x58c   : > { %v21235_v5 = vpop.f32.mrf.mxu0  ;;  %6604 = vmatmul.mubr.bf16.gmra.mxu0 %v18137_v48  ;;  %v18144_v48 = vld [vmem:[%s18787_s11 + $0xad4] ss:$8 sps:$4 sm:$0xff]  }
 0x58d   : > { %16120 = vmatprep.mubr.msk.bf16.mxu0 %vm4150_vm0, %v18138_v2 }
 0x58e   : > { %v6415_v14 = vpop.f32.mrf.mxu0 }
 0x590   : > { %v21238_v21 = vpop.f32.mrf.mxu0 }
 0x592   : > { %v6418_v11 = vpop.f32.mrf.mxu0 }
 0x594   : > { %v21242_v23 = vpop.f32.mrf.mxu0  ;;  %6612 = vmatmul.mubr.bf16.gmra.mxu0 %v18140_v38  ;;  %v18147_v38 = vld [vmem:[%s18787_s11 + $0xae4] ss:$8 sps:$4 sm:$0xff]  }
 0x595   : > { %16121 = vmatprep.mubr.msk.bf16.mxu0 %vm4150_vm0, %v18141_v46 }
 0x596   : > { %v6423_v3 = vpop.f32.mrf.mxu0 }
 0x598   : > { %v21245_v29 = vpop.f32.mrf.mxu0 }
 0x59a   : > { %v6426_v2 = vpop.f32.mrf.mxu0 }
 0x59c   : > { %v21249_v14 = vpop.f32.mrf.mxu0  ;;  %6620 = vmatmul.mubr.bf16.gmra.mxu0 %v18143_v0  ;;  %v18150_v0 = vld [vmem:[%s18787_s11 + $0xaf4] ss:$8 sps:$4 sm:$0xff]  }
 0x59d   : > { %16122 = vmatprep.mubr.msk.bf16.mxu0 %vm4150_vm0, %v18144_v48 }
 0x59e   : > { %v6431_v26 = vpop.f32.mrf.mxu0 }
 0x5a0   : > { %v21252_v11 = vpop.f32.mrf.mxu0 }
 0x5a2   : > { %v6434_v46 = vpop.f32.mrf.mxu0 }
 0x5a4   : > { %v21256_v3 = vpop.f32.mrf.mxu0  ;;  %6628 = vmatmul.mubr.bf16.gmra.mxu0 %v18146_v1  ;;  %v18153_v1 = vld [vmem:[%s18787_s11 + $0xb04] ss:$8 sps:$4 sm:$0xff]  }
 0x5a5   : > { %25311 = vst [vmem:[#allocation101_spill] sm:$0xff] %v21256_v3  ;;  %16123 = vmatprep.mubr.msk.bf16.mxu0 %vm4150_vm0, %v18147_v38 }
 0x5a6   : > { %v6439_v9 = vpop.f32.mrf.mxu0 }
 0x5a8   : > { %v21259_v2 = vpop.f32.mrf.mxu0 }
 0x5a9   : > { %25312 = vst [vmem:[#allocation25_spill] sm:$0xff] %v21259_v2  ;;  %v18182_v2 = vld [vmem:[%s18787_s11 + $0xb90] ss:$8 sps:$4 sm:$0xff]  }
 0x5aa   : > { %v6442_v26 = vpop.f32.mrf.mxu0 }
 0x5ac   : > { %v21263_v48 = vpop.f32.mrf.mxu0  ;;  %6636 = vmatmul.mubr.bf16.gmra.mxu0 %v18149_v56  ;;  %v18156_v56 = vld [vmem:[%s18787_s11 + $0xb14] ss:$8 sps:$4 sm:$0xff]  }
 0x5ad   : > { %25313 = vst [vmem:[#allocation72_spill] sm:$0xff] %v21263_v48  ;;  %16124 = vmatprep.mubr.msk.bf16.mxu0 %vm4150_vm0, %v18150_v0 }
 0x5ae   : > { %v6447_v60 = vpop.f32.mrf.mxu0 }
 0x5b0   : > { %v21266_v46 = vpop.f32.mrf.mxu0 }
 0x5b1   : > { %25314 = vst [vmem:[#allocation69_spill] sm:$0xff] %v21266_v46 }
 0x5b2   : > { %v6450_v9 = vpop.f32.mrf.mxu0 }
 0x5b4   : > { %v21270_v38 = vpop.f32.mrf.mxu0  ;;  %6644 = vmatmul.mubr.bf16.gmra.mxu0 %v18152_v12  ;;  %v18159_v12 = vld [vmem:[%s18787_s11 + $0xb24] ss:$8 sps:$4 sm:$0xff]  }
 0x5b5   : > { %25315 = vst [vmem:[#allocation116_spill] sm:$0xff] %v21270_v38  ;;  %16125 = vmatprep.mubr.msk.bf16.mxu0 %vm4150_vm0, %v18153_v1  ;;  %v18167_v38 = vld [vmem:[%s18787_s11 + $0xb40] ss:$8 sps:$4 sm:$0xff]  }
 0x5b6   : > { %v6455_v15 = vpop.f32.mrf.mxu0 }
 0x5b8   : > { %v21273_v26 = vpop.f32.mrf.mxu0 }
 0x5b9   : > { %25316 = vst [vmem:[#allocation117_spill] sm:$0xff] %v21273_v26 }
 0x5ba   : > { %v6458_v60 = vpop.f32.mrf.mxu0 }
 0x5bc   : > { %v21277_v0 = vpop.f32.mrf.mxu0  ;;  %6652 = vmatmul.mubr.bf16.gmra.mxu0 %v18155_v51  ;;  %v18162_v51 = vld [vmem:[%s18787_s11 + $0xb34] ss:$8 sps:$4 sm:$0xff]  }
 0x5bd   : > { %25317 = vst [vmem:[#allocation39_spill] sm:$0xff] %v21277_v0  ;;  %16126 = vmatprep.mubr.msk.bf16.mxu0 %vm4150_vm0, %v18156_v56  ;;  %v18161_v0 = vld [vmem:[%s18787_s11 + $0xb20] ss:$8 sps:$4 sm:$0xff]  }
 0x5be   : > { %v6463_v45 = vpop.f32.mrf.mxu0 }
 0x5c0   : > { %v21280_v9 = vpop.f32.mrf.mxu0 }
 0x5c1   : > { %25318 = vst [vmem:[#allocation63_spill] sm:$0xff] %v21280_v9 }
 0x5c2   : > { %v6466_v15 = vpop.f32.mrf.mxu0 }
 0x5c4   : > { %v21284_v1 = vpop.f32.mrf.mxu0  ;;  %6660 = vmatmul.mubr.bf16.gmra.mxu0 %v18158_v34  ;;  %v18165_v34 = vld [vmem:[%s18787_s11 + $0xb44] ss:$8 sps:$4 sm:$0xff]  }
 0x5c5   : > { %25319 = vst [vmem:[#allocation93_spill] sm:$0xff] %v21284_v1  ;;  %16127 = vmatprep.mubr.msk.bf16.mxu0 %vm4150_vm0, %v18159_v12  ;;  %v18164_v1 = vld [vmem:[%s18787_s11 + $0xb30] ss:$8 sps:$4 sm:$0xff]  }
 0x5c6   : > { %v6471_v26 = vpop.f32.mrf.mxu0 }
 0x5c8   : > { %v21287_v60 = vpop.f32.mrf.mxu0 }
 0x5c9   : > { %25320 = vst [vmem:[#allocation102_spill] sm:$0xff] %v21287_v60 }
 0x5ca   : > { %v6474_v45 = vpop.f32.mrf.mxu0 }
 0x5cc   : > { %v21291_v56 = vpop.f32.mrf.mxu0  ;;  %6668 = vmatmul.mubr.bf16.gmra.mxu0 %v18161_v0  ;;  %v18168_v0 = vld [vmem:[%s18787_s11 + $0xb54] ss:$8 sps:$4 sm:$0xff]  }
 0x5cd   : > { %16128 = vmatprep.mubr.msk.bf16.mxu0 %vm4150_vm0, %v18162_v51 }
 0x5ce   : > { %v6479_v9 = vpop.f32.mrf.mxu0 }
 0x5d0   : > { %v21294_v15 = vpop.f32.mrf.mxu0 }
 0x5d2   : > { %v6482_v26 = vpop.f32.mrf.mxu0 }
 0x5d4   : > { %v21298_v12 = vpop.f32.mrf.mxu0  ;;  %6676 = vmatmul.mubr.bf16.gmra.mxu0 %v18164_v1  ;;  %v18171_v1 = vld [vmem:[%s18787_s11 + $0xb64] ss:$8 sps:$4 sm:$0xff]  }
 0x5d5   : > { %16129 = vmatprep.mubr.msk.bf16.mxu0 %vm4150_vm0, %v18165_v34 }
 0x5d6   : > { %v6487_v60 = vpop.f32.mrf.mxu0 }
 0x5d8   : > { %v21301_v45 = vpop.f32.mrf.mxu0 }
 0x5da   : > { %v6490_v9 = vpop.f32.mrf.mxu0 }
 0x5dc   : > { %v21305_v51 = vpop.f32.mrf.mxu0  ;;  %6684 = vmatmul.mubr.bf16.gmra.mxu0 %v18167_v38  ;;  %v18174_v38 = vld [vmem:[%s18787_s11 + $0xb74] ss:$8 sps:$4 sm:$0xff]  }
 0x5dd   : > { %16130 = vmatprep.mubr.msk.bf16.mxu0 %vm4150_vm0, %v18168_v0 }
 0x5de   : > { %v6495_v6 = vpop.f32.mrf.mxu0 }
 0x5e0   : > { %v21308_v26 = vpop.f32.mrf.mxu0 }
 0x5e2   : > { %v6498_v60 = vpop.f32.mrf.mxu0 }
 0x5e4   : > { %v21312_v34 = vpop.f32.mrf.mxu0  ;;  %6692 = vmatmul.mubr.bf16.gmra.mxu0 %v18170_v36  ;;  %v18177_v36 = vld [vmem:[%s18787_s11 + $0xb84] ss:$8 sps:$4 sm:$0xff]  }
 0x5e5   : > { %16131 = vmatprep.mubr.msk.bf16.mxu0 %vm4150_vm0, %v18171_v1 }
 0x5e6   : > { %v6503_v46 = vpop.f32.mrf.mxu0 }
 0x5e8   : > { %v21315_v9 = vpop.f32.mrf.mxu0 }
 0x5ea   : > { %v6506_v6 = vpop.f32.mrf.mxu0 }
 0x5ec   : > { %v21319_v0 = vpop.f32.mrf.mxu0  ;;  %6700 = vmatmul.mubr.bf16.gmra.mxu0 %v18173_v54  ;;  %v18180_v54 = vld [vmem:[%s18787_s11 + $0xb94] ss:$8 sps:$4 sm:$0xff]  }
 0x5ed   : > { %16132 = vmatprep.mubr.msk.bf16.mxu0 %vm4150_vm0, %v18174_v38 }
 0x5ee   : > { %v6511_v35 = vpop.f32.mrf.mxu0 }
 0x5f0   : > { %v21322_v60 = vpop.f32.mrf.mxu0 }
 0x5f2   : > { %v6514_v46 = vpop.f32.mrf.mxu0 }
 0x5f4   : > { %v21326_v1 = vpop.f32.mrf.mxu0  ;;  %6708 = vmatmul.mubr.bf16.gmra.mxu0 %v18176_v52  ;;  %v18185_v52 = vld [vmem:[%s18787_s11 + $0xba4] ss:$8 sps:$4 sm:$0xff]  }
 0x5f5   : > { %16133 = vmatprep.mubr.msk.bf16.mxu0 %vm4150_vm0, %v18177_v36 }
 0x5f6   : > { %v6519_v48 = vpop.f32.mrf.mxu0 }
 0x5f8   : > { %v21329_v6 = vpop.f32.mrf.mxu0 }
 0x5fa   : > { %v6522_v35 = vpop.f32.mrf.mxu0 }
 0x5fc   : > { %v21333_v38 = vpop.f32.mrf.mxu0  ;;  %6716 = vmatmul.mubr.bf16.gmra.mxu0 %v18179_v50  ;;  %v18188_v50 = vld [vmem:[%s18787_s11 + $0xbb4] ss:$8 sps:$4 sm:$0xff]  }
 0x5fd   : > { %25321 = vst [vmem:[#allocation14_spill] sm:$0xff] %v21333_v38  ;;  %16134 = vmatprep.mubr.msk.bf16.mxu0 %vm4150_vm0, %v18180_v54 }
 0x5fe   : > { %v6527_v58 = vpop.f32.mrf.mxu0 }
 0x5ff   : > { %v18233_v58 = vld [vmem:[%s24546_s2 + $0x50] sm:$0xff]  }
 0x600   : > { %v21336_v46 = vpop.f32.mrf.mxu0  ;;  %16668 = vmatprep.subr.bf16.mxu1 %v18233_v58  ;;  %v18194_v58 = vld [vmem:[%s18787_s11 + $0xbd4] ss:$8 sps:$4 sm:$0xff]  }
 0x601   : > { %25322 = vst [vmem:[#allocation118_spill] sm:$0xff] %v21336_v46 }
 0x602   : > { %v6530_v33 = vpop.f32.mrf.mxu0 }
 0x603   : > { %v18236_v33 = vld [vmem:[%s24546_s2 + $0x10] sm:$0xff]  }
 0x604   : > { %v21340_v36 = vpop.f32.mrf.mxu0  ;;  %6724 = vmatmul.mubr.bf16.gmra.mxu0 %v18182_v2  ;;  %16669 = vmatpush3.bf16.msra.mxu1 %v18236_v33 }
 0x605   : > { %25323 = vst [vmem:[#allocation119_spill] sm:$0xff] %v21340_v36  ;;  %16135 = vmatprep.mubr.msk.bf16.mxu0 %vm4150_vm0, %v18185_v52 }
 0x606   : > { %v6535_v48 = vpop.f32.mrf.mxu0 }
 0x607   : > { %v18191_v48 = vld [vmem:[%s18787_s11 + $0xbc4] ss:$8 sps:$4 sm:$0xff]  }
 0x608   : > { %v21343_v35 = vpop.f32.mrf.mxu0 }
 0x609   : > { %25324 = vst [vmem:[#allocation45_spill] sm:$0xff] %v21343_v35 }
 0x60a   : > { %v6538_v38 = vpop.f32.mrf.mxu0 }
 0x60b   : > { %v18190_v38 = vld [vmem:[%s18787_s11 + $0xbb0] ss:$8 sps:$4 sm:$0xff]  }
 0x60c   : > { %v21353_v2 = vpop.f32.mrf.mxu0  ;;  %6732 = vmatmul.mubr.bf16.gmra.mxu0 %v18187_v31  ;;  %v18193_v31 = vld [vmem:[%s18787_s11 + $0xbc0] ss:$8 sps:$4 sm:$0xff]  }
 0x60d   : > { %25325 = vst [vmem:[#allocation36_spill] sm:$0xff] %v21353_v2  ;;  %16136 = vmatprep.mubr.msk.bf16.mxu0 %vm4150_vm0, %v18188_v50 }
 0x60e   : > { %v6543_v54 = vpop.f32.mrf.mxu0 }
 0x610   : > { %v21356_v52 = vpop.f32.mrf.mxu0 }
 0x611   : > { %25326 = vst [vmem:[#allocation56_spill] sm:$0xff] %v21356_v52 }
 0x612   : > { %v6546_v35 = vpop.f32.mrf.mxu0 }
 0x614   : > { %v21360_v36 = vpop.f32.mrf.mxu0  ;;  %6740 = vmatmul.mubr.bf16.gmra.mxu0 %v18190_v38  ;;  %v18197_v38 = vld [vmem:[%s18787_s11 + $0xbe4] ss:$8 sps:$4 sm:$0xff]  }
 0x615   : > { %25327 = vst [vmem:[#allocation94_spill] sm:$0xff] %v21360_v36  ;;  %16137 = vmatprep.mubr.msk.bf16.mxu0 %vm4150_vm0, %v18191_v48  ;;  %v18196_v36 = vld [vmem:[%s18787_s11 + $0xbd0] ss:$8 sps:$4 sm:$0xff]  }
 0x616   : > { %v6551_v2 = vpop.f32.mrf.mxu0 }
 0x617   : > { %v8126_v2 = vmax.f32 %v21111_v55, %v21208_v42  ;;  %v8128_v55 = vmax.f32 %v21130_v20, %v21215_v41 }
 0x618   : > { %v21363_v46 = vpop.f32.mrf.mxu0 }
 0x619   : > { %25328 = vst [vmem:[#allocation120_spill] sm:$0xff] %v21363_v46 }
 0x61a   : > { %v6554_v50 = vpop.f32.mrf.mxu0 }
 0x61c   : > { %v21367_v33 = vpop.f32.mrf.mxu0  ;;  %6748 = vmatmul.mubr.bf16.gmra.mxu0 %v18193_v31 }
 0x61d   : > { %25329 = vst [vmem:[#allocation121_spill] sm:$0xff] %v21367_v33  ;;  %16138 = vmatprep.mubr.msk.bf16.mxu0 %vm4150_vm0, %v18194_v58  ;;  %v18199_v58 = vld [vmem:[%s18787_s11 + $0xbe0] ss:$8 sps:$4 sm:$0xff]  }
 0x61e   : > { %v6559_v54 = vpop.f32.mrf.mxu0 }
 0x61f   : > { %v8127_v54 = vmax.f32 %v21122_v17, %v21211_v24 }
 0x620   : > { %v21370_v35 = vpop.f32.mrf.mxu0 }
 0x621   : > { %25330 = vst [vmem:[#allocation85_spill] sm:$0xff] %v21370_v35 }
 0x622   : > { %v6562_v52 = vpop.f32.mrf.mxu0 }
 0x623   : > { %v18200_v52 = vld [vmem:[%s18787_s11 + $0xbf4] ss:$8 sps:$4 sm:$0xff]  }
 0x624   : > { %v6565_v48 = vpop.f32.mrf.mxu0  ;;  %6756 = vmatmul.mubr.bf16.gmra.mxu0 %v18196_v36 }
 0x625   : > { %v8302_v50 = vmax.f32 %v21291_v56, %v6565_v48  ;;  %16139 = vmatprep.mubr.msk.bf16.mxu0 %vm4150_vm0, %v18197_v38 }
 0x626   : > { %v6567_v33 = vpop.f32.mrf.mxu0 }
 0x627   : > { %v8478_v31 = vmax.f32 %v8126_v2, %v8302_v50  ;;  %v18203_v2 = vld [vmem:[%s18787_s11 + $0xc04] ss:$8 sps:$4 sm:$0xff]  }
 0x628   : > { %v6568_v46 = vpop.f32.mrf.mxu0 }
 0x629   : > { %v8303_v35 = vmax.f32 %v21294_v15, %v6568_v46  ;;  %v8654_v42 = vmax.f32 %v8478_v31, 0.0  ;;  %v8864_v15 = vshrl.u32 %v20888_v16, 16  ;;  %v18241_v31 = vld [vmem:[%s18787_s11 + $0xcc4] ss:$8 sps:$4 sm:$0xff]  }
 0x62a   : > { %v6570_v25 = vpop.f32.mrf.mxu0 }
 0x62b   : > { %v8479_v36 = vmax.f32 %v8127_v54, %v8303_v35  ;;  %v18202_v25 = vld [vmem:[%s18787_s11 + $0xbf0] ss:$8 sps:$4 sm:$0xff]   ;;  %v8129_v35 = vmax.f32 %v21136_v43, %v21218_v13  ;;  %v8130_v43 = vmax.f32 %v21145_v10, %v21222_v53  ;;  %v8896_v10 = vshrl.u32 %v20905_v7, 16 }
 0x62c   : > { %v6573_v3 = vpop.f32.mrf.mxu0  ;;  %6764 = vmatmul.mubr.bf16.gmra.mxu0 %v18199_v58 }
 0x62d   : > { %v8655_v56 = vmax.f32 %v8479_v36, 0.0  ;;  %v8304_v33 = vmax.f32 %v21298_v12, %v6573_v3  ;;  %16140 = vmatprep.mubr.msk.bf16.mxu0 %vm4150_vm0, %v18200_v52 }
 0x62e   : > { %v6575_v38 = vpop.f32.mrf.mxu0 }
 0x62f   : > { %v8797_v17 = vpack.c.bf16 %v8655_v56, %v8654_v42  ;;  %v8480_v24 = vmax.f32 %v8128_v55, %v8304_v33  ;;  %v18205_v33 = vld [vmem:[%s18787_s11 + $0xc00] ss:$8 sps:$4 sm:$0xff]   ;;  %v8131_v38 = vmax.f32 %v21148_v59, %v21231_v49  ;;  %v8132_v59 = vmax.f32 %v21152_v63, %v21235_v5 }
 0x630   : > { %v6576_v46 = vpop.f32.mrf.mxu0  ;;  %v8928_v5 = vshrl.u32 %v20928_v47, 16  ;;  %v18243_v55 = vld [vmem:[%s18787_s11 + $0xcc0] ss:$8 sps:$4 sm:$0xff]  }
 0x631   : > { %v21392_v48 = vpack.i.b16 %v8797_v17, %v20888_v16  ;;  %v8865_v20 = vshrl.u32 %v8797_v17, 16  ;;  %v8305_v41 = vmax.f32 %v21301_v45, %v6576_v46  ;;  %v8656_v13 = vmax.f32 %v8480_v24, 0.0 }
 0x632   : > { %v6578_v3 = vpop.f32.mrf.mxu0 }
 0x633   : > { %v21396_v12 = vpack.i.b16 %v8865_v20, %v8864_v15  ;;  %v8481_v58 = vmax.f32 %v8129_v35, %v8305_v41  ;;  %v18206_v15 = vld [vmem:[%s18787_s11 + $0xc14] ss:$8 sps:$4 sm:$0xff]  }
 0x634   : > { %v6581_v16 = vpop.f32.mrf.mxu0  ;;  %6772 = vmatmul.mubr.bf16.gmra.mxu0 %v18202_v25 }
 0x635   : > { %v8657_v45 = vmax.f32 %v8481_v58, 0.0  ;;  %v8306_v54 = vmax.f32 %v21305_v51, %v6581_v16  ;;  %16141 = vmatprep.mubr.msk.bf16.mxu0 %vm4150_vm0, %v18203_v2 }
 0x636   : > { %v6583_v36 = vpop.f32.mrf.mxu0 }
 0x637   : > { %v8798_v42 = vpack.c.bf16 %v8657_v45, %v8656_v13  ;;  %v8482_v56 = vmax.f32 %v8130_v43, %v8306_v54  ;;  %v18208_v45 = vld [vmem:[%s18787_s11 + $0xc10] ss:$8 sps:$4 sm:$0xff]   ;;  %v8133_v54 = vmax.f32 %v21155_v30, %v21238_v21  ;;  %v8134_v30 = vmax.f32 %v21159_v4, %v21242_v23 }
 0x638   : > { %v6584_v53 = vpop.f32.mrf.mxu0  ;;  %v8960_v4 = vshrl.u32 %v20951_v19, 16 }
 0x639   : > { %v21415_v51 = vpack.i.b16 %v8798_v42, %v20905_v7  ;;  %v8897_v17 = vshrl.u32 %v8798_v42, 16  ;;  %v8307_v24 = vmax.f32 %v21308_v26, %v6584_v53  ;;  %v8658_v49 = vmax.f32 %v8482_v56, 0.0  ;;  %v18209_v56 = vld [vmem:[%s18787_s11 + $0xc24] ss:$8 sps:$4 sm:$0xff]  }
 0x63a   : > { %v6586_v46 = vpop.f32.mrf.mxu0 }
 0x63b   : > { %v21419_v25 = vpack.i.b16 %v8897_v17, %v8896_v10  ;;  %v8483_v41 = vmax.f32 %v8131_v38, %v8307_v24 }
 0x63c   : > { %v6589_v7 = vpop.f32.mrf.mxu0  ;;  %6780 = vmatmul.mubr.bf16.gmra.mxu0 %v18205_v33 }
 0x63d   : > { %v8659_v26 = vmax.f32 %v8483_v41, 0.0  ;;  %v8308_v2 = vmax.f32 %v21312_v34, %v6589_v7  ;;  %16142 = vmatprep.mubr.msk.bf16.mxu0 %vm4150_vm0, %v18206_v15  ;;  %v25387_v15 = vld [vmem:[#allocation37_spill] sm:$0xff] }
 0x63e   : > { %v6591_v58 = vpop.f32.mrf.mxu0 }
 0x63f   : > { %v8799_v16 = vpack.c.bf16 %v8659_v26, %v8658_v49  ;;  %v8484_v13 = vmax.f32 %v8132_v59, %v8308_v2  ;;  %v18211_v49 = vld [vmem:[%s18787_s11 + $0xc20] ss:$8 sps:$4 sm:$0xff]   ;;  %v8135_v26 = vmax.f32 %v21162_v32, %v21245_v29  ;;  %v8136_v32 = vmax.f32 %v21166_v61, %v21249_v14 }
 0x640   : > { %v6592_v63 = vpop.f32.mrf.mxu0  ;;  %v8992_v61 = vshrl.u32 %v20974_v62, 16 }
 0x641   : > { %v21438_v34 = vpack.i.b16 %v8799_v16, %v20928_v47  ;;  %v8929_v36 = vshrl.u32 %v8799_v16, 16  ;;  %v8309_v42 = vmax.f32 %v21315_v9, %v6592_v63  ;;  %v8660_v21 = vmax.f32 %v8484_v13, 0.0  ;;  %v18212_v16 = vld [vmem:[%s18787_s11 + $0xc34] ss:$8 sps:$4 sm:$0xff]   ;;  %v25376_v63 = vld [vmem:[#allocation92_spill] sm:$0xff] }
 0x642   : > { %v6594_v10 = vpop.f32.mrf.mxu0 }
 0x643   : > { %25331 = vst [vmem:[#allocation19_spill] sm:$0xff] %v21438_v34  ;;  %v21442_v53 = vpack.i.b16 %v8929_v36, %v8928_v5  ;;  %v8485_v17 = vmax.f32 %v8133_v54, %v8309_v42  ;;  %v25374_v10 = vld [vmem:[#allocation108_spill] sm:$0xff] }
 0x644   : > { %v6597_v47 = vpop.f32.mrf.mxu0  ;;  %6788 = vmatmul.mubr.bf16.gmra.mxu0 %v18208_v45 }
 0x645   : > { %25332 = vst [vmem:[#allocation44_spill] sm:$0xff] %v21442_v53  ;;  %v8661_v9 = vmax.f32 %v8485_v17, 0.0  ;;  %v8310_v24 = vmax.f32 %v21319_v0, %v6597_v47  ;;  %16143 = vmatprep.mubr.msk.bf16.mxu0 %vm4150_vm0, %v18209_v56  ;;  %v18214_v47 = vld [vmem:[%s18787_s11 + $0xc30] ss:$8 sps:$4 sm:$0xff]  }
 0x646   : > { %v6599_v46 = vpop.f32.mrf.mxu0 }
 0x647   : > { %v8800_v59 = vpack.c.bf16 %v8661_v9, %v8660_v21  ;;  %v8486_v7 = vmax.f32 %v8134_v30, %v8310_v24  ;;  %v8137_v21 = vmax.f32 %v21169_v44, %v21252_v11  ;;  %v18215_v46 = vld [vmem:[%s18787_s11 + $0xc44] ss:$8 sps:$4 sm:$0xff]  }
 0x648   : > { %v6600_v23 = vpop.f32.mrf.mxu0  ;;  %v25338_v44 = vld [vmem:[#allocation15_spill] sm:$0xff] }
 0x649   : > { %v21461_v0 = vpack.i.b16 %v8800_v59, %v20951_v19  ;;  %v8961_v2 = vshrl.u32 %v8800_v59, 16  ;;  %v8311_v58 = vmax.f32 %v21322_v60, %v6600_v23  ;;  %v8662_v29 = vmax.f32 %v8486_v7, 0.0  ;;  %v25363_v23 = vld [vmem:[#allocation71_spill] sm:$0xff] }
 0x64a   : > { %v6602_v13 = vpop.f32.mrf.mxu0 }
 0x64b   : > { %25333 = vst [vmem:[#allocation82_spill] sm:$0xff] %v21461_v0  ;;  %v21465_v5 = vpack.i.b16 %v8961_v2, %v8960_v4  ;;  %v8487_v54 = vmax.f32 %v8135_v26, %v8311_v58  ;;  %v25337_v26 = vld [vmem:[#allocation101_spill] sm:$0xff]  ;;  %v25339_v58 = vld [vmem:[#allocation14_spill] sm:$0xff] }
 0x64c   : > { %v6605_v19 = vpop.f32.mrf.mxu0  ;;  %6796 = vmatmul.mubr.bf16.gmra.mxu0 %v18211_v49  ;;  %v8138_v11 = vmax.f32 %v25338_v44, %v25337_v26 }
 0x64d   : > { %25334 = vst [vmem:[#allocation79_spill] sm:$0xff] %v21465_v5  ;;  %v8663_v60 = vmax.f32 %v8487_v54, 0.0  ;;  %v8312_v36 = vmax.f32 %v21326_v1, %v6605_v19  ;;  %16144 = vmatprep.mubr.msk.bf16.mxu0 %vm4150_vm0, %v18212_v16  ;;  %v25365_v54 = vld [vmem:[#allocation51_spill] sm:$0xff] }
 0x64e   : > { %v6607_v56 = vpop.f32.mrf.mxu0 }
 0x64f   : > { %v8801_v17 = vpack.c.bf16 %v8663_v60, %v8662_v29  ;;  %v8488_v30 = vmax.f32 %v8136_v32, %v8312_v36  ;;  %v25341_v36 = vld [vmem:[#allocation35_spill] sm:$0xff] }
 0x650   : > { %v6608_v14 = vpop.f32.mrf.mxu0  ;;  %v9024_v56 = vshrl.u32 %v25341_v36, 16 }
 0x651   : > { %v21484_v1 = vpack.i.b16 %v8801_v17, %v20974_v62  ;;  %v8993_v9 = vshrl.u32 %v8801_v17, 16  ;;  %v8313_v24 = vmax.f32 %v21329_v6, %v6608_v14  ;;  %v8664_v2 = vmax.f32 %v8488_v30, 0.0  ;;  %v25342_v30 = vld [vmem:[#allocation25_spill] sm:$0xff] }
 0x652   : > { %v6610_v59 = vpop.f32.mrf.mxu0  ;;  %v25343_v14 = vld [vmem:[#allocation109_spill] sm:$0xff] }
 0x653   : > { %25335 = vst [vmem:[#allocation122_spill] sm:$0xff] %v21484_v1  ;;  %v21488_v7 = vpack.i.b16 %v8993_v9, %v8992_v61  ;;  %v8489_v49 = vmax.f32 %v8137_v21, %v8313_v24  ;;  %v18217_v61 = vld [vmem:[%s18787_s11 + $0xc40] ss:$8 sps:$4 sm:$0xff]   ;;  %v25345_v24 = vld [vmem:[#allocation118_spill] sm:$0xff] }
 0x654   : > { %v6613_v62 = vpop.f32.mrf.mxu0  ;;  %6804 = vmatmul.mubr.bf16.gmra.mxu0 %v18214_v47  ;;  %v8139_v47 = vmax.f32 %v25343_v14, %v25342_v30  ;;  %v18218_v59 = vld [vmem:[%s18787_s11 + $0xc54] ss:$8 sps:$4 sm:$0xff]   ;;  %v18221_v14 = vld [vmem:[%s18787_s11 + $0xc64] ss:$8 sps:$4 sm:$0xff]  }
 0x655   : > { %25336 = vst [vmem:[#allocation123_spill] sm:$0xff] %v21488_v7  ;;  %v8665_v6 = vmax.f32 %v8489_v49, 0.0  ;;  %v8314_v16 = vmax.f32 %v25339_v58, %v6613_v62  ;;  %16145 = vmatprep.mubr.msk.bf16.mxu0 %vm4150_vm0, %v18215_v46  ;;  %v25349_v58 = vld [vmem:[#allocation58_spill] sm:$0xff]  ;;  %v25354_v62 = vld [vmem:[#allocation57_spill] sm:$0xff] }
 0x656   : > { %v6615_v32 = vpop.f32.mrf.mxu0 }
 0x657   : > { %v8802_v29 = vpack.c.bf16 %v8665_v6, %v8664_v2  ;;  %v8490_v60 = vmax.f32 %v8138_v11, %v8314_v16  ;;  %v25348_v6 = vld [vmem:[#allocation72_spill] sm:$0xff] }
 0x658   : > { %v6616_v17 = vpop.f32.mrf.mxu0  ;;  %v8140_v16 = vmax.f32 %v25349_v58, %v25348_v6 }
 0x659   : > { %v21507_v21 = vpack.i.b16 %v8802_v29, %v25341_v36  ;;  %v9025_v9 = vshrl.u32 %v8802_v29, 16  ;;  %v8315_v46 = vmax.f32 %v25345_v24, %v6616_v17  ;;  %v8666_v29 = vmax.f32 %v8490_v60, 0.0  ;;  %v25350_v17 = vld [vmem:[#allocation119_spill] sm:$0xff]  ;;  %v25353_v60 = vld [vmem:[#allocation69_spill] sm:$0xff] }
 0x65a   : > { %v6618_v49 = vpop.f32.mrf.mxu0 }
 0x65b   : > { %25344 = vst [vmem:[#allocation104_spill] sm:$0xff] %v21507_v21  ;;  %v21511_v26 = vpack.i.b16 %v9025_v9, %v9024_v56  ;;  %v8491_v2 = vmax.f32 %v8139_v47, %v8315_v46  ;;  %v25352_v49 = vld [vmem:[#allocation74_spill] sm:$0xff] }
 0x65c   : > { %v6621_v32 = vpop.f32.mrf.mxu0  ;;  %6812 = vmatmul.mubr.bf16.gmra.mxu0 %v18217_v61  ;;  %v9056_v6 = vshrl.u32 %v25352_v49, 16  ;;  %v18220_v61 = vld [vmem:[%s18787_s11 + $0xc50] ss:$8 sps:$4 sm:$0xff]  }
 0x65d   : > { %25346 = vst [vmem:[#allocation70_spill] sm:$0xff] %v21511_v26  ;;  %v8667_v36 = vmax.f32 %v8491_v2, 0.0  ;;  %v8316_v30 = vmax.f32 %v25350_v17, %v6621_v32  ;;  %16146 = vmatprep.mubr.msk.bf16.mxu0 %vm4150_vm0, %v18218_v59  ;;  %v8141_v2 = vmax.f32 %v25354_v62, %v25353_v60  ;;  %v25356_v17 = vld [vmem:[#allocation45_spill] sm:$0xff]  ;;  %v25360_v62 = vld [vmem:[#allocation26_spill] sm:$0xff]  ;;  %v18279_v26 = vld [vmem:[%s18787_s11 + $0xd80] ss:$8 sps:$4 sm:$0xff]  }
 0x65e   : > { %v6623_v9 = vpop.f32.mrf.mxu0  ;;  %v18276_v21 = vld [vmem:[%s18787_s11 + $0xd70] ss:$8 sps:$4 sm:$0xff]  }
 0x65f   : > { %v8803_v47 = vpack.c.bf16 %v8667_v36, %v8666_v29  ;;  %v8492_v46 = vmax.f32 %v8140_v16, %v8316_v30  ;;  %v25359_v30 = vld [vmem:[#allocation116_spill] sm:$0xff] }
 0x660   : > { %v6624_v58 = vpop.f32.mrf.mxu0  ;;  %v8142_v60 = vmax.f32 %v25360_v62, %v25359_v30  ;;  %v9088_v30 = vshrl.u32 %v25363_v23, 16 }
 0x661   : > { %v21530_v32 = vpack.i.b16 %v8803_v47, %v25352_v49  ;;  %v9057_v59 = vshrl.u32 %v8803_v47, 16  ;;  %v8317_v11 = vmax.f32 %v25356_v17, %v6624_v58  ;;  %v8668_v47 = vmax.f32 %v8492_v46, 0.0  ;;  %v25361_v17 = vld [vmem:[#allocation36_spill] sm:$0xff]  ;;  %v25364_v46 = vld [vmem:[#allocation117_spill] sm:$0xff] }
 0x662   : > { %v6626_v9 = vpop.f32.mrf.mxu0 }
 0x663   : > { %25355 = vst [vmem:[#allocation103_spill] sm:$0xff] %v21530_v32  ;;  %v21534_v19 = vpack.i.b16 %v9057_v59, %v9056_v6  ;;  %v8493_v36 = vmax.f32 %v8141_v2, %v8317_v11  ;;  %v18224_v59 = vld [vmem:[%s18787_s11 + $0xc74] ss:$8 sps:$4 sm:$0xff]   ;;  %v18273_v32 = vld [vmem:[%s18787_s11 + $0xd60] ss:$8 sps:$4 sm:$0xff]  }
 0x664   : > { %v6629_v49 = vpop.f32.mrf.mxu0  ;;  %6820 = vmatmul.mubr.bf16.gmra.mxu0 %v18220_v61  ;;  %v18223_v61 = vld [vmem:[%s18787_s11 + $0xc60] ss:$8 sps:$4 sm:$0xff]  }
 0x665   : > { %25357 = vst [vmem:[#allocation24_spill] sm:$0xff] %v21534_v19  ;;  %v8669_v58 = vmax.f32 %v8493_v36, 0.0  ;;  %v8318_v9 = vmax.f32 %v25361_v17, %v6629_v49  ;;  %16147 = vmatprep.mubr.msk.bf16.mxu0 %vm4150_vm0, %v18221_v14  ;;  %v8143_v36 = vmax.f32 %v25365_v54, %v25364_v46  ;;  %v25367_v17 = vld [vmem:[#allocation56_spill] sm:$0xff]  ;;  %v25371_v54 = vld [vmem:[#allocation46_spill] sm:$0xff] }
 0x666   : > { %v6631_v16 = vpop.f32.mrf.mxu0  ;;  %v18270_v19 = vld [vmem:[%s18787_s11 + $0xd50] ss:$8 sps:$4 sm:$0xff]  }
 0x667   : > { %v8804_v11 = vpack.c.bf16 %v8669_v58, %v8668_v47  ;;  %v8494_v2 = vmax.f32 %v8142_v60, %v8318_v9  ;;  %v25370_v9 = vld [vmem:[#allocation39_spill] sm:$0xff] }
 0x668   : > { %v6632_v62 = vpop.f32.mrf.mxu0  ;;  %v8144_v46 = vmax.f32 %v25371_v54, %v25370_v9  ;;  %v9120_v9 = vshrl.u32 %v25374_v10, 16 }
 0x669   : > { %v21553_v49 = vpack.i.b16 %v8804_v11, %v25363_v23  ;;  %v9089_v14 = vshrl.u32 %v8804_v11, 16  ;;  %v8319_v4 = vmax.f32 %v25367_v17, %v6632_v62  ;;  %v8670_v11 = vmax.f32 %v8494_v2, 0.0  ;;  %v25372_v17 = vld [vmem:[#allocation94_spill] sm:$0xff]  ;;  %v25375_v2 = vld [vmem:[#allocation63_spill] sm:$0xff] }
 0x66a   : > { %v6634_v16 = vpop.f32.mrf.mxu0 }
 0x66b   : > { %25366 = vst [vmem:[#allocation124_spill] sm:$0xff] %v21553_v49  ;;  %v21557_v45 = vpack.i.b16 %v9089_v14, %v9088_v30  ;;  %v8495_v58 = vmax.f32 %v8143_v36, %v8319_v4  ;;  %v18227_v14 = vld [vmem:[%s18787_s11 + $0xc84] ss:$8 sps:$4 sm:$0xff]   ;;  %v18267_v49 = vld [vmem:[%s18787_s11 + $0xd40] ss:$8 sps:$4 sm:$0xff]  }
 0x66c   : > { %v6637_v23 = vpop.f32.mrf.mxu0  ;;  %6828 = vmatmul.mubr.bf16.gmra.mxu0 %v18223_v61  ;;  %v18226_v61 = vld [vmem:[%s18787_s11 + $0xc70] ss:$8 sps:$4 sm:$0xff]  }
 0x66d   : > { %25368 = vst [vmem:[#allocation125_spill] sm:$0xff] %v21557_v45  ;;  %v8671_v62 = vmax.f32 %v8495_v58, 0.0  ;;  %v8320_v16 = vmax.f32 %v25372_v17, %v6637_v23  ;;  %16148 = vmatprep.mubr.msk.bf16.mxu0 %vm4150_vm0, %v18224_v59  ;;  %v8145_v58 = vmax.f32 %v25376_v63, %v25375_v2  ;;  %v25378_v17 = vld [vmem:[#allocation120_spill] sm:$0xff]  ;;  %v25383_v2 = vld [vmem:[#allocation47_spill] sm:$0xff]  ;;  %v18264_v45 = vld [vmem:[%s18787_s11 + $0xd30] ss:$8 sps:$4 sm:$0xff]  }
 0x66e   : > { %v6639_v60 = vpop.f32.mrf.mxu0 }
 0x66f   : > { %v8805_v4 = vpack.c.bf16 %v8671_v62, %v8670_v11  ;;  %v8496_v36 = vmax.f32 %v8144_v46, %v8320_v16 }
 0x670   : > { %v6640_v54 = vpop.f32.mrf.mxu0 }
 0x671   : > { %v21576_v23 = vpack.i.b16 %v8805_v4, %v25374_v10  ;;  %v9121_v59 = vshrl.u32 %v8805_v4, 16  ;;  %v8321_v42 = vmax.f32 %v25378_v17, %v6640_v54  ;;  %v8672_v4 = vmax.f32 %v8496_v36, 0.0  ;;  %v25384_v17 = vld [vmem:[#allocation121_spill] sm:$0xff]  ;;  %v18229_v10 = vld [vmem:[%s18787_s11 + $0xc80] ss:$8 sps:$4 sm:$0xff]   ;;  %v25386_v36 = vld [vmem:[#allocation102_spill] sm:$0xff] }
 0x672   : > { %v6642_v60 = vpop.f32.mrf.mxu0 }
 0x673   : > { %25377 = vst [vmem:[#allocation49_spill] sm:$0xff] %v21576_v23  ;;  %v21580_v41 = vpack.i.b16 %v9121_v59, %v9120_v9  ;;  %v8497_v62 = vmax.f32 %v8145_v58, %v8321_v42  ;;  %v25382_v9 = vld [vmem:[#allocation93_spill] sm:$0xff]  ;;  %v25385_v58 = vld [vmem:[#allocation78_spill] sm:$0xff]  ;;  %v18261_v23 = vld [vmem:[%s18787_s11 + $0xd20] ss:$8 sps:$4 sm:$0xff]  }
 0x674   : > { %v6645_v16 = vpop.f32.mrf.mxu0  ;;  %6836 = vmatmul.mubr.bf16.gmra.mxu0 %v18226_v61  ;;  %v8146_v59 = vmax.f32 %v25383_v2, %v25382_v9  ;;  %v9152_v61 = vshrl.u32 %v25385_v58, 16  ;;  %v25389_v9 = vld [vmem:[#allocation85_spill] sm:$0xff] }
 0x675   : > { %25379 = vst [vmem:[#allocation73_spill] sm:$0xff] %v21580_v41  ;;  %v8673_v54 = vmax.f32 %v8497_v62, 0.0  ;;  %16149 = vmatprep.mubr.msk.bf16.mxu0 %vm4150_vm0, %v18227_v14  ;;  %v8322_v60 = vmax.f32 %v25384_v17, %v6645_v16  ;;  %v8147_v62 = vmax.f32 %v25387_v15, %v25386_v36  ;;  %v18230_v16 = vld [vmem:[%s18787_s11 + $0xc94] ss:$8 sps:$4 sm:$0xff]   ;;  %v18258_v41 = vld [vmem:[%s18787_s11 + $0xd10] ss:$8 sps:$4 sm:$0xff]  }
 0x676   : > { %v6647_v46 = vpop.f32.mrf.mxu0 }
 0x677   : > { %v8806_v42 = vpack.c.bf16 %v8673_v54, %v8672_v4  ;;  %v8498_v38 = vmax.f32 %v8146_v59, %v8322_v60  ;;  %v18232_v54 = vld [vmem:[%s18787_s11 + $0xc90] ss:$8 sps:$4 sm:$0xff]  }
 0x678   : > { %v6648_v33 = vpop.f32.mrf.mxu0 }
 0x679   : > { %v21599_v14 = vpack.i.b16 %v8806_v42, %v25385_v58  ;;  %v9153_v20 = vshrl.u32 %v8806_v42, 16  ;;  %v8323_v2 = vmax.f32 %v25389_v9, %v6648_v33 }
 0x67a   : > { %v6650_v46 = vpop.f32.mrf.mxu0 }
 0x67b   : > { %25388 = vst [vmem:[#allocation96_spill] sm:$0xff] %v21599_v14  ;;  %v21603_v17 = vpack.i.b16 %v9153_v20, %v9152_v61  ;;  %v8499_v60 = vmax.f32 %v8147_v62, %v8323_v2  ;;  %v8674_v20 = vmax.f32 %v8498_v38, 0.0  ;;  %v18234_v62 = vld [vmem:[%s18787_s11 + $0xca4] ss:$8 sps:$4 sm:$0xff]   ;;  %v18249_v38 = vld [vmem:[%s18787_s11 + $0xce0] ss:$8 sps:$4 sm:$0xff]  }
 0x67c   : > { %v21609_v15 = vpop.f32.mrf.mxu0  ;;  %6844 = vmatmul.mubr.bf16.gmra.mxu0 %v18229_v10  ;;  %v25393_v2 = vld [vmem:[#allocation84_spill] sm:$0xff] }
 0x67d   : > { %25390 = vst [vmem:[#allocation55_spill] sm:$0xff] %v21603_v17  ;;  %16150 = vmatprep.mubr.msk.bf16.mxu0 %vm4150_vm0, %v18230_v16  ;;  %v8675_v61 = vmax.f32 %v8499_v60, 0.0  ;;  %v9184_v10 = vshrl.u32 %v25393_v2, 16  ;;  %v25394_v16 = vld [vmem:[#allocation33_spill] sm:$0xff]  ;;  %v18255_v14 = vld [vmem:[%s18787_s11 + $0xd00] ss:$8 sps:$4 sm:$0xff]  }
 0x67e   : > { %v6655_v36 = vpop.f32.mrf.mxu0  ;;  %v18252_v17 = vld [vmem:[%s18787_s11 + $0xcf0] ss:$8 sps:$4 sm:$0xff]  }
 0x67f   : > { %v8807_v9 = vpack.c.bf16 %v8675_v61, %v8674_v20  ;;  %v25395_v61 = vld [vmem:[#allocation100_spill] sm:$0xff]  ;;  %v18246_v36 = vld [vmem:[%s18787_s11 + $0xcd0] ss:$8 sps:$4 sm:$0xff]  }
 0x680   : > { %v21616_v46 = vpop.f32.mrf.mxu0 }
 0x681   : > { %v21622_v59 = vpack.i.b16 %v8807_v9, %v25393_v2  ;;  %v9185_v42 = vshrl.u32 %v8807_v9, 16  ;;  %v18237_v2 = vld [vmem:[%s18787_s11 + $0xca0] ss:$8 sps:$4 sm:$0xff]  }
 0x682   : > { %v6658_v11 = vpop.f32.mrf.mxu0 }
 0x683   : > { %v21624_v33 = vpack.i.b16 %v9185_v42, %v9184_v10  ;;  %v18238_v10 = vld [vmem:[%s18787_s11 + $0xcb4] ss:$8 sps:$4 sm:$0xff]  }
 0x684   : > { %v21630_v20 = vpop.f32.mrf.mxu0  ;;  %6852 = vmatmul.mubr.bf16.gmra.mxu0 %v18232_v54 }
 0x685   : > { %16151 = vmatprep.mubr.msk.bf16.mxu0 %vm4150_vm0, %v18234_v62  ;;  %v18286_v62 = vld [vmem:[%s24546_s2 + $0x48] sm:$0xff]  }
 0x686   : > { %v6663_v42 = vpop.f32.mrf.mxu0  ;;  %16670 = vmatprep.subr.bf16.mxu1 %v18286_v62  ;;  %v18244_v62 = vld [vmem:[%s18787_s11 + $0xcd4] ss:$8 sps:$4 sm:$0xff]  }
 0x687   : > { %v18240_v42 = vld [vmem:[%s18787_s11 + $0xcb0] ss:$8 sps:$4 sm:$0xff]  }
 0x688   : > { %v21637_v9 = vpop.f32.mrf.mxu0 }
 0x68a   : > { %v6666_v43 = vpop.f32.mrf.mxu0 }
 0x68b   : > { %v18287_v43 = vld [vmem:[%s24546_s2 + $0x8] sm:$0xff]  }
 0x68c   : > { %v21641_v35 = vpop.f32.mrf.mxu0  ;;  %6860 = vmatmul.mubr.bf16.gmra.mxu0 %v18237_v2  ;;  %16671 = vmatpush3.bf16.msra.mxu1 %v18287_v43 }
 0x68d   : > { %16152 = vmatprep.mubr.msk.bf16.mxu0 %vm4150_vm0, %v18238_v10 }
 0x68e   : > { %v6671_v54 = vpop.f32.mrf.mxu0 }
 0x690   : > { %v21647_v3 = vpop.f32.mrf.mxu0 }
 0x692   : > { %v6674_v2 = vpop.f32.mrf.mxu0 }
 0x694   : > { %v21654_v10 = vpop.f32.mrf.mxu0  ;;  %6868 = vmatmul.mubr.bf16.gmra.mxu0 %v18240_v42  ;;  %v18247_v42 = vld [vmem:[%s18787_s11 + $0xce4] ss:$8 sps:$4 sm:$0xff]  }
 0x695   : > { %16153 = vmatprep.mubr.msk.bf16.mxu0 %vm4150_vm0, %v18241_v31 }
 0x696   : > { %v6679_v54 = vpop.f32.mrf.mxu0 }
 0x698   : > { %v21657_v11 = vpop.f32.mrf.mxu0 }
 0x69a   : > { %v6682_v50 = vpop.f32.mrf.mxu0 }
 0x69c   : > { %v21661_v52 = vpop.f32.mrf.mxu0  ;;  %6876 = vmatmul.mubr.bf16.gmra.mxu0 %v18243_v55  ;;  %v18250_v55 = vld [vmem:[%s18787_s11 + $0xcf4] ss:$8 sps:$4 sm:$0xff]  }
 0x69d   : > { %16154 = vmatprep.mubr.msk.bf16.mxu0 %vm4150_vm0, %v18244_v62 }
 0x69e   : > { %v6687_v2 = vpop.f32.mrf.mxu0 }
 0x6a0   : > { %v21664_v43 = vpop.f32.mrf.mxu0 }
 0x6a1   : > { %25396 = vst [vmem:[#allocation95_spill] sm:$0xff] %v21664_v43 }
 0x6a2   : > { %v6690_v31 = vpop.f32.mrf.mxu0 }
 0x6a4   : > { %v21668_v54 = vpop.f32.mrf.mxu0  ;;  %6884 = vmatmul.mubr.bf16.gmra.mxu0 %v18246_v36  ;;  %v18253_v36 = vld [vmem:[%s18787_s11 + $0xd04] ss:$8 sps:$4 sm:$0xff]  }
 0x6a5   : > { %25397 = vst [vmem:[#allocation126_spill] sm:$0xff] %v21668_v54  ;;  %16155 = vmatprep.mubr.msk.bf16.mxu0 %vm4150_vm0, %v18247_v42  ;;  %v9209_v54 = vlaneseq }
 0x6a6   : > { %v6695_v60 = vpop.f32.mrf.mxu0 }
 0x6a7   : > { %v21820_v43 = vshrl.u32 %v9209_v54, 7  ;;  %v25431_v54 = vld [vmem:[#allocation88_spill] sm:$0xff] }
 0x6a8   : > { %v21671_v50 = vpop.f32.mrf.mxu0 }
 0x6a9   : > { %25398 = vst [vmem:[#allocation127_spill] sm:$0xff] %v21671_v50 }
 0x6aa   : > { %v6698_v62 = vpop.f32.mrf.mxu0 }
 0x6ac   : > { %v21675_v2 = vpop.f32.mrf.mxu0  ;;  %6892 = vmatmul.mubr.bf16.gmra.mxu0 %v18249_v38  ;;  %v18256_v38 = vld [vmem:[%s18787_s11 + $0xd14] ss:$8 sps:$4 sm:$0xff]  }
 0x6ad   : > { %25399 = vst [vmem:[#allocation18_spill] sm:$0xff] %v21675_v2  ;;  %16156 = vmatprep.mubr.msk.bf16.mxu0 %vm4150_vm0, %v18250_v55 }
 0x6ae   : > { %v6703_v58 = vpop.f32.mrf.mxu0 }
 0x6b0   : > { %v21678_v31 = vpop.f32.mrf.mxu0 }
 0x6b1   : > { %25400 = vst [vmem:[#allocation43_spill] sm:$0xff] %v21678_v31 }
 0x6b2   : > { %v6706_v60 = vpop.f32.mrf.mxu0 }
 0x6b4   : > { %v21682_v42 = vpop.f32.mrf.mxu0  ;;  %6900 = vmatmul.mubr.bf16.gmra.mxu0 %v18252_v17  ;;  %v18259_v17 = vld [vmem:[%s18787_s11 + $0xd24] ss:$8 sps:$4 sm:$0xff]  }
 0x6b5   : > { %25401 = vst [vmem:[#allocation29_spill] sm:$0xff] %v21682_v42  ;;  %16157 = vmatprep.mubr.msk.bf16.mxu0 %vm4150_vm0, %v18253_v36 }
 0x6b6   : > { %v6711_v4 = vpop.f32.mrf.mxu0 }
 0x6b8   : > { %v21685_v62 = vpop.f32.mrf.mxu0 }
 0x6b9   : > { %25402 = vst [vmem:[#allocation54_spill] sm:$0xff] %v21685_v62 }
 0x6ba   : > { %v6714_v58 = vpop.f32.mrf.mxu0 }
 0x6bc   : > { %v21689_v55 = vpop.f32.mrf.mxu0  ;;  %6908 = vmatmul.mubr.bf16.gmra.mxu0 %v18255_v14  ;;  %v18262_v14 = vld [vmem:[%s18787_s11 + $0xd34] ss:$8 sps:$4 sm:$0xff]  }
 0x6bd   : > { %25403 = vst [vmem:[#allocation128_spill] sm:$0xff] %v21689_v55  ;;  %16158 = vmatprep.mubr.msk.bf16.mxu0 %vm4150_vm0, %v18256_v38 }
 0x6be   : > { %v6719_v63 = vpop.f32.mrf.mxu0 }
 0x6c0   : > { %v21692_v60 = vpop.f32.mrf.mxu0 }
 0x6c1   : > { %25404 = vst [vmem:[#allocation129_spill] sm:$0xff] %v21692_v60  ;;  %v18283_v60 = vld [vmem:[%s18787_s11 + $0xda4] ss:$8 sps:$4 sm:$0xff]  }
 0x6c2   : > { %v6722_v4 = vpop.f32.mrf.mxu0 }
 0x6c4   : > { %v21696_v36 = vpop.f32.mrf.mxu0  ;;  %6916 = vmatmul.mubr.bf16.gmra.mxu0 %v18258_v41  ;;  %v18265_v41 = vld [vmem:[%s18787_s11 + $0xd44] ss:$8 sps:$4 sm:$0xff]  }
 0x6c5   : > { %25405 = vst [vmem:[#allocation12_spill] sm:$0xff] %v21696_v36  ;;  %16159 = vmatprep.mubr.msk.bf16.mxu0 %vm4150_vm0, %v18259_v17 }
 0x6c6   : > { %v6727_v47 = vpop.f32.mrf.mxu0 }
 0x6c8   : > { %v21699_v58 = vpop.f32.mrf.mxu0 }
 0x6c9   : > { %25406 = vst [vmem:[#allocation106_spill] sm:$0xff] %v21699_v58 }
 0x6ca   : > { %v6730_v63 = vpop.f32.mrf.mxu0 }
 0x6cc   : > { %v21703_v38 = vpop.f32.mrf.mxu0  ;;  %6924 = vmatmul.mubr.bf16.gmra.mxu0 %v18261_v23  ;;  %v18268_v23 = vld [vmem:[%s18787_s11 + $0xd54] ss:$8 sps:$4 sm:$0xff]  }
 0x6cd   : > { %16160 = vmatprep.mubr.msk.bf16.mxu0 %vm4150_vm0, %v18262_v14 }
 0x6ce   : > { %v6735_v30 = vpop.f32.mrf.mxu0 }
 0x6d0   : > { %v21706_v4 = vpop.f32.mrf.mxu0 }
 0x6d2   : > { %v6738_v47 = vpop.f32.mrf.mxu0 }
 0x6d4   : > { %v21710_v17 = vpop.f32.mrf.mxu0  ;;  %6932 = vmatmul.mubr.bf16.gmra.mxu0 %v18264_v45  ;;  %v18271_v45 = vld [vmem:[%s18787_s11 + $0xd64] ss:$8 sps:$4 sm:$0xff]  }
 0x6d5   : > { %16161 = vmatprep.mubr.msk.bf16.mxu0 %vm4150_vm0, %v18265_v41 }
 0x6d6   : > { %v6743_v29 = vpop.f32.mrf.mxu0 }
 0x6d8   : > { %v21713_v63 = vpop.f32.mrf.mxu0 }
 0x6da   : > { %v6746_v30 = vpop.f32.mrf.mxu0 }
 0x6dc   : > { %v21717_v14 = vpop.f32.mrf.mxu0  ;;  %6940 = vmatmul.mubr.bf16.gmra.mxu0 %v18267_v49  ;;  %v18274_v49 = vld [vmem:[%s18787_s11 + $0xd74] ss:$8 sps:$4 sm:$0xff]  }
 0x6dd   : > { %16162 = vmatprep.mubr.msk.bf16.mxu0 %vm4150_vm0, %v18268_v23 }
 0x6de   : > { %v6751_v6 = vpop.f32.mrf.mxu0 }
 0x6e0   : > { %v21720_v47 = vpop.f32.mrf.mxu0 }
 0x6e2   : > { %v6754_v29 = vpop.f32.mrf.mxu0 }
 0x6e4   : > { %v21724_v41 = vpop.f32.mrf.mxu0  ;;  %6948 = vmatmul.mubr.bf16.gmra.mxu0 %v18270_v19  ;;  %v18277_v19 = vld [vmem:[%s18787_s11 + $0xd84] ss:$8 sps:$4 sm:$0xff]  }
 0x6e5   : > { %16163 = vmatprep.mubr.msk.bf16.mxu0 %vm4150_vm0, %v18271_v45 }
 0x6e6   : > { %v6759_v24 = vpop.f32.mrf.mxu0 }
 0x6e8   : > { %v21727_v30 = vpop.f32.mrf.mxu0 }
 0x6ea   : > { %v6762_v6 = vpop.f32.mrf.mxu0 }
 0x6ec   : > { %v21731_v23 = vpop.f32.mrf.mxu0  ;;  %6956 = vmatmul.mubr.bf16.gmra.mxu0 %v18273_v32  ;;  %v18280_v32 = vld [vmem:[%s18787_s11 + $0xd94] ss:$8 sps:$4 sm:$0xff]  }
 0x6ed   : > { %16164 = vmatprep.mubr.msk.bf16.mxu0 %vm4150_vm0, %v18274_v49 }
 0x6ee   : > { %v6767_v44 = vpop.f32.mrf.mxu0 }
 0x6f0   : > { %v21734_v29 = vpop.f32.mrf.mxu0 }
 0x6f2   : > { %v6770_v24 = vpop.f32.mrf.mxu0 }
 0x6f3   : > { %v18282_v24 = vld [vmem:[%s18787_s11 + $0xd90] ss:$8 sps:$4 sm:$0xff]  }
 0x6f4   : > { %v21738_v45 = vpop.f32.mrf.mxu0  ;;  %6964 = vmatmul.mubr.bf16.gmra.mxu0 %v18276_v21 }
 0x6f5   : > { %16165 = vmatprep.mubr.msk.bf16.mxu0 %vm4150_vm0, %v18277_v19 }
 0x6f6   : > { %v6775_v56 = vpop.f32.mrf.mxu0 }
 0x6f8   : > { %v21741_v6 = vpop.f32.mrf.mxu0 }
 0x6fa   : > { %v6778_v49 = vpop.f32.mrf.mxu0 }
 0x6fb   : > { %v18285_v49 = vld [vmem:[%s18787_s11 + $0xda0] ss:$8 sps:$4 sm:$0xff]   ;;  %s18630_s11 = sshll.u32 %s18694_s19, 4  ;;  %s18631_s11 = int_to_ptr.vmem [resolvable:$false] %s18630_s11 }
 0x6fc   : > { %v21745_v44 = vpop.f32.mrf.mxu0  ;;  %6972 = vmatmul.mubr.bf16.gmra.mxu0 %v18279_v26  ;;  %s18632_s8 = scalar_lea.vmem %s18631_s11, 256 }
 0x6fd   : > { %25407 = vst [vmem:[#allocation17_spill] sm:$0xff] %v21745_v44  ;;  %16166 = vmatprep.mubr.msk.bf16.mxu0 %vm4150_vm0, %v18280_v32 }
 0x6fe   : > { %v6783_v58 = vpop.f32.mrf.mxu0 }
 0x700   : > { %v21748_v36 = vpop.f32.mrf.mxu0 }
 0x701   : > { %25408 = vst [vmem:[#allocation105_spill] sm:$0xff] %v21748_v36 }
 0x702   : > { %v6786_v21 = vpop.f32.mrf.mxu0 }
 0x704   : > { %v21752_v13 = vpop.f32.mrf.mxu0  ;;  %6980 = vmatmul.mubr.bf16.gmra.mxu0 %v18282_v24 }
 0x705   : > { %25409 = vst [vmem:[#allocation80_spill] sm:$0xff] %v21752_v13  ;;  %16167 = vmatprep.mubr.msk.bf16.mxu0 %vm4150_vm0, %v18283_v60  ;;  %v18288_v60 = vld [vmem:[%s24546_s2 + $0x40] sm:$0xff]  }
 0x706   : > { %v6791_v56 = vpop.f32.mrf.mxu0  ;;  %16672 = vmatprep.subr.bf16.mxu1 %v18288_v60 }
 0x708   : > { %v21755_v19 = vpop.f32.mrf.mxu0 }
 0x709   : > { %25410 = vst [vmem:[#allocation130_spill] sm:$0xff] %v21755_v19 }
 0x70a   : > { %v6794_v7 = vpop.f32.mrf.mxu0 }
 0x70b   : > { %v18289_v7 = vld [vmem:[%s24546_s2] sm:$0xff]  }
 0x70c   : > { %v21758_v55 = vpop.f32.mrf.mxu0  ;;  %6988 = vmatmul.mubr.bf16.gmra.mxu0 %v18285_v49  ;;  %16673 = vmatpush3.bf16.msra.mxu1 %v18289_v7 }
 0x70d   : > { %25411 = vst [vmem:[#allocation131_spill] sm:$0xff] %v21758_v55 }
 0x70e   : > { %v6799_v26 = vpop.f32.mrf.mxu0 }
 0x710   : > { %v21760_v58 = vpop.f32.mrf.mxu0 }
 0x711   : > { %25412 = vst [vmem:[#allocation38_spill] sm:$0xff] %v21760_v58 }
 0x712   : > { %v6802_v32 = vpop.f32.mrf.mxu0 }
 0x714   : > { %v21762_v39 = vpop.f32.mrf.mxu0 }
 0x715   : > { %25413 = vst [vmem:[#allocation97_spill] sm:$0xff] %v21762_v39 }
 0x716   : > { %v6807_v21 = vpop.f32.mrf.mxu0 }
 0x718   : > { %v21764_v1 = vpop.f32.mrf.mxu0 }
 0x719   : > { %25414 = vst [vmem:[#allocation132_spill] sm:$0xff] %v21764_v1 }
 0x71a   : > { %v6810_v24 = vpop.f32.mrf.mxu0 }
 0x71c   : > { %v21772_v56 = vpop.f32.mrf.mxu0 }
 0x71d   : > { %25415 = vst [vmem:[#allocation83_spill] sm:$0xff] %v21772_v56 }
 0x71e   : > { %v6815_v49 = vpop.f32.mrf.mxu0 }
 0x720   : > { %v21774_v26 = vpop.f32.mrf.mxu0 }
 0x721   : > { %25416 = vst [vmem:[#allocation98_spill] sm:$0xff] %v21774_v26 }
 0x722   : > { %v6818_v32 = vpop.f32.mrf.mxu0 }
 0x724   : > { %v6821_v21 = vpop.f32.mrf.mxu0 }
 0x726   : > { %v6823_v39 = vpop.f32.mrf.mxu0 }
 0x728   : > { %v6824_v1 = vpop.f32.mrf.mxu0 }
 0x72a   : > { %v6826_v24 = vpop.f32.mrf.mxu0 }
 0x72c   : > { %v21776_v62 = vpop.f32.mrf.mxu0 }
 0x72e   : > { %v6831_v58 = vpop.f32.mrf.mxu0 }
 0x730   : > { %v21778_v42 = vpop.f32.mrf.mxu0 }
 0x732   : > { %v6834_v55 = vpop.f32.mrf.mxu0 }
 0x734   : > { %v21780_v31 = vpop.f32.mrf.mxu0 }
 0x736   : > { %v6839_v19 = vpop.f32.mrf.mxu0 }
 0x738   : > { %v21782_v56 = vpop.f32.mrf.mxu0 }
 0x73a   : > { %v6842_v60 = vpop.f32.mrf.mxu0 }
 0x73c   : > { %v21784_v7 = vpop.f32.mrf.mxu0 }
 0x73e   : > { %v6847_v49 = vpop.f32.mrf.mxu0 }
 0x740   : > { %v21786_v32 = vpop.f32.mrf.mxu0 }
 0x742   : > { %v6850_v39 = vpop.f32.mrf.mxu0 }
 0x744   : > { %v21788_v26 = vpop.f32.mrf.mxu0 }
 0x746   : > { %v6855_v24 = vpop.f32.mrf.mxu0 }
 0x748   : > { %v21790_v8 = vpop.f32.mrf.mxu0 }
 0x74a   : > { %v6858_v58 = vpop.f32.mrf.mxu0 }
 0x74c   : > { %v21792_v0 = vpop.f32.mrf.mxu0 }
 0x74e   : > { %v6863_v55 = vpop.f32.mrf.mxu0 }
 0x750   : > { %v21794_v28 = vpop.f32.mrf.mxu0 }
 0x751   : > { %25417 = vst [vmem:[#allocation77_spill] sm:$0xff] %v21794_v28 }
 0x752   : > { %v6866_v19 = vpop.f32.mrf.mxu0 }
 0x754   : > { %v21796_v5 = vpop.f32.mrf.mxu0 }
 0x755   : > { %25418 = vst [vmem:[#allocation68_spill] sm:$0xff] %v21796_v5 }
 0x756   : > { %v6871_v60 = vpop.f32.mrf.mxu0 }
 0x758   : > { %v21798_v2 = vpop.f32.mrf.mxu0 }
 0x759   : > { %25419 = vst [vmem:[#allocation101_spill] sm:$0xff] %v21798_v2 }
 0x75a   : > { %v6874_v49 = vpop.f32.mrf.mxu0 }
 0x75c   : > { %v21800_v13 = vpop.f32.mrf.mxu0 }
 0x75d   : > { %25420 = vst [vmem:[#allocation15_spill] sm:$0xff] %v21800_v13 }
 0x75e   : > { %v6879_v39 = vpop.f32.mrf.mxu0 }
 0x760   : > { %v21802_v50 = vpop.f32.mrf.mxu0 }
 0x761   : > { %25421 = vst [vmem:[#allocation14_spill] sm:$0xff] %v21802_v50 }
 0x762   : > { %v6882_v24 = vpop.f32.mrf.mxu0 }
 0x763   : > { %v8168_v24 = vmax.f32 %v21703_v38, %v6821_v21  ;;  %v25430_v38 = vld [vmem:[#allocation65_spill] sm:$0xff] }
 0x764   : > { %v21804_v36 = vpop.f32.mrf.mxu0  ;;  %v9193_v21 = vshrl.u32 %v25430_v38, 16 }
 0x765   : > { %25422 = vst [vmem:[#allocation35_spill] sm:$0xff] %v21804_v36  ;;  %v25428_v36 = vld [vmem:[#allocation5_spill] sm:$0xff] }
 0x766   : > { %v6887_v58 = vpop.f32.mrf.mxu0 }
 0x768   : > { %v21806_v37 = vpop.f32.mrf.mxu0 }
 0x769   : > { %25423 = vst [vmem:[#allocation25_spill] sm:$0xff] %v21806_v37 }
 0x76a   : > { %v6890_v55 = vpop.f32.mrf.mxu0 }
 0x76c   : > { %v21808_v34 = vpop.f32.mrf.mxu0 }
 0x76d   : > { %25424 = vst [vmem:[#allocation109_spill] sm:$0xff] %v21808_v34  ;;  %v8169_v34 = vmax.f32 %v21706_v4, %v6824_v1  ;;  %v8148_v1 = vmax.f32 %v21609_v15, %v21710_v17  ;;  %v25433_v15 = vld [vmem:[#allocation42_spill] sm:$0xff] }
 0x76e   : > { %v6895_v19 = vpop.f32.mrf.mxu0 }
 0x76f   : > { %v25429_v19 = vld [vmem:[#allocation6_spill] sm:$0xff] }
 0x770   : > { %v21810_v57 = vpop.f32.mrf.mxu0 }
 0x771   : > { %25425 = vst [vmem:[#allocation118_spill] sm:$0xff] %v21810_v57  ;;  %v18689_v57 = vmov 1983009808  }
 0x772   : > { %v6898_v60 = vpop.f32.mrf.mxu0 }
 0x773   : > { %v9207_v60 = vunpack.c.l.s4 %v18689_v57  ;;  %v8149_v57 = vmax.f32 %v21616_v46, %v21713_v63  ;;  %v25434_v63 = vcombine.low %v21622_v59, %v25394_v16 }
 0x774   : > { %v21812_v2 = vpop.f32.mrf.mxu0 }
 0x775   : > { %25426 = vst [vmem:[#allocation72_spill] sm:$0xff] %v21812_v2  ;;  %v9208_v28 = vunpack.c.0.s8 %v9207_v60  ;;  %v25436_v60 = vcombine.high %v21622_v59, %v25394_v16  ;;  %v8150_v59 = vmax.f32 %v21630_v20, %v21717_v14 }
 0x776   : > { %v6903_v49 = vpop.f32.mrf.mxu0 }
 0x778   : > { %v21814_v13 = vpop.f32.mrf.mxu0 }
 0x779   : > { %25427 = vst [vmem:[#allocation58_spill] sm:$0xff] %v21814_v13 }
 0x77a   : > { %v6906_v39 = vpop.f32.mrf.mxu0 }
 0x77c   : > { %v6909_v50 = vpop.f32.mrf.mxu0 }
 0x77d   : > { %v8344_v58 = vmax.f32 %v6909_v50, %v25428_v36 }
 0x77e   : > { %v6911_v53 = vpop.f32.mrf.mxu0 }
 0x77f   : > { %v8520_v37 = vmax.f32 %v8168_v24, %v8344_v58  ;;  %v25432_v24 = vld [vmem:[#allocation89_spill] sm:$0xff] }
 0x780   : > { %v6912_v55 = vpop.f32.mrf.mxu0 }
 0x781   : > { %v8345_v5 = vmax.f32 %v6912_v55, %v25429_v19  ;;  %v8696_v13 = vmax.f32 %v8520_v37, 0.0 }
 0x782   : > { %v6914_v2 = vpop.f32.mrf.mxu0 }
 0x783   : > { %v8521_v49 = vmax.f32 %v8169_v34, %v8345_v5  ;;  %v8873_v2 = vshrl.u32 %v25431_v54, 16 }
 0x784   : > { %v6917_v44 = vpop.f32.mrf.mxu0 }
 0x785   : > { %v8697_v39 = vmax.f32 %v8521_v49, 0.0  ;;  %v8324_v50 = vmax.f32 %v21776_v62, %v6917_v44  ;;  %v8905_v62 = vshrl.u32 %v25432_v24, 16 }
 0x786   : > { %v6919_v53 = vpop.f32.mrf.mxu0 }
 0x787   : > { %v8818_v36 = vpack.c.bf16 %v8697_v39, %v8696_v13  ;;  %v21833_v13 = vsub.s32 %v9208_v28, %v21820_v43  ;;  %v8500_v44 = vmax.f32 %v8148_v1, %v8324_v50  ;;  %v25438_v39 = vcombine.low %v21624_v33, %v25395_v61 }
 0x788   : > { %v6920_v4 = vpop.f32.mrf.mxu0 }
 0x789   : > { %v9190_v34 = vpack.i.b16 %v25430_v38, %v8818_v36  ;;  %v9192_v37 = vshrl.u32 %v8818_v36, 16  ;;  %v8325_v5 = vmax.f32 %v21778_v42, %v6920_v4  ;;  %v21841_v42 = vrot.slane %v25434_v63, %v21833_v13  ;;  %v25442_v38 = vld [vmem:[#allocation22_spill] sm:$0xff] }
 0x78a   : > { %v6922_v58 = vpop.f32.mrf.mxu0  ;;  %v21847_v28 = vrot.slane %v25436_v60, %v21833_v13  ;;  %v21853_v50 = vrot.slane %v25438_v39, %v21833_v13  ;;  %v8676_v16 = vmax.f32 %v8500_v44, 0.0  ;;  %v25444_v39 = vcombine.low %v21396_v12, %v20923_v27 }
 0x78b   : > { %v9194_v55 = vpack.i.b16 %v9193_v21, %v9192_v37  ;;  %v10564_v17 = vcombine.low %v25433_v15, %v9190_v34  ;;  %v10565_v19 = vcombine.high %v25433_v15, %v9190_v34  ;;  %v8501_v46 = vmax.f32 %v8149_v57, %v8325_v5  ;;  %25435 = vst [vmem:[#allocation119_spill] sm:$0xff] %v21841_v42 }
 0x78c   : > { %25437 = vst [vmem:[#allocation74_spill] sm:$0xff] %v21847_v28  ;;  %v6925_v49 = vpop.f32.mrf.mxu0  ;;  %25439 = vst [vmem:[#allocation69_spill] sm:$0xff] %v21853_v50  ;;  %v18690_v37 = vmov 1934713408  }
 0x78d   : > { %v21856_v53 = vrot.slane %v10564_v17, %v21833_v13  ;;  %v21859_v36 = vrot.slane %v10565_v19, %v21833_v13  ;;  %v10632_v21 = vcombine.low %v25442_v38, %v9194_v55  ;;  %v10633_v1 = vcombine.high %v25442_v38, %v9194_v55 }
 0x78e   : > { %v8677_v4 = vmax.f32 %v8501_v46, 0.0  ;;  %v8326_v57 = vmax.f32 %v21780_v31, %v6925_v49  ;;  %v6927_v34 = vpop.f32.mrf.mxu0  ;;  %v9239_v5 = vunpack.c.l.s4 %v18690_v37  ;;  %v8151_v55 = vmax.f32 %v21637_v9, %v21720_v47  ;;  %v25447_v37 = vld [vmem:[#allocation110_spill] sm:$0xff]  ;;  %v25470_v31 = vld [vmem:[#allocation44_spill] sm:$0xff] }
 0x78f   : > { %25440 = vst [vmem:[#allocation57_spill] sm:$0xff] %v21856_v53  ;;  %25441 = vst [vmem:[#allocation45_spill] sm:$0xff] %v21859_v36  ;;  %v21867_v58 = vrot.slane %v10632_v21, %v21833_v13  ;;  %v9296_v38 = vrot.slane %v25444_v39, %v21833_v13  ;;  %v25445_v21 = vcombine.low %v21392_v48, %v20916_v18  ;;  %v25449_v39 = vld [vmem:[#allocation111_spill] sm:$0xff]  ;;  %v25530_v53 = vld [vmem:[#allocation129_spill] sm:$0xff] }
 0x790   : > { %v8808_v20 = vpack.c.bf16 %v8677_v4, %v8676_v16  ;;  %v6928_v14 = vpop.f32.mrf.mxu0  ;;  %v8502_v19 = vmax.f32 %v8150_v59, %v8326_v57  ;;  %v9240_v16 = vunpack.c.0.s8 %v9239_v5  ;;  %v25446_v4 = vcombine.high %v21396_v12, %v20923_v27 }
 0x791   : > { %25443 = vst [vmem:[#allocation116_spill] sm:$0xff] %v21867_v58  ;;  %v8327_v46 = vmax.f32 %v21782_v56, %v6928_v14  ;;  %v9228_v56 = vrot.slane %v25445_v21, %v21833_v13  ;;  %v8152_v27 = vmax.f32 %v21641_v35, %v21724_v41  ;;  %v25471_v41 = vld [vmem:[#allocation31_spill] sm:$0xff] }
 0x792   : > { %v8870_v49 = vpack.i.b16 %v25431_v54, %v8808_v20  ;;  %v8872_v9 = vshrl.u32 %v8808_v20, 16  ;;  %v6930_v47 = vpop.f32.mrf.mxu0  ;;  %v21897_v57 = vrot.slane %v25446_v4, %v21833_v13  ;;  %v21900_v54 = vrot.slane %v10633_v1, %v21833_v13 }
 0x793   : > { %v8503_v59 = vmax.f32 %v8151_v55, %v8327_v46  ;;  %v25448_v55 = vcombine.high %v21624_v33, %v25395_v61  ;;  %v8678_v12 = vmax.f32 %v8502_v19, 0.0  ;;  %v21919_v61 = vsub.s32 %v9240_v16, %v21820_v43 }
 0x794   : > { %v8874_v34 = vpack.i.b16 %v8873_v2, %v8872_v9  ;;  %v9204_v20 = vcombine.low %v25447_v37, %v8870_v49  ;;  %v9205_v14 = vcombine.high %v25447_v37, %v8870_v49  ;;  %v6933_v47 = vpop.f32.mrf.mxu0  ;;  %v8153_v2 = vmax.f32 %v21647_v3, %v21727_v30 }
 0x795   : > { %v21908_v5 = vrot.slane %v25448_v55, %v21833_v13  ;;  %v8679_v46 = vmax.f32 %v8503_v59, 0.0  ;;  %v8328_v1 = vmax.f32 %v21784_v7, %v6933_v47  ;;  %v25472_v17 = vcombine.low %v25470_v31, %v25471_v41 }
 0x796   : > { %v6935_v9 = vpop.f32.mrf.mxu0  ;;  %v9272_v49 = vcombine.low %v25449_v39, %v8874_v34  ;;  %v9212_v21 = vrot.slane %v9204_v20, %v21833_v13  ;;  %v9273_v4 = vcombine.high %v25449_v39, %v8874_v34  ;;  %v21922_v35 = vrot.slane %v9205_v14, %v21833_v13 }
 0x797   : > { %v8809_v33 = vpack.c.bf16 %v8679_v46, %v8678_v12  ;;  %v8504_v7 = vmax.f32 %v8152_v27, %v8328_v1 }
 0x798   : > { %v6936_v19 = vpop.f32.mrf.mxu0  ;;  %v9280_v3 = vrot.slane %v9272_v49, %v21833_v13  ;;  %v9237_v30 = vcombine.high %v9212_v21, %v9228_v56  ;;  %v9236_v59 = vcombine.low %v9212_v21, %v9228_v56  ;;  %v21932_v43 = vrot.slane %v9273_v4, %v21833_v13  ;;  %v18290_v56 = vld [vmem:[%s24546_s2 + $0xf8] sm:$0xff]  }
 0x799   : > { %v21928_v37 = vpack.i.b16 %v25432_v24, %v8809_v33  ;;  %v8904_v34 = vshrl.u32 %v8809_v33, 16  ;;  %v8329_v20 = vmax.f32 %v21786_v32, %v6936_v19  ;;  %v25450_v32 = vld [vmem:[#allocation112_spill] sm:$0xff]  ;;  %v8680_v39 = vmax.f32 %v8504_v7, 0.0  ;;  %16680 = vmatprep.subr.bf16.mxu1 %v18290_v56  ;;  %v25453_v7 = vld [vmem:[#allocation91_spill] sm:$0xff]  ;;  %v25456_v56 = vld [vmem:[#allocation113_spill] sm:$0xff] }
 0x79a   : > { %v6938_v16 = vpop.f32.mrf.mxu0  ;;  %v9305_v14 = vcombine.high %v9280_v3, %v9296_v38  ;;  %v21935_v47 = vrot.slane %v9237_v30, %v21919_v61  ;;  %v9304_v55 = vcombine.low %v9280_v3, %v9296_v38  ;;  %v21938_v27 = vrot.slane %v9236_v59, %v21919_v61 }
 0x79b   : > { %v21945_v12 = vpack.i.b16 %v8905_v62, %v8904_v34  ;;  %v9340_v46 = vcombine.low %v25450_v32, %v21928_v37  ;;  %v9341_v1 = vcombine.high %v25450_v32, %v21928_v37  ;;  %v8505_v9 = vmax.f32 %v8153_v2, %v8329_v20 }
 0x79c   : > { %v6941_v38 = vpop.f32.mrf.mxu0  ;;  %v9319_v49 = vrot.slane %v9305_v14, %v21919_v61  ;;  %v25451_v21 = vmov 0   ;;  %v25452_v24 = vcombine.high %v21392_v48, %v20916_v18  ;;  %v9321_v3 = vcombine.high %v21932_v43, %v21897_v57 }
 0x79d   : > { %v9269_v4 = vcombine.high %v21935_v47, %v25451_v21  ;;  %v8681_v33 = vmax.f32 %v8505_v9, 0.0  ;;  %v8330_v19 = vmax.f32 %v21788_v26, %v6941_v38  ;;  %v9320_v2 = vcombine.low %v21932_v43, %v21897_v57 }
 0x79e   : > { %v9235_v62 = vrot.slane %v25452_v24, %v21833_v13  ;;  %v8937_v30 = vshrl.u32 %v25453_v7, 16  ;;  %v8154_v59 = vmax.f32 %v21654_v10, %v21731_v23  ;;  %10710 = vrot.lane.b32.xlu0 %v9319_v49, %s18691_s10  ;;  %v6943_v18 = vpop.f32.mrf.mxu0  ;;  %v9312_v48 = vrot.slane %v9304_v55, %v21919_v61 }
 0x79f   : > { %10713 = vrot.lane.b32.xlu1 %v9269_v4, %s18692_s12  ;;  %v8810_v34 = vpack.c.bf16 %v8681_v33, %v8680_v39  ;;  %v9268_v57 = vcombine.high %v21938_v27, %v25451_v21  ;;  %v25454_v20 = vcombine.low %v21419_v25, %v20946_v40  ;;  %v25455_v23 = vcombine.low %v21415_v51, %v20939_v22 }
 0x7a0   : > { %v9253_v26 = vcombine.high %v21922_v35, %v9235_v62  ;;  %v8506_v16 = vmax.f32 %v8154_v59, %v8330_v19  ;;  %v6944_v14 = vpop.f32.mrf.mxu0  ;;  %v9252_v55 = vcombine.low %v21922_v35, %v9235_v62  ;;  %v9408_v9 = vcombine.low %v25456_v56, %v21945_v12 }
 0x7a1   : > { %v21976_v10 = vrot.slane %v25454_v20, %v21833_v13  ;;  %v21982_v43 = vrot.slane %v25455_v23, %v21833_v13  ;;  %v21988_v39 = vrot.slane %v9340_v46, %v21833_v13  ;;  %v8155_v38 = vmax.f32 %v21657_v11, %v21734_v29  ;;  %v25457_v11 = vld [vmem:[#allocation114_spill] sm:$0xff]  ;;  %v25458_v23 = vld [vmem:[#allocation7_spill] sm:$0xff] }
 0x7a2   : > { %v21993_v4 = vpack.i.b16 %v25453_v7, %v8810_v34  ;;  %v8936_v24 = vshrl.u32 %v8810_v34, 16  ;;  %v8331_v33 = vmax.f32 %v21790_v8, %v6944_v14  ;;  %v8156_v19 = vmax.f32 %v21661_v52, %v21738_v45  ;;  %10701 = vrot.lane.b32.xlu0 %v9312_v48, %s18691_s10  ;;  %v6946_v46 = vpop.f32.mrf.mxu0 }
 0x7a3   : > { %v9337_v35 = vcombine.high %v9319_v49, %v25451_v21  ;;  %10704 = vrot.lane.b32.xlu1 %v9268_v57, %s18692_s12  ;;  %v9336_v62 = vcombine.high %v9312_v48, %v25451_v21  ;;  %v8682_v18 = vmax.f32 %v8506_v16, 0.0  ;;  %v22009_v45 = vrot.slane %v9253_v26, %v21919_v61 }
 0x7a4   : > { %v22002_v59 = vpack.i.b16 %v8937_v30, %v8936_v24  ;;  %v9476_v29 = vcombine.low %v25457_v11, %v21993_v4  ;;  %v8507_v7 = vmax.f32 %v8155_v38, %v8331_v33  ;;  %v6949_v52 = vpop.f32.mrf.mxu0  ;;  %v22012_v49 = vrot.slane %v9408_v9, %v21833_v13 }
 0x7a5   : > { %v9373_v48 = vcombine.high %v21988_v39, %v21982_v43  ;;  %v8332_v34 = vmax.f32 %v21792_v0, %v6949_v52  ;;  %v9372_v57 = vcombine.low %v21988_v39, %v21982_v43  ;;  %v9409_v20 = vcombine.high %v25456_v56, %v21945_v12  ;;  %v25464_v52 = vld [vmem:[#allocation17_spill] sm:$0xff] }
 0x7a6   : > { %v8683_v30 = vmax.f32 %v8507_v7, 0.0  ;;  %v8969_v16 = vshrl.u32 %v25458_v23, 16  ;;  %10716 = vrot.lane.b32.xlu0 %v9337_v35, %s18693_s13  ;;  %v6951_v26 = vpop.f32.mrf.mxu0  ;;  %v22025_v14 = vrot.slane %v9252_v55, %v21919_v61  ;;  %v9441_v0 = vcombine.high %v22012_v49, %v21976_v10 }
 0x7a7   : > { %10707 = vrot.lane.b32.xlu1 %v9336_v62, %s18693_s13  ;;  %v9440_v9 = vcombine.low %v22012_v49, %v21976_v10  ;;  %v8508_v24 = vmax.f32 %v8156_v19, %v8332_v34  ;;  %v25460_v12 = vcombine.high %v21419_v25, %v20946_v40  ;;  %v25461_v33 = vcombine.high %v21415_v51, %v20939_v22  ;;  %v25462_v25 = vld [vmem:[#allocation95_spill] sm:$0xff] }
 0x7a8   : > { %25459 = vst [vmem:[#allocation26_spill] sm:$0xff] %v22025_v14  ;;  %v8811_v38 = vpack.c.bf16 %v8683_v30, %v8682_v18  ;;  %v6952_v35 = vpop.f32.mrf.mxu0  ;;  %v9335_v46 = vrot.slane %v9321_v3, %v21919_v61  ;;  %v9328_v62 = vrot.slane %v9320_v2, %v21919_v61  ;;  %v22046_v7 = vrot.slane %v9409_v20, %v21833_v13  ;;  %v25463_v18 = vld [vmem:[#allocation77_spill] sm:$0xff]  ;;  %v25465_v2 = vld [vmem:[#allocation126_spill] sm:$0xff] }
 0x7a9   : > { %v22035_v56 = vrot.slane %v25460_v12, %v21833_v13  ;;  %v22041_v55 = vrot.slane %v25461_v33, %v21833_v13  ;;  %v22052_v40 = vrot.slane %v9341_v1, %v21833_v13  ;;  %v8157_v19 = vmax.f32 %v25462_v25, %v21741_v6  ;;  %v25466_v20 = vld [vmem:[#allocation90_spill] sm:$0xff] }
 0x7aa   : > { %v22057_v22 = vpack.i.b16 %v25458_v23, %v8811_v38  ;;  %v8968_v51 = vshrl.u32 %v8811_v38, 16  ;;  %v8333_v3 = vmax.f32 %v25463_v18, %v6952_v35  ;;  %v8158_v30 = vmax.f32 %v25465_v2, %v25464_v52  ;;  %10728 = vrot.lane.b32.xlu0 %v9335_v46, %s18691_s10  ;;  %v6954_v37 = vpop.f32.mrf.mxu0  ;;  %v25468_v52 = vld [vmem:[#allocation115_spill] sm:$0xff]  ;;  %v25479_v35 = vld [vmem:[#allocation80_spill] sm:$0xff]  ;;  %v25480_v33 = vld [vmem:[#allocation18_spill] sm:$0xff] }
 0x7ab   : > { %v8684_v34 = vmax.f32 %v8508_v24, 0.0  ;;  %10719 = vrot.lane.b32.xlu1 %v9328_v62, %s18691_s10  ;;  %v9271_v32 = vcombine.high %v22009_v45, %v25451_v21  ;;  %v9270_v6 = vcombine.high %v22025_v14, %v25451_v21  ;;  %v9544_v2 = vcombine.low %v25468_v52, %v22002_v59 }
 0x7ac   : > { %v22068_v1 = vpack.i.b16 %v8969_v16, %v8968_v51  ;;  %v8509_v38 = vmax.f32 %v8157_v19, %v8333_v3  ;;  %v6957_v24 = vpop.f32.mrf.mxu0  ;;  %v25467_v51 = vld [vmem:[#allocation68_spill] sm:$0xff]  ;;  %v22086_v19 = vrot.slane %v9476_v29, %v21833_v13  ;;  %v25469_v3 = vld [vmem:[#allocation62_spill] sm:$0xff]  ;;  %v8160_v12 = vmax.f32 %v25480_v33, %v25479_v35 }
 0x7ad   : > { %v8334_v18 = vmax.f32 %v25467_v51, %v6957_v24  ;;  %v9001_v37 = vshrl.u32 %v25469_v3, 16  ;;  %v25473_v24 = vld [vmem:[#allocation19_spill] sm:$0xff]  ;;  %v25474_v51 = vld [vmem:[#allocation48_spill] sm:$0xff]  ;;  %v9338_v8 = vcombine.high %v9328_v62, %v25451_v21  ;;  %v22136_v62 = vrot.slane %v9372_v57, %v21919_v61  ;;  %v25498_v57 = vld [vmem:[#allocation14_spill] sm:$0xff] }
 0x7ae   : > { %v8685_v25 = vmax.f32 %v8509_v38, 0.0  ;;  %10731 = vrot.lane.b32.xlu0 %v9271_v32, %s18692_s12  ;;  %v6959_v44 = vpop.f32.mrf.mxu0  ;;  %v22095_v38 = vrot.slane %v25472_v17, %v21833_v13  ;;  %v25475_v60 = vcombine.low %v25473_v24, %v25474_v51  ;;  %v25476_v29 = vcombine.high %v25473_v24, %v25474_v51 }
 0x7af   : > { %10722 = vrot.lane.b32.xlu1 %v9270_v6, %s18692_s12  ;;  %v25477_v6 = vld [vmem:[#allocation105_spill] sm:$0xff]  ;;  %v25478_v44 = vld [vmem:[#allocation127_spill] sm:$0xff]  ;;  %v8510_v16 = vmax.f32 %v8158_v30, %v8334_v18  ;;  %v22112_v17 = vrot.slane %v9544_v2, %v21833_v13  ;;  %25483 = vst [vmem:[#allocation71_spill] sm:$0xff] %v22136_v62  ;;  %v9455_v43 = vrot.slane %v9441_v0, %v21919_v61 }
 0x7b0   : > { %v22101_v15 = vrot.slane %v25475_v60, %v21833_v13  ;;  %v22107_v32 = vrot.slane %v25476_v29, %v21833_v13  ;;  %v8159_v63 = vmax.f32 %v25478_v44, %v25477_v6  ;;  %v8812_v26 = vpack.c.bf16 %v8685_v25, %v8684_v34  ;;  %v6960_v23 = vpop.f32.mrf.mxu0  ;;  %v25481_v34 = vld [vmem:[#allocation101_spill] sm:$0xff]  ;;  %v25485_v6 = vld [vmem:[#allocation15_spill] sm:$0xff] }
 0x7b1   : > { %v9339_v60 = vcombine.high %v9335_v46, %v25451_v21  ;;  %v8335_v30 = vmax.f32 %v25481_v34, %v6960_v23  ;;  %v22128_v25 = vrot.slane %v9373_v48, %v21919_v61  ;;  %v25484_v48 = vld [vmem:[#allocation20_spill] sm:$0xff]  ;;  %v8686_v2 = vmax.f32 %v8510_v16, 0.0  ;;  %v25487_v0 = vld [vmem:[#allocation9_spill] sm:$0xff] }
 0x7b2   : > { %v22121_v51 = vpack.i.b16 %v25469_v3, %v8812_v26  ;;  %v9000_v29 = vshrl.u32 %v8812_v26, 16  ;;  %v6962_v46 = vpop.f32.mrf.mxu0  ;;  %v9448_v39 = vrot.slane %v9440_v9, %v21919_v61  ;;  %v25486_v16 = vcombine.high %v25457_v11, %v21993_v4  ;;  %v25492_v11 = vld [vmem:[#allocation82_spill] sm:$0xff]  ;;  %v25499_v26 = vld [vmem:[#allocation131_spill] sm:$0xff]  ;;  %v25500_v23 = vld [vmem:[#allocation29_spill] sm:$0xff] }
 0x7b3   : > { %25482 = vst [vmem:[#allocation36_spill] sm:$0xff] %v22128_v25  ;;  %10734 = vrot.lane.b32.xlu0 %v9339_v60, %s18693_s13  ;;  %10725 = vrot.lane.b32.xlu1 %v9338_v8, %s18693_s13  ;;  %v8511_v18 = vmax.f32 %v8159_v63, %v8335_v30  ;;  %v9545_v63 = vcombine.high %v25468_v52, %v22002_v59  ;;  %v25489_v59 = vld [vmem:[#allocation79_spill] sm:$0xff]  ;;  %v25490_v52 = vld [vmem:[#allocation60_spill] sm:$0xff]  ;;  %v25493_v30 = vld [vmem:[#allocation53_spill] sm:$0xff] }
 0x7b4   : > { %v22142_v33 = vpack.i.b16 %v9001_v37, %v9000_v29  ;;  %v6965_v3 = vpop.f32.mrf.mxu0  ;;  %v22165_v60 = vrot.slane %v25486_v16, %v21833_v13  ;;  %v9033_v29 = vshrl.u32 %v25487_v0, 16  ;;  %v25488_v49 = vcombine.high %v25470_v31, %v25471_v41 }
 0x7b5   : > { %v8687_v37 = vmax.f32 %v8511_v18, 0.0  ;;  %v8336_v44 = vmax.f32 %v25485_v6, %v6965_v3  ;;  %v25491_v34 = vcombine.low %v25489_v59, %v25490_v52  ;;  %v25494_v46 = vcombine.low %v25492_v11, %v25493_v30 }
 0x7b6   : > { %v6967_v10 = vpop.f32.mrf.mxu0  ;;  %v22174_v9 = vrot.slane %v25488_v49, %v21833_v13  ;;  %v9405_v16 = vcombine.high %v22128_v25, %v25451_v21  ;;  %v22191_v31 = vrot.slane %v9545_v63, %v21833_v13  ;;  %v8162_v35 = vmax.f32 %v25500_v23, %v25499_v26  ;;  %v25502_v26 = vld [vmem:[#allocation38_spill] sm:$0xff] }
 0x7b7   : > { %10746 = vrot.lane.b32.xlu0 %v9455_v43, %s18691_s10  ;;  %10737 = vrot.lane.b32.xlu1 %v9448_v39, %s18691_s10  ;;  %v22180_v4 = vrot.slane %v25491_v34, %v21833_v13  ;;  %v22186_v18 = vrot.slane %v25494_v46, %v21833_v13  ;;  %v8813_v3 = vpack.c.bf16 %v8687_v37, %v8686_v2  ;;  %v25495_v46 = vld [vmem:[#allocation75_spill] sm:$0xff] }
 0x7b8   : > { %v8512_v6 = vmax.f32 %v8160_v12, %v8336_v44  ;;  %v6968_v41 = vpop.f32.mrf.mxu0  ;;  %v9404_v10 = vcombine.high %v22136_v62, %v25451_v21  ;;  %v9680_v2 = vcombine.low %v25495_v46, %v22068_v1  ;;  %v25496_v12 = vld [vmem:[#allocation130_spill] sm:$0xff]  ;;  %v25497_v37 = vld [vmem:[#allocation43_spill] sm:$0xff]  ;;  %v9473_v28 = vcombine.high %v9455_v43, %v25451_v21 }
 0x7b9   : > { %v8161_v44 = vmax.f32 %v25497_v37, %v25496_v12  ;;  %v22204_v8 = vpack.i.b16 %v25487_v0, %v8813_v3  ;;  %v9032_v63 = vshrl.u32 %v8813_v3, 16  ;;  %v8337_v24 = vmax.f32 %v25498_v57, %v6968_v41  ;;  %v25501_v0 = vld [vmem:[#allocation30_spill] sm:$0xff]  ;;  %v25504_v12 = vld [vmem:[#allocation35_spill] sm:$0xff] }
 0x7ba   : > { %v6970_v34 = vpop.f32.mrf.mxu0  ;;  %v9472_v49 = vcombine.high %v9448_v39, %v25451_v21  ;;  %v25505_v57 = vcombine.low %v25466_v20, %v22057_v22  ;;  %v25507_v39 = vcombine.high %v22046_v7, %v22035_v56 }
 0x7bb   : > { %10749 = vrot.lane.b32.xlu0 %v9405_v16, %s18692_s12  ;;  %10740 = vrot.lane.b32.xlu1 %v9404_v10, %s18692_s12  ;;  %v22215_v37 = vpack.i.b16 %v9033_v29, %v9032_v63  ;;  %v8513_v23 = vmax.f32 %v8161_v44, %v8337_v24  ;;  %v25503_v16 = vld [vmem:[#allocation54_spill] sm:$0xff]  ;;  %v8688_v10 = vmax.f32 %v8512_v6, 0.0  ;;  %v22227_v63 = vrot.slane %v9680_v2, %v21833_v13  ;;  %v25506_v44 = vld [vmem:[#allocation8_spill] sm:$0xff] }
 0x7bc   : > { %v8163_v41 = vmax.f32 %v25503_v16, %v25502_v26  ;;  %v6973_v34 = vpop.f32.mrf.mxu0  ;;  %v22233_v24 = vrot.slane %v25505_v57, %v21833_v13  ;;  %v9065_v26 = vshrl.u32 %v25506_v44, 16  ;;  %v9471_v6 = vrot.slane %v25507_v39, %v21919_v61  ;;  %v25522_v39 = vld [vmem:[#allocation128_spill] sm:$0xff] }
 0x7bd   : > { %v8689_v36 = vmax.f32 %v8513_v23, 0.0  ;;  %v8338_v29 = vmax.f32 %v25504_v12, %v6973_v34  ;;  %v25508_v2 = vcombine.low %v22046_v7, %v22035_v56  ;;  %v25509_v57 = vcombine.high %v22052_v40, %v22041_v55 }
 0x7be   : > { %v6975_v43 = vpop.f32.mrf.mxu0  ;;  %v25511_v56 = vcombine.low %v22052_v40, %v22041_v55  ;;  %v25514_v55 = vcombine.high %v25466_v20, %v22057_v22  ;;  %v25517_v22 = vld [vmem:[#allocation122_spill] sm:$0xff]  ;;  %v25518_v20 = vld [vmem:[#allocation87_spill] sm:$0xff]  ;;  %v9475_v58 = vcombine.high %v9471_v6, %v25451_v21 }
 0x7bf   : > { %10752 = vrot.lane.b32.xlu0 %v9473_v28, %s18693_s13  ;;  %10743 = vrot.lane.b32.xlu1 %v9472_v49, %s18693_s13  ;;  %v9464_v12 = vrot.slane %v25508_v2, %v21919_v61  ;;  %v22250_v23 = vrot.slane %v25509_v57, %v21919_v61  ;;  %v8814_v28 = vpack.c.bf16 %v8689_v36, %v8688_v10  ;;  %v25513_v2 = vld [vmem:[#allocation25_spill] sm:$0xff] }
 0x7c0   : > { %v8514_v16 = vmax.f32 %v8162_v35, %v8338_v29  ;;  %v6976_v43 = vpop.f32.mrf.mxu0  ;;  %v22260_v7 = vrot.slane %v25511_v56, %v21919_v61  ;;  %v9681_v35 = vcombine.high %v25495_v46, %v22068_v1  ;;  %v22276_v40 = vrot.slane %v25514_v55, %v21833_v13 }
 0x7c1   : > { %25510 = vst [vmem:[#allocation117_spill] sm:$0xff] %v22250_v23  ;;  %v22269_v10 = vpack.i.b16 %v25506_v44, %v8814_v28  ;;  %v9064_v29 = vshrl.u32 %v8814_v28, 16  ;;  %v8339_v57 = vmax.f32 %v25513_v2, %v6976_v43  ;;  %v25515_v1 = vcombine.high %v25489_v59, %v25490_v52 }
 0x7c2   : > { %25512 = vst [vmem:[#allocation51_spill] sm:$0xff] %v22260_v7  ;;  %v6978_v56 = vpop.f32.mrf.mxu0  ;;  %v25516_v44 = vcombine.high %v25492_v11, %v25493_v30  ;;  %v25519_v43 = vcombine.low %v25517_v22, %v25518_v20  ;;  %v8690_v30 = vmax.f32 %v8514_v16, 0.0  ;;  %v9407_v34 = vcombine.high %v22250_v23, %v25451_v21 }
 0x7c3   : > { %10764 = vrot.lane.b32.xlu0 %v9471_v6, %s18691_s10  ;;  %10755 = vrot.lane.b32.xlu1 %v9464_v12, %s18691_s10  ;;  %v22284_v46 = vrot.slane %v25515_v1, %v21833_v13  ;;  %v22298_v55 = vpack.i.b16 %v9065_v26, %v9064_v29  ;;  %v25520_v56 = vld [vmem:[#allocation76_spill] sm:$0xff]  ;;  %v8515_v52 = vmax.f32 %v8163_v41, %v8339_v57  ;;  %v25521_v1 = vld [vmem:[#allocation97_spill] sm:$0xff] }
 0x7c4   : > { %v22290_v28 = vrot.slane %v25516_v44, %v21833_v13  ;;  %v22296_v2 = vrot.slane %v25519_v43, %v21833_v13  ;;  %v8164_v11 = vmax.f32 %v25522_v39, %v25521_v1  ;;  %v6981_v44 = vpop.f32.mrf.mxu0  ;;  %v9406_v43 = vcombine.high %v22260_v7, %v25451_v21  ;;  %v25523_v29 = vld [vmem:[#allocation109_spill] sm:$0xff]  ;;  %v25524_v57 = vld [vmem:[#allocation64_spill] sm:$0xff] }
 0x7c5   : > { %v8691_v26 = vmax.f32 %v8515_v52, 0.0  ;;  %v8340_v49 = vmax.f32 %v25523_v29, %v6981_v44  ;;  %v22312_v36 = vrot.slane %v9681_v35, %v21833_v13  ;;  %v9097_v59 = vshrl.u32 %v25524_v57, 16  ;;  %v25525_v52 = vld [vmem:[#allocation66_spill] sm:$0xff]  ;;  %v25526_v44 = vld [vmem:[#allocation123_spill] sm:$0xff]  ;;  %v25527_v35 = vld [vmem:[#allocation28_spill] sm:$0xff] }
 0x7c6   : > { %v6983_v16 = vpop.f32.mrf.mxu0  ;;  %v9816_v1 = vcombine.low %v25525_v52, %v22142_v33  ;;  %v25528_v29 = vcombine.low %v25526_v44, %v25527_v35  ;;  %v9474_v7 = vcombine.high %v9464_v12, %v25451_v21 }
 0x7c7   : > { %10767 = vrot.lane.b32.xlu0 %v9407_v34, %s18692_s12  ;;  %10758 = vrot.lane.b32.xlu1 %v9406_v43, %s18692_s12  ;;  %v8815_v41 = vpack.c.bf16 %v8691_v26, %v8690_v30  ;;  %v8516_v42 = vmax.f32 %v8164_v11, %v8340_v49  ;;  %v25529_v16 = vld [vmem:[#allocation132_spill] sm:$0xff]  ;;  %v25531_v11 = vld [vmem:[#allocation118_spill] sm:$0xff] }
 0x7c8   : > { %v22327_v3 = vrot.slane %v25528_v29, %v21833_v13  ;;  %v8165_v39 = vmax.f32 %v25530_v53, %v25529_v16  ;;  %v6984_v50 = vpop.f32.mrf.mxu0  ;;  %v22338_v23 = vrot.slane %v9816_v1, %v21833_v13  ;;  %v25532_v29 = vcombine.low %v25484_v48, %v22121_v51  ;;  %v25533_v53 = vld [vmem:[#allocation83_spill] sm:$0xff]  ;;  %v25534_v16 = vld [vmem:[#allocation12_spill] sm:$0xff] }
 0x7c9   : > { %v22341_v30 = vpack.i.b16 %v25524_v57, %v8815_v41  ;;  %v9096_v49 = vshrl.u32 %v8815_v41, 16  ;;  %v8341_v26 = vmax.f32 %v25531_v11, %v6984_v50  ;;  %v8166_v6 = vmax.f32 %v25534_v16, %v25533_v53 }
 0x7ca   : > { %v22348_v43 = vrot.slane %v25532_v29, %v21833_v13  ;;  %v6986_v12 = vpop.f32.mrf.mxu0  ;;  %v25535_v41 = vcombine.high %v22112_v17, %v22095_v38  ;;  %v25536_v50 = vcombine.low %v22112_v17, %v22095_v38  ;;  %v25537_v29 = vld [vmem:[#allocation86_spill] sm:$0xff]  ;;  %v8692_v16 = vmax.f32 %v8516_v42, 0.0 }
 0x7cb   : > { %10770 = vrot.lane.b32.xlu0 %v9475_v58, %s18693_s13  ;;  %10761 = vrot.lane.b32.xlu1 %v9474_v7, %s18693_s13  ;;  %v22362_v11 = vpack.i.b16 %v9097_v59, %v9096_v49  ;;  %v8517_v7 = vmax.f32 %v8165_v39, %v8341_v26  ;;  %v25540_v38 = vcombine.low %v22086_v19, %v22101_v15 }
 0x7cc   : > { %v9591_v57 = vrot.slane %v25535_v41, %v21919_v61  ;;  %v9584_v1 = vrot.slane %v25536_v50, %v21919_v61  ;;  %v6989_v12 = vpop.f32.mrf.mxu0  ;;  %v25538_v41 = vcombine.high %v22086_v19, %v22101_v15  ;;  %v25542_v50 = vld [vmem:[#allocation72_spill] sm:$0xff]  ;;  %v9817_v19 = vcombine.high %v25525_v52, %v22142_v33 }
 0x7cd   : > { %v22378_v17 = vrot.slane %v25540_v38, %v21919_v61  ;;  %v8693_v49 = vmax.f32 %v8517_v7, 0.0  ;;  %v8342_v39 = vmax.f32 %v25542_v50, %v6989_v12  ;;  %v25543_v7 = vld [vmem:[#allocation11_spill] sm:$0xff]  ;;  %v25544_v42 = vcombine.high %v25517_v22, %v25518_v20  ;;  %v25547_v22 = vld [vmem:[#allocation106_spill] sm:$0xff] }
 0x7ce   : > { %v22372_v34 = vrot.slane %v25538_v41, %v21919_v61  ;;  %v6991_v41 = vpop.f32.mrf.mxu0  ;;  %v9129_v38 = vshrl.u32 %v25543_v7, 16  ;;  %v22405_v58 = vrot.slane %v9817_v19, %v21833_v13  ;;  %v25545_v33 = vcombine.high %v25484_v48, %v22121_v51 }
 0x7cf   : > { %25541 = vst [vmem:[#allocation39_spill] sm:$0xff] %v22378_v17  ;;  %10782 = vrot.lane.b32.xlu0 %v9591_v57, %s18691_s10  ;;  %10773 = vrot.lane.b32.xlu1 %v9584_v1, %s18691_s10  ;;  %v8816_v12 = vpack.c.bf16 %v8693_v49, %v8692_v16  ;;  %v8518_v50 = vmax.f32 %v8166_v6, %v8342_v39  ;;  %v25546_v6 = vld [vmem:[#allocation98_spill] sm:$0xff] }
 0x7d0   : > { %25539 = vst [vmem:[#allocation56_spill] sm:$0xff] %v22372_v34  ;;  %v22398_v26 = vrot.slane %v25544_v42, %v21833_v13  ;;  %v6992_v59 = vpop.f32.mrf.mxu0  ;;  %v9541_v41 = vcombine.high %v22372_v34, %v25451_v21  ;;  %v9540_v15 = vcombine.high %v22378_v17, %v25451_v21  ;;  %v22411_v52 = vrot.slane %v25545_v33, %v21833_v13  ;;  %v25548_v39 = vld [vmem:[#allocation58_spill] sm:$0xff] }
 0x7d1   : > { %v8167_v20 = vmax.f32 %v25547_v22, %v25546_v6  ;;  %v22416_v16 = vpack.i.b16 %v25543_v7, %v8816_v12  ;;  %v9128_v49 = vshrl.u32 %v8816_v12, 16  ;;  %v8343_v42 = vmax.f32 %v25548_v39, %v6992_v59  ;;  %v25550_v12 = vld [vmem:[#allocation67_spill] sm:$0xff]  ;;  %v25552_v39 = vld [vmem:[#allocation10_spill] sm:$0xff] }
 0x7d2   : > { %v9609_v19 = vcombine.high %v9591_v57, %v25451_v21  ;;  %v9608_v53 = vcombine.high %v9584_v1, %v25451_v21  ;;  %v25549_v51 = vcombine.high %v25526_v44, %v25527_v35  ;;  %v6994_v33 = vpop.f32.mrf.mxu0  ;;  %v8694_v22 = vmax.f32 %v8518_v50, 0.0  ;;  %v25556_v44 = vld [vmem:[#allocation104_spill] sm:$0xff]  ;;  %v25557_v35 = vld [vmem:[#allocation27_spill] sm:$0xff] }
 0x7d3   : > { %10785 = vrot.lane.b32.xlu0 %v9541_v41, %s18692_s12  ;;  %10776 = vrot.lane.b32.xlu1 %v9540_v15, %s18692_s12  ;;  %v22429_v7 = vpack.i.b16 %v9129_v38, %v9128_v49  ;;  %v8519_v15 = vmax.f32 %v8167_v20, %v8343_v42  ;;  %v25551_v38 = vld [vmem:[#allocation23_spill] sm:$0xff]  ;;  %v25553_v20 = vld [vmem:[#allocation70_spill] sm:$0xff]  ;;  %v25554_v42 = vld [vmem:[#allocation52_spill] sm:$0xff]  ;;  %v25558_v57 = vcombine.low %v25556_v44, %v25557_v35 }
 0x7d4   : > { %v22427_v48 = vrot.slane %v25549_v51, %v21833_v13  ;;  %v9161_v51 = vshrl.u32 %v25552_v39, 16  ;;  %v25555_v33 = vcombine.low %v25553_v20, %v25554_v42  ;;  %v25565_v17 = vcombine.low %v22165_v60, %v22107_v32 }
 0x7d5   : > { %v8695_v49 = vmax.f32 %v8519_v15, 0.0  ;;  %v22458_v41 = vrot.slane %v25558_v57, %v21833_v13  ;;  %v25559_v15 = vcombine.high %v22165_v60, %v22107_v32  ;;  %v25563_v57 = vcombine.high %v22191_v31, %v22174_v9 }
 0x7d6   : > { %v22452_v1 = vrot.slane %v25555_v33, %v21833_v13  ;;  %v25562_v33 = vcombine.low %v25501_v0, %v22204_v8  ;;  %v22486_v34 = vrot.slane %v25565_v17, %v21919_v61  ;;  %v25570_v32 = vcombine.high %v25501_v0, %v22204_v8  ;;  %v25575_v8 = vld [vmem:[#allocation13_spill] sm:$0xff] }
 0x7d7   : > { %10788 = vrot.lane.b32.xlu0 %v9609_v19, %s18693_s13  ;;  %10779 = vrot.lane.b32.xlu1 %v9608_v53, %s18693_s13  ;;  %v8817_v50 = vpack.c.bf16 %v8695_v49, %v8694_v22  ;;  %v22464_v19 = vrot.slane %v25559_v15, %v21919_v61  ;;  %v25561_v53 = vld [vmem:[#allocation50_spill] sm:$0xff]  ;;  %v9607_v22 = vrot.slane %v25563_v57, %v21919_v61 }
 0x7d8   : > { %v9952_v6 = vcombine.low %v25561_v53, %v22215_v37  ;;  %v22472_v59 = vrot.slane %v25562_v33, %v21833_v13  ;;  %v25564_v49 = vcombine.low %v22191_v31, %v22174_v9  ;;  %25566 = vst [vmem:[#allocation94_spill] sm:$0xff] %v22486_v34  ;;  %v9953_v33 = vcombine.high %v25561_v53, %v22215_v37 }
 0x7d9   : > { %25560 = vst [vmem:[#allocation46_spill] sm:$0xff] %v22464_v19  ;;  %v22491_v62 = vpack.i.b16 %v25552_v39, %v8817_v50  ;;  %v9160_v25 = vshrl.u32 %v8817_v50, 16  ;;  %v25567_v9 = vcombine.high %v25553_v20, %v25554_v42  ;;  %v9543_v50 = vcombine.high %v22464_v19, %v25451_v21 }
 0x7da   : > { %v9600_v15 = vrot.slane %v25564_v49, %v21919_v61  ;;  %v22494_v57 = vrot.slane %v9952_v6, %v21833_v13  ;;  %v22509_v37 = vrot.slane %v9953_v33, %v21833_v13  ;;  %v25568_v6 = vld [vmem:[#allocation59_spill] sm:$0xff]  ;;  %v9542_v53 = vcombine.high %v22486_v34, %v25451_v21 }
 0x7db   : > { %v22500_v31 = vrot.slane %v25567_v9, %v21833_v13  ;;  %10800 = vrot.lane.b32.xlu0 %v9607_v22, %s18691_s10  ;;  %v22511_v17 = vpack.i.b16 %v9161_v51, %v9160_v25  ;;  %v25569_v51 = vld [vmem:[#allocation32_spill] sm:$0xff]  ;;  %v22539_v49 = vrot.slane %v25570_v32, %v21833_v13  ;;  %v25571_v25 = vcombine.high %v25556_v44, %v25557_v35  ;;  %v25572_v9 = vld [vmem:[#allocation103_spill] sm:$0xff] }
 0x7dc   : > { %10791 = vrot.lane.b32.xlu1 %v9600_v15, %s18691_s10  ;;  %v9611_v60 = vcombine.high %v9607_v22, %v25451_v21  ;;  %v9610_v20 = vcombine.high %v9600_v15, %v25451_v21  ;;  %v10088_v0 = vcombine.low %v25575_v8, %v22298_v55  ;;  %v25576_v32 = vcombine.low %v25520_v56, %v22269_v10  ;;  %v25578_v22 = vld [vmem:[#allocation107_spill] sm:$0xff] }
 0x7dd   : > { %v22545_v42 = vrot.slane %v25571_v25, %v21833_v13  ;;  %v25580_v25 = vcombine.high %v22227_v63, %v22180_v4  ;;  %v25584_v35 = vcombine.low %v22233_v24, %v22186_v18 }
 0x7de   : > { %v22561_v44 = vrot.slane %v25576_v32, %v21833_v13  ;;  %v22576_v34 = vrot.slane %v10088_v0, %v21833_v13  ;;  %v25582_v0 = vcombine.high %v22233_v24, %v22186_v18  ;;  %v25587_v18 = vcombine.high %v25520_v56, %v22269_v10 }
 0x7df   : > { %10803 = vrot.lane.b32.xlu0 %v9543_v50, %s18692_s12  ;;  %v25573_v50 = vld [vmem:[#allocation61_spill] sm:$0xff]  ;;  %v9727_v19 = vrot.slane %v25580_v25, %v21919_v61  ;;  %v22602_v14 = vrot.slane %v25584_v35, %v21919_v61  ;;  %v25597_v25 = vld [vmem:[#allocation99_spill] sm:$0xff] }
 0x7e0   : > { %10794 = vrot.lane.b32.xlu1 %v9542_v53, %s18692_s12  ;;  %v25574_v33 = vcombine.low %v25572_v9, %v25573_v50  ;;  %v22596_v32 = vrot.slane %v25582_v0, %v21919_v61  ;;  %v22621_v24 = vrot.slane %v25587_v18, %v21833_v13  ;;  %v25589_v35 = vcombine.high %v25572_v9, %v25573_v50 }
 0x7e1   : > { %25585 = vst [vmem:[#allocation63_spill] sm:$0xff] %v22602_v14  ;;  %v9676_v9 = vcombine.high %v22602_v14, %v25451_v21 }
 0x7e2   : > { %v22551_v53 = vrot.slane %v25574_v33, %v21833_v13  ;;  %v25577_v33 = vld [vmem:[#allocation24_spill] sm:$0xff]  ;;  %25583 = vst [vmem:[#allocation108_spill] sm:$0xff] %v22596_v32  ;;  %25588 = vst [vmem:[#allocation92_spill] sm:$0xff] %v22621_v24  ;;  %v9677_v56 = vcombine.high %v22596_v32, %v25451_v21 }
 0x7e3   : > { %v25579_v39 = vcombine.low %v25577_v33, %v25578_v22  ;;  %10806 = vrot.lane.b32.xlu0 %v9611_v60, %s18693_s13  ;;  %v25581_v60 = vcombine.low %v22227_v63, %v22180_v4  ;;  %v25596_v4 = vld [vmem:[#allocation125_spill] sm:$0xff]  ;;  %v25605_v24 = vld [vmem:[#allocation16_spill] sm:$0xff] }
 0x7e4   : > { %10797 = vrot.lane.b32.xlu1 %v9610_v20, %s18693_s13  ;;  %v10089_v20 = vcombine.high %v25575_v8, %v22298_v55  ;;  %v25586_v55 = vcombine.high %v25577_v33, %v25578_v22  ;;  %v25594_v22 = vld [vmem:[#allocation40_spill] sm:$0xff]  ;;  %v25598_v14 = vcombine.low %v25596_v4, %v25597_v25 }
 0x7e5   : > { %v22571_v15 = vrot.slane %v25579_v39, %v21833_v13  ;;  %v9720_v39 = vrot.slane %v25581_v60, %v21919_v61  ;;  %v22627_v60 = vrot.slane %v25589_v35, %v21833_v13  ;;  %v25593_v35 = vld [vmem:[#allocation124_spill] sm:$0xff] }
 0x7e6   : > { %v22609_v63 = vrot.slane %v10089_v20, %v21833_v13  ;;  %v22615_v8 = vrot.slane %v25586_v55, %v21833_v13  ;;  %v25591_v20 = vld [vmem:[#allocation34_spill] sm:$0xff]  ;;  %v25592_v55 = vcombine.low %v25537_v29, %v22341_v30  ;;  %v25595_v10 = vcombine.low %v25593_v35, %v25594_v22 }
 0x7e7   : > { %25590 = vst [vmem:[#allocation120_spill] sm:$0xff] %v22627_v60  ;;  %10818 = vrot.lane.b32.xlu0 %v9727_v19, %s18691_s10  ;;  %v10224_v0 = vcombine.low %v25591_v20, %v22362_v11  ;;  %v22666_v32 = vrot.slane %v25598_v14, %v21833_v13  ;;  %v9745_v60 = vcombine.high %v9727_v19, %v25451_v21 }
 0x7e8   : > { %10809 = vrot.lane.b32.xlu1 %v9720_v39, %s18691_s10  ;;  %v22649_v18 = vrot.slane %v25592_v55, %v21833_v13  ;;  %v22655_v33 = vrot.slane %v25595_v10, %v21833_v13  ;;  %v10225_v55 = vcombine.high %v25591_v20, %v22362_v11  ;;  %v25604_v11 = vld [vmem:[#allocation49_spill] sm:$0xff] }
 0x7e9   : > { %v22660_v50 = vrot.slane %v10224_v0, %v21833_v13  ;;  %v9744_v0 = vcombine.high %v9720_v39, %v25451_v21  ;;  %v25603_v39 = vcombine.high %v25537_v29, %v22341_v30  ;;  %v25609_v30 = vcombine.high %v22276_v40, %v22290_v28 }
 0x7ea   : > { %v22687_v19 = vrot.slane %v10225_v55, %v21833_v13  ;;  %v25606_v55 = vcombine.low %v25604_v11, %v25605_v24 }
 0x7eb   : > { %10821 = vrot.lane.b32.xlu0 %v9677_v56, %s18692_s12  ;;  %v25599_v56 = vcombine.high %v25593_v35, %v25594_v22  ;;  %v25601_v22 = vcombine.high %v25596_v4, %v25597_v25  ;;  %v22699_v35 = vrot.slane %v25603_v39, %v21833_v13  ;;  %v25608_v25 = vcombine.low %v25550_v12, %v22416_v16 }
 0x7ec   : > { %10812 = vrot.lane.b32.xlu1 %v9676_v9, %s18692_s12  ;;  %25600 = vst [vmem:[#allocation93_spill] sm:$0xff] %v22687_v19  ;;  %v22707_v10 = vrot.slane %v25606_v55, %v21833_v13  ;;  %v22721_v29 = vrot.slane %v25609_v30, %v21919_v61  ;;  %v25615_v55 = vcombine.high %v25550_v12, %v22416_v16 }
 0x7ed   : > { %v22677_v9 = vrot.slane %v25599_v56, %v21833_v13  ;;  %v22693_v20 = vrot.slane %v25601_v22, %v21833_v13  ;;  %v10360_v56 = vcombine.low %v25551_v38, %v22429_v7  ;;  %v22713_v4 = vrot.slane %v25608_v25, %v21833_v13 }
 0x7ee   : > { %25607 = vst [vmem:[#allocation121_spill] sm:$0xff] %v22707_v10  ;;  %25610 = vst [vmem:[#allocation78_spill] sm:$0xff] %v22721_v29  ;;  %v25612_v25 = vcombine.low %v22312_v36, %v22284_v46  ;;  %v25613_v22 = vcombine.low %v22276_v40, %v22290_v28  ;;  %v25619_v16 = vcombine.high %v25604_v11, %v25605_v24  ;;  %v25623_v24 = vld [vmem:[#allocation96_spill] sm:$0xff] }
 0x7ef   : > { %25602 = vst [vmem:[#allocation47_spill] sm:$0xff] %v22693_v20  ;;  %10824 = vrot.lane.b32.xlu0 %v9745_v60, %s18693_s13  ;;  %v25611_v60 = vcombine.high %v22312_v36, %v22284_v46  ;;  %v22749_v20 = vrot.slane %v25615_v55, %v21833_v13  ;;  %v25616_v36 = vld [vmem:[#allocation73_spill] sm:$0xff]  ;;  %v25621_v11 = vcombine.high %v25551_v38, %v22429_v7 }
 0x7f0   : > { %10815 = vrot.lane.b32.xlu1 %v9744_v0, %s18693_s13  ;;  %v9736_v30 = vrot.slane %v25612_v25, %v21919_v61  ;;  %v22741_v14 = vrot.slane %v25613_v22, %v21919_v61  ;;  %v25617_v46 = vld [vmem:[#allocation41_spill] sm:$0xff]  ;;  %v22770_v12 = vrot.slane %v25619_v16, %v21833_v13  ;;  %v25620_v22 = vcombine.low %v25568_v6, %v22491_v62 }
 0x7f1   : > { %v9743_v0 = vrot.slane %v25611_v60, %v21919_v61  ;;  %v22752_v60 = vrot.slane %v10360_v56, %v21833_v13  ;;  %v25618_v25 = vcombine.low %v25616_v36, %v25617_v46  ;;  %v22790_v16 = vrot.slane %v25621_v11, %v21833_v13  ;;  %v25627_v11 = vld [vmem:[#allocation81_spill] sm:$0xff] }
 0x7f2   : > { %25614 = vst [vmem:[#allocation102_spill] sm:$0xff] %v22741_v14  ;;  %v22778_v55 = vrot.slane %v25620_v22, %v21833_v13  ;;  %v9678_v28 = vcombine.high %v22741_v14, %v25451_v21  ;;  %v25622_v22 = vcombine.high %v25616_v36, %v25617_v46  ;;  %v25624_v14 = vld [vmem:[#allocation21_spill] sm:$0xff]  ;;  %v25626_v46 = vld [vmem:[#allocation55_spill] sm:$0xff] }
 0x7f3   : > { %v22758_v19 = vrot.slane %v25618_v25, %v21833_v13  ;;  %10836 = vrot.lane.b32.xlu0 %v9743_v0, %s18691_s10  ;;  %v9679_v25 = vcombine.high %v22721_v29, %v25451_v21  ;;  %v25625_v29 = vcombine.low %v25623_v24, %v25624_v14  ;;  %v9747_v7 = vcombine.high %v9743_v0, %v25451_v21 }
 0x7f4   : > { %10827 = vrot.lane.b32.xlu1 %v9736_v30, %s18691_s10  ;;  %v22796_v40 = vrot.slane %v25622_v22, %v21833_v13  ;;  %v25628_v22 = vcombine.low %v25626_v46, %v25627_v11  ;;  %v9746_v0 = vcombine.high %v9736_v30, %v25451_v21 }
 0x7f5   : > { %v22806_v10 = vrot.slane %v25625_v29, %v21833_v13  ;;  %v25629_v29 = vcombine.high %v25568_v6, %v22491_v62  ;;  %v25631_v62 = vcombine.high %v25623_v24, %v25624_v14  ;;  %v25633_v14 = vcombine.low %v22338_v23, %v22327_v3 }
 0x7f6   : > { %v10409_v38 = vcombine.high %v22790_v16, %v22796_v40  ;;  %v22819_v39 = vrot.slane %v25628_v22, %v21833_v13 }
 0x7f7   : > { %10839 = vrot.lane.b32.xlu0 %v9679_v25, %s18692_s12  ;;  %v22825_v25 = vrot.slane %v25629_v29, %v21833_v13  ;;  %v22842_v6 = vrot.slane %v25631_v62, %v21833_v13  ;;  %v9856_v24 = vrot.slane %v25633_v14, %v21919_v61  ;;  %v25635_v62 = vcombine.high %v22348_v43, %v22296_v2 }
 0x7f8   : > { %10830 = vrot.lane.b32.xlu1 %v9678_v28, %s18692_s12  ;;  %v25630_v28 = vcombine.low %v25569_v51, %v22511_v17 }
 0x7f9   : > { %v22868_v29 = vrot.slane %v25635_v62, %v21919_v61  ;;  %v25638_v62 = vcombine.high %v22405_v58, %v22427_v48 }
 0x7fa   : > { %v22832_v56 = vrot.slane %v25630_v28, %v21833_v13  ;;  %v25632_v28 = vcombine.high %v22338_v23, %v22327_v3  ;;  %v25637_v3 = vcombine.high %v25569_v51, %v22511_v17 }
 0x7fb   : > { %10842 = vrot.lane.b32.xlu0 %v9747_v7, %s18693_s13  ;;  %v25634_v7 = vcombine.high %v25626_v46, %v25627_v11  ;;  %v10477_v46 = vcombine.high %v22825_v25, %v22842_v6  ;;  %v9813_v17 = vcombine.high %v22868_v29, %v25451_v21 }
 0x7fc   : > { %10833 = vrot.lane.b32.xlu1 %v9746_v0, %s18693_s13  ;;  %v10529_v30 = vcombine.high %v22832_v56, %v22819_v39  ;;  %v9863_v22 = vrot.slane %v25632_v28, %v21919_v61  ;;  %v25636_v28 = vcombine.low %v22348_v43, %v22296_v2  ;;  %v22880_v23 = vrot.slane %v25637_v3, %v21833_v13 }
 0x7fd   : > { %v22862_v0 = vrot.slane %v25634_v7, %v21833_v13  ;;  %v9880_v7 = vcombine.high %v9856_v24, %v25451_v21  ;;  %v25639_v3 = vcombine.low %v22405_v58, %v22427_v48 }
 0x7fe   : > { %v22874_v36 = vrot.slane %v25636_v28, %v21919_v61  ;;  %v9881_v14 = vcombine.high %v9863_v22, %v25451_v21  ;;  %v9879_v28 = vrot.slane %v25638_v62, %v21919_v61 }
 0x7ff   : > { %10854 = vrot.lane.b32.xlu0 %v9863_v22, %s18691_s10  ;;  %v10545_v2 = vcombine.high %v22880_v23, %v22862_v0  ;;  %v10544_v43 = vcombine.low %v22880_v23, %v22862_v0  ;;  %v25640_v22 = vcombine.high %v22411_v52, %v22398_v26  ;;  %v18345_v0 = vld [vmem:[%s24546_s2 + $0x220] sm:$0xff]  }
 0x800   : > { %10845 = vrot.lane.b32.xlu1 %v9856_v24, %s18691_s10  ;;  %v9812_v51 = vcombine.high %v22874_v36, %v25451_v21  ;;  %v25641_v24 = vcombine.low %v22411_v52, %v22398_v26  ;;  %v9883_v26 = vcombine.high %v9879_v28, %v25451_v21 }
 0x803   : > { %10857 = vrot.lane.b32.xlu0 %v9813_v17, %s18692_s12  ;;  %v9872_v17 = vrot.slane %v25639_v3, %v21919_v61 }
 0x804   : > { %10848 = vrot.lane.b32.xlu1 %v9812_v51, %s18692_s12  ;;  %v22916_v51 = vrot.slane %v25640_v22, %v21919_v61 }
 0x805   : > { %v9882_v52 = vcombine.high %v9872_v17, %v25451_v21 }
 0x806   : > { %v9815_v58 = vcombine.high %v22916_v51, %v25451_v21 }
 0x807   : > { %10860 = vrot.lane.b32.xlu0 %v9881_v14, %s18693_s13  ;;  %v22922_v14 = vrot.slane %v25641_v24, %v21919_v61  ;;  %v25642_v24 = vcombine.high %v22494_v57, %v22452_v1 }
 0x808   : > { %10851 = vrot.lane.b32.xlu1 %v9880_v7, %s18693_s13 }
 0x809   : > { %v9814_v48 = vcombine.high %v22922_v14, %v25451_v21 }
 0x80b   : > { %10872 = vrot.lane.b32.xlu0 %v9879_v28, %s18691_s10  ;;  %v25644_v28 = vcombine.high %v22472_v59, %v22458_v41 }
 0x80c   : > { %10863 = vrot.lane.b32.xlu1 %v9872_v17, %s18691_s10 }
 0x80d   : > { %v22948_v17 = vrot.slane %v25644_v28, %v21919_v61 }
 0x80f   : > { %10875 = vrot.lane.b32.xlu0 %v9815_v58, %s18692_s12  ;;  %v9999_v58 = vrot.slane %v25642_v24, %v21919_v61  ;;  %v25645_v24 = vcombine.low %v22472_v59, %v22458_v41  ;;  %v18291_v59 = vld [vmem:[%s24546_s2 + $0xb8] sm:$0xff]  }
 0x810   : > { %10866 = vrot.lane.b32.xlu1 %v9814_v48, %s18692_s12  ;;  %v10711_v7 = vpop.permute.xlu0 %10710  ;;  %v25643_v48 = vcombine.low %v22494_v57, %v22452_v1 }
 0x811   : > { %v10714_v62 = vpop.permute.xlu1 %10713  ;;  %v22958_v11 = vrot.slane %v25645_v24, %v21919_v61  ;;  %v10017_v28 = vcombine.high %v9999_v58, %v25451_v21  ;;  %v18294_v24 = vld [vmem:[%s24546_s2 + $0xe8] sm:$0xff]  }
 0x812   : > { %v9992_v13 = vrot.slane %v25643_v48, %v21919_v61 }
 0x813   : > { %10878 = vrot.lane.b32.xlu0 %v9883_v26, %s18693_s13  ;;  %v11109_v26 = vsel %vm11096_vm2, %v21935_v47, %v10711_v7  ;;  %v9948_v48 = vcombine.high %v22958_v11, %v25451_v21 }
 0x814   : > { %10869 = vrot.lane.b32.xlu1 %v9882_v52, %s18693_s13  ;;  %v10702_v3 = vpop.permute.xlu0 %10701  ;;  %v11111_v1 = vsel %vm11100_vm3, %v11109_v26, %v10714_v62  ;;  %v18292_v62 = vld [vmem:[%s24546_s2 + $0xf0] sm:$0xff]  }
 0x815   : > { %v10705_v22 = vpop.permute.xlu1 %10704  ;;  %v11099_v52 = vsel %vm11096_vm2, %v21938_v27, %v10702_v3  ;;  %v9949_v27 = vcombine.high %v22948_v17, %v25451_v21  ;;  %v18293_v26 = vld [vmem:[%s24546_s2 + $0xb0] sm:$0xff]  }
 0x816   : > { %v11102_v57 = vsel %vm11100_vm3, %v11099_v52, %v10705_v22  ;;  %v10016_v52 = vcombine.high %v9992_v13, %v25451_v21 }
 0x817   : > { %10890 = vrot.lane.b32.xlu0 %v9999_v58, %s18691_s10  ;;  %v25646_v58 = vcombine.high %v22509_v37, %v22500_v31 }
 0x818   : > { %10881 = vrot.lane.b32.xlu1 %v9992_v13, %s18691_s10  ;;  %v10717_v47 = vpop.permute.xlu0 %10716  ;;  %v25647_v13 = vcombine.high %v22539_v49, %v22545_v42 }
 0x819   : > { %v10708_v7 = vpop.permute.xlu1 %10707  ;;  %v11113_v3 = vsel %vm11103_vm4, %v11111_v1, %v10717_v47  ;;  %v18295_v47 = vld [vmem:[%s24546_s2 + $0xa8] sm:$0xff]  }
 0x81a   : > { %v11105_v41 = vsel %vm11103_vm4, %v11102_v57, %v10708_v7  ;;  %14306 = vmatprep.mubr.bf16.mxu1 %v11113_v3  ;;  %v10015_v57 = vrot.slane %v25646_v58, %v21919_v61  ;;  %v22999_v7 = vrot.slane %v25647_v13, %v21919_v61  ;;  %v25649_v3 = vcombine.low %v22539_v49, %v22545_v42  ;;  %v18297_v42 = vld [vmem:[%s24546_s2 + $0xa0] sm:$0xff]  }
 0x81b   : > { %10893 = vrot.lane.b32.xlu0 %v9949_v27, %s18692_s12  ;;  %14307 = vmatmul.mubr.bf16.vlgmr.msra.gmra.mxu1 %v11105_v41  ;;  %v25648_v27 = vcombine.low %v22509_v37, %v22500_v31  ;;  %v18296_v41 = vld [vmem:[%s24546_s2 + $0xe0] sm:$0xff]  }
 0x81c   : > { %10884 = vrot.lane.b32.xlu1 %v9948_v48, %s18692_s12  ;;  %16681 = vmatpush3.bf16.msra.mxu1 %v18291_v59  ;;  %v10729_v22 = vpop.permute.xlu0 %10728  ;;  %v23012_v48 = vrot.slane %v25649_v3, %v21919_v61  ;;  %v25652_v3 = vcombine.low %v22576_v34, %v22571_v15 }
 0x81d   : > { %16682 = vmatprep.subr.bf16.mxu1 %v18292_v62  ;;  %v10008_v59 = vrot.slane %v25648_v27, %v21919_v61  ;;  %v11125_v62 = vsel %vm11096_vm2, %v22009_v45, %v10729_v22  ;;  %v18298_v45 = vld [vmem:[%s24546_s2 + $0xd8] sm:$0xff]   ;;  %v10019_v22 = vcombine.high %v10015_v57, %v25451_v21  ;;  %v10720_v58 = vpop.permute.xlu1 %10719  ;;  %v18301_v27 = vld [vmem:[%s24546_s2 + $0x90] sm:$0xff]  }
 0x81f   : > { %10896 = vrot.lane.b32.xlu0 %v10017_v28, %s18693_s13  ;;  %v9951_v28 = vcombine.high %v22999_v7, %v25451_v21 }
 0x820   : > { %10887 = vrot.lane.b32.xlu1 %v10016_v52, %s18693_s13  ;;  %16683 = vmatpush3.bf16.msra.mxu1 %v18293_v26  ;;  %v10732_v1 = vpop.permute.xlu0 %10731  ;;  %v9950_v26 = vcombine.high %v23012_v48, %v25451_v21  ;;  %v18299_v52 = vld [vmem:[%s24546_s2 + $0x98] sm:$0xff]  }
 0x821   : > { %16684 = vmatprep.subr.bf16.mxu1 %v18294_v24  ;;  %v11127_v31 = vsel %vm11100_vm3, %v11125_v62, %v10732_v1  ;;  %v10018_v24 = vcombine.high %v10008_v59, %v25451_v21  ;;  %v18300_v1 = vld [vmem:[%s24546_s2 + $0xd0] sm:$0xff]   ;;  %v10128_v62 = vrot.slane %v25652_v3, %v21919_v61  ;;  %v18307_v3 = vld [vmem:[%s24546_s2 + $0x138] sm:$0xff]  }
 0x823   : > { %10908 = vrot.lane.b32.xlu0 %v10015_v57, %s18691_s10  ;;  %v25650_v57 = vcombine.high %v22576_v34, %v22571_v15  ;;  %v18303_v34 = vld [vmem:[%s24546_s2 + $0x88] sm:$0xff]   ;;  %v10723_v15 = vpop.permute.xlu1 %10722 }
 0x824   : > { %10899 = vrot.lane.b32.xlu1 %v10008_v59, %s18691_s10  ;;  %16685 = vmatpush3.bf16.msra.mxu1 %v18295_v47  ;;  %v25651_v59 = vcombine.high %v22561_v44, %v22551_v53 }
 0x825   : > { %v10735_v37 = vpop.permute.xlu0 %10734  ;;  %16686 = vmatprep.subr.bf16.mxu1 %v18296_v41  ;;  %v10135_v13 = vrot.slane %v25650_v57, %v21919_v61 }
 0x826   : > { %v11129_v49 = vsel %vm11103_vm4, %v11127_v31, %v10735_v37  ;;  %v23053_v41 = vrot.slane %v25651_v59, %v21919_v61  ;;  %v18302_v31 = vld [vmem:[%s24546_s2 + $0xc8] sm:$0xff]   ;;  %v25653_v37 = vcombine.low %v22561_v44, %v22551_v53  ;;  %v18304_v53 = vld [vmem:[%s24546_s2 + $0xc0] sm:$0xff]  }
 0x827   : > { %14346 = vmatprep.mubr.bf16.mxu1 %v11129_v49  ;;  %10911 = vrot.lane.b32.xlu0 %v9951_v28, %s18692_s12 }
 0x828   : > { %10902 = vrot.lane.b32.xlu1 %v9950_v26, %s18692_s12  ;;  %16687 = vmatpush3.bf16.msra.mxu1 %v18297_v42  ;;  %v23066_v28 = vrot.slane %v25653_v37, %v21919_v61  ;;  %v10085_v42 = vcombine.high %v23053_v41, %v25451_v21  ;;  %v10153_v26 = vcombine.high %v10135_v13, %v25451_v21 }
 0x829   : > { %16688 = vmatprep.subr.bf16.mxu1 %v18298_v45  ;;  %v10747_v47 = vpop.permute.xlu0 %10746  ;;  %v18305_v45 = vld [vmem:[%s24546_s2 + $0x80] sm:$0xff]  }
 0x82a   : > { %v10084_v49 = vcombine.high %v23066_v28, %v25451_v21 }
 0x82b   : > { %10914 = vrot.lane.b32.xlu0 %v10019_v22, %s18693_s13  ;;  %v10152_v22 = vcombine.high %v10128_v62, %v25451_v21 }
 0x82c   : > { %10905 = vrot.lane.b32.xlu1 %v10018_v24, %s18693_s13  ;;  %16689 = vmatpush3.bf16.msra.mxu1 %v18299_v52  ;;  %v18306_v52 = vld [vmem:[%s24546_s2 + $0x178] sm:$0xff]   ;;  %v10726_v24 = vpop.permute.xlu1 %10725 }
 0x82d   : > { %16690 = vmatprep.subr.bf16.mxu1 %v18300_v1  ;;  %v10750_v44 = vpop.permute.xlu0 %10749  ;;  %v25654_v1 = vld [vmem:[#allocation26_spill] sm:$0xff] }
 0x82e   : > { %v11117_v57 = vsel %vm11096_vm2, %v25654_v1, %v10720_v58  ;;  %v25659_v58 = vld [vmem:[#allocation36_spill] sm:$0xff] }
 0x82f   : > { %10926 = vrot.lane.b32.xlu0 %v10135_v13, %s18691_s10 }
 0x830   : > { %10917 = vrot.lane.b32.xlu1 %v10128_v62, %s18691_s10  ;;  %16691 = vmatpush3.bf16.msra.mxu1 %v18301_v27  ;;  %v25655_v27 = vcombine.high %v22609_v63, %v22615_v8  ;;  %v25656_v62 = vld [vmem:[#allocation92_spill] sm:$0xff] }
 0x831   : > { %16692 = vmatprep.subr.bf16.mxu1 %v18302_v31  ;;  %v10753_v13 = vpop.permute.xlu0 %10752  ;;  %v25657_v31 = vld [vmem:[#allocation120_spill] sm:$0xff] }
 0x832   : > { %v10151_v59 = vrot.slane %v25655_v27, %v21919_v61  ;;  %v25658_v37 = vcombine.high %v25656_v62, %v25657_v31 }
 0x833   : > { %10929 = vrot.lane.b32.xlu0 %v10085_v42, %s18692_s12 }
 0x834   : > { %10920 = vrot.lane.b32.xlu1 %v10084_v49, %s18692_s12  ;;  %16693 = vmatpush3.bf16.msra.mxu1 %v18303_v34  ;;  %v23105_v42 = vrot.slane %v25658_v37, %v21919_v61  ;;  %v11119_v34 = vsel %vm11100_vm3, %v11117_v57, %v10723_v15  ;;  %v11141_v49 = vsel %vm11096_vm2, %v25659_v58, %v10747_v47 }
 0x835   : > { %16694 = vmatprep.subr.bf16.mxu1 %v18304_v53  ;;  %v25660_v53 = vcombine.low %v22609_v63, %v22615_v8  ;;  %v11121_v15 = vsel %vm11103_vm4, %v11119_v34, %v10726_v24  ;;  %v11143_v47 = vsel %vm11100_vm3, %v11141_v49, %v10750_v44  ;;  %v18310_v24 = vld [vmem:[%s24546_s2 + $0x168] sm:$0xff]   ;;  %v10155_v57 = vcombine.high %v10151_v59, %v25451_v21 }
 0x836   : > { %v11145_v63 = vsel %vm11103_vm4, %v11143_v47, %v10753_v13  ;;  %v10087_v8 = vcombine.high %v23105_v42, %v25451_v21  ;;  %v18311_v13 = vld [vmem:[%s24546_s2 + $0x128] sm:$0xff]   ;;  %v25663_v37 = vcombine.high %v22649_v18, %v22655_v33  ;;  %v25664_v58 = vcombine.low %v22660_v50, %v22666_v32 }
 0x837   : > { %10932 = vrot.lane.b32.xlu0 %v10153_v26, %s18693_s13  ;;  %v10144_v26 = vrot.slane %v25660_v53, %v21919_v61  ;;  %v18314_v53 = vld [vmem:[%s24546_s2 + $0x158] sm:$0xff]  }
 0x838   : > { %10923 = vrot.lane.b32.xlu1 %v10152_v22, %s18693_s13  ;;  %16695 = vmatpush3.bf16.msra.mxu1 %v18305_v45  ;;  %v18308_v45 = vld [vmem:[%s24546_s2 + $0x170] sm:$0xff]   ;;  %v25661_v22 = vcombine.low %v25656_v62, %v25657_v31  ;;  %v18313_v31 = vld [vmem:[%s24546_s2 + $0x120] sm:$0xff]   ;;  %v23161_v34 = vrot.slane %v25663_v37, %v21919_v61  ;;  %v10264_v49 = vrot.slane %v25664_v58, %v21919_v61 }
 0x839   : > { %16702 = vmatprep.subr.bf16.mxu1 %v18306_v52  ;;  %v18309_v52 = vld [vmem:[%s24546_s2 + $0x130] sm:$0xff]   ;;  %v10154_v27 = vcombine.high %v10144_v26, %v25451_v21  ;;  %v18320_v58 = vld [vmem:[%s24546_s2 + $0x140] sm:$0xff]  }
 0x83a   : > { %v23121_v1 = vrot.slane %v25661_v22, %v21919_v61  ;;  %v10221_v22 = vcombine.high %v23161_v34, %v25451_v21 }
 0x83b   : > { %10944 = vrot.lane.b32.xlu0 %v10151_v59, %s18691_s10  ;;  %14347 = vmatmul.mubr.bf16.vlgmr.msra.gmra.mxu1 %v11121_v15  ;;  %v25662_v59 = vcombine.high %v22660_v50, %v22666_v32  ;;  %v18315_v32 = vld [vmem:[%s24546_s2 + $0x118] sm:$0xff]   ;;  %v10765_v15 = vpop.permute.xlu0 %10764 }
 0x83c   : > { %10935 = vrot.lane.b32.xlu1 %v10144_v26, %s18691_s10  ;;  %16703 = vmatpush3.bf16.msra.mxu1 %v18307_v3  ;;  %v10086_v44 = vcombine.high %v23121_v1, %v25451_v21  ;;  %v18312_v3 = vld [vmem:[%s24546_s2 + $0x160] sm:$0xff]   ;;  %v25665_v26 = vcombine.low %v22649_v18, %v22655_v33  ;;  %v18316_v33 = vld [vmem:[%s24546_s2 + $0x150] sm:$0xff]   ;;  %v10738_v18 = vpop.permute.xlu1 %10737 }
 0x83d   : > { %14386 = vmatprep.mubr.bf16.mxu1 %v11145_v63  ;;  %16704 = vmatprep.subr.bf16.mxu1 %v18308_v45  ;;  %v10271_v62 = vrot.slane %v25662_v59, %v21919_v61  ;;  %v18317_v63 = vld [vmem:[%s24546_s2 + $0x110] sm:$0xff]  }
 0x83e   : > { %v23174_v45 = vrot.slane %v25665_v26, %v21919_v61 }
 0x83f   : > { %10947 = vrot.lane.b32.xlu0 %v10087_v8, %s18692_s12  ;;  %v10289_v47 = vcombine.high %v10271_v62, %v25451_v21  ;;  %v10288_v8 = vcombine.high %v10264_v49, %v25451_v21  ;;  %v10768_v26 = vpop.permute.xlu0 %10767 }
 0x840   : > { %10938 = vrot.lane.b32.xlu1 %v10086_v44, %s18692_s12  ;;  %16705 = vmatpush3.bf16.msra.mxu1 %v18309_v52  ;;  %v10220_v50 = vcombine.high %v23174_v45, %v25451_v21  ;;  %v18318_v52 = vld [vmem:[%s24546_s2 + $0x148] sm:$0xff]   ;;  %v25666_v44 = vld [vmem:[#allocation93_spill] sm:$0xff] }
 0x841   : > { %16706 = vmatprep.subr.bf16.mxu1 %v18310_v24  ;;  %v25667_v24 = vld [vmem:[#allocation47_spill] sm:$0xff] }
 0x843   : > { %10950 = vrot.lane.b32.xlu0 %v10155_v57, %s18693_s13  ;;  %v25668_v57 = vcombine.high %v25666_v44, %v25667_v24 }
 0x844   : > { %10941 = vrot.lane.b32.xlu1 %v10154_v27, %s18693_s13  ;;  %16707 = vmatpush3.bf16.msra.mxu1 %v18311_v13  ;;  %v18319_v27 = vld [vmem:[%s24546_s2 + $0x108] sm:$0xff]  }
 0x845   : > { %16708 = vmatprep.subr.bf16.mxu1 %v18312_v3  ;;  %v10287_v13 = vrot.slane %v25668_v57, %v21919_v61  ;;  %v25669_v3 = vcombine.high %v22699_v35, %v22677_v9 }
 0x847   : > { %10962 = vrot.lane.b32.xlu0 %v10271_v62, %s18691_s10  ;;  %v23211_v59 = vrot.slane %v25669_v3, %v21919_v61  ;;  %v10741_v62 = vpop.permute.xlu1 %10740 }
 0x848   : > { %10953 = vrot.lane.b32.xlu1 %v10264_v49, %s18691_s10  ;;  %16709 = vmatpush3.bf16.msra.mxu1 %v18313_v31  ;;  %v25670_v31 = vcombine.low %v25666_v44, %v25667_v24  ;;  %v25671_v49 = vcombine.low %v22699_v35, %v22677_v9  ;;  %v18322_v9 = vld [vmem:[%s24546_s2 + $0x1f8] sm:$0xff]   ;;  %v25673_v24 = vld [vmem:[#allocation117_spill] sm:$0xff] }
 0x849   : > { %16710 = vmatprep.subr.bf16.mxu1 %v18314_v53  ;;  %v11157_v57 = vsel %vm11096_vm2, %v25673_v24, %v10765_v15  ;;  %v25674_v15 = vcombine.high %v22752_v60, %v22758_v19  ;;  %v18331_v24 = vld [vmem:[%s24546_s2 + $0x198] sm:$0xff]  }
 0x84a   : > { %v10280_v37 = vrot.slane %v25670_v31, %v21919_v61  ;;  %v23224_v53 = vrot.slane %v25671_v49, %v21919_v61 }
 0x84b   : > { %10965 = vrot.lane.b32.xlu0 %v10221_v22, %s18692_s12  ;;  %v10223_v22 = vcombine.high %v23211_v59, %v25451_v21  ;;  %v10744_v35 = vpop.permute.xlu1 %10743  ;;  %v10407_v31 = vrot.slane %v25674_v15, %v21919_v61 }
 0x84c   : > { %10956 = vrot.lane.b32.xlu1 %v10220_v50, %s18692_s12  ;;  %16711 = vmatpush3.bf16.msra.mxu1 %v18315_v32  ;;  %v18321_v32 = vld [vmem:[%s24546_s2 + $0x100] sm:$0xff]   ;;  %v10222_v50 = vcombine.high %v23224_v53, %v25451_v21 }
 0x84d   : > { %16712 = vmatprep.subr.bf16.mxu1 %v18316_v33  ;;  %v25672_v33 = vld [vmem:[#allocation71_spill] sm:$0xff] }
 0x84f   : > { %10968 = vrot.lane.b32.xlu0 %v10289_v47, %s18693_s13  ;;  %v11133_v47 = vsel %vm11096_vm2, %v25672_v33, %v10738_v18  ;;  %v18324_v18 = vld [vmem:[%s24546_s2 + $0x1f0] sm:$0xff]   ;;  %v10756_v15 = vpop.permute.xlu1 %10755 }
 0x850   : > { %10959 = vrot.lane.b32.xlu1 %v10288_v8, %s18693_s13  ;;  %16713 = vmatpush3.bf16.msra.mxu1 %v18317_v63  ;;  %v10771_v63 = vpop.permute.xlu0 %10770  ;;  %v10291_v8 = vcombine.high %v10287_v13, %v25451_v21  ;;  %v11135_v44 = vsel %vm11100_vm3, %v11133_v47, %v10741_v62  ;;  %v10425_v47 = vcombine.high %v10407_v31, %v25451_v21 }
 0x851   : > { %16714 = vmatprep.subr.bf16.mxu1 %v18318_v52  ;;  %v18323_v52 = vld [vmem:[%s24546_s2 + $0x1b8] sm:$0xff]   ;;  %v11137_v3 = vsel %vm11103_vm4, %v11135_v44, %v10744_v35  ;;  %v10423_v44 = vrot.slane %v10409_v38, %v21919_v61  ;;  %v18332_v38 = vld [vmem:[%s24546_s2 + $0x1d0] sm:$0xff]  }
 0x853   : > { %10980 = vrot.lane.b32.xlu0 %v10287_v13, %s18691_s10  ;;  %v11159_v13 = vsel %vm11100_vm3, %v11157_v57, %v10768_v26  ;;  %v25679_v57 = vcombine.high %v22749_v20, %v22770_v12 }
 0x854   : > { %10971 = vrot.lane.b32.xlu1 %v10280_v37, %s18691_s10  ;;  %16715 = vmatpush3.bf16.msra.mxu1 %v18319_v27  ;;  %v10290_v27 = vcombine.high %v10280_v37, %v25451_v21  ;;  %v11161_v62 = vsel %vm11103_vm4, %v11159_v13, %v10771_v63  ;;  %v18325_v37 = vld [vmem:[%s24546_s2 + $0x1b0] sm:$0xff]   ;;  %v18329_v63 = vld [vmem:[%s24546_s2 + $0x1a0] sm:$0xff]   ;;  %v25681_v13 = vcombine.low %v22749_v20, %v22770_v12  ;;  %v18334_v12 = vld [vmem:[%s24546_s2 + $0x1c8] sm:$0xff]  }
 0x855   : > { %16716 = vmatprep.subr.bf16.mxu1 %v18320_v58  ;;  %v25675_v58 = vld [vmem:[#allocation121_spill] sm:$0xff] }
 0x856   : > { %v25676_v49 = vcombine.high %v22713_v4, %v25675_v58 }
 0x857   : > { %10983 = vrot.lane.b32.xlu0 %v10223_v22, %s18692_s12  ;;  %v25677_v22 = vcombine.low %v22752_v60, %v22758_v19  ;;  %v18327_v19 = vld [vmem:[%s24546_s2 + $0x1a8] sm:$0xff]  }
 0x858   : > { %10974 = vrot.lane.b32.xlu1 %v10222_v50, %s18692_s12  ;;  %16717 = vmatpush3.bf16.msra.mxu1 %v18321_v32  ;;  %v23269_v26 = vrot.slane %v25676_v49, %v21919_v61  ;;  %v18326_v50 = vld [vmem:[%s24546_s2 + $0x1e8] sm:$0xff]   ;;  %v10759_v49 = vpop.permute.xlu1 %10758 }
 0x859   : > { %16724 = vmatprep.subr.bf16.mxu1 %v18322_v9  ;;  %v10400_v32 = vrot.slane %v25677_v22, %v21919_v61  ;;  %v25678_v9 = vcombine.low %v22713_v4, %v25675_v58  ;;  %v18328_v4 = vld [vmem:[%s24546_s2 + $0x1e0] sm:$0xff]   ;;  %v18335_v58 = vld [vmem:[%s24546_s2 + $0x188] sm:$0xff]  }
 0x85a   : > { %v10357_v33 = vcombine.high %v23269_v26, %v25451_v21 }
 0x85b   : > { %10986 = vrot.lane.b32.xlu0 %v10291_v8, %s18693_s13  ;;  %14387 = vmatmul.mubr.bf16.vlgmr.msra.gmra.mxu1 %v11137_v3  ;;  %v23282_v35 = vrot.slane %v25678_v9, %v21919_v61  ;;  %v10424_v8 = vcombine.high %v10400_v32, %v25451_v21  ;;  %v10543_v9 = vrot.slane %v10529_v30, %v21919_v61  ;;  %v18338_v30 = vld [vmem:[%s24546_s2 + $0x278] sm:$0xff]  }
 0x85c   : > { %10977 = vrot.lane.b32.xlu1 %v10290_v27, %s18693_s13  ;;  %16725 = vmatpush3.bf16.msra.mxu1 %v18323_v52  ;;  %v18330_v52 = vld [vmem:[%s24546_s2 + $0x1d8] sm:$0xff]   ;;  %v23319_v27 = vrot.slane %v25679_v57, %v21919_v61 }
 0x85d   : > { %14426 = vmatprep.mubr.bf16.mxu1 %v11161_v62  ;;  %16726 = vmatprep.subr.bf16.mxu1 %v18324_v18  ;;  %v10356_v60 = vcombine.high %v23282_v35, %v25451_v21  ;;  %v25680_v18 = vcombine.low %v22790_v16, %v22796_v40  ;;  %v23332_v62 = vrot.slane %v25681_v13, %v21919_v61  ;;  %v18333_v16 = vld [vmem:[%s24546_s2 + $0x190] sm:$0xff]   ;;  %v18339_v57 = vld [vmem:[%s24546_s2 + $0x238] sm:$0xff]  }
 0x85e   : > { %v10359_v40 = vcombine.high %v23319_v27, %v25451_v21 }
 0x85f   : > { %10998 = vrot.lane.b32.xlu0 %v10407_v31, %s18691_s10  ;;  %v10416_v3 = vrot.slane %v25680_v18, %v21919_v61  ;;  %v10783_v31 = vpop.permute.xlu0 %10782  ;;  %v10358_v20 = vcombine.high %v23332_v62, %v25451_v21 }
 0x860   : > { %10989 = vrot.lane.b32.xlu1 %v10400_v32, %s18691_s10  ;;  %16727 = vmatpush3.bf16.msra.mxu1 %v18325_v37  ;;  %v10427_v37 = vcombine.high %v10423_v44, %v25451_v21  ;;  %v18336_v32 = vld [vmem:[%s24546_s2 + $0x1c0] sm:$0xff]  }
 0x861   : > { %16728 = vmatprep.subr.bf16.mxu1 %v18326_v50  ;;  %v10426_v22 = vcombine.high %v10416_v3, %v25451_v21 }
 0x863   : > { %11001 = vrot.lane.b32.xlu0 %v10357_v33, %s18692_s12  ;;  %v10786_v50 = vpop.permute.xlu0 %10785  ;;  %v18337_v33 = vld [vmem:[%s24546_s2 + $0x180] sm:$0xff]  }
 0x864   : > { %10992 = vrot.lane.b32.xlu1 %v10356_v60, %s18692_s12  ;;  %16729 = vmatpush3.bf16.msra.mxu1 %v18327_v19  ;;  %v25682_v19 = vcombine.high %v22778_v55, %v22806_v10 }
 0x865   : > { %16730 = vmatprep.subr.bf16.mxu1 %v18328_v4  ;;  %v25683_v4 = vcombine.low %v22832_v56, %v22819_v39 }
 0x866   : > { %v23369_v60 = vrot.slane %v25682_v19, %v21919_v61 }
 0x867   : > { %11004 = vrot.lane.b32.xlu0 %v10425_v47, %s18693_s13  ;;  %v10536_v47 = vrot.slane %v25683_v4, %v21919_v61  ;;  %v10789_v39 = vpop.permute.xlu0 %10788 }
 0x868   : > { %10995 = vrot.lane.b32.xlu1 %v10424_v8, %s18693_s13  ;;  %16731 = vmatpush3.bf16.msra.mxu1 %v18329_v63  ;;  %v25684_v63 = vcombine.low %v22778_v55, %v22806_v10  ;;  %v10493_v56 = vcombine.high %v23369_v60, %v25451_v21  ;;  %v25686_v55 = vld [vmem:[#allocation56_spill] sm:$0xff] }
 0x869   : > { %16732 = vmatprep.subr.bf16.mxu1 %v18330_v52  ;;  %v10762_v52 = vpop.permute.xlu1 %10761  ;;  %v11173_v18 = vsel %vm11096_vm2, %v25686_v55, %v10783_v31  ;;  %v10561_v31 = vcombine.high %v10543_v9, %v25451_v21 }
 0x86a   : > { %v23382_v8 = vrot.slane %v25684_v63, %v21919_v61 }
 0x86b   : > { %11016 = vrot.lane.b32.xlu0 %v10423_v44, %s18691_s10  ;;  %v25685_v44 = vld [vmem:[#allocation51_spill] sm:$0xff]  ;;  %v10801_v4 = vpop.permute.xlu0 %10800 }
 0x86c   : > { %11007 = vrot.lane.b32.xlu1 %v10416_v3, %s18691_s10  ;;  %16733 = vmatpush3.bf16.msra.mxu1 %v18331_v24  ;;  %v11149_v24 = vsel %vm11096_vm2, %v25685_v44, %v10756_v15  ;;  %v10492_v3 = vcombine.high %v23382_v8, %v25451_v21  ;;  %v11175_v15 = vsel %vm11100_vm3, %v11173_v18, %v10786_v50  ;;  %v18349_v44 = vld [vmem:[%s24546_s2 + $0x210] sm:$0xff]   ;;  %v18350_v18 = vld [vmem:[%s24546_s2 + $0x248] sm:$0xff]  }
 0x86d   : > { %16734 = vmatprep.subr.bf16.mxu1 %v18332_v38  ;;  %v11151_v10 = vsel %vm11100_vm3, %v11149_v24, %v10759_v49  ;;  %v18340_v38 = vld [vmem:[%s24546_s2 + $0x270] sm:$0xff]   ;;  %v23427_v49 = vrot.slane %v10477_v46, %v21919_v61  ;;  %v10774_v19 = vpop.permute.xlu1 %10773 }
 0x86e   : > { %v11153_v13 = vsel %vm11103_vm4, %v11151_v10, %v10762_v52  ;;  %v25691_v24 = vld [vmem:[#allocation57_spill] sm:$0xff] }
 0x86f   : > { %11019 = vrot.lane.b32.xlu0 %v10359_v40, %s18692_s12  ;;  %v11177_v40 = vsel %vm11103_vm4, %v11175_v15, %v10789_v39  ;;  %v10495_v46 = vcombine.high %v23427_v49, %v25451_v21  ;;  %v25692_v39 = vld [vmem:[#allocation119_spill] sm:$0xff]  ;;  %v18351_v15 = vld [vmem:[%s24546_s2 + $0x208] sm:$0xff]  }
 0x870   : > { %11010 = vrot.lane.b32.xlu1 %v10358_v20, %s18692_s12  ;;  %16735 = vmatpush3.bf16.msra.mxu1 %v18333_v16  ;;  %v18341_v16 = vld [vmem:[%s24546_s2 + $0x230] sm:$0xff]   ;;  %v10560_v20 = vcombine.high %v10536_v47, %v25451_v21 }
 0x871   : > { %16736 = vmatprep.subr.bf16.mxu1 %v18334_v12  ;;  %v18342_v12 = vld [vmem:[%s24546_s2 + $0x268] sm:$0xff]  }
 0x873   : > { %11022 = vrot.lane.b32.xlu0 %v10427_v37, %s18693_s13  ;;  %v10559_v37 = vrot.slane %v10545_v2, %v21919_v61  ;;  %v18344_v2 = vld [vmem:[%s24546_s2 + $0x260] sm:$0xff]  }
 0x874   : > { %11013 = vrot.lane.b32.xlu1 %v10426_v22, %s18693_s13  ;;  %16737 = vmatpush3.bf16.msra.mxu1 %v18335_v58  ;;  %v18343_v58 = vld [vmem:[%s24546_s2 + $0x228] sm:$0xff]   ;;  %v10552_v22 = vrot.slane %v10544_v43, %v21919_v61  ;;  %v18347_v43 = vld [vmem:[%s24546_s2 + $0x218] sm:$0xff]  }
 0x875   : > { %16738 = vmatprep.subr.bf16.mxu1 %v18336_v32  ;;  %v25687_v32 = vcombine.low %v22825_v25, %v22842_v6  ;;  %v18346_v25 = vld [vmem:[%s24546_s2 + $0x258] sm:$0xff]   ;;  %v10563_v6 = vcombine.high %v10559_v37, %v25451_v21 }
 0x877   : > { %11034 = vrot.lane.b32.xlu0 %v10543_v9, %s18691_s10  ;;  %v23440_v50 = vrot.slane %v25687_v32, %v21919_v61  ;;  %v10562_v9 = vcombine.high %v10552_v22, %v25451_v21  ;;  %v25696_v32 = vld [vmem:[#allocation39_spill] sm:$0xff] }
 0x878   : > { %11025 = vrot.lane.b32.xlu1 %v10536_v47, %s18691_s10  ;;  %16739 = vmatpush3.bf16.msra.mxu1 %v18337_v33  ;;  %v18348_v33 = vld [vmem:[%s24546_s2 + $0x250] sm:$0xff]   ;;  %v25688_v47 = vld [vmem:[#allocation116_spill] sm:$0xff] }
 0x879   : > { %16746 = vmatprep.subr.bf16.mxu1 %v18338_v30  ;;  %v10494_v23 = vcombine.high %v23440_v50, %v25451_v21  ;;  %v25689_v30 = vld [vmem:[#allocation69_spill] sm:$0xff] }
 0x87a   : > { %v25690_v63 = vcombine.high %v25688_v47, %v25689_v30  ;;  %v25694_v10 = vcombine.low %v25688_v47, %v25689_v30 }
 0x87b   : > { %11037 = vrot.lane.b32.xlu0 %v10493_v56, %s18692_s12  ;;  %14427 = vmatmul.mubr.bf16.vlgmr.msra.gmra.mxu1 %v11153_v13  ;;  %v25693_v56 = vcombine.high %v25691_v24, %v25692_v39 }
 0x87c   : > { %11028 = vrot.lane.b32.xlu1 %v10492_v3, %s18692_s12  ;;  %16747 = vmatpush3.bf16.msra.mxu1 %v18339_v57  ;;  %v10679_v52 = vrot.slane %v25690_v63, %v21919_v61  ;;  %v10672_v55 = vrot.slane %v25694_v10, %v21919_v61  ;;  %v25695_v3 = vcombine.low %v25691_v24, %v25692_v39  ;;  %v18356_v24 = vld [vmem:[%s24546_s2 + $0x2f0] sm:$0xff]  }
 0x87d   : > { %14466 = vmatprep.mubr.bf16.mxu1 %v11177_v40  ;;  %16748 = vmatprep.subr.bf16.mxu1 %v18340_v38  ;;  %v23477_v57 = vrot.slane %v25693_v56, %v21919_v61  ;;  %v10777_v40 = vpop.permute.xlu1 %10776 }
 0x87e   : > { %v23490_v38 = vrot.slane %v25695_v3, %v21919_v61  ;;  %v18358_v3 = vld [vmem:[%s24546_s2 + $0x2e8] sm:$0xff]  }
 0x87f   : > { %11040 = vrot.lane.b32.xlu0 %v10561_v31, %s18693_s13  ;;  %v10629_v13 = vcombine.high %v23477_v57, %v25451_v21 }
 0x880   : > { %11031 = vrot.lane.b32.xlu1 %v10560_v20, %s18693_s13  ;;  %16749 = vmatpush3.bf16.msra.mxu1 %v18341_v16  ;;  %v10628_v31 = vcombine.high %v23490_v38, %v25451_v21  ;;  %v18352_v16 = vld [vmem:[%s24546_s2 + $0x240] sm:$0xff]   ;;  %v10804_v20 = vpop.permute.xlu0 %10803 }
 0x881   : > { %16750 = vmatprep.subr.bf16.mxu1 %v18342_v12  ;;  %v10697_v12 = vcombine.high %v10679_v52, %v25451_v21 }
 0x883   : > { %11052 = vrot.lane.b32.xlu0 %v10559_v37, %s18691_s10  ;;  %v18353_v37 = vld [vmem:[%s24546_s2 + $0x200] sm:$0xff]  }
 0x884   : > { %11043 = vrot.lane.b32.xlu1 %v10552_v22, %s18691_s10  ;;  %16751 = vmatpush3.bf16.msra.mxu1 %v18343_v58  ;;  %v10696_v58 = vcombine.high %v10672_v55, %v25451_v21  ;;  %v18354_v22 = vld [vmem:[%s24546_s2 + $0x2f8] sm:$0xff]  }
 0x885   : > { %16752 = vmatprep.subr.bf16.mxu1 %v18344_v2  ;;  %v10780_v2 = vpop.permute.xlu1 %10779 }
 0x887   : > { %11055 = vrot.lane.b32.xlu0 %v10495_v46, %s18692_s12  ;;  %v11165_v46 = vsel %vm11096_vm2, %v25696_v32, %v10774_v19  ;;  %v25701_v19 = vld [vmem:[#allocation46_spill] sm:$0xff]  ;;  %v18367_v32 = vld [vmem:[%s24546_s2 + $0x288] sm:$0xff]  }
 0x888   : > { %11046 = vrot.lane.b32.xlu1 %v10494_v23, %s18692_s12  ;;  %16753 = vmatpush3.bf16.msra.mxu1 %v18345_v0  ;;  %v10807_v0 = vpop.permute.xlu0 %10806  ;;  %v25697_v23 = vcombine.high %v21900_v54, %v21908_v5  ;;  %v11167_v30 = vsel %vm11100_vm3, %v11165_v46, %v10777_v40  ;;  %v11189_v63 = vsel %vm11096_vm2, %v25701_v19, %v10801_v4  ;;  %v18368_v46 = vld [vmem:[%s24546_s2 + $0x2c0] sm:$0xff]  }
 0x889   : > { %16754 = vmatprep.subr.bf16.mxu1 %v18346_v25  ;;  %v11169_v10 = vsel %vm11103_vm4, %v11167_v30, %v10780_v2  ;;  %v11191_v4 = vsel %vm11100_vm3, %v11189_v63, %v10804_v20  ;;  %v18361_v20 = vld [vmem:[%s24546_s2 + $0x2a0] sm:$0xff]   ;;  %v18366_v2 = vld [vmem:[%s24546_s2 + $0x2c8] sm:$0xff]   ;;  %v18371_v30 = vld [vmem:[%s24546_s2 + $0x338] sm:$0xff]  }
 0x88a   : > { %v10695_v25 = vrot.slane %v25697_v23, %v21919_v61  ;;  %v18369_v23 = vld [vmem:[%s24546_s2 + $0x280] sm:$0xff]   ;;  %v25705_v63 = vld [vmem:[#allocation108_spill] sm:$0xff] }
 0x88b   : > { %11058 = vrot.lane.b32.xlu0 %v10563_v6, %s18693_s13  ;;  %v18355_v6 = vld [vmem:[%s24546_s2 + $0x2b8] sm:$0xff]  }
 0x88c   : > { %11049 = vrot.lane.b32.xlu1 %v10562_v9, %s18693_s13  ;;  %16755 = vmatpush3.bf16.msra.mxu1 %v18347_v43  ;;  %v25698_v43 = vld [vmem:[#allocation45_spill] sm:$0xff]  ;;  %v25699_v9 = vld [vmem:[#allocation74_spill] sm:$0xff] }
 0x88d   : > { %16756 = vmatprep.subr.bf16.mxu1 %v18348_v33  ;;  %v25700_v33 = vcombine.high %v25698_v43, %v25699_v9  ;;  %v25703_v39 = vcombine.low %v25698_v43, %v25699_v9  ;;  %v25704_v43 = vld [vmem:[#allocation94_spill] sm:$0xff] }
 0x88f   : > { %11070 = vrot.lane.b32.xlu0 %v10679_v52, %s18691_s10  ;;  %v23529_v47 = vrot.slane %v25700_v33, %v21919_v61  ;;  %v25702_v52 = vcombine.low %v21900_v54, %v21908_v5  ;;  %v23545_v56 = vrot.slane %v25703_v39, %v21919_v61  ;;  %v11193_v54 = vsel %vm11103_vm4, %v11191_v4, %v10807_v0  ;;  %v18373_v4 = vld [vmem:[%s24546_s2 + $0x330] sm:$0xff]  }
 0x890   : > { %11061 = vrot.lane.b32.xlu1 %v10672_v55, %s18691_s10  ;;  %16757 = vmatpush3.bf16.msra.mxu1 %v18349_v44  ;;  %v10792_v55 = vpop.permute.xlu1 %10791 }
 0x891   : > { %16758 = vmatprep.subr.bf16.mxu1 %v18350_v18  ;;  %v10688_v44 = vrot.slane %v25702_v52, %v21919_v61  ;;  %v10631_v5 = vcombine.high %v23529_v47, %v25451_v21  ;;  %v18357_v61 = vld [vmem:[%s24546_s2 + $0x2b0] sm:$0xff]   ;;  %v10630_v18 = vcombine.high %v23545_v56, %v25451_v21  ;;  %v11181_v9 = vsel %vm11096_vm2, %v25704_v43, %v10792_v55  ;;  %v18377_v55 = vld [vmem:[%s24546_s2 + $0x320] sm:$0xff]  }
 0x893   : > { %11073 = vrot.lane.b32.xlu0 %v10629_v13, %s18692_s12  ;;  %v10699_v13 = vcombine.high %v10695_v25, %v25451_v21  ;;  %v10698_v40 = vcombine.high %v10688_v44, %v25451_v21  ;;  %v18363_v21 = vld [vmem:[%s24546_s2 + $0x298] sm:$0xff]  }
 0x894   : > { %11064 = vrot.lane.b32.xlu1 %v10628_v31, %s18692_s12  ;;  %16759 = vmatpush3.bf16.msra.mxu1 %v18351_v15  ;;  %v18359_v15 = vld [vmem:[%s24546_s2 + $0x2a8] sm:$0xff]   ;;  %v18360_v31 = vld [vmem:[%s24546_s2 + $0x2e0] sm:$0xff]  }
 0x895   : > { %16760 = vmatprep.subr.bf16.mxu1 %v18352_v16  ;;  %v10795_v16 = vpop.permute.xlu1 %10794 }
 0x896   : > { %v11183_v19 = vsel %vm11100_vm3, %v11181_v9, %v10795_v16  ;;  %v18382_v16 = vld [vmem:[%s24546_s2 + $0x348] sm:$0xff]   ;;  %v18388_v9 = vld [vmem:[%s24546_s2 + $0x3f0] sm:$0xff]  }
 0x897   : > { %11076 = vrot.lane.b32.xlu0 %v10697_v12, %s18693_s13  ;;  %v18362_v12 = vld [vmem:[%s24546_s2 + $0x2d8] sm:$0xff]  }
 0x898   : > { %11067 = vrot.lane.b32.xlu1 %v10696_v58, %s18693_s13  ;;  %16761 = vmatpush3.bf16.msra.mxu1 %v18353_v37  ;;  %v18364_v37 = vld [vmem:[%s24546_s2 + $0x2d0] sm:$0xff]   ;;  %v10819_v58 = vpop.permute.xlu0 %10818 }
 0x899   : > { %16768 = vmatprep.subr.bf16.mxu1 %v18354_v22  ;;  %v18365_v22 = vld [vmem:[%s24546_s2 + $0x290] sm:$0xff]   ;;  %v11205_v52 = vsel %vm11096_vm2, %v25705_v63, %v10819_v58  ;;  %v18385_v58 = vld [vmem:[%s24546_s2 + $0x300] sm:$0xff]  }
 0x89b   : > { %11088 = vrot.lane.b32.xlu0 %v10695_v25, %s18691_s10  ;;  %14467 = vmatmul.mubr.bf16.vlgmr.msra.gmra.mxu1 %v11169_v10  ;;  %v18370_v25 = vld [vmem:[%s24546_s2 + $0x378] sm:$0xff]  }
 0x89c   : > { %11079 = vrot.lane.b32.xlu1 %v10688_v44, %s18691_s10  ;;  %16769 = vmatpush3.bf16.msra.mxu1 %v18355_v6  ;;  %v10822_v0 = vpop.permute.xlu0 %10821  ;;  %v10798_v6 = vpop.permute.xlu1 %10797  ;;  %v18372_v44 = vld [vmem:[%s24546_s2 + $0x370] sm:$0xff]   ;;  %s15156_s10 = scalar_lea.sflag [#allocation3], %s191_s23 }
 0x89d   : > { %14506 = vmatprep.mubr.bf16.mxu1 %v11193_v54  ;;  %16770 = vmatprep.subr.bf16.mxu1 %v18356_v24  ;;  %v11185_v24 = vsel %vm11103_vm4, %v11183_v19, %v10798_v6  ;;  %v11207_v39 = vsel %vm11100_vm3, %v11205_v52, %v10822_v0  ;;  %v18374_v54 = vld [vmem:[%s24546_s2 + $0x368] sm:$0xff]   ;;  %v25707_v6 = vld [vmem:[#allocation78_spill] sm:$0xff]  ;;  %v18389_v52 = vld [vmem:[%s24546_s2 + $0x3b0] sm:$0xff]  }
 0x89f   : > { %11091 = vrot.lane.b32.xlu0 %v10631_v5, %s18692_s12  ;;  %v18375_v5 = vld [vmem:[%s24546_s2 + $0x328] sm:$0xff]  }
 0x8a0   : > { %11082 = vrot.lane.b32.xlu1 %v10630_v18, %s18692_s12  ;;  %16771 = vmatpush3.bf16.msra.mxu1 %v18357_v61  ;;  %v10825_v33 = vpop.permute.xlu0 %10824  ;;  %v18376_v61 = vld [vmem:[%s24546_s2 + $0x360] sm:$0xff]   ;;  %v18378_v18 = vld [vmem:[%s24546_s2 + $0x358] sm:$0xff]  }
 0x8a1   : > { %16772 = vmatprep.subr.bf16.mxu1 %v18358_v3  ;;  %v11209_v10 = vsel %vm11103_vm4, %v11207_v39, %v10825_v33  ;;  %v18379_v3 = vld [vmem:[%s24546_s2 + $0x318] sm:$0xff]  }
 0x8a3   : > { %11094 = vrot.lane.b32.xlu0 %v10699_v13, %s18693_s13  ;;  %v18380_v13 = vld [vmem:[%s24546_s2 + $0x350] sm:$0xff]  }
 0x8a4   : > { %11085 = vrot.lane.b32.xlu1 %v10698_v40, %s18693_s13  ;;  %16773 = vmatpush3.bf16.msra.mxu1 %v18359_v15  ;;  %v10810_v15 = vpop.permute.xlu1 %10809  ;;  %v10837_v40 = vpop.permute.xlu0 %10836  ;;  %s193_s13 = scalar_lea.vmem [#allocation2], %s15232_s27 }
 0x8a5   : > { %16774 = vmatprep.subr.bf16.mxu1 %v18360_v31  ;;  %v18381_v31 = vld [vmem:[%s24546_s2 + $0x310] sm:$0xff]   ;;  %v11221_v43 = vsel %vm11096_vm2, %v25707_v6, %v10837_v40  ;;  %s15169_s29 = sshll.u32 %s193_s13, 4  ;;  %s15170_s29 = int_to_ptr.vmem [resolvable:$true] %s15169_s29 }
 0x8a6   : > { %v18397_v40 = vld [vmem:[%s24546_s2 + $0x390] sm:$0xff]   ;;  %s18626_s7 = scalar_lea.vmem %s15170_s29, 128  ;;  %p18633_p0 = scmp.lt.s32.totalorder %s15170_s29, %s18631_s11 }
 0x8a7   : > { %v18404_v6 = vld [vmem:[%s24546_s2 + $0x470] sm:$0xff]   ;;  %p18627_p11 = scmp.ne.s32.totalorder %s15170_s29, %s18626_s7  ;;  %p18634_p1 = scmp.lt.s32.totalorder %s18632_s8, %s18626_s7 }
 0x8a8   : > { %16775 = vmatpush3.bf16.msra.mxu1 %v18361_v20  ;;  %v18383_v20 = vld [vmem:[%s24546_s2 + $0x308] sm:$0xff]  }
 0x8a9   : > { %16776 = vmatprep.subr.bf16.mxu1 %v18362_v12  ;;  %v10813_v12 = vpop.permute.xlu1 %10812  ;;  %p18628_p12 = pnand %p18627_p11, %p18758_p5  ;;  %p18635_p2 = por %p18634_p1, %p18633_p0 }
 0x8ab   : > { %p18629_p13 = pneg %p18628_p12 }
 0x8ac   : > { %16777 = vmatpush3.bf16.msra.mxu1 %v18363_v21  ;;  %v18384_v21 = vld [vmem:[%s24546_s2 + $0x340] sm:$0xff]  }
 0x8ad   : > { %16778 = vmatprep.subr.bf16.mxu1 %v18364_v37  ;;  %v10840_v37 = vpop.permute.xlu0 %10839  ;;  %p18636_p3 = pnand %p18635_p2, %p18629_p13 }
 0x8b0   : > { %16779 = vmatpush3.bf16.msra.mxu1 %v18365_v22  ;;  %v18386_v22 = vld [vmem:[%s24546_s2 + $0x3f8] sm:$0xff]  }
 0x8b1   : > { %16780 = vmatprep.subr.bf16.mxu1 %v18366_v2  ;;  %v10816_v2 = vpop.permute.xlu1 %10815  ;;  %v10843_v0 = vpop.permute.xlu0 %10842 }
 0x8b4   : > { %16781 = vmatpush3.bf16.msra.mxu1 %v18367_v32  ;;  %v25706_v32 = vld [vmem:[#allocation63_spill] sm:$0xff] }
 0x8b5   : > { %16782 = vmatprep.subr.bf16.mxu1 %v18368_v46  ;;  %v11197_v46 = vsel %vm11096_vm2, %v25706_v32, %v10810_v15  ;;  %v10855_v15 = vpop.permute.xlu0 %10854 }
 0x8b8   : > { %16783 = vmatpush3.bf16.msra.mxu1 %v18369_v23  ;;  %v18387_v23 = vld [vmem:[%s24546_s2 + $0x3b8] sm:$0xff]  }
 0x8b9   : > { %16790 = vmatprep.subr.bf16.mxu1 %v18370_v25  ;;  %v11199_v25 = vsel %vm11100_vm3, %v11197_v46, %v10813_v12  ;;  %v18400_v12 = vld [vmem:[%s24546_s2 + $0x3c0] sm:$0xff]  }
 0x8ba   : > { %v11201_v33 = vsel %vm11103_vm4, %v11199_v25, %v10816_v2  ;;  %v25708_v2 = vld [vmem:[#allocation102_spill] sm:$0xff]  ;;  %v11237_v25 = vsel %vm11096_vm2, %v22868_v29, %v10855_v15  ;;  %v18405_v29 = vld [vmem:[%s24546_s2 + $0x430] sm:$0xff]  }
 0x8bb   : > { %14507 = vmatmul.mubr.bf16.vlgmr.msra.gmra.mxu1 %v11185_v24  ;;  %v18390_v24 = vld [vmem:[%s24546_s2 + $0x3e8] sm:$0xff]  }
 0x8bc   : > { %16791 = vmatpush3.bf16.msra.mxu1 %v18371_v30  ;;  %14546 = vmatprep.mubr.bf16.mxu1 %v11209_v10  ;;  %v11223_v30 = vsel %vm11100_vm3, %v11221_v43, %v10840_v37  ;;  %v18401_v37 = vld [vmem:[%s24546_s2 + $0x380] sm:$0xff]  }
 0x8bd   : > { %16792 = vmatprep.subr.bf16.mxu1 %v18372_v44  ;;  %v11225_v63 = vsel %vm11103_vm4, %v11223_v30, %v10843_v0  ;;  %v18403_v0 = vld [vmem:[%s24546_s2 + $0x438] sm:$0xff]  }
 0x8c0   : > { %16793 = vmatpush3.bf16.msra.mxu1 %v18373_v4  ;;  %v18391_v4 = vld [vmem:[%s24546_s2 + $0x3a8] sm:$0xff]  }
 0x8c1   : > { %16794 = vmatprep.subr.bf16.mxu1 %v18374_v54 }
 0x8c4   : > { %16795 = vmatpush3.bf16.msra.mxu1 %v18375_v5  ;;  %v18392_v5 = vld [vmem:[%s24546_s2 + $0x3e0] sm:$0xff]  }
 0x8c5   : > { %16796 = vmatprep.subr.bf16.mxu1 %v18376_v61  ;;  %v18393_v61 = vld [vmem:[%s24546_s2 + $0x3a0] sm:$0xff]  }
 0x8c8   : > { %16797 = vmatpush3.bf16.msra.mxu1 %v18377_v55  ;;  %v18394_v55 = vld [vmem:[%s24546_s2 + $0x3d8] sm:$0xff]  }
 0x8c9   : > { %16798 = vmatprep.subr.bf16.mxu1 %v18378_v18  ;;  %v18395_v18 = vld [vmem:[%s24546_s2 + $0x398] sm:$0xff]  }
 0x8cc   : > { %16799 = vmatpush3.bf16.msra.mxu1 %v18379_v3  ;;  %v18396_v3 = vld [vmem:[%s24546_s2 + $0x3d0] sm:$0xff]  }
 0x8cd   : > { %16800 = vmatprep.subr.bf16.mxu1 %v18380_v13  ;;  %v10828_v13 = vpop.permute.xlu1 %10827 }
 0x8ce   : > { %v11213_v32 = vsel %vm11096_vm2, %v25708_v2, %v10828_v13 }
 0x8d0   : > { %16801 = vmatpush3.bf16.msra.mxu1 %v18381_v31  ;;  %v18398_v31 = vld [vmem:[%s24546_s2 + $0x3c8] sm:$0xff]  }
 0x8d1   : > { %16802 = vmatprep.subr.bf16.mxu1 %v18382_v16  ;;  %v18399_v16 = vld [vmem:[%s24546_s2 + $0x388] sm:$0xff]  }
 0x8d4   : > { %16803 = vmatpush3.bf16.msra.mxu1 %v18383_v20  ;;  %v10831_v20 = vpop.permute.xlu1 %10830 }
 0x8d5   : > { %16804 = vmatprep.subr.bf16.mxu1 %v18384_v21  ;;  %v10858_v21 = vpop.permute.xlu0 %10857 }
 0x8d8   : > { %16805 = vmatpush3.bf16.msra.mxu1 %v18385_v58  ;;  %v18402_v58 = vld [vmem:[%s24546_s2 + $0x478] sm:$0xff]  }
 0x8d9   : > { %16812 = vmatprep.subr.bf16.mxu1 %v18386_v22  ;;  %v10834_v22 = vpop.permute.xlu1 %10833  ;;  %v10861_v46 = vpop.permute.xlu0 %10860 }
 0x8db   : > { %14547 = vmatmul.mubr.bf16.vlgmr.msra.gmra.mxu1 %v11201_v33  ;;  %v16674_v19 = vpop.f32.mrf.mxu1  ;;  %v16301_v33 = vld [vmem:[%s24547_s3] ss:$0 sm:$0xff] }
 0x8dc   : > { %16813 = vmatpush3.bf16.msra.mxu1 %v18387_v23  ;;  %14586 = vmatprep.mubr.bf16.mxu1 %v11225_v63  ;;  %v11215_v23 = vsel %vm11100_vm3, %v11213_v32, %v10831_v20 }
 0x8dd   : > { %v16675_v44 = vpop.f32.mrf.mxu1  ;;  %16814 = vmatprep.subr.bf16.mxu1 %v18388_v9  ;;  %v11217_v43 = vsel %vm11103_vm4, %v11215_v23, %v10834_v22  ;;  %v11239_v9 = vsel %vm11100_vm3, %v11237_v25, %v10858_v21  ;;  %v10846_v13 = vpop.permute.xlu1 %10845  ;;  %v18420_v25 = vld [vmem:[%s24546_s2 + $0x4f0] sm:$0xff]  }
 0x8de   : > { %v16676_v39 = vadd.f32 %v16675_v44, %v16674_v19  ;;  %v11241_v19 = vsel %vm11103_vm4, %v11239_v9, %v10861_v46  ;;  %v10873_v15 = vpop.permute.xlu0 %10872  ;;  %v11229_v2 = vsel %vm11096_vm2, %v22874_v36, %v10846_v13  ;;  %v18419_v46 = vld [vmem:[%s24546_s2 + $0x4b8] sm:$0xff]  }
 0x8df   : > { %v16677_v10 = vpop.f32.mrf.mxu1  ;;  %v11253_v23 = vsel %vm11096_vm2, %v22916_v51, %v10873_v15  ;;  %v18432_v15 = vld [vmem:[%s24546_s2 + $0x4c0] sm:$0xff]  }
 0x8e0   : > { %16815 = vmatpush3.bf16.msra.mxu1 %v18389_v52  ;;  %v18406_v52 = vld [vmem:[%s24546_s2 + $0x468] sm:$0xff]   ;;  %v14309_v44 = vadd.f32 %v16676_v39, %v16301_v33  ;;  %v18410_v39 = vld [vmem:[%s24546_s2 + $0x458] sm:$0xff]   ;;  %v18421_v33 = vld [vmem:[%s24546_s2 + $0x4b0] sm:$0xff]  }
 0x8e1   : > { %v16678_v54 = vpop.f32.mrf.mxu1  ;;  %16816 = vmatprep.subr.bf16.mxu1 %v18390_v24  ;;  %v10849_v20 = vpop.permute.xlu1 %10848 }
 0x8e2   : > { %v18407_v54 = vld [vmem:[%s24546_s2 + $0x428] sm:$0xff]   ;;  %v10876_v21 = vpop.permute.xlu0 %10875 }
 0x8e3   : > { %v11255_v36 = vsel %vm11100_vm3, %v11253_v23, %v10876_v21  ;;  %v18437_v23 = vld [vmem:[%s24546_s2 + $0x530] sm:$0xff]  }
 0x8e4   : > { %16817 = vmatpush3.bf16.msra.mxu1 %v18391_v4 }
 0x8e5   : > { %16818 = vmatprep.subr.bf16.mxu1 %v18392_v5  ;;  %v10852_v22 = vpop.permute.xlu1 %10851 }
 0x8e6   : > { %v10879_v32 = vpop.permute.xlu0 %10878 }
 0x8e7   : > { %v11257_v9 = vsel %vm11103_vm4, %v11255_v36, %v10879_v32 }
 0x8e8   : > { %16819 = vmatpush3.bf16.msra.mxu1 %v18393_v61  ;;  %v18408_v61 = vld [vmem:[%s24546_s2 + $0x460] sm:$0xff]  }
 0x8e9   : > { %16820 = vmatprep.subr.bf16.mxu1 %v18394_v55  ;;  %v18409_v55 = vld [vmem:[%s24546_s2 + $0x420] sm:$0xff]  }
 0x8ec   : > { %16821 = vmatpush3.bf16.msra.mxu1 %v18395_v18  ;;  %v18411_v18 = vld [vmem:[%s24546_s2 + $0x418] sm:$0xff]  }
 0x8ed   : > { %16822 = vmatprep.subr.bf16.mxu1 %v18396_v3  ;;  %v18412_v3 = vld [vmem:[%s24546_s2 + $0x450] sm:$0xff]  }
 0x8f0   : > { %16823 = vmatpush3.bf16.msra.mxu1 %v18397_v40  ;;  %v18413_v40 = vld [vmem:[%s24546_s2 + $0x410] sm:$0xff]  }
 0x8f1   : > { %16824 = vmatprep.subr.bf16.mxu1 %v18398_v31  ;;  %v18414_v31 = vld [vmem:[%s24546_s2 + $0x448] sm:$0xff]  }
 0x8f4   : > { %16825 = vmatpush3.bf16.msra.mxu1 %v18399_v16  ;;  %v18415_v16 = vld [vmem:[%s24546_s2 + $0x408] sm:$0xff]  }
 0x8f5   : > { %16826 = vmatprep.subr.bf16.mxu1 %v18400_v12  ;;  %v18416_v12 = vld [vmem:[%s24546_s2 + $0x440] sm:$0xff]  }
 0x8f8   : > { %16827 = vmatpush3.bf16.msra.mxu1 %v18401_v37  ;;  %v18417_v37 = vld [vmem:[%s24546_s2 + $0x400] sm:$0xff]  }
 0x8f9   : > { %16834 = vmatprep.subr.bf16.mxu1 %v18402_v58  ;;  %v18418_v58 = vld [vmem:[%s24546_s2 + $0x4f8] sm:$0xff]  }
 0x8fb   : > { %v16696_v30 = vpop.f32.mrf.mxu1  ;;  %14587 = vmatmul.mubr.bf16.vlgmr.msra.gmra.mxu1 %v11217_v43 }
 0x8fc   : > { %16835 = vmatpush3.bf16.msra.mxu1 %v18403_v0  ;;  %14626 = vmatprep.mubr.bf16.mxu1 %v11241_v19  ;;  %v11231_v0 = vsel %vm11100_vm3, %v11229_v2, %v10849_v20  ;;  %v18436_v2 = vld [vmem:[%s24546_s2 + $0x570] sm:$0xff]  }
 0x8fd   : > { %v16697_v63 = vpop.f32.mrf.mxu1  ;;  %16836 = vmatprep.subr.bf16.mxu1 %v18404_v6  ;;  %v11233_v6 = vsel %vm11103_vm4, %v11231_v0, %v10852_v22 }
 0x8fe   : > { %v16698_v24 = vadd.f32 %v16697_v63, %v16696_v30  ;;  %v18422_v30 = vld [vmem:[%s24546_s2 + $0x4e8] sm:$0xff]  }
 0x8ff   : > { %v16699_v10 = vpop.f32.mrf.mxu1 }
 0x900   : > { %v14349_v4 = vadd.f32 %v16698_v24, %v14309_v44  ;;  %16837 = vmatpush3.bf16.msra.mxu1 %v18405_v29  ;;  %v18424_v24 = vld [vmem:[%s24546_s2 + $0x4e0] sm:$0xff]  }
 0x901   : > { %v16700_v5 = vpop.f32.mrf.mxu1  ;;  %16838 = vmatprep.subr.bf16.mxu1 %v18406_v52  ;;  %v18423_v52 = vld [vmem:[%s24546_s2 + $0x4a8] sm:$0xff]   ;;  %v18425_v10 = vld [vmem:[%s24546_s2 + $0x4a0] sm:$0xff]  }
 0x902   : > { %v18428_v5 = vld [vmem:[%s24546_s2 + $0x4d0] sm:$0xff]  }
 0x904   : > { %16839 = vmatpush3.bf16.msra.mxu1 %v18407_v54  ;;  %v18427_v54 = vld [vmem:[%s24546_s2 + $0x498] sm:$0xff]  }
 0x905   : > { %16840 = vmatprep.subr.bf16.mxu1 %v18408_v61  ;;  %v10864_v61 = vpop.permute.xlu1 %10863 }
 0x908   : > { %16841 = vmatpush3.bf16.msra.mxu1 %v18409_v55  ;;  %v10891_v55 = vpop.permute.xlu0 %10890 }
 0x909   : > { %16842 = vmatprep.subr.bf16.mxu1 %v18410_v39  ;;  %v18429_v39 = vld [vmem:[%s24546_s2 + $0x490] sm:$0xff]   ;;  %v10867_v13 = vpop.permute.xlu1 %10866  ;;  %v11269_v22 = vsel %vm11096_vm2, %v22948_v17, %v10891_v55  ;;  %v18449_v55 = vld [vmem:[%s24546_s2 + $0x500] sm:$0xff]  }
 0x90c   : > { %16843 = vmatpush3.bf16.msra.mxu1 %v18411_v18  ;;  %v18430_v18 = vld [vmem:[%s24546_s2 + $0x4c8] sm:$0xff]  }
 0x90d   : > { %16844 = vmatprep.subr.bf16.mxu1 %v18412_v3  ;;  %v18431_v3 = vld [vmem:[%s24546_s2 + $0x488] sm:$0xff]   ;;  %v10870_v20 = vpop.permute.xlu1 %10869 }
 0x910   : > { %16845 = vmatpush3.bf16.msra.mxu1 %v18413_v40  ;;  %v10894_v40 = vpop.permute.xlu0 %10893 }
 0x911   : > { %16846 = vmatprep.subr.bf16.mxu1 %v18414_v31  ;;  %v18433_v31 = vld [vmem:[%s24546_s2 + $0x480] sm:$0xff]  }
 0x914   : > { %16847 = vmatpush3.bf16.msra.mxu1 %v18415_v16  ;;  %v18434_v16 = vld [vmem:[%s24546_s2 + $0x578] sm:$0xff]   ;;  %v10897_v21 = vpop.permute.xlu0 %10896 }
 0x915   : > { %16848 = vmatprep.subr.bf16.mxu1 %v18416_v12  ;;  %v11245_v12 = vsel %vm11096_vm2, %v22922_v14, %v10864_v61  ;;  %v11271_v14 = vsel %vm11100_vm3, %v11269_v22, %v10894_v40 }
 0x916   : > { %v11273_v0 = vsel %vm11103_vm4, %v11271_v14, %v10897_v21  ;;  %v18455_v14 = vld [vmem:[%s24546_s2 + $0x5a8] sm:$0xff]  }
 0x918   : > { %16849 = vmatpush3.bf16.msra.mxu1 %v18417_v37  ;;  %v18435_v37 = vld [vmem:[%s24546_s2 + $0x538] sm:$0xff]  }
 0x919   : > { %16856 = vmatprep.subr.bf16.mxu1 %v18418_v58  ;;  %v11247_v58 = vsel %vm11100_vm3, %v11245_v12, %v10867_v13 }
 0x91a   : > { %v11249_v32 = vsel %vm11103_vm4, %v11247_v58, %v10870_v20  ;;  %v18454_v58 = vld [vmem:[%s24546_s2 + $0x5e8] sm:$0xff]  }
 0x91b   : > { %v16718_v43 = vpop.f32.mrf.mxu1  ;;  %14627 = vmatmul.mubr.bf16.vlgmr.msra.gmra.mxu1 %v11233_v6 }
 0x91c   : > { %16857 = vmatpush3.bf16.msra.mxu1 %v18419_v46  ;;  %14666 = vmatprep.mubr.bf16.mxu1 %v11257_v9  ;;  %v18439_v9 = vld [vmem:[%s24546_s2 + $0x528] sm:$0xff]  }
 0x91d   : > { %v16719_v51 = vpop.f32.mrf.mxu1  ;;  %16858 = vmatprep.subr.bf16.mxu1 %v18420_v25  ;;  %v18438_v25 = vld [vmem:[%s24546_s2 + $0x568] sm:$0xff]  }
 0x91e   : > { %v16720_v19 = vadd.f32 %v16719_v51, %v16718_v43  ;;  %v18440_v51 = vld [vmem:[%s24546_s2 + $0x560] sm:$0xff]  }
 0x91f   : > { %v16721_v29 = vpop.f32.mrf.mxu1 }
 0x920   : > { %v14389_v63 = vadd.f32 %v16720_v19, %v14349_v4  ;;  %16859 = vmatpush3.bf16.msra.mxu1 %v18421_v33  ;;  %v18426_v4 = vld [vmem:[%s24546_s2 + $0x4d8] sm:$0xff]  }
 0x921   : > { %v16722_v44 = vpop.f32.mrf.mxu1  ;;  %16860 = vmatprep.subr.bf16.mxu1 %v18422_v30  ;;  %v18441_v30 = vld [vmem:[%s24546_s2 + $0x520] sm:$0xff]   ;;  %v18442_v19 = vld [vmem:[%s24546_s2 + $0x558] sm:$0xff]  }
 0x922   : > { %v18443_v29 = vld [vmem:[%s24546_s2 + $0x518] sm:$0xff]   ;;  %v10909_v44 = vpop.permute.xlu0 %10908 }
 0x924   : > { %16861 = vmatpush3.bf16.msra.mxu1 %v18423_v52  ;;  %v10882_v52 = vpop.permute.xlu1 %10881 }
 0x925   : > { %16862 = vmatprep.subr.bf16.mxu1 %v18424_v24  ;;  %v18445_v24 = vld [vmem:[%s24546_s2 + $0x510] sm:$0xff]  }
 0x926   : > { %v10912_v61 = vpop.permute.xlu0 %10911 }
 0x928   : > { %16863 = vmatpush3.bf16.msra.mxu1 %v18425_v10  ;;  %v18446_v10 = vld [vmem:[%s24546_s2 + $0x548] sm:$0xff]  }
 0x929   : > { %16864 = vmatprep.subr.bf16.mxu1 %v18426_v4  ;;  %v18447_v4 = vld [vmem:[%s24546_s2 + $0x508] sm:$0xff]  }
 0x92a   : > { %v10915_v13 = vpop.permute.xlu0 %10914 }
 0x92c   : > { %16865 = vmatpush3.bf16.msra.mxu1 %v18427_v54  ;;  %v10885_v54 = vpop.permute.xlu1 %10884 }
 0x92d   : > { %16866 = vmatprep.subr.bf16.mxu1 %v18428_v5  ;;  %v18448_v5 = vld [vmem:[%s24546_s2 + $0x540] sm:$0xff]  }
 0x930   : > { %16867 = vmatpush3.bf16.msra.mxu1 %v18429_v39  ;;  %v18450_v39 = vld [vmem:[%s24546_s2 + $0x5f8] sm:$0xff]  }
 0x931   : > { %16868 = vmatprep.subr.bf16.mxu1 %v18430_v18  ;;  %v10888_v18 = vpop.permute.xlu1 %10887 }
 0x934   : > { %16869 = vmatpush3.bf16.msra.mxu1 %v18431_v3  ;;  %v11261_v3 = vsel %vm11096_vm2, %v22958_v11, %v10882_v52  ;;  %v18466_v52 = vld [vmem:[%s24546_s2 + $0x678] sm:$0xff]  }
 0x935   : > { %16870 = vmatprep.subr.bf16.mxu1 %v18432_v15  ;;  %v18451_v15 = vld [vmem:[%s24546_s2 + $0x5b8] sm:$0xff]   ;;  %v11263_v40 = vsel %vm11100_vm3, %v11261_v3, %v10885_v54  ;;  %v18469_v3 = vld [vmem:[%s24546_s2 + $0x630] sm:$0xff]  }
 0x936   : > { %v11265_v20 = vsel %vm11103_vm4, %v11263_v40, %v10888_v18 }
 0x938   : > { %16871 = vmatpush3.bf16.msra.mxu1 %v18433_v31  ;;  %v11285_v31 = vsel %vm11096_vm2, %v22999_v7, %v10909_v44 }
 0x939   : > { %16878 = vmatprep.subr.bf16.mxu1 %v18434_v16  ;;  %v18452_v16 = vld [vmem:[%s24546_s2 + $0x5f0] sm:$0xff]   ;;  %v11287_v11 = vsel %vm11100_vm3, %v11285_v31, %v10912_v61 }
 0x93a   : > { %v11289_v21 = vsel %vm11103_vm4, %v11287_v11, %v10915_v13  ;;  %v18468_v61 = vld [vmem:[%s24546_s2 + $0x670] sm:$0xff]   ;;  %v18470_v13 = vld [vmem:[%s24546_s2 + $0x668] sm:$0xff]   ;;  %v18472_v11 = vld [vmem:[%s24546_s2 + $0x660] sm:$0xff]  }
 0x93b   : > { %v16740_v46 = vpop.f32.mrf.mxu1  ;;  %14667 = vmatmul.mubr.bf16.vlgmr.msra.gmra.mxu1 %v11249_v32 }
 0x93c   : > { %16879 = vmatpush3.bf16.msra.mxu1 %v18435_v37  ;;  %14706 = vmatprep.mubr.bf16.mxu1 %v11273_v0  ;;  %v18453_v37 = vld [vmem:[%s24546_s2 + $0x5b0] sm:$0xff]   ;;  %v18456_v0 = vld [vmem:[%s24546_s2 + $0x5e0] sm:$0xff]  }
 0x93d   : > { %v16741_v17 = vpop.f32.mrf.mxu1  ;;  %16880 = vmatprep.subr.bf16.mxu1 %v18436_v2 }
 0x93e   : > { %v16742_v6 = vadd.f32 %v16741_v17, %v16740_v46  ;;  %v18458_v17 = vld [vmem:[%s24546_s2 + $0x5d8] sm:$0xff]  }
 0x93f   : > { %v16743_v36 = vpop.f32.mrf.mxu1 }
 0x940   : > { %v14429_v43 = vadd.f32 %v16742_v6, %v14389_v63  ;;  %16881 = vmatpush3.bf16.msra.mxu1 %v18437_v23  ;;  %v18444_v63 = vld [vmem:[%s24546_s2 + $0x550] sm:$0xff]   ;;  %v18457_v23 = vld [vmem:[%s24546_s2 + $0x5a0] sm:$0xff]   ;;  %v10900_v36 = vpop.permute.xlu1 %10899 }
 0x941   : > { %v16744_v33 = vpop.f32.mrf.mxu1  ;;  %16882 = vmatprep.subr.bf16.mxu1 %v18438_v25  ;;  %v18459_v25 = vld [vmem:[%s24546_s2 + $0x598] sm:$0xff]   ;;  %v18460_v6 = vld [vmem:[%s24546_s2 + $0x5d0] sm:$0xff]  }
 0x942   : > { %v18462_v33 = vld [vmem:[%s24546_s2 + $0x5c8] sm:$0xff]  }
 0x944   : > { %16883 = vmatpush3.bf16.msra.mxu1 %v18439_v9  ;;  %v18461_v9 = vld [vmem:[%s24546_s2 + $0x590] sm:$0xff]  }
 0x945   : > { %16884 = vmatprep.subr.bf16.mxu1 %v18440_v51  ;;  %v18463_v51 = vld [vmem:[%s24546_s2 + $0x588] sm:$0xff]  }
 0x948   : > { %16885 = vmatpush3.bf16.msra.mxu1 %v18441_v30  ;;  %v10903_v30 = vpop.permute.xlu1 %10902 }
 0x949   : > { %16886 = vmatprep.subr.bf16.mxu1 %v18442_v19  ;;  %v18464_v19 = vld [vmem:[%s24546_s2 + $0x5c0] sm:$0xff]  }
 0x94c   : > { %16887 = vmatpush3.bf16.msra.mxu1 %v18443_v29  ;;  %v10906_v44 = vpop.permute.xlu1 %10905 }
 0x94d   : > { %16888 = vmatprep.subr.bf16.mxu1 %v18444_v63  ;;  %v18465_v63 = vld [vmem:[%s24546_s2 + $0x580] sm:$0xff]  }
 0x950   : > { %16889 = vmatpush3.bf16.msra.mxu1 %v18445_v24  ;;  %v11277_v24 = vsel %vm11096_vm2, %v23012_v48, %v10900_v36 }
 0x951   : > { %16890 = vmatprep.subr.bf16.mxu1 %v18446_v10  ;;  %v11279_v54 = vsel %vm11100_vm3, %v11277_v24, %v10903_v30  ;;  %v18484_v30 = vld [vmem:[%s24546_s2 + $0x6f0] sm:$0xff]  }
 0x954   : > { %16891 = vmatpush3.bf16.msra.mxu1 %v18447_v4  ;;  %v18467_v4 = vld [vmem:[%s24546_s2 + $0x638] sm:$0xff]  }
 0x955   : > { %16892 = vmatprep.subr.bf16.mxu1 %v18448_v5 }
 0x958   : > { %16893 = vmatpush3.bf16.msra.mxu1 %v18449_v55  ;;  %v11281_v55 = vsel %vm11103_vm4, %v11279_v54, %v10906_v44  ;;  %v18486_v44 = vld [vmem:[%s24546_s2 + $0x6e8] sm:$0xff]  }
 0x959   : > { %16900 = vmatprep.subr.bf16.mxu1 %v18450_v39  ;;  %v18487_v54 = vld [vmem:[%s24546_s2 + $0x6a8] sm:$0xff]  }
 0x95b   : > { %v16762_v12 = vpop.f32.mrf.mxu1  ;;  %14707 = vmatmul.mubr.bf16.vlgmr.msra.gmra.mxu1 %v11265_v20 }
 0x95c   : > { %16901 = vmatpush3.bf16.msra.mxu1 %v18451_v15  ;;  %14746 = vmatprep.mubr.bf16.mxu1 %v11289_v21  ;;  %v18474_v21 = vld [vmem:[%s24546_s2 + $0x658] sm:$0xff]  }
 0x95d   : > { %v16763_v7 = vpop.f32.mrf.mxu1  ;;  %16902 = vmatprep.subr.bf16.mxu1 %v18452_v16  ;;  %v18471_v16 = vld [vmem:[%s24546_s2 + $0x628] sm:$0xff]  }
 0x95e   : > { %v16764_v22 = vadd.f32 %v16763_v7, %v16762_v12  ;;  %v18473_v12 = vld [vmem:[%s24546_s2 + $0x620] sm:$0xff]   ;;  %v18476_v7 = vld [vmem:[%s24546_s2 + $0x650] sm:$0xff]  }
 0x95f   : > { %v16765_v2 = vpop.f32.mrf.mxu1 }
 0x960   : > { %v14469_v32 = vadd.f32 %v16764_v22, %v14429_v43  ;;  %16903 = vmatpush3.bf16.msra.mxu1 %v18453_v37  ;;  %v10927_v43 = vpop.permute.xlu0 %10926  ;;  %v18475_v37 = vld [vmem:[%s24546_s2 + $0x618] sm:$0xff]   ;;  %v18477_v2 = vld [vmem:[%s24546_s2 + $0x610] sm:$0xff]  }
 0x961   : > { %v16766_v46 = vpop.f32.mrf.mxu1  ;;  %16904 = vmatprep.subr.bf16.mxu1 %v18454_v58  ;;  %v11301_v5 = vsel %vm11096_vm2, %v23053_v41, %v10927_v43  ;;  %v10918_v58 = vpop.permute.xlu1 %10917 }
 0x962   : > { %v11293_v36 = vsel %vm11096_vm2, %v23066_v28, %v10918_v58  ;;  %v18499_v58 = vld [vmem:[%s24546_s2 + $0x738] sm:$0xff]  }
 0x964   : > { %16905 = vmatpush3.bf16.msra.mxu1 %v18455_v14  ;;  %v10930_v29 = vpop.permute.xlu0 %10929  ;;  %v18479_v14 = vld [vmem:[%s24546_s2 + $0x608] sm:$0xff]  }
 0x965   : > { %16906 = vmatprep.subr.bf16.mxu1 %v18456_v0  ;;  %v11303_v48 = vsel %vm11100_vm3, %v11301_v5, %v10930_v29  ;;  %v10921_v46 = vpop.permute.xlu1 %10920  ;;  %v18480_v0 = vld [vmem:[%s24546_s2 + $0x640] sm:$0xff]  }
 0x968   : > { %16907 = vmatpush3.bf16.msra.mxu1 %v18457_v23  ;;  %v10933_v10 = vpop.permute.xlu0 %10932 }
 0x969   : > { %16908 = vmatprep.subr.bf16.mxu1 %v18458_v17  ;;  %v11305_v18 = vsel %vm11103_vm4, %v11303_v48, %v10933_v10  ;;  %v18481_v17 = vld [vmem:[%s24546_s2 + $0x600] sm:$0xff]   ;;  %v18490_v48 = vld [vmem:[%s24546_s2 + $0x6d8] sm:$0xff]  }
 0x96c   : > { %16909 = vmatpush3.bf16.msra.mxu1 %v18459_v25  ;;  %v10945_v22 = vpop.permute.xlu0 %10944  ;;  %v18482_v25 = vld [vmem:[%s24546_s2 + $0x6f8] sm:$0xff]  }
 0x96d   : > { %16910 = vmatprep.subr.bf16.mxu1 %v18460_v6  ;;  %v10924_v6 = vpop.permute.xlu1 %10923 }
 0x970   : > { %16911 = vmatpush3.bf16.msra.mxu1 %v18461_v9  ;;  %v10948_v23 = vpop.permute.xlu0 %10947  ;;  %v18483_v9 = vld [vmem:[%s24546_s2 + $0x6b8] sm:$0xff]  }
 0x971   : > { %16912 = vmatprep.subr.bf16.mxu1 %v18462_v33  ;;  %v11295_v33 = vsel %vm11100_vm3, %v11293_v36, %v10921_v46 }
 0x974   : > { %16913 = vmatpush3.bf16.msra.mxu1 %v18463_v51  ;;  %v10951_v43 = vpop.permute.xlu0 %10950  ;;  %v11317_v51 = vsel %vm11096_vm2, %v23105_v42, %v10945_v22 }
 0x975   : > { %16914 = vmatprep.subr.bf16.mxu1 %v18464_v19  ;;  %v11297_v19 = vsel %vm11103_vm4, %v11295_v33, %v10924_v6  ;;  %v11319_v28 = vsel %vm11100_vm3, %v11317_v51, %v10948_v23  ;;  %v18501_v23 = vld [vmem:[%s24546_s2 + $0x730] sm:$0xff]   ;;  %v18504_v33 = vld [vmem:[%s24546_s2 + $0x760] sm:$0xff]  }
 0x976   : > { %v18505_v51 = vld [vmem:[%s24546_s2 + $0x720] sm:$0xff]  }
 0x978   : > { %16915 = vmatpush3.bf16.msra.mxu1 %v18465_v63  ;;  %v11321_v63 = vsel %vm11103_vm4, %v11319_v28, %v10951_v43  ;;  %v18503_v43 = vld [vmem:[%s24546_s2 + $0x728] sm:$0xff]   ;;  %v18508_v28 = vld [vmem:[%s24546_s2 + $0x750] sm:$0xff]  }
 0x979   : > { %16922 = vmatprep.subr.bf16.mxu1 %v18466_v52  ;;  %v18485_v52 = vld [vmem:[%s24546_s2 + $0x6b0] sm:$0xff]  }
 0x97b   : > { %v16784_v39 = vpop.f32.mrf.mxu1  ;;  %14747 = vmatmul.mubr.bf16.vlgmr.msra.gmra.mxu1 %v11281_v55  ;;  %v18489_v55 = vld [vmem:[%s24546_s2 + $0x6a0] sm:$0xff]  }
 0x97c   : > { %16923 = vmatpush3.bf16.msra.mxu1 %v18467_v4  ;;  %14786 = vmatprep.mubr.bf16.mxu1 %v11305_v18  ;;  %v18492_v18 = vld [vmem:[%s24546_s2 + $0x6d0] sm:$0xff]  }
 0x97d   : > { %v16785_v41 = vpop.f32.mrf.mxu1  ;;  %16924 = vmatprep.subr.bf16.mxu1 %v18468_v61  ;;  %v18488_v61 = vld [vmem:[%s24546_s2 + $0x6e0] sm:$0xff]  }
 0x97e   : > { %v16786_v15 = vadd.f32 %v16785_v41, %v16784_v39  ;;  %v18491_v39 = vld [vmem:[%s24546_s2 + $0x698] sm:$0xff]   ;;  %v10963_v41 = vpop.permute.xlu0 %10962 }
 0x97f   : > { %v16787_v40 = vpop.f32.mrf.mxu1 }
 0x980   : > { %v14509_v31 = vadd.f32 %v16786_v15, %v14469_v32  ;;  %16925 = vmatpush3.bf16.msra.mxu1 %v18469_v3  ;;  %v18478_v32 = vld [vmem:[%s24546_s2 + $0x648] sm:$0xff]   ;;  %v10936_v3 = vpop.permute.xlu1 %10935 }
 0x981   : > { %v16788_v20 = vpop.f32.mrf.mxu1  ;;  %16926 = vmatprep.subr.bf16.mxu1 %v18470_v13  ;;  %v18493_v13 = vld [vmem:[%s24546_s2 + $0x690] sm:$0xff]   ;;  %v18494_v15 = vld [vmem:[%s24546_s2 + $0x6c8] sm:$0xff]  }
 0x982   : > { %v18495_v40 = vld [vmem:[%s24546_s2 + $0x688] sm:$0xff]   ;;  %v10966_v20 = vpop.permute.xlu0 %10965 }
 0x984   : > { %16927 = vmatpush3.bf16.msra.mxu1 %v18471_v16  ;;  %v18496_v16 = vld [vmem:[%s24546_s2 + $0x6c0] sm:$0xff]  }
 0x985   : > { %16928 = vmatprep.subr.bf16.mxu1 %v18472_v11  ;;  %v18497_v11 = vld [vmem:[%s24546_s2 + $0x680] sm:$0xff]  }
 0x988   : > { %16929 = vmatpush3.bf16.msra.mxu1 %v18473_v12  ;;  %v18498_v12 = vld [vmem:[%s24546_s2 + $0x778] sm:$0xff]  }
 0x989   : > { %16930 = vmatprep.subr.bf16.mxu1 %v18474_v21 }
 0x98c   : > { %16931 = vmatpush3.bf16.msra.mxu1 %v18475_v37  ;;  %v11309_v37 = vsel %vm11096_vm2, %v23121_v1, %v10936_v3 }
 0x98d   : > { %16932 = vmatprep.subr.bf16.mxu1 %v18476_v7  ;;  %v10969_v7 = vpop.permute.xlu0 %10968 }
 0x990   : > { %16933 = vmatpush3.bf16.msra.mxu1 %v18477_v2  ;;  %v11333_v2 = vsel %vm11096_vm2, %v23161_v34, %v10963_v41  ;;  %v18516_v41 = vld [vmem:[%s24546_s2 + $0x7f0] sm:$0xff]  }
 0x991   : > { %16934 = vmatprep.subr.bf16.mxu1 %v18478_v32  ;;  %v18500_v32 = vld [vmem:[%s24546_s2 + $0x770] sm:$0xff]   ;;  %v11335_v1 = vsel %vm11100_vm3, %v11333_v2, %v10966_v20  ;;  %v18523_v2 = vld [vmem:[%s24546_s2 + $0x798] sm:$0xff]  }
 0x994   : > { %16935 = vmatpush3.bf16.msra.mxu1 %v18479_v14 }
 0x995   : > { %16936 = vmatprep.subr.bf16.mxu1 %v18480_v0  ;;  %v11337_v0 = vsel %vm11103_vm4, %v11335_v1, %v10969_v7  ;;  %v18520_v7 = vld [vmem:[%s24546_s2 + $0x7e0] sm:$0xff]  }
 0x998   : > { %16937 = vmatpush3.bf16.msra.mxu1 %v18481_v17  ;;  %v18502_v17 = vld [vmem:[%s24546_s2 + $0x768] sm:$0xff]  }
 0x999   : > { %16944 = vmatprep.subr.bf16.mxu1 %v18482_v25 }
 0x99b   : > { %v16806_v29 = vpop.f32.mrf.mxu1  ;;  %14787 = vmatmul.mubr.bf16.vlgmr.msra.gmra.mxu1 %v11297_v19  ;;  %v18507_v19 = vld [vmem:[%s24546_s2 + $0x718] sm:$0xff]  }
 0x99c   : > { %16945 = vmatpush3.bf16.msra.mxu1 %v18483_v9  ;;  %14826 = vmatprep.mubr.bf16.mxu1 %v11321_v63  ;;  %v10981_v63 = vpop.permute.xlu0 %10980 }
 0x99d   : > { %v16807_v42 = vpop.f32.mrf.mxu1  ;;  %16946 = vmatprep.subr.bf16.mxu1 %v18484_v30  ;;  %v18506_v30 = vld [vmem:[%s24546_s2 + $0x758] sm:$0xff]   ;;  %v11349_v3 = vsel %vm11096_vm2, %v23211_v59, %v10981_v63 }
 0x99e   : > { %v16808_v24 = vadd.f32 %v16807_v42, %v16806_v29  ;;  %v18510_v42 = vld [vmem:[%s24546_s2 + $0x748] sm:$0xff]  }
 0x99f   : > { %v16809_v10 = vpop.f32.mrf.mxu1 }
 0x9a0   : > { %v14549_v4 = vadd.f32 %v16808_v24, %v14509_v31  ;;  %16947 = vmatpush3.bf16.msra.mxu1 %v18485_v52  ;;  %v10939_v31 = vpop.permute.xlu1 %10938  ;;  %v18509_v52 = vld [vmem:[%s24546_s2 + $0x710] sm:$0xff]   ;;  %v18512_v10 = vld [vmem:[%s24546_s2 + $0x740] sm:$0xff]  }
 0x9a1   : > { %v16810_v5 = vpop.f32.mrf.mxu1  ;;  %16948 = vmatprep.subr.bf16.mxu1 %v18486_v44  ;;  %v11311_v22 = vsel %vm11100_vm3, %v11309_v37, %v10939_v31  ;;  %v18511_v44 = vld [vmem:[%s24546_s2 + $0x708] sm:$0xff]   ;;  %v18517_v31 = vld [vmem:[%s24546_s2 + $0x7b0] sm:$0xff]  }
 0x9a2   : > { %v18514_v5 = vld [vmem:[%s24546_s2 + $0x7f8] sm:$0xff]  }
 0x9a4   : > { %16949 = vmatpush3.bf16.msra.mxu1 %v18487_v54  ;;  %v10942_v21 = vpop.permute.xlu1 %10941  ;;  %v18513_v54 = vld [vmem:[%s24546_s2 + $0x700] sm:$0xff]  }
 0x9a5   : > { %16950 = vmatprep.subr.bf16.mxu1 %v18488_v61  ;;  %v11313_v14 = vsel %vm11103_vm4, %v11311_v22, %v10942_v21  ;;  %v18519_v21 = vld [vmem:[%s24546_s2 + $0x7a8] sm:$0xff]   ;;  %v18522_v22 = vld [vmem:[%s24546_s2 + $0x7d8] sm:$0xff]  }
 0x9a8   : > { %16951 = vmatpush3.bf16.msra.mxu1 %v18489_v55  ;;  %v10954_v29 = vpop.permute.xlu1 %10953 }
 0x9a9   : > { %16952 = vmatprep.subr.bf16.mxu1 %v18490_v48  ;;  %v11325_v55 = vsel %vm11096_vm2, %v23174_v45, %v10954_v29 }
 0x9ac   : > { %16953 = vmatpush3.bf16.msra.mxu1 %v18491_v39  ;;  %v10957_v24 = vpop.permute.xlu1 %10956  ;;  %v18515_v39 = vld [vmem:[%s24546_s2 + $0x7b8] sm:$0xff]  }
 0x9ad   : > { %16954 = vmatprep.subr.bf16.mxu1 %v18492_v18  ;;  %v11327_v18 = vsel %vm11100_vm3, %v11325_v55, %v10957_v24  ;;  %v18537_v55 = vld [vmem:[%s24546_s2 + $0x820] sm:$0xff]  }
 0x9b0   : > { %16955 = vmatpush3.bf16.msra.mxu1 %v18493_v13  ;;  %v10960_v61 = vpop.permute.xlu1 %10959 }
 0x9b1   : > { %16956 = vmatprep.subr.bf16.mxu1 %v18494_v15  ;;  %v11329_v13 = vsel %vm11103_vm4, %v11327_v18, %v10960_v61  ;;  %v18536_v61 = vld [vmem:[%s24546_s2 + $0x860] sm:$0xff]   ;;  %v18540_v18 = vld [vmem:[%s24546_s2 + $0x850] sm:$0xff]  }
 0x9b4   : > { %16957 = vmatpush3.bf16.msra.mxu1 %v18495_v40 }
 0x9b5   : > { %16958 = vmatprep.subr.bf16.mxu1 %v18496_v16  ;;  %v18518_v16 = vld [vmem:[%s24546_s2 + $0x7e8] sm:$0xff]  }
 0x9b8   : > { %16959 = vmatpush3.bf16.msra.mxu1 %v18497_v11 }
 0x9b9   : > { %16966 = vmatprep.subr.bf16.mxu1 %v18498_v12 }
 0x9bb   : > { %v16828_v46 = vpop.f32.mrf.mxu1  ;;  %14827 = vmatmul.mubr.bf16.vlgmr.msra.gmra.mxu1 %v11313_v14  ;;  %v10972_v14 = vpop.permute.xlu1 %10971 }
 0x9bc   : > { %16967 = vmatpush3.bf16.msra.mxu1 %v18499_v58  ;;  %14866 = vmatprep.mubr.bf16.mxu1 %v11337_v0  ;;  %v18521_v58 = vld [vmem:[%s24546_s2 + $0x7a0] sm:$0xff]   ;;  %v18526_v0 = vld [vmem:[%s24546_s2 + $0x7c8] sm:$0xff]  }
 0x9bd   : > { %v16829_v34 = vpop.f32.mrf.mxu1  ;;  %16968 = vmatprep.subr.bf16.mxu1 %v18500_v32  ;;  %v18524_v32 = vld [vmem:[%s24546_s2 + $0x7d0] sm:$0xff]  }
 0x9be   : > { %v16830_v25 = vadd.f32 %v16829_v34, %v16828_v46  ;;  %v18525_v46 = vld [vmem:[%s24546_s2 + $0x790] sm:$0xff]  }
 0x9bf   : > { %v16831_v6 = vpop.f32.mrf.mxu1  ;;  %v10975_v34 = vpop.permute.xlu1 %10974 }
 0x9c0   : > { %v14589_v36 = vadd.f32 %v16830_v25, %v14549_v4  ;;  %16969 = vmatpush3.bf16.msra.mxu1 %v18501_v23  ;;  %v10984_v4 = vpop.permute.xlu0 %10983  ;;  %v18527_v23 = vld [vmem:[%s24546_s2 + $0x788] sm:$0xff]   ;;  %v18529_v6 = vld [vmem:[%s24546_s2 + $0x780] sm:$0xff]  }
 0x9c1   : > { %v16832_v9 = vpop.f32.mrf.mxu1  ;;  %16970 = vmatprep.subr.bf16.mxu1 %v18502_v17  ;;  %v11351_v45 = vsel %vm11100_vm3, %v11349_v3, %v10984_v4  ;;  %v18528_v17 = vld [vmem:[%s24546_s2 + $0x7c0] sm:$0xff]  }
 0x9c2   : > { %v11341_v9 = vsel %vm11096_vm2, %v23224_v53, %v10972_v14 }
 0x9c4   : > { %16971 = vmatpush3.bf16.msra.mxu1 %v18503_v43  ;;  %v10987_v48 = vpop.permute.xlu0 %10986  ;;  %v10978_v43 = vpop.permute.xlu1 %10977 }
 0x9c5   : > { %16972 = vmatprep.subr.bf16.mxu1 %v18504_v33  ;;  %v11353_v40 = vsel %vm11103_vm4, %v11351_v45, %v10987_v48  ;;  %v18538_v48 = vld [vmem:[%s24546_s2 + $0x858] sm:$0xff]   ;;  %v18542_v45 = vld [vmem:[%s24546_s2 + $0x848] sm:$0xff]  }
 0x9c8   : > { %16973 = vmatpush3.bf16.msra.mxu1 %v18505_v51  ;;  %v10999_v1 = vpop.permute.xlu0 %10998  ;;  %v18531_v51 = vld [vmem:[%s24546_s2 + $0x838] sm:$0xff]   ;;  %v10990_v3 = vpop.permute.xlu1 %10989 }
 0x9c9   : > { %16974 = vmatprep.subr.bf16.mxu1 %v18506_v30  ;;  %v11343_v30 = vsel %vm11100_vm3, %v11341_v9, %v10975_v34  ;;  %v18555_v9 = vld [vmem:[%s24546_s2 + $0x898] sm:$0xff]  }
 0x9ca   : > { %v11345_v29 = vsel %vm11103_vm4, %v11343_v30, %v10978_v43  ;;  %v18554_v43 = vld [vmem:[%s24546_s2 + $0x8d8] sm:$0xff]  }
 0x9cc   : > { %16975 = vmatpush3.bf16.msra.mxu1 %v18507_v19  ;;  %v11002_v25 = vpop.permute.xlu0 %11001  ;;  %v11365_v19 = vsel %vm11096_vm2, %v23269_v26, %v10999_v1  ;;  %v18549_v1 = vld [vmem:[%s24546_s2 + $0x8b0] sm:$0xff]  }
 0x9cd   : > { %16976 = vmatprep.subr.bf16.mxu1 %v18508_v28  ;;  %v18532_v28 = vld [vmem:[%s24546_s2 + $0x870] sm:$0xff]   ;;  %v11367_v53 = vsel %vm11100_vm3, %v11365_v19, %v11002_v25 }
 0x9ce   : > { %v18557_v19 = vld [vmem:[%s24546_s2 + $0x890] sm:$0xff]  }
 0x9d0   : > { %16977 = vmatpush3.bf16.msra.mxu1 %v18509_v52  ;;  %v11005_v33 = vpop.permute.xlu0 %11004 }
 0x9d1   : > { %16978 = vmatprep.subr.bf16.mxu1 %v18510_v42  ;;  %v11369_v52 = vsel %vm11103_vm4, %v11367_v53, %v11005_v33  ;;  %v18533_v42 = vld [vmem:[%s24546_s2 + $0x830] sm:$0xff]  }
 0x9d2   : > { %v18556_v33 = vld [vmem:[%s24546_s2 + $0x8d0] sm:$0xff]  }
 0x9d4   : > { %16979 = vmatpush3.bf16.msra.mxu1 %v18511_v44  ;;  %v18534_v44 = vld [vmem:[%s24546_s2 + $0x868] sm:$0xff]  }
 0x9d5   : > { %16980 = vmatprep.subr.bf16.mxu1 %v18512_v10 }
 0x9d8   : > { %16981 = vmatpush3.bf16.msra.mxu1 %v18513_v54  ;;  %v18535_v54 = vld [vmem:[%s24546_s2 + $0x828] sm:$0xff]  }
 0x9d9   : > { %16988 = vmatprep.subr.bf16.mxu1 %v18514_v5 }
 0x9db   : > { %v16850_v15 = vpop.f32.mrf.mxu1  ;;  %14867 = vmatmul.mubr.bf16.vlgmr.msra.gmra.mxu1 %v11329_v13  ;;  %v18541_v13 = vld [vmem:[%s24546_s2 + $0x810] sm:$0xff]  }
 0x9dc   : > { %16989 = vmatpush3.bf16.msra.mxu1 %v18515_v39  ;;  %14906 = vmatprep.mubr.bf16.mxu1 %v11353_v40  ;;  %v18539_v39 = vld [vmem:[%s24546_s2 + $0x818] sm:$0xff]   ;;  %v10993_v40 = vpop.permute.xlu1 %10992 }
 0x9dd   : > { %v16851_v59 = vpop.f32.mrf.mxu1  ;;  %16990 = vmatprep.subr.bf16.mxu1 %v18516_v41  ;;  %v11017_v41 = vpop.permute.xlu0 %11016 }
 0x9de   : > { %v16852_v20 = vadd.f32 %v16851_v59, %v16850_v15  ;;  %v18543_v15 = vld [vmem:[%s24546_s2 + $0x808] sm:$0xff]  }
 0x9df   : > { %v16853_v11 = vpop.f32.mrf.mxu1 }
 0x9e0   : > { %v14629_v12 = vadd.f32 %v16852_v20, %v14589_v36  ;;  %16991 = vmatpush3.bf16.msra.mxu1 %v18517_v31  ;;  %v18530_v36 = vld [vmem:[%s24546_s2 + $0x878] sm:$0xff]   ;;  %v18544_v31 = vld [vmem:[%s24546_s2 + $0x840] sm:$0xff]   ;;  %v10996_v11 = vpop.permute.xlu1 %10995 }
 0x9e1   : > { %v16854_v37 = vpop.f32.mrf.mxu1  ;;  %16992 = vmatprep.subr.bf16.mxu1 %v18518_v16  ;;  %v11020_v59 = vpop.permute.xlu0 %11019  ;;  %v18545_v16 = vld [vmem:[%s24546_s2 + $0x800] sm:$0xff]   ;;  %v18546_v20 = vld [vmem:[%s24546_s2 + $0x8f8] sm:$0xff]  }
 0x9e2   : > { %v18547_v37 = vld [vmem:[%s24546_s2 + $0x8b8] sm:$0xff]  }
 0x9e4   : > { %16993 = vmatpush3.bf16.msra.mxu1 %v18519_v21 }
 0x9e5   : > { %16994 = vmatprep.subr.bf16.mxu1 %v18520_v7  ;;  %v11023_v21 = vpop.permute.xlu0 %11022 }
 0x9e8   : > { %16995 = vmatpush3.bf16.msra.mxu1 %v18521_v58  ;;  %v11381_v58 = vsel %vm11096_vm2, %v23319_v27, %v11017_v41 }
 0x9e9   : > { %16996 = vmatprep.subr.bf16.mxu1 %v18522_v22  ;;  %v18548_v22 = vld [vmem:[%s24546_s2 + $0x8f0] sm:$0xff]   ;;  %v11035_v30 = vpop.permute.xlu0 %11034 }
 0x9ec   : > { %16997 = vmatpush3.bf16.msra.mxu1 %v18523_v2 }
 0x9ed   : > { %16998 = vmatprep.subr.bf16.mxu1 %v18524_v32 }
 0x9f0   : > { %16999 = vmatpush3.bf16.msra.mxu1 %v18525_v46  ;;  %v18550_v46 = vld [vmem:[%s24546_s2 + $0x8e8] sm:$0xff]  }
 0x9f1   : > { %17000 = vmatprep.subr.bf16.mxu1 %v18526_v0 }
 0x9f4   : > { %17001 = vmatpush3.bf16.msra.mxu1 %v18527_v23 }
 0x9f5   : > { %17002 = vmatprep.subr.bf16.mxu1 %v18528_v17  ;;  %v18551_v17 = vld [vmem:[%s24546_s2 + $0x8a8] sm:$0xff]  }
 0x9f8   : > { %17003 = vmatpush3.bf16.msra.mxu1 %v18529_v6  ;;  %v18552_v6 = vld [vmem:[%s24546_s2 + $0x8e0] sm:$0xff]  }
 0x9f9   : > { %17010 = vmatprep.subr.bf16.mxu1 %v18530_v36  ;;  %v18553_v36 = vld [vmem:[%s24546_s2 + $0x8a0] sm:$0xff]  }
 0x9fb   : > { %v16872_v63 = vpop.f32.mrf.mxu1  ;;  %14907 = vmatmul.mubr.bf16.vlgmr.msra.gmra.mxu1 %v11345_v29  ;;  %v18559_v29 = vld [vmem:[%s24546_s2 + $0x888] sm:$0xff]  }
 0x9fc   : > { %17011 = vmatpush3.bf16.msra.mxu1 %v18531_v51  ;;  %14946 = vmatprep.mubr.bf16.mxu1 %v11369_v52  ;;  %v11008_v51 = vpop.permute.xlu1 %11007  ;;  %v11038_v52 = vpop.permute.xlu0 %11037 }
 0x9fd   : > { %v16873_v26 = vpop.f32.mrf.mxu1  ;;  %17012 = vmatprep.subr.bf16.mxu1 %v18532_v28  ;;  %v18558_v28 = vld [vmem:[%s24546_s2 + $0x8c8] sm:$0xff]  }
 0x9fe   : > { %v16874_v24 = vadd.f32 %v16873_v26, %v16872_v63  ;;  %v18560_v63 = vld [vmem:[%s24546_s2 + $0x8c0] sm:$0xff]   ;;  %v18562_v26 = vld [vmem:[%s24546_s2 + $0x978] sm:$0xff]  }
 0x9ff   : > { %v16875_v10 = vpop.f32.mrf.mxu1 }
 0xa00   : > { %v14669_v4 = vadd.f32 %v16874_v24, %v14629_v12  ;;  %17013 = vmatpush3.bf16.msra.mxu1 %v18533_v42  ;;  %v11357_v12 = vsel %vm11096_vm2, %v23282_v35, %v10990_v3  ;;  %v11383_v35 = vsel %vm11100_vm3, %v11381_v58, %v11020_v59  ;;  %v11011_v53 = vpop.permute.xlu1 %11010  ;;  %v18561_v42 = vld [vmem:[%s24546_s2 + $0x880] sm:$0xff]   ;;  %v11373_v24 = vsel %vm11096_vm2, %v23332_v62, %v11008_v51  ;;  %v11041_v10 = vpop.permute.xlu0 %11040  ;;  %v18566_v3 = vld [vmem:[%s24546_s2 + $0x968] sm:$0xff]  }
 0xa01   : > { %v16876_v5 = vpop.f32.mrf.mxu1  ;;  %17014 = vmatprep.subr.bf16.mxu1 %v18534_v44  ;;  %v11359_v7 = vsel %vm11100_vm3, %v11357_v12, %v10993_v40  ;;  %v11385_v14 = vsel %vm11103_vm4, %v11383_v35, %v11023_v21  ;;  %v18569_v59 = vld [vmem:[%s24546_s2 + $0x920] sm:$0xff]   ;;  %v18575_v58 = vld [vmem:[%s24546_s2 + $0x908] sm:$0xff]  }
 0xa02   : > { %v11361_v2 = vsel %vm11103_vm4, %v11359_v7, %v10996_v11  ;;  %v11397_v5 = vsel %vm11096_vm2, %v23369_v60, %v11035_v30  ;;  %v18572_v11 = vld [vmem:[%s24546_s2 + $0x950] sm:$0xff]   ;;  %v18574_v7 = vld [vmem:[%s24546_s2 + $0x948] sm:$0xff]  }
 0xa03   : > { %v11399_v62 = vsel %vm11100_vm3, %v11397_v5, %v11038_v52  ;;  %v18587_v52 = vld [vmem:[%s24546_s2 + $0x998] sm:$0xff]   ;;  %v18592_v5 = vld [vmem:[%s24546_s2 + $0x9c0] sm:$0xff]  }
 0xa04   : > { %17015 = vmatpush3.bf16.msra.mxu1 %v18535_v54  ;;  %v11014_v44 = vpop.permute.xlu1 %11013  ;;  %v11375_v54 = vsel %vm11100_vm3, %v11373_v24, %v11011_v53  ;;  %v11053_v21 = vpop.permute.xlu0 %11052  ;;  %v18585_v53 = vld [vmem:[%s24546_s2 + $0x9a0] sm:$0xff]   ;;  %v18589_v24 = vld [vmem:[%s24546_s2 + $0x990] sm:$0xff]  }
 0xa05   : > { %17016 = vmatprep.subr.bf16.mxu1 %v18536_v61  ;;  %v18564_v61 = vld [vmem:[%s24546_s2 + $0x970] sm:$0xff]  }
 0xa08   : > { %17017 = vmatpush3.bf16.msra.mxu1 %v18537_v55  ;;  %v11377_v55 = vsel %vm11103_vm4, %v11375_v54, %v11014_v44  ;;  %v11026_v12 = vpop.permute.xlu1 %11025  ;;  %v11056_v35 = vpop.permute.xlu0 %11055 }
 0xa09   : > { %17018 = vmatprep.subr.bf16.mxu1 %v18538_v48 }
 0xa0c   : > { %17019 = vmatpush3.bf16.msra.mxu1 %v18539_v39  ;;  %v11401_v39 = vsel %vm11103_vm4, %v11399_v62, %v11041_v10  ;;  %v18590_v10 = vld [vmem:[%s24546_s2 + $0x9c8] sm:$0xff]   ;;  %v18594_v62 = vld [vmem:[%s24546_s2 + $0xa78] sm:$0xff]  }
 0xa0d   : > { %17020 = vmatprep.subr.bf16.mxu1 %v18540_v18  ;;  %v18565_v18 = vld [vmem:[%s24546_s2 + $0x930] sm:$0xff]  }
 0xa10   : > { %17021 = vmatpush3.bf16.msra.mxu1 %v18541_v13 }
 0xa11   : > { %17022 = vmatprep.subr.bf16.mxu1 %v18542_v45 }
 0xa14   : > { %17023 = vmatpush3.bf16.msra.mxu1 %v18543_v15  ;;  %v18567_v15 = vld [vmem:[%s24546_s2 + $0x928] sm:$0xff]  }
 0xa15   : > { %17024 = vmatprep.subr.bf16.mxu1 %v18544_v31  ;;  %v18568_v31 = vld [vmem:[%s24546_s2 + $0x960] sm:$0xff]  }
 0xa18   : > { %17025 = vmatpush3.bf16.msra.mxu1 %v18545_v16  ;;  %v18570_v16 = vld [vmem:[%s24546_s2 + $0x958] sm:$0xff]  }
 0xa19   : > { %17032 = vmatprep.subr.bf16.mxu1 %v18546_v20  ;;  %v18571_v20 = vld [vmem:[%s24546_s2 + $0x918] sm:$0xff]  }
 0xa1b   : > { %v16894_v32 = vpop.f32.mrf.mxu1  ;;  %14947 = vmatmul.mubr.bf16.vlgmr.msra.gmra.mxu1 %v11361_v2  ;;  %v18576_v2 = vld [vmem:[%s24546_s2 + $0x940] sm:$0xff]  }
 0xa1c   : > { %17033 = vmatpush3.bf16.msra.mxu1 %v18547_v37  ;;  %14986 = vmatprep.mubr.bf16.mxu1 %v11385_v14  ;;  %v18573_v37 = vld [vmem:[%s24546_s2 + $0x910] sm:$0xff]   ;;  %v18578_v14 = vld [vmem:[%s24546_s2 + $0x9f8] sm:$0xff]  }
 0xa1d   : > { %v16895_v27 = vpop.f32.mrf.mxu1  ;;  %17034 = vmatprep.subr.bf16.mxu1 %v18548_v22  ;;  %v11029_v22 = vpop.permute.xlu1 %11028 }
 0xa1e   : > { %v16896_v0 = vadd.f32 %v16895_v27, %v16894_v32  ;;  %v18577_v32 = vld [vmem:[%s24546_s2 + $0x900] sm:$0xff]   ;;  %v11389_v27 = vsel %vm11096_vm2, %v23382_v8, %v11026_v12  ;;  %v18599_v12 = vld [vmem:[%s24546_s2 + $0xa28] sm:$0xff]  }
 0xa1f   : > { %v16897_v23 = vpop.f32.mrf.mxu1 }
 0xa20   : > { %v14709_v34 = vadd.f32 %v16896_v0, %v14669_v4  ;;  %17035 = vmatpush3.bf16.msra.mxu1 %v18549_v1  ;;  %v18563_v4 = vld [vmem:[%s24546_s2 + $0x938] sm:$0xff]   ;;  %v11391_v23 = vsel %vm11100_vm3, %v11389_v27, %v11029_v22  ;;  %v18607_v27 = vld [vmem:[%s24546_s2 + $0xa08] sm:$0xff]  }
 0xa21   : > { %v16898_v25 = vpop.f32.mrf.mxu1  ;;  %17036 = vmatprep.subr.bf16.mxu1 %v18550_v46  ;;  %v11032_v1 = vpop.permute.xlu1 %11031  ;;  %v18579_v0 = vld [vmem:[%s24546_s2 + $0x9b8] sm:$0xff]  }
 0xa22   : > { %v11059_v46 = vpop.permute.xlu0 %11058  ;;  %v11393_v25 = vsel %vm11103_vm4, %v11391_v23, %v11032_v1  ;;  %v18603_v22 = vld [vmem:[%s24546_s2 + $0xa18] sm:$0xff]   ;;  %v18606_v1 = vld [vmem:[%s24546_s2 + $0xa48] sm:$0xff]  }
 0xa24   : > { %17037 = vmatpush3.bf16.msra.mxu1 %v18551_v17  ;;  %v18580_v17 = vld [vmem:[%s24546_s2 + $0x9f0] sm:$0xff]  }
 0xa25   : > { %17038 = vmatprep.subr.bf16.mxu1 %v18552_v6 }
 0xa26   : > { %v11071_v44 = vpop.permute.xlu0 %11070 }
 0xa28   : > { %17039 = vmatpush3.bf16.msra.mxu1 %v18553_v36 }
 0xa29   : > { %17040 = vmatprep.subr.bf16.mxu1 %v18554_v43  ;;  %v18581_v43 = vld [vmem:[%s24546_s2 + $0x9b0] sm:$0xff]  }
 0xa2c   : > { %17041 = vmatpush3.bf16.msra.mxu1 %v18555_v9  ;;  %v18582_v9 = vld [vmem:[%s24546_s2 + $0x9e8] sm:$0xff]  }
 0xa2d   : > { %17042 = vmatprep.subr.bf16.mxu1 %v18556_v33 }
 0xa30   : > { %17043 = vmatpush3.bf16.msra.mxu1 %v18557_v19  ;;  %v18583_v19 = vld [vmem:[%s24546_s2 + $0x9a8] sm:$0xff]  }
 0xa31   : > { %17044 = vmatprep.subr.bf16.mxu1 %v18558_v28 }
 0xa34   : > { %17045 = vmatpush3.bf16.msra.mxu1 %v18559_v29  ;;  %v18584_v29 = vld [vmem:[%s24546_s2 + $0x9e0] sm:$0xff]  }
 0xa35   : > { %17046 = vmatprep.subr.bf16.mxu1 %v18560_v63  ;;  %v18586_v63 = vld [vmem:[%s24546_s2 + $0x9d8] sm:$0xff]  }
 0xa38   : > { %17047 = vmatpush3.bf16.msra.mxu1 %v18561_v42  ;;  %v18588_v42 = vld [vmem:[%s24546_s2 + $0x9d0] sm:$0xff]  }
 0xa39   : > { %17054 = vmatprep.subr.bf16.mxu1 %v18562_v26  ;;  %v11044_v26 = vpop.permute.xlu1 %11043 }
 0xa3b   : > { %v16916_v48 = vpop.f32.mrf.mxu1  ;;  %14987 = vmatmul.mubr.bf16.vlgmr.msra.gmra.mxu1 %v11377_v55  ;;  %v18593_v55 = vld [vmem:[%s24546_s2 + $0x980] sm:$0xff]  }
 0xa3c   : > { %17055 = vmatpush3.bf16.msra.mxu1 %v18563_v4  ;;  %15026 = vmatprep.mubr.bf16.mxu1 %v11401_v39  ;;  %v18591_v4 = vld [vmem:[%s24546_s2 + $0x988] sm:$0xff]   ;;  %v11405_v39 = vsel %vm11096_vm2, %v23440_v50, %v11044_v26  ;;  %v18616_v26 = vld [vmem:[%s24546_s2 + $0xae0] sm:$0xff]  }
 0xa3d   : > { %v16917_v60 = vpop.f32.mrf.mxu1  ;;  %17056 = vmatprep.subr.bf16.mxu1 %v18564_v61  ;;  %v11047_v54 = vpop.permute.xlu1 %11046 }
 0xa3e   : > { %v16918_v41 = vadd.f32 %v16917_v60, %v16916_v48  ;;  %v11074_v61 = vpop.permute.xlu0 %11073  ;;  %v18595_v60 = vld [vmem:[%s24546_s2 + $0xa38] sm:$0xff]  }
 0xa3f   : > { %v16919_v13 = vpop.f32.mrf.mxu1 }
 0xa40   : > { %v14749_v45 = vadd.f32 %v16918_v41, %v14709_v34  ;;  %17057 = vmatpush3.bf16.msra.mxu1 %v18565_v18  ;;  %v11413_v34 = vsel %vm11096_vm2, %v23427_v49, %v11053_v21  ;;  %v11429_v41 = vsel %vm11096_vm2, %v23477_v57, %v11071_v44  ;;  %v18596_v13 = vld [vmem:[%s24546_s2 + $0xa70] sm:$0xff]   ;;  %v18617_v44 = vld [vmem:[%s24546_s2 + $0xaa0] sm:$0xff]  }
 0xa41   : > { %v16920_v40 = vpop.f32.mrf.mxu1  ;;  %17058 = vmatprep.subr.bf16.mxu1 %v18566_v3  ;;  %v11415_v8 = vsel %vm11100_vm3, %v11413_v34, %v11056_v35  ;;  %v11050_v48 = vpop.permute.xlu1 %11049  ;;  %v11407_v3 = vsel %vm11100_vm3, %v11405_v39, %v11047_v54  ;;  %v11431_v50 = vsel %vm11100_vm3, %v11429_v41, %v11074_v61  ;;  %v18609_v34 = vld [vmem:[%s24546_s2 + $0xa00] sm:$0xff]   ;;  %v18622_v61 = vld [vmem:[%s24546_s2 + $0xac8] sm:$0xff]  }
 0xa42   : > { %v11417_v36 = vsel %vm11103_vm4, %v11415_v8, %v11059_v46  ;;  %v11077_v18 = vpop.permute.xlu0 %11076  ;;  %v18625_v39 = vld [vmem:[%s24546_s2 + $0xa80] sm:$0xff]  }
 0xa43   : > { %v11433_v40 = vsel %vm11103_vm4, %v11431_v50, %v11077_v18 }
 0xa44   : > { %17059 = vmatpush3.bf16.msra.mxu1 %v18567_v15 }
 0xa45   : > { %17060 = vmatprep.subr.bf16.mxu1 %v18568_v31  ;;  %v18597_v31 = vld [vmem:[%s24546_s2 + $0xa30] sm:$0xff]   ;;  %v11062_v35 = vpop.permute.xlu1 %11061 }
 0xa46   : > { %v11421_v8 = vsel %vm11096_vm2, %v23490_v38, %v11062_v35 }
 0xa48   : > { %17061 = vmatpush3.bf16.msra.mxu1 %v18569_v59  ;;  %v18598_v59 = vld [vmem:[%s24546_s2 + $0xa68] sm:$0xff]  }
 0xa49   : > { %17062 = vmatprep.subr.bf16.mxu1 %v18570_v16  ;;  %v11065_v46 = vpop.permute.xlu1 %11064 }
 0xa4c   : > { %17063 = vmatpush3.bf16.msra.mxu1 %v18571_v20 }
 0xa4d   : > { %17064 = vmatprep.subr.bf16.mxu1 %v18572_v11 }
 0xa50   : > { %17065 = vmatpush3.bf16.msra.mxu1 %v18573_v37  ;;  %v18600_v37 = vld [vmem:[%s24546_s2 + $0xa60] sm:$0xff]  }
 0xa51   : > { %17066 = vmatprep.subr.bf16.mxu1 %v18574_v7  ;;  %v18601_v7 = vld [vmem:[%s24546_s2 + $0xa20] sm:$0xff]  }
 0xa54   : > { %17067 = vmatpush3.bf16.msra.mxu1 %v18575_v58  ;;  %v18602_v58 = vld [vmem:[%s24546_s2 + $0xa58] sm:$0xff]  }
 0xa55   : > { %17068 = vmatprep.subr.bf16.mxu1 %v18576_v2  ;;  %v18604_v2 = vld [vmem:[%s24546_s2 + $0xa50] sm:$0xff]  }
 0xa58   : > { %17069 = vmatpush3.bf16.msra.mxu1 %v18577_v32  ;;  %v11089_v32 = vpop.permute.xlu0 %11088 }
 0xa59   : > { %17076 = vmatprep.subr.bf16.mxu1 %v18578_v14  ;;  %v18605_v14 = vld [vmem:[%s24546_s2 + $0xa10] sm:$0xff]  }
 0xa5b   : > { %v16938_v6 = vpop.f32.mrf.mxu1  ;;  %15027 = vmatmul.mubr.bf16.vlgmr.msra.gmra.mxu1 %v11393_v25  ;;  %v11068_v25 = vpop.permute.xlu1 %11067 }
 0xa5c   : > { %17077 = vmatpush3.bf16.msra.mxu1 %v18579_v0  ;;  %15066 = vmatprep.mubr.bf16.mxu1 %v11417_v36  ;;  %v18608_v0 = vld [vmem:[%s24546_s2 + $0xa40] sm:$0xff]   ;;  %v11092_v23 = vpop.permute.xlu0 %11091  ;;  %v18611_v36 = vld [vmem:[%s24546_s2 + $0xab8] sm:$0xff]  }
 0xa5d   : > { %v16939_v49 = vpop.f32.mrf.mxu1  ;;  %17078 = vmatprep.subr.bf16.mxu1 %v18580_v17  ;;  %v18610_v17 = vld [vmem:[%s24546_s2 + $0xaf8] sm:$0xff]  }
 0xa5e   : > { %v16940_v33 = vadd.f32 %v16939_v49, %v16938_v6  ;;  %v11445_v49 = vsel %vm11096_vm2, %v23529_v47, %v11089_v32 }
 0xa5f   : > { %v16941_v51 = vpop.f32.mrf.mxu1  ;;  %v11447_v38 = vsel %vm11100_vm3, %v11445_v49, %v11092_v23  ;;  %v11080_v54 = vpop.permute.xlu1 %11079 }
 0xa60   : > { %v14789_v30 = vadd.f32 %v16940_v33, %v14749_v45  ;;  %17079 = vmatpush3.bf16.msra.mxu1 %v18581_v43  ;;  %v11409_v45 = vsel %vm11103_vm4, %v11407_v3, %v11050_v48  ;;  %v11095_v6 = vpop.permute.xlu0 %11094  ;;  %v11423_v43 = vsel %vm11100_vm3, %v11421_v8, %v11065_v46  ;;  %v18624_v48 = vld [vmem:[%s24546_s2 + $0xac0] sm:$0xff]  }
 0xa61   : > { %v16942_v28 = vpop.f32.mrf.mxu1  ;;  %17080 = vmatprep.subr.bf16.mxu1 %v18582_v9  ;;  %v18612_v9 = vld [vmem:[%s24546_s2 + $0xaf0] sm:$0xff]   ;;  %v11425_v33 = vsel %vm11103_vm4, %v11423_v43, %v11068_v25 }
 0xa62   : > { %v18614_v28 = vld [vmem:[%s24546_s2 + $0xae8] sm:$0xff]  }
 0xa64   : > { %17081 = vmatpush3.bf16.msra.mxu1 %v18583_v19  ;;  %v18613_v19 = vld [vmem:[%s24546_s2 + $0xab0] sm:$0xff]  }
 0xa65   : > { %17082 = vmatprep.subr.bf16.mxu1 %v18584_v29 }
 0xa68   : > { %17083 = vmatpush3.bf16.msra.mxu1 %v18585_v53 }
 0xa69   : > { %17084 = vmatprep.subr.bf16.mxu1 %v18586_v63 }
 0xa6c   : > { %17085 = vmatpush3.bf16.msra.mxu1 %v18587_v52  ;;  %v18615_v52 = vld [vmem:[%s24546_s2 + $0xaa8] sm:$0xff]  }
 0xa6d   : > { %17086 = vmatprep.subr.bf16.mxu1 %v18588_v42 }
 0xa70   : > { %17087 = vmatpush3.bf16.msra.mxu1 %v18589_v24  ;;  %v18618_v24 = vld [vmem:[%s24546_s2 + $0xad8] sm:$0xff]  }
 0xa71   : > { %17088 = vmatprep.subr.bf16.mxu1 %v18590_v10  ;;  %v18619_v10 = vld [vmem:[%s24546_s2 + $0xa98] sm:$0xff]  }
 0xa74   : > { %17089 = vmatpush3.bf16.msra.mxu1 %v18591_v4  ;;  %v18620_v4 = vld [vmem:[%s24546_s2 + $0xad0] sm:$0xff]  }
 0xa75   : > { %17090 = vmatprep.subr.bf16.mxu1 %v18592_v5  ;;  %v18621_v5 = vld [vmem:[%s24546_s2 + $0xa90] sm:$0xff]  }
 0xa78   : > { %17091 = vmatpush3.bf16.msra.mxu1 %v18593_v55  ;;  %v18623_v55 = vld [vmem:[%s24546_s2 + $0xa88] sm:$0xff]  }
 0xa79   : > { %17098 = vmatprep.subr.bf16.mxu1 %v18594_v62  ;;  %v11083_v62 = vpop.permute.xlu1 %11082 }
 0xa7b   : > { %v16960_v15 = vpop.f32.mrf.mxu1  ;;  %15067 = vmatmul.mubr.bf16.vlgmr.msra.gmra.mxu1 %v11409_v45 }
 0xa7c   : > { %17099 = vmatpush3.bf16.msra.mxu1 %v18595_v60  ;;  %15106 = vmatprep.mubr.bf16.mxu1 %v11433_v40  ;;  %v11437_v60 = vsel %vm11096_vm2, %v23545_v56, %v11080_v54 }
 0xa7d   : > { %v16961_v57 = vpop.f32.mrf.mxu1  ;;  %17100 = vmatprep.subr.bf16.mxu1 %v18596_v13  ;;  %v11086_v18 = vpop.permute.xlu1 %11085  ;;  %v11439_v3 = vsel %vm11100_vm3, %v11437_v60, %v11083_v62 }
 0xa7e   : > { %v16962_v16 = vadd.f32 %v16961_v57, %v16960_v15  ;;  %v11441_v41 = vsel %vm11103_vm4, %v11439_v3, %v11086_v18 }
 0xa7f   : > { %v16963_v20 = vpop.f32.mrf.mxu1 }
 0xa80   : > { %v14829_v11 = vadd.f32 %v16962_v16, %v14789_v30  ;;  %17101 = vmatpush3.bf16.msra.mxu1 %v18597_v31  ;;  %v11449_v30 = vsel %vm11103_vm4, %v11447_v38, %v11095_v6 }
 0xa81   : > { %v16964_v21 = vpop.f32.mrf.mxu1  ;;  %17102 = vmatprep.subr.bf16.mxu1 %v18598_v59 }
 0xa84   : > { %17103 = vmatpush3.bf16.msra.mxu1 %v18599_v12 }
 0xa85   : > { %17104 = vmatprep.subr.bf16.mxu1 %v18600_v37 }
 0xa88   : > { %17105 = vmatpush3.bf16.msra.mxu1 %v18601_v7 }
 0xa89   : > { %17106 = vmatprep.subr.bf16.mxu1 %v18602_v58 }
 0xa8c   : > { %17107 = vmatpush3.bf16.msra.mxu1 %v18603_v22 }
 0xa8d   : > { %17108 = vmatprep.subr.bf16.mxu1 %v18604_v2 }
 0xa90   : > { %17109 = vmatpush3.bf16.msra.mxu1 %v18605_v14 }
 0xa91   : > { %17110 = vmatprep.subr.bf16.mxu1 %v18606_v1 }
 0xa94   : > { %17111 = vmatpush3.bf16.msra.mxu1 %v18607_v27 }
 0xa95   : > { %17112 = vmatprep.subr.bf16.mxu1 %v18608_v0 }
 0xa98   : > { %17113 = vmatpush3.bf16.msra.mxu1 %v18609_v34 }
 0xa99   : > { %17120 = vmatprep.subr.bf16.mxu1 %v18610_v17 }
 0xa9b   : > { %v16982_v51 = vpop.f32.mrf.mxu1  ;;  %15107 = vmatmul.mubr.bf16.vlgmr.msra.gmra.mxu1 %v11425_v33 }
 0xa9c   : > { %17121 = vmatpush3.bf16.msra.mxu1 %v18611_v36  ;;  %15146 = vmatprep.mubr.bf16.mxu1 %v11449_v30 }
 0xa9d   : > { %v16983_v47 = vpop.f32.mrf.mxu1  ;;  %17122 = vmatprep.subr.bf16.mxu1 %v18612_v9 }
 0xa9e   : > { %v16984_v29 = vadd.f32 %v16983_v47, %v16982_v51 }
 0xa9f   : > { %v16985_v53 = vpop.f32.mrf.mxu1 }
 0xaa0   : > { %v14869_v63 = vadd.f32 %v16984_v29, %v14829_v11  ;;  %17123 = vmatpush3.bf16.msra.mxu1 %v18613_v19 }
 0xaa1   : > { %v16986_v42 = vpop.f32.mrf.mxu1  ;;  %17124 = vmatprep.subr.bf16.mxu1 %v18614_v28 }
 0xaa4   : > { %17125 = vmatpush3.bf16.msra.mxu1 %v18615_v52 }
 0xaa5   : > { %17126 = vmatprep.subr.bf16.mxu1 %v18616_v26 }
 0xaa8   : > { %17127 = vmatpush3.bf16.msra.mxu1 %v18617_v44 }
 0xaa9   : > { %17128 = vmatprep.subr.bf16.mxu1 %v18618_v24 }
 0xaac   : > { %17129 = vmatpush3.bf16.msra.mxu1 %v18619_v10 }
 0xaad   : > { %17130 = vmatprep.subr.bf16.mxu1 %v18620_v4 }
 0xab0   : > { %17131 = vmatpush3.bf16.msra.mxu1 %v18621_v5 }
 0xab1   : > { %17132 = vmatprep.subr.bf16.mxu1 %v18622_v61 }
 0xab4   : > { %17133 = vmatpush3.bf16.msra.mxu1 %v18623_v55 }
 0xab5   : > { %17134 = vmatprep.subr.bf16.mxu1 %v18624_v48 }
 0xab8   : > { %17135 = vmatpush3.bf16.msra.mxu1 %v18625_v39 }
 0xabb   : > { %v17004_v13 = vpop.f32.mrf.mxu1  ;;  %15147 = vmatmul.mubr.bf16.vlgmr.msra.gmra.mxu1 %v11441_v41 }
 0xabd   : > { %v17005_v45 = vpop.f32.mrf.mxu1 }
 0xabe   : > { %v17006_v50 = vadd.f32 %v17005_v45, %v17004_v13 }
 0xabf   : > { %v17007_v15 = vpop.f32.mrf.mxu1 }
 0xac0   : > { %v14909_v40 = vadd.f32 %v17006_v50, %v14869_v63 }
 0xac1   : > { %v17008_v31 = vpop.f32.mrf.mxu1 }
 0xadb   : > { %v17026_v57 = vpop.f32.mrf.mxu1 }
 0xadd   : > { %v17027_v59 = vpop.f32.mrf.mxu1 }
 0xade   : > { %v17028_v16 = vadd.f32 %v17027_v59, %v17026_v57 }
 0xadf   : > { %v17029_v20 = vpop.f32.mrf.mxu1 }
 0xae0   : > { %v14949_v11 = vadd.f32 %v17028_v16, %v14909_v40 }
 0xae1   : > { %v17030_v12 = vpop.f32.mrf.mxu1 }
 0xafb   : > { %v17048_v21 = vpop.f32.mrf.mxu1 }
 0xafd   : > { %v17049_v56 = vpop.f32.mrf.mxu1 }
 0xafe   : > { %v17050_v37 = vadd.f32 %v17049_v56, %v17048_v21 }
 0xaff   : > { %v17051_v7 = vpop.f32.mrf.mxu1 }
 0xb00   : > { %v14989_v58 = vadd.f32 %v17050_v37, %v14949_v11 }
 0xb01   : > { %v17052_v22 = vpop.f32.mrf.mxu1 }
 0xb1b   : > { %v17070_v2 = vpop.f32.mrf.mxu1 }
 0xb1d   : > { %v17071_v35 = vpop.f32.mrf.mxu1 }
 0xb1e   : > { %v17072_v32 = vadd.f32 %v17071_v35, %v17070_v2 }
 0xb1f   : > { %v17073_v14 = vpop.f32.mrf.mxu1 }
 0xb20   : > { %v15029_v1 = vadd.f32 %v17072_v32, %v14989_v58 }
 0xb21   : > { %v17074_v27 = vpop.f32.mrf.mxu1 }
 0xb3b   : > { %v17092_v46 = vpop.f32.mrf.mxu1 }
 0xb3d   : > { %v17093_v0 = vpop.f32.mrf.mxu1 }
 0xb3e   : > { %v17094_v36 = vadd.f32 %v17093_v0, %v17092_v46 }
 0xb3f   : > { %v17095_v23 = vpop.f32.mrf.mxu1 }
 0xb40   : > { %v15069_v9 = vadd.f32 %v17094_v36, %v15029_v1 }
 0xb41   : > { %v17096_v34 = vpop.f32.mrf.mxu1 }
 0xb5b   : > { %v17114_v17 = vpop.f32.mrf.mxu1 }
 0xb5d   : > { %v17115_v25 = vpop.f32.mrf.mxu1 }
 0xb5e   : > { %v17116_v43 = vadd.f32 %v17115_v25, %v17114_v17 }
 0xb5f   : > { %v17117_v8 = vpop.f32.mrf.mxu1 }
 0xb60   : > { %v15109_v38 = vadd.f32 %v17116_v43, %v15069_v9 }
 0xb61   : > { %v17118_v6 = vpop.f32.mrf.mxu1 }
 0xb7b   : > { %v17136_v49 = vpop.f32.mrf.mxu1 }
 0xb7d   : > { %v17137_v33 = vpop.f32.mrf.mxu1 }
 0xb7e   : > { %v17138_v51 = vadd.f32 %v17137_v33, %v17136_v49 }
 0xb7f   : > { %v17139_v30 = vpop.f32.mrf.mxu1 }
 0xb80   : > { %v15149_v19 = vadd.f32 %v17138_v51, %v15109_v38 }
 0xb81   : > { %v17140_v47 = vpop.f32.mrf.mxu1 }
 0xb82   : > { %15154 = vst [vmem:[%s193_s13] sm:$0xff] %v15149_v19 }
 0xb83   : > { %18639 = shalt.err (!%p18636_p3)
}
 0xb84   : > { %s18640_s12 = scalar_lea.hbm %s24509_s6, 128  ;;  %s18644_s20 = scalar_lea.hbm %s24548_s4, 256 }
 0xb85   : > { %p18641_p4 = scmp.ne.s32.totalorder %s24509_s6, %s18640_s12  ;;  %p18645_p9 = scmp.lt.s32.totalorder %s24509_s6, %s24548_s4 }
 0xb86   : > { %p18646_p10 = scmp.lt.s32.totalorder %s18644_s20, %s18640_s12 }
 0xb87   : > { %p18642_p7 = pnand %p18641_p4, %p18758_p5 }
 0xb88   : > { %p18647_p11 = por %p18646_p10, %p18645_p9 }
 0xb89   : > { %p18643_p8 = pneg %p18642_p7 }
 0xb8b   : > { %p18648_p12 = pnand %p18647_p11, %p18643_p8 }
 0xb8d   : > { %18651 = shalt.err (!%p18648_p12)
}
 0xb8e   : > { %17163 = dma.vmem_to_hbm [thread:$0]  (%p18758_p5), %s15170_s29, 128, %s24509_s6, %s15156_s10  }
 0xb8f PF: > { %p17169_p13 = scmp.ge.s32.totalorder %s18686_s18, 2  ;;  %s15181_s27 = sand.u32 1, %s18674_s15  }
 0xb90   : > { %s15182_s28 = scalar_lea.sflag [#allocation3], %s15181_s27 }
 0xb91   : > { %p17166_p0 = pnand %p17169_p13, %p18762_p6 }
 0xb93   : > { %p17167_p1 = pneg %p17166_p0 }
 0xb95   : > { %18669 = dma.done.wait (%p17167_p1), %s15182_s28, 128  }
 0xb96   : > { %18671 = vsyncadd (%p17167_p1), %s15182_s28, 4294967168  ;;  %p14_p2 = scmp.ge.s32.totalorder %s18745_s21, 4   ;;  %s25709_s15 = smov %s18678_s16 }
 0xb97   : > { %s25710_s16 = smov %s18682_s17  ;;  %s25711_s17 = smov %s18756_s24 }
 0xb98   : > { %s25712_s18 = smov %s18745_s21  ;;  %16 = sbr.rel (!%p14_p2) target bundleno = 3 (0x3), region = 71 }
 0xb9d   :  { %15187 = vsyncpa [#allocation3], 1 }
 0xb9e   :  { %15189 = vsyncpa [#allocation3 + $0x1], 1 }

</bundles_post_ra>
